<compile_context>
chip_gen: v7x
topology: tpu7x:2x2x1
jax: 0.10.0
libtpu: 0.0.40
codegen_flags: <defaults>
</compile_context>

<pallas_src>
import functools

import jax
import jax.numpy as jnp
from jax import lax
from jax.experimental import pallas as pl
from jax.experimental.pallas import tpu as pltpu


NEG_SLOPE = 0.2
BN_EPS = 1e-5

CONV_CFG = [  # (Cin, Cout, stride) for the 8 Conv3d layers
    (1, 64, 1), (64, 64, 2), (64, 128, 1), (128, 128, 2),
    (128, 256, 1), (256, 256, 2), (256, 512, 1), (512, 512, 2),
]


def _row_tile(m, cap=1024):
    """Pick a row tile (tm) and padded row count (mp) for an (M, C) slab."""
    if m <= cap:
        return m, m                               # single full block, no pad
    for t in (1024, 512, 256, 128, 64, 32, 16, 8):
        if m % t == 0:
            return t, m
    mp = ((m + 127) // 128) * 128                 # rare fallback: pad rows
    return 128, mp


# ---------------------------------------------------------------------------
# Pallas kernel 1: fused per-channel bias + LeakyReLU(0.2) + bf16 downcast
#   o = leaky_relu(y + offset)      (BN scale already folded into conv w)
# ---------------------------------------------------------------------------
def _bias_act_kernel(y_ref, offset_ref, o_ref, *, negative_slope):
    t = y_ref[...] + offset_ref[...]
    o_ref[...] = jnp.maximum(t, negative_slope * t).astype(o_ref.dtype)


def fused_bias_leaky_relu(y, offset, *, negative_slope=NEG_SLOPE,
                          out_dtype=jnp.bfloat16):
    """y: (M, C) f32; offset: (C,) f32.  Returns (M, C) bf16."""
    m, c = y.shape
    orig_m, orig_c = m, c

    # Lane-dense trick: fold rows into lanes when C < 128 (e.g. C = 64).
    fold = 1
    if c < 128 and 128 % c == 0 and m % (128 // c) == 0:
        fold = 128 // c
        y = y.reshape(m // fold, c * fold)
        offset = jnp.tile(offset, fold)
        m, c = y.shape

    tm, mp = _row_tile(m)
    if mp != m:
        y = jnp.pad(y, ((0, mp - m), (0, 0)))
    offset2 = offset.reshape(1, c).astype(jnp.float32)

    kernel = functools.partial(_bias_act_kernel, negative_slope=negative_slope)
    out = pl.pallas_call(
        kernel,
        out_shape=jax.ShapeDtypeStruct((mp, c), out_dtype),
        grid_spec=pltpu.PrefetchScalarGridSpec(
            num_scalar_prefetch=0,
            grid=(mp // tm,),
            in_specs=[
                pl.BlockSpec((tm, c), lambda i: (i, 0)),
                pl.BlockSpec((1, c), lambda i: (0, 0)),
            ],
            out_specs=pl.BlockSpec((tm, c), lambda i: (i, 0)),
        ),
        compiler_params=pltpu.CompilerParams(
            dimension_semantics=("parallel",)),
    )(y.astype(jnp.float32), offset2)

    if mp != m:
        out = out[:m]
    if fold != 1:
        out = out.reshape(orig_m, orig_c)
    return out


# ---------------------------------------------------------------------------
# Pallas kernel 2: fused classifier
#   h1  = leaky_relu(x @ W1 + b1)          (accumulated in VMEM, never to HBM)
#   out = h1 @ W2 + b2                     (W2 padded 4 -> 128 lanes)
# ---------------------------------------------------------------------------
def _classifier_kernel(x_ref, w1_ref, b1_ref, w2_ref, b2_ref, o_ref, acc_ref,
                       *, negative_slope):
    k = pl.program_id(1)

    @pl.when(k == 0)
    def _():
        acc_ref[...] = jnp.zeros_like(acc_ref)

    acc_ref[...] += jnp.dot(x_ref[...], w1_ref[...],
                            preferred_element_type=jnp.float32)

    @pl.when(k == pl.num_programs(1) - 1)
    def _():
        h = acc_ref[...] + b1_ref[...]
        h = jnp.maximum(h, negative_slope * h)
        o_ref[...] = jnp.dot(h.astype(w2_ref.dtype), w2_ref[...],
                             preferred_element_type=jnp.float32) + b2_ref[...]


def fused_classifier(x, w1, b1, w2, b2, *, negative_slope=NEG_SLOPE,
                     max_tm=256, max_tk=1024, n2_pad=128):
    """Fused (x @ W1 + b1) -> LeakyReLU -> (@ W2 + b2).  Returns (M, N2) f32."""
    m, k = x.shape
    k1, n1 = w1.shape
    n1b, n2 = w2.shape
    assert k == k1 and n1 == n1b

    # ---- pad-free tiles whenever shapes allow it --------------------------
    if m <= max_tm:
        tm, mp = m, m
    else:
        tm = next((t for t in (256, 128) if m % t == 0), None)
        mp = m if tm is not None else ((m + 127) // 128) * 128
        tm = tm if tm is not None else 128
    if k <= max_tk:
        tk, kp = k, k
    else:
        tk = next((t for t in (1024, 512, 256, 128) if k % t == 0), None)
        kp = k if tk is not None else ((k + 127) // 128) * 128
        tk = tk if tk is not None else 128

    xb = x.astype(jnp.bfloat16)
    w1b = w1.astype(jnp.bfloat16)
    if mp != m or kp != k:
        xb = jnp.pad(xb, ((0, mp - m), (0, kp - k)))
    if kp != k:
        w1b = jnp.pad(w1b, ((0, kp - k), (0, 0)))

    n2p = max(n2, n2_pad)
    w2b = jnp.pad(w2, ((0, 0), (0, n2p - n2))).astype(jnp.bfloat16)
    b1_2 = b1.reshape(1, n1).astype(jnp.float32)
    b2_2 = jnp.pad(b2, ((0, n2p - n2),)).reshape(1, n2p).astype(jnp.float32)

    kernel = functools.partial(_classifier_kernel,
                               negative_slope=negative_slope)
    out = pl.pallas_call(
        kernel,
        out_shape=jax.ShapeDtypeStruct((mp, n2p), jnp.float32),
        grid_spec=pltpu.PrefetchScalarGridSpec(
            num_scalar_prefetch=0,
            grid=(mp // tm, kp // tk),
            in_specs=[
                pl.BlockSpec((tm, tk), lambda i, kk: (i, kk)),
                pl.BlockSpec((tk, n1), lambda i, kk: (kk, 0)),
                pl.BlockSpec((1, n1), lambda i, kk: (0, 0)),
                pl.BlockSpec((n1, n2p), lambda i, kk: (0, 0)),
                pl.BlockSpec((1, n2p), lambda i, kk: (0, 0)),
            ],
            out_specs=pl.BlockSpec((tm, n2p), lambda i, kk: (i, 0)),
            scratch_shapes=[pltpu.VMEM((tm, n1), jnp.float32)],
        ),
        compiler_params=pltpu.CompilerParams(
            dimension_semantics=("parallel", "arbitrary")),
    )(xb, w1b, b1_2, w2b, b2_2)
    return out[:m, :n2]


# ---------------------------------------------------------------------------
# Deterministic parameter construction (shapes per the PyTorch __init__).
# Conv weights are stored DHWIO with the BatchNorm scale pre-folded into them,
# linear weights are pre-transposed -> zero per-forward weight reshaping.
# ---------------------------------------------------------------------------
def make_params(key, classifier_in_features):
    params = {"convs": []}
    for (cin, cout, _stride) in CONV_CFG:
        key, kw, kb, kg, kbe, km, kv = jax.random.split(key, 7)
        fan_in = cin * 27
        w = jax.random.normal(kw, (3, 3, 3, cin, cout), jnp.float32) \
            / jnp.sqrt(fan_in)
        bias = 0.1 * jax.random.normal(kb, (cout,), jnp.float32)
        gamma = 1.0 + 0.1 * jax.random.normal(kg, (cout,), jnp.float32)
        beta = 0.1 * jax.random.normal(kbe, (cout,), jnp.float32)
        mean = 0.1 * jax.random.normal(km, (cout,), jnp.float32)
        var = 1.0 + 0.1 * jax.random.uniform(kv, (cout,), jnp.float32)
        # Fold inference BatchNorm into the conv weight (scale) and a
        # per-channel offset (bias - mean folded + beta).
        scale = gamma / jnp.sqrt(var + BN_EPS)
        w_folded = w * scale.reshape(1, 1, 1, 1, cout)
        offset = (bias - mean) * scale + beta
        params["convs"].append(
            dict(w=w_folded.astype(jnp.bfloat16), offset=offset))

    key, k1, k1b, k2, k2b = jax.random.split(key, 5)
    # NOTE: the original module hard-codes in_features=212992 (its design-time
    # input volume); here it is derived from the test shape so the forward
    # stays shape-consistent end to end.
    params["lin1"] = dict(
        w=jax.random.normal(k1, (classifier_in_features, 1024), jnp.float32)
          / jnp.sqrt(classifier_in_features),
        b=0.1 * jax.random.normal(k1b, (1024,), jnp.float32))
    params["lin2"] = dict(
        w=jax.random.normal(k2, (1024, 4), jnp.float32) / jnp.sqrt(1024.0),
        b=0.1 * jax.random.normal(k2b, (4,), jnp.float32))
    return params


# ---------------------------------------------------------------------------
# Forward pass (jitted; activations stay channels-last NDHWC throughout)
# ---------------------------------------------------------------------------
@jax.jit
def risley_speeds_forward(x, params):
    # x: (N, D, H, W) -> add channel dim (equivalent to torch.unsqueeze(x, 1),
    # but channels-last).  bf16 activations feed the MXU; f32 accumulation.
    h = x[..., None].astype(jnp.bfloat16)            # (N, D, H, W, 1)
    for (_cin, _cout, stride), p in zip(CONV_CFG, params["convs"]):
        y = lax.conv_general_dilated(
            h, p["w"],
            window_strides=(stride,) * 3,
            padding=[(1, 1)] * 3,
            dimension_numbers=("NDHWC", "DHWIO", "NDHWC"),
            preferred_element_type=jnp.float32)      # (N, Do, Ho, Wo, Cout) f32
        n, do, ho, wo, c = y.shape
        h = fused_bias_leaky_relu(y.reshape(n * do * ho * wo, c), p["offset"])
        h = h.reshape(n, do, ho, wo, c)              # bf16, NDHWC

    n = h.shape[0]
    # Flatten order here is (D, H, W, C) instead of torch's (C, D, H, W); with
    # in-script weights this is an equivalent feature permutation (and exactly
    # identical for this test shape, whose final spatial volume is 1x1x1).
    flat = h.reshape(n, -1)

    out = fused_classifier(flat,
                           params["lin1"]["w"], params["lin1"]["b"],
                           params["lin2"]["w"], params["lin2"]["b"])
    return out  # (N, 4) f32


# ---------------------------------------------------------------------------
if __name__ == "__main__":
    key = jax.random.PRNGKey(0)
    kx, kp = jax.random.split(key)

    # Small input consistent with the module: (N, D, H, W); after the four
    # stride-2 stages the feature volume is (512, 1, 1, 1) -> in_features 512.
    N, D, H, W = 2, 8, 16, 16
    x = jax.random.normal(kx, (N, D, H, W), jnp.float32)

    d_f, h_f, w_f = -(-D // 16), -(-H // 16), -(-W // 16)
    in_features = 512 * d_f * h_f * w_f

    params = make_params(kp, in_features)

    out = risley_speeds_forward(x, params)
    out = jax.block_until_ready(out)
    assert out.shape == (N, 4) and out.dtype == jnp.float32
    print("KERNEL_OK")
</pallas_src>

<mosaic_0001>
module attributes {stable_mosaic.version = 11 : i64} {
  func.func @_bias_act_kernel(%arg0: i32, %arg1: memref<1024x128xf32, #tpu.memory_space<vmem>>, %arg2: memref<1x128xf32, #tpu.memory_space<vmem>>, %arg3: memref<1024x128xbf16, #tpu.memory_space<vmem>>) attributes {dimension_semantics = [#tpu.dimension_semantics<parallel>], iteration_bounds = array<i64: 2>, scalar_prefetch = 0 : i64, scratch_operands = 0 : i64, tpu.core_type = #tpu.core_type<tc>, window_params = [{transform_indices = @transform_0, window_bounds = array<i64: 1024, 128>}, {pipeline_mode = #tpu.pipeline_mode<synchronous>, transform_indices = @transform_1, window_bounds = array<i64: 1, 128>}, {transform_indices = @transform_2, window_bounds = array<i64: 1024, 128>}]} {
    %c0 = arith.constant 0 : index
    %c0_0 = arith.constant 0 : index
    %0 = vector.load %arg1[%c0, %c0_0] : memref<1024x128xf32, #tpu.memory_space<vmem>>, vector<1024x128xf32>
    %c0_1 = arith.constant 0 : index
    %c0_2 = arith.constant 0 : index
    %1 = vector.load %arg2[%c0_1, %c0_2] : memref<1x128xf32, #tpu.memory_space<vmem>>, vector<1x128xf32>
    %2 = vector.broadcast %1 : vector<1x128xf32> to vector<1024x128xf32>
    %3 = arith.addf %0, %2 : vector<1024x128xf32>
    %cst = arith.constant 2.000000e-01 : f32
    %4 = vector.broadcast %cst : f32 to vector<1024x128xf32>
    %5 = arith.mulf %4, %3 : vector<1024x128xf32>
    %6 = arith.maximumf %3, %5 : vector<1024x128xf32>
    %7 = arith.truncf %6 : vector<1024x128xf32> to vector<1024x128xbf16>
    %c0_3 = arith.constant 0 : index
    %c0_4 = arith.constant 0 : index
    %8 = vector.load %arg3[%c0_3, %c0_4] : memref<1024x128xbf16, #tpu.memory_space<vmem>>, vector<1024x128xbf16>
    tpu.vector_store %arg3[%c0_3, %c0_4], %7 {strides = array<i32>} : memref<1024x128xbf16, #tpu.memory_space<vmem>>, vector<1024x128xbf16>,
    return
  }
  func.func @transform_0(%arg0: i32) -> (i32, i32) {
    %c0_i32 = arith.constant 0 : i32
    %c0_i32_0 = arith.constant 0 : i32
    return %arg0, %c0_i32 : i32, i32
  }
  func.func @transform_1(%arg0: i32) -> (i32, i32) {
    %c0_i32 = arith.constant 0 : i32
    %c0_i32_0 = arith.constant 0 : i32
    %c0_i32_1 = arith.constant 0 : i32
    return %c0_i32, %c0_i32_0 : i32, i32
  }
  func.func @transform_2(%arg0: i32) -> (i32, i32) {
    %c0_i32 = arith.constant 0 : i32
    %c0_i32_0 = arith.constant 0 : i32
    return %arg0, %c0_i32 : i32, i32
  }
}

module attributes {stable_mosaic.version = 11 : i64} {
  func.func @_bias_act_kernel(%arg0: i32, %arg1: memref<256x128xf32, #tpu.memory_space<vmem>>, %arg2: memref<1x128xf32, #tpu.memory_space<vmem>>, %arg3: memref<256x128xbf16, #tpu.memory_space<vmem>>) attributes {dimension_semantics = [#tpu.dimension_semantics<parallel>], iteration_bounds = array<i64: 1>, scalar_prefetch = 0 : i64, scratch_operands = 0 : i64, tpu.core_type = #tpu.core_type<tc>, window_params = [{transform_indices = @transform_0, window_bounds = array<i64: 256, 128>}, {pipeline_mode = #tpu.pipeline_mode<synchronous>, transform_indices = @transform_1, window_bounds = array<i64: 1, 128>}, {transform_indices = @transform_2, window_bounds = array<i64: 256, 128>}]} {
    %c0 = arith.constant 0 : index
    %c0_0 = arith.constant 0 : index
    %0 = vector.load %arg1[%c0, %c0_0] : memref<256x128xf32, #tpu.memory_space<vmem>>, vector<256x128xf32>
    %c0_1 = arith.constant 0 : index
    %c0_2 = arith.constant 0 : index
    %1 = vector.load %arg2[%c0_1, %c0_2] : memref<1x128xf32, #tpu.memory_space<vmem>>, vector<1x128xf32>
    %2 = vector.broadcast %1 : vector<1x128xf32> to vector<256x128xf32>
    %3 = arith.addf %0, %2 : vector<256x128xf32>
    %cst = arith.constant 2.000000e-01 : f32
    %4 = vector.broadcast %cst : f32 to vector<256x128xf32>
    %5 = arith.mulf %4, %3 : vector<256x128xf32>
    %6 = arith.maximumf %3, %5 : vector<256x128xf32>
    %7 = arith.truncf %6 : vector<256x128xf32> to vector<256x128xbf16>
    %c0_3 = arith.constant 0 : index
    %c0_4 = arith.constant 0 : index
    %8 = vector.load %arg3[%c0_3, %c0_4] : memref<256x128xbf16, #tpu.memory_space<vmem>>, vector<256x128xbf16>
    tpu.vector_store %arg3[%c0_3, %c0_4], %7 {strides = array<i32>} : memref<256x128xbf16, #tpu.memory_space<vmem>>, vector<256x128xbf16>,
    return
  }
  func.func @transform_0(%arg0: i32) -> (i32, i32) {
    %c0_i32 = arith.constant 0 : i32
    %c0_i32_0 = arith.constant 0 : i32
    return %arg0, %c0_i32 : i32, i32
  }
  func.func @transform_1(%arg0: i32) -> (i32, i32) {
    %c0_i32 = arith.constant 0 : i32
    %c0_i32_0 = arith.constant 0 : i32
    %c0_i32_1 = arith.constant 0 : i32
    return %c0_i32, %c0_i32_0 : i32, i32
  }
  func.func @transform_2(%arg0: i32) -> (i32, i32) {
    %c0_i32 = arith.constant 0 : i32
    %c0_i32_0 = arith.constant 0 : i32
    return %arg0, %c0_i32 : i32, i32
  }
}

module attributes {stable_mosaic.version = 11 : i64} {
  func.func @_bias_act_kernel(%arg0: i32, %arg1: memref<512x128xf32, #tpu.memory_space<vmem>>, %arg2: memref<1x128xf32, #tpu.memory_space<vmem>>, %arg3: memref<512x128xbf16, #tpu.memory_space<vmem>>) attributes {dimension_semantics = [#tpu.dimension_semantics<parallel>], iteration_bounds = array<i64: 1>, scalar_prefetch = 0 : i64, scratch_operands = 0 : i64, tpu.core_type = #tpu.core_type<tc>, window_params = [{transform_indices = @transform_0, window_bounds = array<i64: 512, 128>}, {pipeline_mode = #tpu.pipeline_mode<synchronous>, transform_indices = @transform_1, window_bounds = array<i64: 1, 128>}, {transform_indices = @transform_2, window_bounds = array<i64: 512, 128>}]} {
    %c0 = arith.constant 0 : index
    %c0_0 = arith.constant 0 : index
    %0 = vector.load %arg1[%c0, %c0_0] : memref<512x128xf32, #tpu.memory_space<vmem>>, vector<512x128xf32>
    %c0_1 = arith.constant 0 : index
    %c0_2 = arith.constant 0 : index
    %1 = vector.load %arg2[%c0_1, %c0_2] : memref<1x128xf32, #tpu.memory_space<vmem>>, vector<1x128xf32>
    %2 = vector.broadcast %1 : vector<1x128xf32> to vector<512x128xf32>
    %3 = arith.addf %0, %2 : vector<512x128xf32>
    %cst = arith.constant 2.000000e-01 : f32
    %4 = vector.broadcast %cst : f32 to vector<512x128xf32>
    %5 = arith.mulf %4, %3 : vector<512x128xf32>
    %6 = arith.maximumf %3, %5 : vector<512x128xf32>
    %7 = arith.truncf %6 : vector<512x128xf32> to vector<512x128xbf16>
    %c0_3 = arith.constant 0 : index
    %c0_4 = arith.constant 0 : index
    %8 = vector.load %arg3[%c0_3, %c0_4] : memref<512x128xbf16, #tpu.memory_space<vmem>>, vector<512x128xbf16>
    tpu.vector_store %arg3[%c0_3, %c0_4], %7 {strides = array<i32>} : memref<512x128xbf16, #tpu.memory_space<vmem>>, vector<512x128xbf16>,
    return
  }
  func.func @transform_0(%arg0: i32) -> (i32, i32) {
    %c0_i32 = arith.constant 0 : i32
    %c0_i32_0 = arith.constant 0 : i32
    return %arg0, %c0_i32 : i32, i32
  }
  func.func @transform_1(%arg0: i32) -> (i32, i32) {
    %c0_i32 = arith.constant 0 : i32
    %c0_i32_0 = arith.constant 0 : i32
    %c0_i32_1 = arith.constant 0 : i32
    return %c0_i32, %c0_i32_0 : i32, i32
  }
  func.func @transform_2(%arg0: i32) -> (i32, i32) {
    %c0_i32 = arith.constant 0 : i32
    %c0_i32_0 = arith.constant 0 : i32
    return %arg0, %c0_i32 : i32, i32
  }
}

module attributes {stable_mosaic.version = 11 : i64} {
  func.func @_bias_act_kernel(%arg0: i32, %arg1: memref<64x128xf32, #tpu.memory_space<vmem>>, %arg2: memref<1x128xf32, #tpu.memory_space<vmem>>, %arg3: memref<64x128xbf16, #tpu.memory_space<vmem>>) attributes {dimension_semantics = [#tpu.dimension_semantics<parallel>], iteration_bounds = array<i64: 1>, scalar_prefetch = 0 : i64, scratch_operands = 0 : i64, tpu.core_type = #tpu.core_type<tc>, window_params = [{transform_indices = @transform_0, window_bounds = array<i64: 64, 128>}, {pipeline_mode = #tpu.pipeline_mode<synchronous>, transform_indices = @transform_1, window_bounds = array<i64: 1, 128>}, {transform_indices = @transform_2, window_bounds = array<i64: 64, 128>}]} {
    %c0 = arith.constant 0 : index
    %c0_0 = arith.constant 0 : index
    %0 = vector.load %arg1[%c0, %c0_0] : memref<64x128xf32, #tpu.memory_space<vmem>>, vector<64x128xf32>
    %c0_1 = arith.constant 0 : index
    %c0_2 = arith.constant 0 : index
    %1 = vector.load %arg2[%c0_1, %c0_2] : memref<1x128xf32, #tpu.memory_space<vmem>>, vector<1x128xf32>
    %2 = vector.broadcast %1 : vector<1x128xf32> to vector<64x128xf32>
    %3 = arith.addf %0, %2 : vector<64x128xf32>
    %cst = arith.constant 2.000000e-01 : f32
    %4 = vector.broadcast %cst : f32 to vector<64x128xf32>
    %5 = arith.mulf %4, %3 : vector<64x128xf32>
    %6 = arith.maximumf %3, %5 : vector<64x128xf32>
    %7 = arith.truncf %6 : vector<64x128xf32> to vector<64x128xbf16>
    %c0_3 = arith.constant 0 : index
    %c0_4 = arith.constant 0 : index
    %8 = vector.load %arg3[%c0_3, %c0_4] : memref<64x128xbf16, #tpu.memory_space<vmem>>, vector<64x128xbf16>
    tpu.vector_store %arg3[%c0_3, %c0_4], %7 {strides = array<i32>} : memref<64x128xbf16, #tpu.memory_space<vmem>>, vector<64x128xbf16>,
    return
  }
  func.func @transform_0(%arg0: i32) -> (i32, i32) {
    %c0_i32 = arith.constant 0 : i32
    %c0_i32_0 = arith.constant 0 : i32
    return %arg0, %c0_i32 : i32, i32
  }
  func.func @transform_1(%arg0: i32) -> (i32, i32) {
    %c0_i32 = arith.constant 0 : i32
    %c0_i32_0 = arith.constant 0 : i32
    %c0_i32_1 = arith.constant 0 : i32
    return %c0_i32, %c0_i32_0 : i32, i32
  }
  func.func @transform_2(%arg0: i32) -> (i32, i32) {
    %c0_i32 = arith.constant 0 : i32
    %c0_i32_0 = arith.constant 0 : i32
    return %arg0, %c0_i32 : i32, i32
  }
}

module attributes {stable_mosaic.version = 11 : i64} {
  func.func @_bias_act_kernel(%arg0: i32, %arg1: memref<64x256xf32, #tpu.memory_space<vmem>>, %arg2: memref<1x256xf32, #tpu.memory_space<vmem>>, %arg3: memref<64x256xbf16, #tpu.memory_space<vmem>>) attributes {dimension_semantics = [#tpu.dimension_semantics<parallel>], iteration_bounds = array<i64: 1>, scalar_prefetch = 0 : i64, scratch_operands = 0 : i64, tpu.core_type = #tpu.core_type<tc>, window_params = [{transform_indices = @transform_0, window_bounds = array<i64: 64, 256>}, {pipeline_mode = #tpu.pipeline_mode<synchronous>, transform_indices = @transform_1, window_bounds = array<i64: 1, 256>}, {transform_indices = @transform_2, window_bounds = array<i64: 64, 256>}]} {
    %c0 = arith.constant 0 : index
    %c0_0 = arith.constant 0 : index
    %0 = vector.load %arg1[%c0, %c0_0] : memref<64x256xf32, #tpu.memory_space<vmem>>, vector<64x256xf32>
    %c0_1 = arith.constant 0 : index
    %c0_2 = arith.constant 0 : index
    %1 = vector.load %arg2[%c0_1, %c0_2] : memref<1x256xf32, #tpu.memory_space<vmem>>, vector<1x256xf32>
    %2 = vector.broadcast %1 : vector<1x256xf32> to vector<64x256xf32>
    %3 = arith.addf %0, %2 : vector<64x256xf32>
    %cst = arith.constant 2.000000e-01 : f32
    %4 = vector.broadcast %cst : f32 to vector<64x256xf32>
    %5 = arith.mulf %4, %3 : vector<64x256xf32>
    %6 = arith.maximumf %3, %5 : vector<64x256xf32>
    %7 = arith.truncf %6 : vector<64x256xf32> to vector<64x256xbf16>
    %c0_3 = arith.constant 0 : index
    %c0_4 = arith.constant 0 : index
    %8 = vector.load %arg3[%c0_3, %c0_4] : memref<64x256xbf16, #tpu.memory_space<vmem>>, vector<64x256xbf16>
    tpu.vector_store %arg3[%c0_3, %c0_4], %7 {strides = array<i32>} : memref<64x256xbf16, #tpu.memory_space<vmem>>, vector<64x256xbf16>,
    return
  }
  func.func @transform_0(%arg0: i32) -> (i32, i32) {
    %c0_i32 = arith.constant 0 : i32
    %c0_i32_0 = arith.constant 0 : i32
    return %arg0, %c0_i32 : i32, i32
  }
  func.func @transform_1(%arg0: i32) -> (i32, i32) {
    %c0_i32 = arith.constant 0 : i32
    %c0_i32_0 = arith.constant 0 : i32
    %c0_i32_1 = arith.constant 0 : i32
    return %c0_i32, %c0_i32_0 : i32, i32
  }
  func.func @transform_2(%arg0: i32) -> (i32, i32) {
    %c0_i32 = arith.constant 0 : i32
    %c0_i32_0 = arith.constant 0 : i32
    return %arg0, %c0_i32 : i32, i32
  }
}

module attributes {stable_mosaic.version = 11 : i64} {
  func.func @_bias_act_kernel(%arg0: i32, %arg1: memref<8x256xf32, #tpu.memory_space<vmem>>, %arg2: memref<1x256xf32, #tpu.memory_space<vmem>>, %arg3: memref<8x256xbf16, #tpu.memory_space<vmem>>) attributes {dimension_semantics = [#tpu.dimension_semantics<parallel>], iteration_bounds = array<i64: 1>, scalar_prefetch = 0 : i64, scratch_operands = 0 : i64, tpu.core_type = #tpu.core_type<tc>, window_params = [{transform_indices = @transform_0, window_bounds = array<i64: 8, 256>}, {pipeline_mode = #tpu.pipeline_mode<synchronous>, transform_indices = @transform_1, window_bounds = array<i64: 1, 256>}, {transform_indices = @transform_2, window_bounds = array<i64: 8, 256>}]} {
    %c0 = arith.constant 0 : index
    %c0_0 = arith.constant 0 : index
    %0 = vector.load %arg1[%c0, %c0_0] : memref<8x256xf32, #tpu.memory_space<vmem>>, vector<8x256xf32>
    %c0_1 = arith.constant 0 : index
    %c0_2 = arith.constant 0 : index
    %1 = vector.load %arg2[%c0_1, %c0_2] : memref<1x256xf32, #tpu.memory_space<vmem>>, vector<1x256xf32>
    %2 = vector.broadcast %1 : vector<1x256xf32> to vector<8x256xf32>
    %3 = arith.addf %0, %2 : vector<8x256xf32>
    %cst = arith.constant 2.000000e-01 : f32
    %4 = vector.broadcast %cst : f32 to vector<8x256xf32>
    %5 = arith.mulf %4, %3 : vector<8x256xf32>
    %6 = arith.maximumf %3, %5 : vector<8x256xf32>
    %7 = arith.truncf %6 : vector<8x256xf32> to vector<8x256xbf16>
    %c0_3 = arith.constant 0 : index
    %c0_4 = arith.constant 0 : index
    %8 = vector.load %arg3[%c0_3, %c0_4] : memref<8x256xbf16, #tpu.memory_space<vmem>>, vector<8x256xbf16>
    tpu.vector_store %arg3[%c0_3, %c0_4], %7 {strides = array<i32>} : memref<8x256xbf16, #tpu.memory_space<vmem>>, vector<8x256xbf16>,
    return
  }
  func.func @transform_0(%arg0: i32) -> (i32, i32) {
    %c0_i32 = arith.constant 0 : i32
    %c0_i32_0 = arith.constant 0 : i32
    return %arg0, %c0_i32 : i32, i32
  }
  func.func @transform_1(%arg0: i32) -> (i32, i32) {
    %c0_i32 = arith.constant 0 : i32
    %c0_i32_0 = arith.constant 0 : i32
    %c0_i32_1 = arith.constant 0 : i32
    return %c0_i32, %c0_i32_0 : i32, i32
  }
  func.func @transform_2(%arg0: i32) -> (i32, i32) {
    %c0_i32 = arith.constant 0 : i32
    %c0_i32_0 = arith.constant 0 : i32
    return %arg0, %c0_i32 : i32, i32
  }
}

module attributes {stable_mosaic.version = 11 : i64} {
  func.func @_bias_act_kernel(%arg0: i32, %arg1: memref<8x512xf32, #tpu.memory_space<vmem>>, %arg2: memref<1x512xf32, #tpu.memory_space<vmem>>, %arg3: memref<8x512xbf16, #tpu.memory_space<vmem>>) attributes {dimension_semantics = [#tpu.dimension_semantics<parallel>], iteration_bounds = array<i64: 1>, scalar_prefetch = 0 : i64, scratch_operands = 0 : i64, tpu.core_type = #tpu.core_type<tc>, window_params = [{transform_indices = @transform_0, window_bounds = array<i64: 8, 512>}, {pipeline_mode = #tpu.pipeline_mode<synchronous>, transform_indices = @transform_1, window_bounds = array<i64: 1, 512>}, {transform_indices = @transform_2, window_bounds = array<i64: 8, 512>}]} {
    %c0 = arith.constant 0 : index
    %c0_0 = arith.constant 0 : index
    %0 = vector.load %arg1[%c0, %c0_0] : memref<8x512xf32, #tpu.memory_space<vmem>>, vector<8x512xf32>
    %c0_1 = arith.constant 0 : index
    %c0_2 = arith.constant 0 : index
    %1 = vector.load %arg2[%c0_1, %c0_2] : memref<1x512xf32, #tpu.memory_space<vmem>>, vector<1x512xf32>
    %2 = vector.broadcast %1 : vector<1x512xf32> to vector<8x512xf32>
    %3 = arith.addf %0, %2 : vector<8x512xf32>
    %cst = arith.constant 2.000000e-01 : f32
    %4 = vector.broadcast %cst : f32 to vector<8x512xf32>
    %5 = arith.mulf %4, %3 : vector<8x512xf32>
    %6 = arith.maximumf %3, %5 : vector<8x512xf32>
    %7 = arith.truncf %6 : vector<8x512xf32> to vector<8x512xbf16>
    %c0_3 = arith.constant 0 : index
    %c0_4 = arith.constant 0 : index
    %8 = vector.load %arg3[%c0_3, %c0_4] : memref<8x512xbf16, #tpu.memory_space<vmem>>, vector<8x512xbf16>
    tpu.vector_store %arg3[%c0_3, %c0_4], %7 {strides = array<i32>} : memref<8x512xbf16, #tpu.memory_space<vmem>>, vector<8x512xbf16>,
    return
  }
  func.func @transform_0(%arg0: i32) -> (i32, i32) {
    %c0_i32 = arith.constant 0 : i32
    %c0_i32_0 = arith.constant 0 : i32
    return %arg0, %c0_i32 : i32, i32
  }
  func.func @transform_1(%arg0: i32) -> (i32, i32) {
    %c0_i32 = arith.constant 0 : i32
    %c0_i32_0 = arith.constant 0 : i32
    %c0_i32_1 = arith.constant 0 : i32
    return %c0_i32, %c0_i32_0 : i32, i32
  }
  func.func @transform_2(%arg0: i32) -> (i32, i32) {
    %c0_i32 = arith.constant 0 : i32
    %c0_i32_0 = arith.constant 0 : i32
    return %arg0, %c0_i32 : i32, i32
  }
}

module attributes {stable_mosaic.version = 11 : i64} {
  func.func @_bias_act_kernel(%arg0: i32, %arg1: memref<2x512xf32, #tpu.memory_space<vmem>>, %arg2: memref<1x512xf32, #tpu.memory_space<vmem>>, %arg3: memref<2x512xbf16, #tpu.memory_space<vmem>>) attributes {dimension_semantics = [#tpu.dimension_semantics<parallel>], iteration_bounds = array<i64: 1>, scalar_prefetch = 0 : i64, scratch_operands = 0 : i64, tpu.core_type = #tpu.core_type<tc>, window_params = [{transform_indices = @transform_0, window_bounds = array<i64: 2, 512>}, {pipeline_mode = #tpu.pipeline_mode<synchronous>, transform_indices = @transform_1, window_bounds = array<i64: 1, 512>}, {transform_indices = @transform_2, window_bounds = array<i64: 2, 512>}]} {
    %c0 = arith.constant 0 : index
    %c0_0 = arith.constant 0 : index
    %0 = vector.load %arg1[%c0, %c0_0] : memref<2x512xf32, #tpu.memory_space<vmem>>, vector<2x512xf32>
    %c0_1 = arith.constant 0 : index
    %c0_2 = arith.constant 0 : index
    %1 = vector.load %arg2[%c0_1, %c0_2] : memref<1x512xf32, #tpu.memory_space<vmem>>, vector<1x512xf32>
    %2 = vector.broadcast %1 : vector<1x512xf32> to vector<2x512xf32>
    %3 = arith.addf %0, %2 : vector<2x512xf32>
    %cst = arith.constant 2.000000e-01 : f32
    %4 = vector.broadcast %cst : f32 to vector<2x512xf32>
    %5 = arith.mulf %4, %3 : vector<2x512xf32>
    %6 = arith.maximumf %3, %5 : vector<2x512xf32>
    %7 = arith.truncf %6 : vector<2x512xf32> to vector<2x512xbf16>
    %c0_3 = arith.constant 0 : index
    %c0_4 = arith.constant 0 : index
    %8 = vector.load %arg3[%c0_3, %c0_4] : memref<2x512xbf16, #tpu.memory_space<vmem>>, vector<2x512xbf16>
    tpu.vector_store %arg3[%c0_3, %c0_4], %7 {strides = array<i32>} : memref<2x512xbf16, #tpu.memory_space<vmem>>, vector<2x512xbf16>,
    return
  }
  func.func @transform_0(%arg0: i32) -> (i32, i32) {
    %c0_i32 = arith.constant 0 : i32
    %c0_i32_0 = arith.constant 0 : i32
    return %arg0, %c0_i32 : i32, i32
  }
  func.func @transform_1(%arg0: i32) -> (i32, i32) {
    %c0_i32 = arith.constant 0 : i32
    %c0_i32_0 = arith.constant 0 : i32
    %c0_i32_1 = arith.constant 0 : i32
    return %c0_i32, %c0_i32_0 : i32, i32
  }
  func.func @transform_2(%arg0: i32) -> (i32, i32) {
    %c0_i32 = arith.constant 0 : i32
    %c0_i32_0 = arith.constant 0 : i32
    return %arg0, %c0_i32 : i32, i32
  }
}

module attributes {stable_mosaic.version = 11 : i64} {
  func.func @_classifier_kernel(%arg0: i32, %arg1: i32, %arg2: memref<2x512xbf16, #tpu.memory_space<vmem>>, %arg3: memref<512x1024xbf16, #tpu.memory_space<vmem>>, %arg4: memref<1x1024xf32, #tpu.memory_space<vmem>>, %arg5: memref<1024x128xbf16, #tpu.memory_space<vmem>>, %arg6: memref<1x128xf32, #tpu.memory_space<vmem>>, %arg7: memref<2x128xf32, #tpu.memory_space<vmem>>, %arg8: memref<2x1024xf32, #tpu.memory_space<vmem>>) attributes {dimension_semantics = [#tpu.dimension_semantics<parallel>, #tpu.dimension_semantics<arbitrary>], iteration_bounds = array<i64: 1, 1>, scalar_prefetch = 0 : i64, scratch_operands = 1 : i64, tpu.core_type = #tpu.core_type<tc>, window_params = [{transform_indices = @transform_0, window_bounds = array<i64: 2, 512>}, {transform_indices = @transform_1, window_bounds = array<i64: 512, 1024>}, {pipeline_mode = #tpu.pipeline_mode<synchronous>, transform_indices = @transform_2, window_bounds = array<i64: 1, 1024>}, {pipeline_mode = #tpu.pipeline_mode<synchronous>, transform_indices = @transform_3, window_bounds = array<i64: 1024, 128>}, {pipeline_mode = #tpu.pipeline_mode<synchronous>, transform_indices = @transform_4, window_bounds = array<i64: 1, 128>}, {transform_indices = @transform_5, window_bounds = array<i64: 2, 128>}]} {
    %c0_i32 = arith.constant 0 : i32
    %0 = arith.cmpi eq, %arg1, %c0_i32 : i32
    %1 = arith.extui %0 : i1 to i32
    %c0_i32_0 = arith.constant 0 : i32
    %2 = arith.cmpi ne, %1, %c0_i32_0 : i32
    scf.if %2 {
      %cst_10 = arith.constant 0.000000e+00 : f32
      %12 = vector.broadcast %cst_10 : f32 to vector<2x1024xf32>
      %c0_11 = arith.constant 0 : index
      %c0_12 = arith.constant 0 : index
      %13 = vector.load %arg8[%c0_11, %c0_12] : memref<2x1024xf32, #tpu.memory_space<vmem>>, vector<2x1024xf32>
      tpu.vector_store %arg8[%c0_11, %c0_12], %12 {strides = array<i32>} : memref<2x1024xf32, #tpu.memory_space<vmem>>, vector<2x1024xf32>,
    } else {
    }
    %c0 = arith.constant 0 : index
    %c0_1 = arith.constant 0 : index
    %3 = vector.load %arg8[%c0, %c0_1] : memref<2x1024xf32, #tpu.memory_space<vmem>>, vector<2x1024xf32>
    %c0_2 = arith.constant 0 : index
    %c0_3 = arith.constant 0 : index
    %4 = vector.load %arg2[%c0_2, %c0_3] : memref<2x512xbf16, #tpu.memory_space<vmem>>, vector<2x512xbf16>
    %c0_4 = arith.constant 0 : index
    %c0_5 = arith.constant 0 : index
    %5 = vector.load %arg3[%c0_4, %c0_5] : memref<512x1024xbf16, #tpu.memory_space<vmem>>, vector<512x1024xbf16>
    %cst = arith.constant dense<0.000000e+00> : vector<2x1024xf32>
    %6 = tpu.matmul %4, %5, %cst {dimension_numbers = #tpu.dot_dimension_numbers<[1], [0], [0], [1], [0, 0, 1, 1], [], []>} : vector<2x512xbf16>, vector<512x1024xbf16>, vector<2x1024xf32> -> vector<2x1024xf32>
    %7 = arith.addf %3, %6 : vector<2x1024xf32>
    %c0_6 = arith.constant 0 : index
    %c0_7 = arith.constant 0 : index
    %8 = vector.load %arg8[%c0_6, %c0_7] : memref<2x1024xf32, #tpu.memory_space<vmem>>, vector<2x1024xf32>
    tpu.vector_store %arg8[%c0_6, %c0_7], %7 {strides = array<i32>} : memref<2x1024xf32, #tpu.memory_space<vmem>>, vector<2x1024xf32>,
    %c0_i32_8 = arith.constant 0 : i32
    %9 = arith.cmpi eq, %arg1, %c0_i32_8 : i32
    %10 = arith.extui %9 : i1 to i32
    %c0_i32_9 = arith.constant 0 : i32
    %11 = arith.cmpi ne, %10, %c0_i32_9 : i32
    scf.if %11 {
      %c0_10 = arith.constant 0 : index
      %c0_11 = arith.constant 0 : index
      %12 = vector.load %arg8[%c0_10, %c0_11] : memref<2x1024xf32, #tpu.memory_space<vmem>>, vector<2x1024xf32>
      %c0_12 = arith.constant 0 : index
      %c0_13 = arith.constant 0 : index
      %13 = vector.load %arg4[%c0_12, %c0_13] : memref<1x1024xf32, #tpu.memory_space<vmem>>, vector<1x1024xf32>
      %14 = vector.broadcast %13 : vector<1x1024xf32> to vector<2x1024xf32>
      %15 = arith.addf %12, %14 : vector<2x1024xf32>
      %cst_14 = arith.constant 2.000000e-01 : f32
      %16 = vector.broadcast %cst_14 : f32 to vector<2x1024xf32>
      %17 = arith.mulf %16, %15 : vector<2x1024xf32>
      %18 = arith.maximumf %15, %17 : vector<2x1024xf32>
      %19 = arith.truncf %18 : vector<2x1024xf32> to vector<2x1024xbf16>
      %c0_15 = arith.constant 0 : index
      %c0_16 = arith.constant 0 : index
      %20 = vector.load %arg5[%c0_15, %c0_16] : memref<1024x128xbf16, #tpu.memory_space<vmem>>, vector<1024x128xbf16>
      %cst_17 = arith.constant dense<0.000000e+00> : vector<2x128xf32>
      %21 = tpu.matmul %19, %20, %cst_17 {dimension_numbers = #tpu.dot_dimension_numbers<[1], [0], [0], [1], [0, 0, 1, 1], [], []>} : vector<2x1024xbf16>, vector<1024x128xbf16>, vector<2x128xf32> -> vector<2x128xf32>
      %c0_18 = arith.constant 0 : index
      %c0_19 = arith.constant 0 : index
      %22 = vector.load %arg6[%c0_18, %c0_19] : memref<1x128xf32, #tpu.memory_space<vmem>>, vector<1x128xf32>
      %23 = vector.broadcast %22 : vector<1x128xf32> to vector<2x128xf32>
      %24 = arith.addf %21, %23 : vector<2x128xf32>
      %c0_20 = arith.constant 0 : index
      %c0_21 = arith.constant 0 : index
      %25 = vector.load %arg7[%c0_20, %c0_21] : memref<2x128xf32, #tpu.memory_space<vmem>>, vector<2x128xf32>
      tpu.vector_store %arg7[%c0_20, %c0_21], %24 {strides = array<i32>} : memref<2x128xf32, #tpu.memory_space<vmem>>, vector<2x128xf32>,
    } else {
    }
    return
  }
  func.func @transform_0(%arg0: i32, %arg1: i32) -> (i32, i32) {
    %c0_i32 = arith.constant 0 : i32
    return %arg0, %arg1 : i32, i32
  }
  func.func @transform_1(%arg0: i32, %arg1: i32) -> (i32, i32) {
    %c0_i32 = arith.constant 0 : i32
    %c0_i32_0 = arith.constant 0 : i32
    return %arg1, %c0_i32 : i32, i32
  }
  func.func @transform_2(%arg0: i32, %arg1: i32) -> (i32, i32) {
    %c0_i32 = arith.constant 0 : i32
    %c0_i32_0 = arith.constant 0 : i32
    %c0_i32_1 = arith.constant 0 : i32
    return %c0_i32, %c0_i32_0 : i32, i32
  }
  func.func @transform_3(%arg0: i32, %arg1: i32) -> (i32, i32) {
    %c0_i32 = arith.constant 0 : i32
    %c0_i32_0 = arith.constant 0 : i32
    %c0_i32_1 = arith.constant 0 : i32
    return %c0_i32, %c0_i32_0 : i32, i32
  }
  func.func @transform_4(%arg0: i32, %arg1: i32) -> (i32, i32) {
    %c0_i32 = arith.constant 0 : i32
    %c0_i32_0 = arith.constant 0 : i32
    %c0_i32_1 = arith.constant 0 : i32
    return %c0_i32, %c0_i32_0 : i32, i32
  }
  func.func @transform_5(%arg0: i32, %arg1: i32) -> (i32, i32) {
    %c0_i32 = arith.constant 0 : i32
    %c0_i32_0 = arith.constant 0 : i32
    return %arg0, %c0_i32 : i32, i32
  }
}

</mosaic_0001>

<bundles_post_ra>
// kernel: tile.13
= control target key start
LH: loop header
LB: loop body
LE: loop exit
PB: predicated region body
PF: predicated region fallthrough
CT: control target
= control target key end

     0   :  { %s22_s0 = inlined_call_operand.vmem [shape: f32[64], index: 0, kind: input, shape index: {}]   ;;  %s23_s1 = inlined_call_operand.vmem [shape: f32[2,64], index: 1, kind: output, shape index: {}]  }
   0x1   :  { %v4_v0 = vld [vmem:[%s22_s0] ss:$0 sm:$0xff] }
   0x2   :  { %5 = vst [vmem:[%s23_s1] sm:$0x3] %v4_v0 }

// kernel: tile.14
= control target key start
LH: loop header
LB: loop body
LE: loop exit
PB: predicated region body
PF: predicated region fallthrough
CT: control target
= control target key end

     0   :  { %vm7_vm0 = vcmask 523264   ;;  %vm13_vm1 = vcmask 1048064   ;;  %s39_s0 = inlined_call_operand.vmem [shape: f32[2,64], index: 0, kind: input, shape index: {}]   ;;  %s40_s1 = inlined_call_operand.vmem [shape: f32[1,128], index: 1, kind: output, shape index: {}]  }
   0x1   :  { %v4_v0 = vld [vmem:[%s39_s0] sm:$0x3]  ;;  %s22_s0 = smov 64  }
   0x2   :  { %5 = vst [vmem:[#allocation1] sm:$0x3] %v4_v0 }
   0x9   :  { %v10_v1 = vld [vmem:[#allocation1 + $0x1] sm:$0x1]   ;;  %v6_v2 = vld [vmem:[#allocation1] sm:$0x1]  }
   0xa   :  { %11 = vrot.lane.b32.xlu0 %v10_v1, %s22_s0  ;;  %8 = vst.msk [vmem:[#allocation0] sm:$0x1] %vm7_vm0, %v6_v2  }
  0x7c   :  { %v12_v3 = vpop.permute.xlu0 %11  }
  0x7d   :  { %14 = vst.msk [vmem:[#allocation0] sm:$0x1] %vm13_vm1, %v12_v3  }
  0x84   :  { %v18_v4 = vld [vmem:[#allocation0] sm:$0x1] }
  0x85   :  { %20 = vst [vmem:[%s40_s1] sm:$0x1] %v18_v4 }

// kernel: risley_speeds_forward.9
= control target key start
LH: loop header
LB: loop body
LE: loop exit
PB: predicated region body
PF: predicated region fallthrough
CT: control target
= control target key end

     0   :  { %s2045_s9 = smov 0   ;;  %s2400_s0 = inlined_call_operand.vmem [shape: f32[2048,128], index: 0, kind: input, shape index: {}]   ;;  %s2401_s1 = inlined_call_operand.vmem [shape: f32[1,128], index: 1, kind: input, shape index: {}]   ;;  %s2402_s2 = inlined_call_operand.vmem [shape: bf16[2048,128], index: 2, kind: output, shape index: {}]  }
   0x1 LB: > { %s1362_s10 = sadd.s32 4294967295, %s2028_s9   ;;  %p1366_p0 = scmp.ge.s32.totalorder %s2028_s9, 1  ;;  %s2028_s9 = sphi %s2045_s9, %s12_s9  }
   0x2   : > { %p113_p1 = scmp.lt.s32.totalorder %s2028_s9, 3 }
   0x4   : > { %p114_p2 = pnand %p1366_p0, %p113_p1 }
   0x5   : > { %s1367_s11 = sshll.u32 (!%p114_p2), %s1362_s10, 7  ;;  %v2059_v0 = vld [vmem:[%s2401_s1] ss:$0 sm:$0xff] (!%p114_p2) }
   0x6   : > { %117 = sbr.rel (%p114_p2) target bundleno = 135 (0x87), region = 28  ;;  %p136_p3 = scmp.lt.s32.totalorder (!%p114_p2), %s1367_s11, 255 }
   0xd   : > { %s2404_s11 = smov (!%p136_p3, %s1367_s11), 255 }
   0xe   : > { %s1368_s12 = sshll.u32 %s2404_s11, 3  ;;  %s1370_s18 = sshll.u32 %s2404_s11, 2 }
   0xf   : > { %s2064_s17 = scalar_lea.vmem %s2400_s0, %s1368_s12  ;;  %s2089_s21 = scalar_lea.vmem %s2402_s2, %s1370_s18 }
  0x10   : > { %v147_v1 = vld [vmem:[%s2064_s17] sm:$0xff]  ;;  %v148_v2 = vld [vmem:[%s2064_s17 + $0x8] sm:$0xff]  ;;  %v149_v3 = vld [vmem:[%s2064_s17 + $0x10] sm:$0xff] }
  0x11   : > { %v282_v4 = vadd.f32 %v2059_v0, %v147_v1  ;;  %v283_v5 = vadd.f32 %v2059_v0, %v148_v2  ;;  %v150_v6 = vld [vmem:[%s2064_s17 + $0x18] sm:$0xff]  ;;  %v284_v7 = vadd.f32 %v2059_v0, %v149_v3  ;;  %v151_v8 = vld [vmem:[%s2064_s17 + $0x20] sm:$0xff]  ;;  %v152_v9 = vld [vmem:[%s2064_s17 + $0x28] sm:$0xff] }
  0x12   : > { %v285_v10 = vadd.f32 %v2059_v0, %v150_v6  ;;  %v286_v11 = vadd.f32 %v2059_v0, %v151_v8  ;;  %v287_v12 = vadd.f32 %v2059_v0, %v152_v9  ;;  %v153_v13 = vld [vmem:[%s2064_s17 + $0x30] sm:$0xff]  ;;  %v154_v14 = vld [vmem:[%s2064_s17 + $0x38] sm:$0xff]  ;;  %v155_v15 = vld [vmem:[%s2064_s17 + $0x40] sm:$0xff] }
  0x13   : > { %v410_v16 = vmul.f32 0.2, %v282_v4  ;;  %v411_v17 = vmul.f32 0.2, %v283_v5  ;;  %v412_v18 = vmul.f32 0.2, %v284_v7  ;;  %v288_v19 = vadd.f32 %v2059_v0, %v153_v13 }
  0x14   : > { %v413_v20 = vmul.f32 0.2, %v285_v10  ;;  %v414_v21 = vmul.f32 0.2, %v286_v11  ;;  %v415_v22 = vmul.f32 0.2, %v287_v12  ;;  %v289_v23 = vadd.f32 %v2059_v0, %v154_v14 }
  0x15   : > { %v538_v24 = vmax.f32 %v282_v4, %v410_v16  ;;  %v539_v25 = vmax.f32 %v283_v5, %v411_v17  ;;  %v540_v26 = vmax.f32 %v284_v7, %v412_v18  ;;  %v416_v27 = vmul.f32 0.2, %v288_v19  ;;  %v156_v28 = vld [vmem:[%s2064_s17 + $0x48] sm:$0xff]  ;;  %v157_v29 = vld [vmem:[%s2064_s17 + $0x50] sm:$0xff]  ;;  %v158_v34 = vld [vmem:[%s2064_s17 + $0x58] sm:$0xff] }
  0x16   : > { %v541_v30 = vmax.f32 %v285_v10, %v413_v20  ;;  %v542_v31 = vmax.f32 %v286_v11, %v414_v21  ;;  %v543_v32 = vmax.f32 %v287_v12, %v415_v22  ;;  %v417_v33 = vmul.f32 0.2, %v289_v23  ;;  %v159_v35 = vld [vmem:[%s2064_s17 + $0x60] sm:$0xff]  ;;  %v160_v40 = vld [vmem:[%s2064_s17 + $0x68] sm:$0xff]  ;;  %v161_v41 = vld [vmem:[%s2064_s17 + $0x70] sm:$0xff] }
  0x17   : > { %v1633_v36 = vpack.c.bf16 %v539_v25, %v538_v24  ;;  %v544_v37 = vmax.f32 %v288_v19, %v416_v27  ;;  %v290_v38 = vadd.f32 %v2059_v0, %v155_v15  ;;  %v291_v39 = vadd.f32 %v2059_v0, %v156_v28  ;;  %v162_v50 = vld [vmem:[%s2064_s17 + $0x78] sm:$0xff]  ;;  %v163_v55 = vld [vmem:[%s2064_s17 + $0x80] sm:$0xff]  ;;  %v164_v60 = vld [vmem:[%s2064_s17 + $0x88] sm:$0xff] }
  0x18   : > { %v1638_v42 = vpack.c.bf16 %v541_v30, %v540_v26  ;;  %v1643_v43 = vpack.c.bf16 %v543_v32, %v542_v31  ;;  %v545_v44 = vmax.f32 %v289_v23, %v417_v33  ;;  %v292_v45 = vadd.f32 %v2059_v0, %v157_v29  ;;  %v165_v2 = vld [vmem:[%s2064_s17 + $0x90] sm:$0xff]  ;;  %v166_v3 = vld [vmem:[%s2064_s17 + $0x98] sm:$0xff]  ;;  %v167_v8 = vld [vmem:[%s2064_s17 + $0xa0] sm:$0xff] }
  0x19   : > { %1634 = vst [vmem:[%s2089_s21] sm:$0xff] %v1633_v36   ;;  %v418_v46 = vmul.f32 0.2, %v290_v38  ;;  %v419_v47 = vmul.f32 0.2, %v291_v39  ;;  %v293_v48 = vadd.f32 %v2059_v0, %v158_v34  ;;  %v294_v49 = vadd.f32 %v2059_v0, %v159_v35  ;;  %v168_v13 = vld [vmem:[%s2064_s17 + $0xa8] sm:$0xff]  ;;  %v169_v18 = vld [vmem:[%s2064_s17 + $0xb0] sm:$0xff] }
  0x1a   : > { %1950 = vst [vmem:[%s2089_s21 + $0x8] sm:$0xff] %v1638_v42   ;;  %1951 = vst [vmem:[%s2089_s21 + $0x10] sm:$0xff] %v1643_v43   ;;  %v1648_v51 = vpack.c.bf16 %v545_v44, %v544_v37  ;;  %v420_v52 = vmul.f32 0.2, %v292_v45  ;;  %v295_v53 = vadd.f32 %v2059_v0, %v160_v40  ;;  %v296_v54 = vadd.f32 %v2059_v0, %v161_v41  ;;  %v170_v23 = vld [vmem:[%s2064_s17 + $0xb8] sm:$0xff]  ;;  %v171_v28 = vld [vmem:[%s2064_s17 + $0xc0] sm:$0xff] }
  0x1b   : > { %v546_v56 = vmax.f32 %v290_v38, %v418_v46  ;;  %v547_v57 = vmax.f32 %v291_v39, %v419_v47  ;;  %v421_v58 = vmul.f32 0.2, %v293_v48  ;;  %v422_v59 = vmul.f32 0.2, %v294_v49  ;;  %v172_v33 = vld [vmem:[%s2064_s17 + $0xc8] sm:$0xff]  ;;  %v173_v38 = vld [vmem:[%s2064_s17 + $0xd0] sm:$0xff] }
  0x1c   : > { %1952 = vst [vmem:[%s2089_s21 + $0x18] sm:$0xff] %v1648_v51   ;;  %v548_v61 = vmax.f32 %v292_v45, %v420_v52  ;;  %v423_v62 = vmul.f32 0.2, %v295_v53  ;;  %v297_v63 = vadd.f32 %v2059_v0, %v162_v50  ;;  %v424_v1 = vmul.f32 0.2, %v296_v54  ;;  %v174_v39 = vld [vmem:[%s2064_s17 + $0xd8] sm:$0xff] }
  0x1d   : > { %v1653_v4 = vpack.c.bf16 %v547_v57, %v546_v56  ;;  %v549_v5 = vmax.f32 %v293_v48, %v421_v58  ;;  %v550_v6 = vmax.f32 %v294_v49, %v422_v59  ;;  %v298_v7 = vadd.f32 %v2059_v0, %v163_v55  ;;  %v175_v44 = vld [vmem:[%s2064_s17 + $0xe0] sm:$0xff]  ;;  %v176_v49 = vld [vmem:[%s2064_s17 + $0xe8] sm:$0xff]  ;;  %v178_v59 = vld [vmem:[%s2064_s17 + $0xf8] sm:$0xff] }
  0x1e   : > { %v551_v9 = vmax.f32 %v295_v53, %v423_v62  ;;  %v425_v10 = vmul.f32 0.2, %v297_v63  ;;  %v552_v11 = vmax.f32 %v296_v54, %v424_v1  ;;  %v299_v12 = vadd.f32 %v2059_v0, %v164_v60  ;;  %v177_v54 = vld [vmem:[%s2064_s17 + $0xf0] sm:$0xff]  ;;  %v179_v1 = vld [vmem:[%s2064_s17 + $0x100] sm:$0xff] }
  0x1f   : > { %1953 = vst [vmem:[%s2089_s21 + $0x20] sm:$0xff] %v1653_v4   ;;  %v1658_v14 = vpack.c.bf16 %v549_v5, %v548_v61  ;;  %v426_v15 = vmul.f32 0.2, %v298_v7  ;;  %v300_v16 = vadd.f32 %v2059_v0, %v165_v2  ;;  %v301_v17 = vadd.f32 %v2059_v0, %v166_v3 }
  0x20   : > { %v1663_v19 = vpack.c.bf16 %v551_v9, %v550_v6  ;;  %v553_v20 = vmax.f32 %v297_v63, %v425_v10  ;;  %v427_v21 = vmul.f32 0.2, %v299_v12  ;;  %v302_v22 = vadd.f32 %v2059_v0, %v167_v8  ;;  %v180_v6 = vld [vmem:[%s2064_s17 + $0x108] sm:$0xff] }
  0x21   : > { %1954 = vst [vmem:[%s2089_s21 + $0x28] sm:$0xff] %v1658_v14   ;;  %v554_v24 = vmax.f32 %v298_v7, %v426_v15  ;;  %v428_v25 = vmul.f32 0.2, %v300_v16  ;;  %v429_v26 = vmul.f32 0.2, %v301_v17  ;;  %v303_v27 = vadd.f32 %v2059_v0, %v168_v13 }
  0x22   : > { %1955 = vst [vmem:[%s2089_s21 + $0x30] sm:$0xff] %v1663_v19   ;;  %v1668_v29 = vpack.c.bf16 %v553_v20, %v552_v11  ;;  %v555_v30 = vmax.f32 %v299_v12, %v427_v21  ;;  %v430_v31 = vmul.f32 0.2, %v302_v22  ;;  %v304_v32 = vadd.f32 %v2059_v0, %v169_v18  ;;  %v181_v11 = vld [vmem:[%s2064_s17 + $0x110] sm:$0xff]  ;;  %v182_v12 = vld [vmem:[%s2064_s17 + $0x118] sm:$0xff] }
  0x23   : > { %v556_v34 = vmax.f32 %v300_v16, %v428_v25  ;;  %v557_v35 = vmax.f32 %v301_v17, %v429_v26  ;;  %v431_v36 = vmul.f32 0.2, %v303_v27  ;;  %v305_v37 = vadd.f32 %v2059_v0, %v170_v23  ;;  %v183_v17 = vld [vmem:[%s2064_s17 + $0x120] sm:$0xff] }
  0x24   : > { %1956 = vst [vmem:[%s2089_s21 + $0x38] sm:$0xff] %v1668_v29   ;;  %v1673_v40 = vpack.c.bf16 %v555_v30, %v554_v24  ;;  %v558_v41 = vmax.f32 %v302_v22, %v430_v31  ;;  %v432_v42 = vmul.f32 0.2, %v304_v32  ;;  %v306_v43 = vadd.f32 %v2059_v0, %v171_v28  ;;  %v184_v22 = vld [vmem:[%s2064_s17 + $0x128] sm:$0xff] }
  0x25   : > { %v1678_v45 = vpack.c.bf16 %v557_v35, %v556_v34  ;;  %v559_v46 = vmax.f32 %v303_v27, %v431_v36  ;;  %v433_v47 = vmul.f32 0.2, %v305_v37  ;;  %v307_v48 = vadd.f32 %v2059_v0, %v172_v33  ;;  %v185_v27 = vld [vmem:[%s2064_s17 + $0x130] sm:$0xff] }
  0x26   : > { %1957 = vst [vmem:[%s2089_s21 + $0x40] sm:$0xff] %v1673_v40   ;;  %v560_v50 = vmax.f32 %v304_v32, %v432_v42  ;;  %v434_v51 = vmul.f32 0.2, %v306_v43  ;;  %v308_v52 = vadd.f32 %v2059_v0, %v173_v38  ;;  %v309_v53 = vadd.f32 %v2059_v0, %v174_v39  ;;  %v186_v32 = vld [vmem:[%s2064_s17 + $0x138] sm:$0xff]  ;;  %v188_v42 = vld [vmem:[%s2064_s17 + $0x148] sm:$0xff] }
  0x27   : > { %1958 = vst [vmem:[%s2089_s21 + $0x48] sm:$0xff] %v1678_v45   ;;  %v1683_v55 = vpack.c.bf16 %v559_v46, %v558_v41  ;;  %v561_v56 = vmax.f32 %v305_v37, %v433_v47  ;;  %v435_v57 = vmul.f32 0.2, %v307_v48  ;;  %v310_v58 = vadd.f32 %v2059_v0, %v175_v44  ;;  %v187_v37 = vld [vmem:[%s2064_s17 + $0x140] sm:$0xff]  ;;  %v189_v47 = vld [vmem:[%s2064_s17 + $0x150] sm:$0xff] }
  0x28   : > { %v562_v60 = vmax.f32 %v306_v43, %v434_v51  ;;  %v436_v61 = vmul.f32 0.2, %v308_v52  ;;  %v437_v62 = vmul.f32 0.2, %v309_v53  ;;  %v311_v63 = vadd.f32 %v2059_v0, %v176_v49 }
  0x29   : > { %1959 = vst [vmem:[%s2089_s21 + $0x50] sm:$0xff] %v1683_v55   ;;  %v1688_v2 = vpack.c.bf16 %v561_v56, %v560_v50  ;;  %v563_v3 = vmax.f32 %v307_v48, %v435_v57  ;;  %v438_v4 = vmul.f32 0.2, %v310_v58  ;;  %v312_v5 = vadd.f32 %v2059_v0, %v177_v54  ;;  %v190_v48 = vld [vmem:[%s2064_s17 + $0x158] sm:$0xff] }
  0x2a   : > { %v564_v7 = vmax.f32 %v308_v52, %v436_v61  ;;  %v565_v8 = vmax.f32 %v309_v53, %v437_v62  ;;  %v439_v9 = vmul.f32 0.2, %v311_v63  ;;  %v313_v10 = vadd.f32 %v2059_v0, %v178_v59  ;;  %v191_v53 = vld [vmem:[%s2064_s17 + $0x160] sm:$0xff] }
  0x2b   : > { %1960 = vst [vmem:[%s2089_s21 + $0x58] sm:$0xff] %v1688_v2   ;;  %v1693_v13 = vpack.c.bf16 %v563_v3, %v562_v60  ;;  %v566_v14 = vmax.f32 %v310_v58, %v438_v4  ;;  %v440_v15 = vmul.f32 0.2, %v312_v5  ;;  %v314_v16 = vadd.f32 %v2059_v0, %v179_v1  ;;  %v192_v58 = vld [vmem:[%s2064_s17 + $0x168] sm:$0xff] }
  0x2c   : > { %v1698_v18 = vpack.c.bf16 %v565_v8, %v564_v7  ;;  %v567_v19 = vmax.f32 %v311_v63, %v439_v9  ;;  %v441_v20 = vmul.f32 0.2, %v313_v10  ;;  %v315_v21 = vadd.f32 %v2059_v0, %v180_v6  ;;  %v193_v63 = vld [vmem:[%s2064_s17 + $0x170] sm:$0xff] }
  0x2d   : > { %1961 = vst [vmem:[%s2089_s21 + $0x60] sm:$0xff] %v1693_v13   ;;  %v568_v23 = vmax.f32 %v312_v5, %v440_v15  ;;  %v442_v24 = vmul.f32 0.2, %v314_v16  ;;  %v316_v25 = vadd.f32 %v2059_v0, %v181_v11  ;;  %v317_v26 = vadd.f32 %v2059_v0, %v182_v12  ;;  %v194_v5 = vld [vmem:[%s2064_s17 + $0x178] sm:$0xff]  ;;  %v196_v15 = vld [vmem:[%s2064_s17 + $0x188] sm:$0xff] }
  0x2e   : > { %1962 = vst [vmem:[%s2089_s21 + $0x68] sm:$0xff] %v1698_v18   ;;  %v1703_v28 = vpack.c.bf16 %v567_v19, %v566_v14  ;;  %v569_v29 = vmax.f32 %v313_v10, %v441_v20  ;;  %v443_v30 = vmul.f32 0.2, %v315_v21  ;;  %v318_v31 = vadd.f32 %v2059_v0, %v183_v17  ;;  %v195_v10 = vld [vmem:[%s2064_s17 + $0x180] sm:$0xff]  ;;  %v197_v20 = vld [vmem:[%s2064_s17 + $0x190] sm:$0xff] }
  0x2f   : > { %v570_v33 = vmax.f32 %v314_v16, %v442_v24  ;;  %v444_v34 = vmul.f32 0.2, %v316_v25  ;;  %v445_v35 = vmul.f32 0.2, %v317_v26  ;;  %v319_v36 = vadd.f32 %v2059_v0, %v184_v22 }
  0x30   : > { %1963 = vst [vmem:[%s2089_s21 + $0x70] sm:$0xff] %v1703_v28   ;;  %v1708_v38 = vpack.c.bf16 %v569_v29, %v568_v23  ;;  %v571_v39 = vmax.f32 %v315_v21, %v443_v30  ;;  %v446_v40 = vmul.f32 0.2, %v318_v31  ;;  %v320_v41 = vadd.f32 %v2059_v0, %v185_v27  ;;  %v198_v21 = vld [vmem:[%s2064_s17 + $0x198] sm:$0xff] }
  0x31   : > { %v572_v43 = vmax.f32 %v316_v25, %v444_v34  ;;  %v573_v44 = vmax.f32 %v317_v26, %v445_v35  ;;  %v447_v45 = vmul.f32 0.2, %v319_v36  ;;  %v321_v46 = vadd.f32 %v2059_v0, %v186_v32  ;;  %v199_v26 = vld [vmem:[%s2064_s17 + $0x1a0] sm:$0xff] }
  0x32   : > { %1964 = vst [vmem:[%s2089_s21 + $0x78] sm:$0xff] %v1708_v38   ;;  %v1713_v49 = vpack.c.bf16 %v571_v39, %v570_v33  ;;  %v574_v50 = vmax.f32 %v318_v31, %v446_v40  ;;  %v448_v51 = vmul.f32 0.2, %v320_v41  ;;  %v322_v52 = vadd.f32 %v2059_v0, %v187_v37  ;;  %v200_v31 = vld [vmem:[%s2064_s17 + $0x1a8] sm:$0xff] }
  0x33   : > { %v1718_v54 = vpack.c.bf16 %v573_v44, %v572_v43  ;;  %v575_v55 = vmax.f32 %v319_v36, %v447_v45  ;;  %v449_v56 = vmul.f32 0.2, %v321_v46  ;;  %v323_v57 = vadd.f32 %v2059_v0, %v188_v42  ;;  %v201_v36 = vld [vmem:[%s2064_s17 + $0x1b0] sm:$0xff] }
  0x34   : > { %1965 = vst [vmem:[%s2089_s21 + $0x80] sm:$0xff] %v1713_v49   ;;  %v576_v59 = vmax.f32 %v320_v41, %v448_v51  ;;  %v450_v60 = vmul.f32 0.2, %v322_v52  ;;  %v324_v61 = vadd.f32 %v2059_v0, %v189_v47  ;;  %v325_v62 = vadd.f32 %v2059_v0, %v190_v48  ;;  %v202_v41 = vld [vmem:[%s2064_s17 + $0x1b8] sm:$0xff]  ;;  %v204_v51 = vld [vmem:[%s2064_s17 + $0x1c8] sm:$0xff] }
  0x35   : > { %1966 = vst [vmem:[%s2089_s21 + $0x88] sm:$0xff] %v1718_v54   ;;  %v1723_v1 = vpack.c.bf16 %v575_v55, %v574_v50  ;;  %v577_v2 = vmax.f32 %v321_v46, %v449_v56  ;;  %v451_v3 = vmul.f32 0.2, %v323_v57  ;;  %v326_v4 = vadd.f32 %v2059_v0, %v191_v53  ;;  %v203_v46 = vld [vmem:[%s2064_s17 + $0x1c0] sm:$0xff]  ;;  %v205_v56 = vld [vmem:[%s2064_s17 + $0x1d0] sm:$0xff] }
  0x36   : > { %v578_v6 = vmax.f32 %v322_v52, %v450_v60  ;;  %v452_v7 = vmul.f32 0.2, %v324_v61  ;;  %v453_v8 = vmul.f32 0.2, %v325_v62  ;;  %v327_v9 = vadd.f32 %v2059_v0, %v192_v58 }
  0x37   : > { %1967 = vst [vmem:[%s2089_s21 + $0x90] sm:$0xff] %v1723_v1   ;;  %v1728_v11 = vpack.c.bf16 %v577_v2, %v576_v59  ;;  %v579_v12 = vmax.f32 %v323_v57, %v451_v3  ;;  %v454_v13 = vmul.f32 0.2, %v326_v4  ;;  %v328_v14 = vadd.f32 %v2059_v0, %v193_v63  ;;  %v206_v57 = vld [vmem:[%s2064_s17 + $0x1d8] sm:$0xff] }
  0x38   : > { %v580_v16 = vmax.f32 %v324_v61, %v452_v7  ;;  %v581_v17 = vmax.f32 %v325_v62, %v453_v8  ;;  %v455_v18 = vmul.f32 0.2, %v327_v9  ;;  %v329_v19 = vadd.f32 %v2059_v0, %v194_v5  ;;  %v207_v62 = vld [vmem:[%s2064_s17 + $0x1e0] sm:$0xff] }
  0x39   : > { %1968 = vst [vmem:[%s2089_s21 + $0x98] sm:$0xff] %v1728_v11   ;;  %v1733_v22 = vpack.c.bf16 %v579_v12, %v578_v6  ;;  %v582_v23 = vmax.f32 %v326_v4, %v454_v13  ;;  %v456_v24 = vmul.f32 0.2, %v328_v14  ;;  %v330_v25 = vadd.f32 %v2059_v0, %v195_v10  ;;  %v208_v4 = vld [vmem:[%s2064_s17 + $0x1e8] sm:$0xff] }
  0x3a   : > { %v1738_v27 = vpack.c.bf16 %v581_v17, %v580_v16  ;;  %v583_v28 = vmax.f32 %v327_v9, %v455_v18  ;;  %v457_v29 = vmul.f32 0.2, %v329_v19  ;;  %v331_v30 = vadd.f32 %v2059_v0, %v196_v15  ;;  %v209_v9 = vld [vmem:[%s2064_s17 + $0x1f0] sm:$0xff] }
  0x3b   : > { %1969 = vst [vmem:[%s2089_s21 + $0xa0] sm:$0xff] %v1733_v22   ;;  %v584_v32 = vmax.f32 %v328_v14, %v456_v24  ;;  %v458_v33 = vmul.f32 0.2, %v330_v25  ;;  %v332_v34 = vadd.f32 %v2059_v0, %v197_v20  ;;  %v333_v35 = vadd.f32 %v2059_v0, %v198_v21  ;;  %v210_v14 = vld [vmem:[%s2064_s17 + $0x1f8] sm:$0xff]  ;;  %v212_v24 = vld [vmem:[%s2064_s17 + $0x208] sm:$0xff] }
  0x3c   : > { %1970 = vst [vmem:[%s2089_s21 + $0xa8] sm:$0xff] %v1738_v27   ;;  %v1743_v37 = vpack.c.bf16 %v583_v28, %v582_v23  ;;  %v585_v38 = vmax.f32 %v329_v19, %v457_v29  ;;  %v459_v39 = vmul.f32 0.2, %v331_v30  ;;  %v334_v40 = vadd.f32 %v2059_v0, %v199_v26  ;;  %v211_v19 = vld [vmem:[%s2064_s17 + $0x200] sm:$0xff]  ;;  %v213_v29 = vld [vmem:[%s2064_s17 + $0x210] sm:$0xff] }
  0x3d   : > { %v586_v42 = vmax.f32 %v330_v25, %v458_v33  ;;  %v460_v43 = vmul.f32 0.2, %v332_v34  ;;  %v461_v44 = vmul.f32 0.2, %v333_v35  ;;  %v335_v45 = vadd.f32 %v2059_v0, %v200_v31 }
  0x3e   : > { %1971 = vst [vmem:[%s2089_s21 + $0xb0] sm:$0xff] %v1743_v37   ;;  %v1748_v47 = vpack.c.bf16 %v585_v38, %v584_v32  ;;  %v587_v48 = vmax.f32 %v331_v30, %v459_v39  ;;  %v462_v49 = vmul.f32 0.2, %v334_v40  ;;  %v336_v50 = vadd.f32 %v2059_v0, %v201_v36  ;;  %v214_v30 = vld [vmem:[%s2064_s17 + $0x218] sm:$0xff] }
  0x3f   : > { %v588_v52 = vmax.f32 %v332_v34, %v460_v43  ;;  %v589_v53 = vmax.f32 %v333_v35, %v461_v44  ;;  %v463_v54 = vmul.f32 0.2, %v335_v45  ;;  %v337_v55 = vadd.f32 %v2059_v0, %v202_v41  ;;  %v215_v35 = vld [vmem:[%s2064_s17 + $0x220] sm:$0xff] }
  0x40   : > { %1972 = vst [vmem:[%s2089_s21 + $0xb8] sm:$0xff] %v1748_v47   ;;  %v1753_v58 = vpack.c.bf16 %v587_v48, %v586_v42  ;;  %v590_v59 = vmax.f32 %v334_v40, %v462_v49  ;;  %v464_v60 = vmul.f32 0.2, %v336_v50  ;;  %v338_v61 = vadd.f32 %v2059_v0, %v203_v46  ;;  %v216_v40 = vld [vmem:[%s2064_s17 + $0x228] sm:$0xff] }
  0x41   : > { %v1758_v63 = vpack.c.bf16 %v589_v53, %v588_v52  ;;  %v591_v1 = vmax.f32 %v335_v45, %v463_v54  ;;  %v465_v2 = vmul.f32 0.2, %v337_v55  ;;  %v339_v3 = vadd.f32 %v2059_v0, %v204_v51  ;;  %v217_v45 = vld [vmem:[%s2064_s17 + $0x230] sm:$0xff] }
  0x42   : > { %1973 = vst [vmem:[%s2089_s21 + $0xc0] sm:$0xff] %v1753_v58   ;;  %v592_v5 = vmax.f32 %v336_v50, %v464_v60  ;;  %v466_v6 = vmul.f32 0.2, %v338_v61  ;;  %v340_v7 = vadd.f32 %v2059_v0, %v205_v56  ;;  %v341_v8 = vadd.f32 %v2059_v0, %v206_v57  ;;  %v218_v50 = vld [vmem:[%s2064_s17 + $0x238] sm:$0xff]  ;;  %v220_v60 = vld [vmem:[%s2064_s17 + $0x248] sm:$0xff] }
  0x43   : > { %1974 = vst [vmem:[%s2089_s21 + $0xc8] sm:$0xff] %v1758_v63   ;;  %v1763_v10 = vpack.c.bf16 %v591_v1, %v590_v59  ;;  %v593_v11 = vmax.f32 %v337_v55, %v465_v2  ;;  %v467_v12 = vmul.f32 0.2, %v339_v3  ;;  %v342_v13 = vadd.f32 %v2059_v0, %v207_v62  ;;  %v219_v55 = vld [vmem:[%s2064_s17 + $0x240] sm:$0xff]  ;;  %v221_v2 = vld [vmem:[%s2064_s17 + $0x250] sm:$0xff] }
  0x44   : > { %v594_v15 = vmax.f32 %v338_v61, %v466_v6  ;;  %v468_v16 = vmul.f32 0.2, %v340_v7  ;;  %v469_v17 = vmul.f32 0.2, %v341_v8  ;;  %v343_v18 = vadd.f32 %v2059_v0, %v208_v4 }
  0x45   : > { %1975 = vst [vmem:[%s2089_s21 + $0xd0] sm:$0xff] %v1763_v10   ;;  %v1768_v20 = vpack.c.bf16 %v593_v11, %v592_v5  ;;  %v595_v21 = vmax.f32 %v339_v3, %v467_v12  ;;  %v470_v22 = vmul.f32 0.2, %v342_v13  ;;  %v344_v23 = vadd.f32 %v2059_v0, %v209_v9  ;;  %v222_v3 = vld [vmem:[%s2064_s17 + $0x258] sm:$0xff] }
  0x46   : > { %v596_v25 = vmax.f32 %v340_v7, %v468_v16  ;;  %v597_v26 = vmax.f32 %v341_v8, %v469_v17  ;;  %v471_v27 = vmul.f32 0.2, %v343_v18  ;;  %v345_v28 = vadd.f32 %v2059_v0, %v210_v14  ;;  %v223_v8 = vld [vmem:[%s2064_s17 + $0x260] sm:$0xff] }
  0x47   : > { %1976 = vst [vmem:[%s2089_s21 + $0xd8] sm:$0xff] %v1768_v20   ;;  %v1773_v31 = vpack.c.bf16 %v595_v21, %v594_v15  ;;  %v598_v32 = vmax.f32 %v342_v13, %v470_v22  ;;  %v472_v33 = vmul.f32 0.2, %v344_v23  ;;  %v346_v34 = vadd.f32 %v2059_v0, %v211_v19  ;;  %v224_v13 = vld [vmem:[%s2064_s17 + $0x268] sm:$0xff] }
  0x48   : > { %v1778_v36 = vpack.c.bf16 %v597_v26, %v596_v25  ;;  %v599_v37 = vmax.f32 %v343_v18, %v471_v27  ;;  %v473_v38 = vmul.f32 0.2, %v345_v28  ;;  %v347_v39 = vadd.f32 %v2059_v0, %v212_v24  ;;  %v225_v18 = vld [vmem:[%s2064_s17 + $0x270] sm:$0xff] }
  0x49   : > { %1977 = vst [vmem:[%s2089_s21 + $0xe0] sm:$0xff] %v1773_v31   ;;  %v600_v41 = vmax.f32 %v344_v23, %v472_v33  ;;  %v474_v42 = vmul.f32 0.2, %v346_v34  ;;  %v348_v43 = vadd.f32 %v2059_v0, %v213_v29  ;;  %v349_v44 = vadd.f32 %v2059_v0, %v214_v30  ;;  %v226_v23 = vld [vmem:[%s2064_s17 + $0x278] sm:$0xff]  ;;  %v228_v33 = vld [vmem:[%s2064_s17 + $0x288] sm:$0xff] }
  0x4a   : > { %1978 = vst [vmem:[%s2089_s21 + $0xe8] sm:$0xff] %v1778_v36   ;;  %v1783_v46 = vpack.c.bf16 %v599_v37, %v598_v32  ;;  %v601_v47 = vmax.f32 %v345_v28, %v473_v38  ;;  %v475_v48 = vmul.f32 0.2, %v347_v39  ;;  %v350_v49 = vadd.f32 %v2059_v0, %v215_v35  ;;  %v227_v28 = vld [vmem:[%s2064_s17 + $0x280] sm:$0xff]  ;;  %v229_v38 = vld [vmem:[%s2064_s17 + $0x290] sm:$0xff] }
  0x4b   : > { %v602_v51 = vmax.f32 %v346_v34, %v474_v42  ;;  %v476_v52 = vmul.f32 0.2, %v348_v43  ;;  %v477_v53 = vmul.f32 0.2, %v349_v44  ;;  %v351_v54 = vadd.f32 %v2059_v0, %v216_v40 }
  0x4c   : > { %1979 = vst [vmem:[%s2089_s21 + $0xf0] sm:$0xff] %v1783_v46   ;;  %v1788_v56 = vpack.c.bf16 %v601_v47, %v600_v41  ;;  %v603_v57 = vmax.f32 %v347_v39, %v475_v48  ;;  %v478_v58 = vmul.f32 0.2, %v350_v49  ;;  %v352_v59 = vadd.f32 %v2059_v0, %v217_v45  ;;  %v230_v39 = vld [vmem:[%s2064_s17 + $0x298] sm:$0xff] }
  0x4d   : > { %v604_v61 = vmax.f32 %v348_v43, %v476_v52  ;;  %v605_v62 = vmax.f32 %v349_v44, %v477_v53  ;;  %v479_v63 = vmul.f32 0.2, %v351_v54  ;;  %v353_v1 = vadd.f32 %v2059_v0, %v218_v50  ;;  %v231_v44 = vld [vmem:[%s2064_s17 + $0x2a0] sm:$0xff] }
  0x4e   : > { %1980 = vst [vmem:[%s2089_s21 + $0xf8] sm:$0xff] %v1788_v56   ;;  %v1793_v4 = vpack.c.bf16 %v603_v57, %v602_v51  ;;  %v606_v5 = vmax.f32 %v350_v49, %v478_v58  ;;  %v480_v6 = vmul.f32 0.2, %v352_v59  ;;  %v354_v7 = vadd.f32 %v2059_v0, %v219_v55  ;;  %v232_v49 = vld [vmem:[%s2064_s17 + $0x2a8] sm:$0xff] }
  0x4f   : > { %v1798_v9 = vpack.c.bf16 %v605_v62, %v604_v61  ;;  %v607_v10 = vmax.f32 %v351_v54, %v479_v63  ;;  %v481_v11 = vmul.f32 0.2, %v353_v1  ;;  %v355_v12 = vadd.f32 %v2059_v0, %v220_v60  ;;  %v233_v54 = vld [vmem:[%s2064_s17 + $0x2b0] sm:$0xff] }
  0x50   : > { %1981 = vst [vmem:[%s2089_s21 + $0x100] sm:$0xff] %v1793_v4   ;;  %v608_v14 = vmax.f32 %v352_v59, %v480_v6  ;;  %v482_v15 = vmul.f32 0.2, %v354_v7  ;;  %v356_v16 = vadd.f32 %v2059_v0, %v221_v2  ;;  %v357_v17 = vadd.f32 %v2059_v0, %v222_v3  ;;  %v234_v59 = vld [vmem:[%s2064_s17 + $0x2b8] sm:$0xff]  ;;  %v236_v6 = vld [vmem:[%s2064_s17 + $0x2c8] sm:$0xff] }
  0x51   : > { %1982 = vst [vmem:[%s2089_s21 + $0x108] sm:$0xff] %v1798_v9   ;;  %v1803_v19 = vpack.c.bf16 %v607_v10, %v606_v5  ;;  %v609_v20 = vmax.f32 %v353_v1, %v481_v11  ;;  %v483_v21 = vmul.f32 0.2, %v355_v12  ;;  %v358_v22 = vadd.f32 %v2059_v0, %v223_v8  ;;  %v235_v1 = vld [vmem:[%s2064_s17 + $0x2c0] sm:$0xff]  ;;  %v237_v11 = vld [vmem:[%s2064_s17 + $0x2d0] sm:$0xff] }
  0x52   : > { %v610_v24 = vmax.f32 %v354_v7, %v482_v15  ;;  %v484_v25 = vmul.f32 0.2, %v356_v16  ;;  %v485_v26 = vmul.f32 0.2, %v357_v17  ;;  %v359_v27 = vadd.f32 %v2059_v0, %v224_v13 }
  0x53   : > { %1983 = vst [vmem:[%s2089_s21 + $0x110] sm:$0xff] %v1803_v19   ;;  %v1808_v29 = vpack.c.bf16 %v609_v20, %v608_v14  ;;  %v611_v30 = vmax.f32 %v355_v12, %v483_v21  ;;  %v486_v31 = vmul.f32 0.2, %v358_v22  ;;  %v360_v32 = vadd.f32 %v2059_v0, %v225_v18  ;;  %v238_v12 = vld [vmem:[%s2064_s17 + $0x2d8] sm:$0xff] }
  0x54   : > { %v612_v34 = vmax.f32 %v356_v16, %v484_v25  ;;  %v613_v35 = vmax.f32 %v357_v17, %v485_v26  ;;  %v487_v36 = vmul.f32 0.2, %v359_v27  ;;  %v361_v37 = vadd.f32 %v2059_v0, %v226_v23  ;;  %v239_v17 = vld [vmem:[%s2064_s17 + $0x2e0] sm:$0xff] }
  0x55   : > { %1984 = vst [vmem:[%s2089_s21 + $0x118] sm:$0xff] %v1808_v29   ;;  %v1813_v40 = vpack.c.bf16 %v611_v30, %v610_v24  ;;  %v614_v41 = vmax.f32 %v358_v22, %v486_v31  ;;  %v488_v42 = vmul.f32 0.2, %v360_v32  ;;  %v362_v43 = vadd.f32 %v2059_v0, %v227_v28  ;;  %v240_v22 = vld [vmem:[%s2064_s17 + $0x2e8] sm:$0xff] }
  0x56   : > { %v1818_v45 = vpack.c.bf16 %v613_v35, %v612_v34  ;;  %v615_v46 = vmax.f32 %v359_v27, %v487_v36  ;;  %v489_v47 = vmul.f32 0.2, %v361_v37  ;;  %v363_v48 = vadd.f32 %v2059_v0, %v228_v33  ;;  %v241_v27 = vld [vmem:[%s2064_s17 + $0x2f0] sm:$0xff] }
  0x57   : > { %1985 = vst [vmem:[%s2089_s21 + $0x120] sm:$0xff] %v1813_v40   ;;  %v616_v50 = vmax.f32 %v360_v32, %v488_v42  ;;  %v490_v51 = vmul.f32 0.2, %v362_v43  ;;  %v364_v52 = vadd.f32 %v2059_v0, %v229_v38  ;;  %v365_v53 = vadd.f32 %v2059_v0, %v230_v39  ;;  %v242_v32 = vld [vmem:[%s2064_s17 + $0x2f8] sm:$0xff]  ;;  %v244_v42 = vld [vmem:[%s2064_s17 + $0x308] sm:$0xff] }
  0x58   : > { %1986 = vst [vmem:[%s2089_s21 + $0x128] sm:$0xff] %v1818_v45   ;;  %v1823_v55 = vpack.c.bf16 %v615_v46, %v614_v41  ;;  %v617_v56 = vmax.f32 %v361_v37, %v489_v47  ;;  %v491_v57 = vmul.f32 0.2, %v363_v48  ;;  %v366_v58 = vadd.f32 %v2059_v0, %v231_v44  ;;  %v243_v37 = vld [vmem:[%s2064_s17 + $0x300] sm:$0xff]  ;;  %v245_v47 = vld [vmem:[%s2064_s17 + $0x310] sm:$0xff] }
  0x59   : > { %v618_v60 = vmax.f32 %v362_v43, %v490_v51  ;;  %v492_v61 = vmul.f32 0.2, %v364_v52  ;;  %v493_v62 = vmul.f32 0.2, %v365_v53  ;;  %v367_v63 = vadd.f32 %v2059_v0, %v232_v49 }
  0x5a   : > { %1987 = vst [vmem:[%s2089_s21 + $0x130] sm:$0xff] %v1823_v55   ;;  %v1828_v2 = vpack.c.bf16 %v617_v56, %v616_v50  ;;  %v619_v3 = vmax.f32 %v363_v48, %v491_v57  ;;  %v494_v4 = vmul.f32 0.2, %v366_v58  ;;  %v368_v5 = vadd.f32 %v2059_v0, %v233_v54  ;;  %v246_v48 = vld [vmem:[%s2064_s17 + $0x318] sm:$0xff] }
  0x5b   : > { %v620_v7 = vmax.f32 %v364_v52, %v492_v61  ;;  %v621_v8 = vmax.f32 %v365_v53, %v493_v62  ;;  %v495_v9 = vmul.f32 0.2, %v367_v63  ;;  %v369_v10 = vadd.f32 %v2059_v0, %v234_v59  ;;  %v247_v53 = vld [vmem:[%s2064_s17 + $0x320] sm:$0xff] }
  0x5c   : > { %1988 = vst [vmem:[%s2089_s21 + $0x138] sm:$0xff] %v1828_v2   ;;  %v1833_v13 = vpack.c.bf16 %v619_v3, %v618_v60  ;;  %v622_v14 = vmax.f32 %v366_v58, %v494_v4  ;;  %v496_v15 = vmul.f32 0.2, %v368_v5  ;;  %v370_v16 = vadd.f32 %v2059_v0, %v235_v1  ;;  %v248_v58 = vld [vmem:[%s2064_s17 + $0x328] sm:$0xff] }
  0x5d   : > { %v1838_v18 = vpack.c.bf16 %v621_v8, %v620_v7  ;;  %v623_v19 = vmax.f32 %v367_v63, %v495_v9  ;;  %v497_v20 = vmul.f32 0.2, %v369_v10  ;;  %v371_v21 = vadd.f32 %v2059_v0, %v236_v6  ;;  %v249_v63 = vld [vmem:[%s2064_s17 + $0x330] sm:$0xff] }
  0x5e   : > { %1989 = vst [vmem:[%s2089_s21 + $0x140] sm:$0xff] %v1833_v13   ;;  %v624_v23 = vmax.f32 %v368_v5, %v496_v15  ;;  %v498_v24 = vmul.f32 0.2, %v370_v16  ;;  %v372_v25 = vadd.f32 %v2059_v0, %v237_v11  ;;  %v373_v26 = vadd.f32 %v2059_v0, %v238_v12  ;;  %v250_v5 = vld [vmem:[%s2064_s17 + $0x338] sm:$0xff]  ;;  %v252_v15 = vld [vmem:[%s2064_s17 + $0x348] sm:$0xff] }
  0x5f   : > { %1990 = vst [vmem:[%s2089_s21 + $0x148] sm:$0xff] %v1838_v18   ;;  %v1843_v28 = vpack.c.bf16 %v623_v19, %v622_v14  ;;  %v625_v29 = vmax.f32 %v369_v10, %v497_v20  ;;  %v499_v30 = vmul.f32 0.2, %v371_v21  ;;  %v374_v31 = vadd.f32 %v2059_v0, %v239_v17  ;;  %v251_v10 = vld [vmem:[%s2064_s17 + $0x340] sm:$0xff]  ;;  %v253_v20 = vld [vmem:[%s2064_s17 + $0x350] sm:$0xff] }
  0x60   : > { %v626_v33 = vmax.f32 %v370_v16, %v498_v24  ;;  %v500_v34 = vmul.f32 0.2, %v372_v25  ;;  %v501_v35 = vmul.f32 0.2, %v373_v26  ;;  %v375_v36 = vadd.f32 %v2059_v0, %v240_v22 }
  0x61   : > { %1991 = vst [vmem:[%s2089_s21 + $0x150] sm:$0xff] %v1843_v28   ;;  %v1848_v38 = vpack.c.bf16 %v625_v29, %v624_v23  ;;  %v627_v39 = vmax.f32 %v371_v21, %v499_v30  ;;  %v502_v40 = vmul.f32 0.2, %v374_v31  ;;  %v376_v41 = vadd.f32 %v2059_v0, %v241_v27  ;;  %v254_v21 = vld [vmem:[%s2064_s17 + $0x358] sm:$0xff]  ;;  %v255_v27 = vld [vmem:[%s2064_s17 + $0x360] sm:$0xff] }
  0x62   : > { %v628_v43 = vmax.f32 %v372_v25, %v500_v34  ;;  %v629_v44 = vmax.f32 %v373_v26, %v501_v35  ;;  %v503_v45 = vmul.f32 0.2, %v375_v36  ;;  %v377_v46 = vadd.f32 %v2059_v0, %v242_v32  ;;  %v2335_v25 = vld [vmem:[%s2401_s1] ss:$0 sm:$0xff] }
  0x63   : > { %1992 = vst [vmem:[%s2089_s21 + $0x158] sm:$0xff] %v1848_v38   ;;  %v1853_v49 = vpack.c.bf16 %v627_v39, %v626_v33  ;;  %v630_v50 = vmax.f32 %v374_v31, %v502_v40  ;;  %v504_v51 = vmul.f32 0.2, %v376_v41  ;;  %v378_v52 = vadd.f32 %v2059_v0, %v243_v37  ;;  %v256_v31 = vld [vmem:[%s2064_s17 + $0x368] sm:$0xff] }
  0x64   : > { %v1858_v54 = vpack.c.bf16 %v629_v44, %v628_v43  ;;  %v631_v55 = vmax.f32 %v375_v36, %v503_v45  ;;  %v505_v56 = vmul.f32 0.2, %v377_v46  ;;  %v379_v57 = vadd.f32 %v2059_v0, %v244_v42  ;;  %v257_v36 = vld [vmem:[%s2064_s17 + $0x370] sm:$0xff] }
  0x65   : > { %1993 = vst [vmem:[%s2089_s21 + $0x160] sm:$0xff] %v1853_v49   ;;  %v632_v59 = vmax.f32 %v376_v41, %v504_v51  ;;  %v506_v60 = vmul.f32 0.2, %v378_v52  ;;  %v380_v61 = vadd.f32 %v2059_v0, %v245_v47  ;;  %v381_v62 = vadd.f32 %v2059_v0, %v246_v48  ;;  %v258_v41 = vld [vmem:[%s2064_s17 + $0x378] sm:$0xff]  ;;  %v260_v51 = vld [vmem:[%s2064_s17 + $0x388] sm:$0xff] }
  0x66   : > { %1994 = vst [vmem:[%s2089_s21 + $0x168] sm:$0xff] %v1858_v54   ;;  %v1863_v1 = vpack.c.bf16 %v631_v55, %v630_v50  ;;  %v633_v2 = vmax.f32 %v377_v46, %v505_v56  ;;  %v507_v3 = vmul.f32 0.2, %v379_v57  ;;  %v382_v4 = vadd.f32 %v2059_v0, %v247_v53  ;;  %v259_v46 = vld [vmem:[%s2064_s17 + $0x380] sm:$0xff]  ;;  %v261_v56 = vld [vmem:[%s2064_s17 + $0x390] sm:$0xff] }
  0x67   : > { %v634_v6 = vmax.f32 %v378_v52, %v506_v60  ;;  %v508_v7 = vmul.f32 0.2, %v380_v61  ;;  %v509_v8 = vmul.f32 0.2, %v381_v62  ;;  %v383_v9 = vadd.f32 %v2059_v0, %v248_v58 }
  0x68   : > { %1995 = vst [vmem:[%s2089_s21 + $0x170] sm:$0xff] %v1863_v1   ;;  %v1868_v11 = vpack.c.bf16 %v633_v2, %v632_v59  ;;  %v635_v12 = vmax.f32 %v379_v57, %v507_v3  ;;  %v510_v13 = vmul.f32 0.2, %v382_v4  ;;  %v384_v14 = vadd.f32 %v2059_v0, %v249_v63  ;;  %v262_v57 = vld [vmem:[%s2064_s17 + $0x398] sm:$0xff] }
  0x69   : > { %v636_v16 = vmax.f32 %v380_v61, %v508_v7  ;;  %v637_v17 = vmax.f32 %v381_v62, %v509_v8  ;;  %v511_v18 = vmul.f32 0.2, %v383_v9  ;;  %v385_v19 = vadd.f32 %v2059_v0, %v250_v5  ;;  %v263_v62 = vld [vmem:[%s2064_s17 + $0x3a0] sm:$0xff] }
  0x6a   : > { %1996 = vst [vmem:[%s2089_s21 + $0x178] sm:$0xff] %v1868_v11   ;;  %v1873_v22 = vpack.c.bf16 %v635_v12, %v634_v6  ;;  %v638_v23 = vmax.f32 %v382_v4, %v510_v13  ;;  %v512_v24 = vmul.f32 0.2, %v384_v14  ;;  %v386_v26 = vadd.f32 %v2335_v25, %v251_v10  ;;  %v264_v4 = vld [vmem:[%s2064_s17 + $0x3a8] sm:$0xff] }
  0x6b   : > { %v1878_v28 = vpack.c.bf16 %v637_v17, %v636_v16  ;;  %v639_v29 = vmax.f32 %v383_v9, %v511_v18  ;;  %v513_v0 = vmul.f32 0.2, %v385_v19  ;;  %v387_v30 = vadd.f32 %v2335_v25, %v252_v15  ;;  %v265_v9 = vld [vmem:[%s2064_s17 + $0x3b0] sm:$0xff] }
  0x6c   : > { %1997 = vst [vmem:[%s2089_s21 + $0x180] sm:$0xff] %v1873_v22   ;;  %v640_v32 = vmax.f32 %v384_v14, %v512_v24  ;;  %v514_v33 = vmul.f32 0.2, %v386_v26  ;;  %v388_v34 = vadd.f32 %v2335_v25, %v253_v20  ;;  %v389_v35 = vadd.f32 %v2335_v25, %v254_v21  ;;  %v266_v14 = vld [vmem:[%s2064_s17 + $0x3b8] sm:$0xff]  ;;  %v268_v24 = vld [vmem:[%s2064_s17 + $0x3c8] sm:$0xff] }
  0x6d   : > { %1998 = vst [vmem:[%s2089_s21 + $0x188] sm:$0xff] %v1878_v28   ;;  %v1883_v37 = vpack.c.bf16 %v639_v29, %v638_v23  ;;  %v641_v38 = vmax.f32 %v385_v19, %v513_v0  ;;  %v515_v39 = vmul.f32 0.2, %v387_v30  ;;  %v390_v40 = vadd.f32 %v2335_v25, %v255_v27  ;;  %v267_v19 = vld [vmem:[%s2064_s17 + $0x3c0] sm:$0xff]  ;;  %v269_v0 = vld [vmem:[%s2064_s17 + $0x3d0] sm:$0xff] }
  0x6e   : > { %v642_v42 = vmax.f32 %v386_v26, %v514_v33  ;;  %v516_v43 = vmul.f32 0.2, %v388_v34  ;;  %v517_v44 = vmul.f32 0.2, %v389_v35  ;;  %v391_v45 = vadd.f32 %v2335_v25, %v256_v31 }
  0x6f   : > { %1999 = vst [vmem:[%s2089_s21 + $0x190] sm:$0xff] %v1883_v37   ;;  %v1888_v47 = vpack.c.bf16 %v641_v38, %v640_v32  ;;  %v643_v48 = vmax.f32 %v387_v30, %v515_v39  ;;  %v518_v49 = vmul.f32 0.2, %v390_v40  ;;  %v392_v50 = vadd.f32 %v2335_v25, %v257_v36  ;;  %v270_v30 = vld [vmem:[%s2064_s17 + $0x3d8] sm:$0xff] }
  0x70   : > { %v644_v52 = vmax.f32 %v388_v34, %v516_v43  ;;  %v645_v53 = vmax.f32 %v389_v35, %v517_v44  ;;  %v519_v54 = vmul.f32 0.2, %v391_v45  ;;  %v393_v55 = vadd.f32 %v2335_v25, %v258_v41  ;;  %v271_v35 = vld [vmem:[%s2064_s17 + $0x3e0] sm:$0xff] }
  0x71   : > { %2000 = vst [vmem:[%s2089_s21 + $0x198] sm:$0xff] %v1888_v47   ;;  %v1893_v58 = vpack.c.bf16 %v643_v48, %v642_v42  ;;  %v646_v59 = vmax.f32 %v390_v40, %v518_v49  ;;  %v520_v60 = vmul.f32 0.2, %v392_v50  ;;  %v394_v61 = vadd.f32 %v2335_v25, %v259_v46  ;;  %v272_v40 = vld [vmem:[%s2064_s17 + $0x3e8] sm:$0xff] }
  0x72   : > { %v1898_v63 = vpack.c.bf16 %v645_v53, %v644_v52  ;;  %v647_v1 = vmax.f32 %v391_v45, %v519_v54  ;;  %v521_v2 = vmul.f32 0.2, %v393_v55  ;;  %v395_v3 = vadd.f32 %v2335_v25, %v260_v51  ;;  %v273_v45 = vld [vmem:[%s2064_s17 + $0x3f0] sm:$0xff] }
  0x73   : > { %2001 = vst [vmem:[%s2089_s21 + $0x1a0] sm:$0xff] %v1893_v58   ;;  %v648_v5 = vmax.f32 %v392_v50, %v520_v60  ;;  %v522_v6 = vmul.f32 0.2, %v394_v61  ;;  %v396_v7 = vadd.f32 %v2335_v25, %v261_v56  ;;  %v397_v8 = vadd.f32 %v2335_v25, %v262_v57  ;;  %v274_v50 = vld [vmem:[%s2064_s17 + $0x3f8] sm:$0xff] }
  0x74   : > { %2002 = vst [vmem:[%s2089_s21 + $0x1a8] sm:$0xff] %v1898_v63   ;;  %v1903_v10 = vpack.c.bf16 %v647_v1, %v646_v59  ;;  %v649_v11 = vmax.f32 %v393_v55, %v521_v2  ;;  %v523_v12 = vmul.f32 0.2, %v395_v3  ;;  %v398_v13 = vadd.f32 %v2335_v25, %v263_v62 }
  0x75   : > { %v650_v15 = vmax.f32 %v394_v61, %v522_v6  ;;  %v524_v16 = vmul.f32 0.2, %v396_v7  ;;  %v525_v17 = vmul.f32 0.2, %v397_v8  ;;  %v399_v18 = vadd.f32 %v2335_v25, %v264_v4 }
  0x76   : > { %2003 = vst [vmem:[%s2089_s21 + $0x1b0] sm:$0xff] %v1903_v10   ;;  %v1908_v20 = vpack.c.bf16 %v649_v11, %v648_v5  ;;  %v651_v21 = vmax.f32 %v395_v3, %v523_v12  ;;  %v526_v22 = vmul.f32 0.2, %v398_v13  ;;  %v400_v23 = vadd.f32 %v2335_v25, %v265_v9 }
  0x77   : > { %v652_v26 = vmax.f32 %v396_v7, %v524_v16  ;;  %v653_v27 = vmax.f32 %v397_v8, %v525_v17  ;;  %v527_v28 = vmul.f32 0.2, %v399_v18  ;;  %v401_v29 = vadd.f32 %v2335_v25, %v266_v14 }
  0x78   : > { %2004 = vst [vmem:[%s2089_s21 + $0x1b8] sm:$0xff] %v1908_v20   ;;  %v1913_v31 = vpack.c.bf16 %v651_v21, %v650_v15  ;;  %v654_v32 = vmax.f32 %v398_v13, %v526_v22  ;;  %v528_v33 = vmul.f32 0.2, %v400_v23  ;;  %v402_v34 = vadd.f32 %v2335_v25, %v267_v19 }
  0x79   : > { %v1918_v36 = vpack.c.bf16 %v653_v27, %v652_v26  ;;  %v655_v37 = vmax.f32 %v399_v18, %v527_v28  ;;  %v529_v38 = vmul.f32 0.2, %v401_v29  ;;  %v403_v39 = vadd.f32 %v2335_v25, %v268_v24 }
  0x7a   : > { %2005 = vst [vmem:[%s2089_s21 + $0x1c0] sm:$0xff] %v1913_v31   ;;  %v656_v41 = vmax.f32 %v400_v23, %v528_v33  ;;  %v530_v42 = vmul.f32 0.2, %v402_v34  ;;  %v404_v43 = vadd.f32 %v2335_v25, %v269_v0  ;;  %v405_v44 = vadd.f32 %v2335_v25, %v270_v30 }
  0x7b   : > { %2006 = vst [vmem:[%s2089_s21 + $0x1c8] sm:$0xff] %v1918_v36   ;;  %v1923_v46 = vpack.c.bf16 %v655_v37, %v654_v32  ;;  %v657_v47 = vmax.f32 %v401_v29, %v529_v38  ;;  %v531_v48 = vmul.f32 0.2, %v403_v39  ;;  %v406_v49 = vadd.f32 %v2335_v25, %v271_v35 }
  0x7c   : > { %v658_v51 = vmax.f32 %v402_v34, %v530_v42  ;;  %v532_v52 = vmul.f32 0.2, %v404_v43  ;;  %v533_v53 = vmul.f32 0.2, %v405_v44  ;;  %v407_v54 = vadd.f32 %v2335_v25, %v272_v40 }
  0x7d   : > { %2007 = vst [vmem:[%s2089_s21 + $0x1d0] sm:$0xff] %v1923_v46   ;;  %v1928_v55 = vpack.c.bf16 %v657_v47, %v656_v41  ;;  %v659_v56 = vmax.f32 %v403_v39, %v531_v48  ;;  %v534_v57 = vmul.f32 0.2, %v406_v49  ;;  %v408_v58 = vadd.f32 %v2335_v25, %v273_v45 }
  0x7e   : > { %v660_v59 = vmax.f32 %v404_v43, %v532_v52  ;;  %v661_v60 = vmax.f32 %v405_v44, %v533_v53  ;;  %v535_v61 = vmul.f32 0.2, %v407_v54  ;;  %v409_v62 = vadd.f32 %v2335_v25, %v274_v50 }
  0x7f   : > { %2008 = vst [vmem:[%s2089_s21 + $0x1d8] sm:$0xff] %v1928_v55   ;;  %v1933_v63 = vpack.c.bf16 %v659_v56, %v658_v51  ;;  %v662_v1 = vmax.f32 %v406_v49, %v534_v57  ;;  %v536_v2 = vmul.f32 0.2, %v408_v58 }
  0x80   : > { %v1938_v3 = vpack.c.bf16 %v661_v60, %v660_v59  ;;  %v663_v4 = vmax.f32 %v407_v54, %v535_v61  ;;  %v537_v5 = vmul.f32 0.2, %v409_v62 }
  0x81   : > { %2009 = vst [vmem:[%s2089_s21 + $0x1e0] sm:$0xff] %v1933_v63   ;;  %v664_v6 = vmax.f32 %v408_v58, %v536_v2 }
  0x82   : > { %2010 = vst [vmem:[%s2089_s21 + $0x1e8] sm:$0xff] %v1938_v3   ;;  %v1943_v7 = vpack.c.bf16 %v663_v4, %v662_v1  ;;  %v665_v8 = vmax.f32 %v409_v62, %v537_v5 }
  0x84   : > { %2011 = vst [vmem:[%s2089_s21 + $0x1f0] sm:$0xff] %v1943_v7   ;;  %v1948_v9 = vpack.c.bf16 %v665_v8, %v664_v6 }
  0x86   : > { %2012 = vst [vmem:[%s2089_s21 + $0x1f8] sm:$0xff] %v1948_v9  }
  0x87 PF: > { %s12_s9 = sadd.s32 1, %s2028_s9  }
  0x88   : > { %p9_p4 = scmp.ge.s32.totalorder %s12_s9, 4  }
  0x8a   :  { %11 = sbr.rel (!%p9_p4) target bundleno = 1 (0x1), region = 58 }

// kernel: risley_speeds_forward.10
= control target key start
LH: loop header
LB: loop body
LE: loop exit
PB: predicated region body
PF: predicated region fallthrough
CT: control target
= control target key end

     0   :  { %s666_s0 = inlined_call_operand.vmem [shape: f32[256,128], index: 0, kind: input, shape index: {}]   ;;  %s667_s1 = inlined_call_operand.vmem [shape: f32[1,128], index: 1, kind: input, shape index: {}]   ;;  %s668_s2 = inlined_call_operand.vmem [shape: bf16[256,128], index: 2, kind: output, shape index: {}]  }
   0x1   :  { %v11_v0 = vld [vmem:[%s666_s0] sm:$0xff]  ;;  %v12_v1 = vld [vmem:[%s666_s0 + $0x8] sm:$0xff]  ;;  %v13_v5 = vld [vmem:[%s666_s0 + $0x10] sm:$0xff] }
   0x2   :  { %v494_v2 = vld [vmem:[%s667_s1] ss:$0 sm:$0xff]  ;;  %v14_v6 = vld [vmem:[%s666_s0 + $0x18] sm:$0xff]  ;;  %v16_v10 = vld [vmem:[%s666_s0 + $0x28] sm:$0xff] }
   0x3   :  { %v50_v3 = vadd.f32 %v494_v2, %v11_v0  ;;  %v51_v4 = vadd.f32 %v494_v2, %v12_v1  ;;  %v15_v7 = vld [vmem:[%s666_s0 + $0x20] sm:$0xff]  ;;  %v52_v8 = vadd.f32 %v494_v2, %v13_v5  ;;  %v53_v9 = vadd.f32 %v494_v2, %v14_v6  ;;  %v17_v12 = vld [vmem:[%s666_s0 + $0x30] sm:$0xff]  ;;  %v18_v13 = vld [vmem:[%s666_s0 + $0x38] sm:$0xff] }
   0x4   :  { %v54_v11 = vadd.f32 %v494_v2, %v15_v7  ;;  %v55_v16 = vadd.f32 %v494_v2, %v16_v10  ;;  %v56_v17 = vadd.f32 %v494_v2, %v17_v12  ;;  %v19_v18 = vld [vmem:[%s666_s0 + $0x40] sm:$0xff]  ;;  %v57_v22 = vadd.f32 %v494_v2, %v18_v13  ;;  %v20_v27 = vld [vmem:[%s666_s0 + $0x48] sm:$0xff]  ;;  %v21_v28 = vld [vmem:[%s666_s0 + $0x50] sm:$0xff] }
   0x5   :  { %v82_v14 = vmul.f32 0.2, %v50_v3  ;;  %v83_v15 = vmul.f32 0.2, %v51_v4  ;;  %v84_v19 = vmul.f32 0.2, %v52_v8  ;;  %v58_v38 = vadd.f32 %v494_v2, %v19_v18 }
   0x6   :  { %v85_v20 = vmul.f32 0.2, %v53_v9  ;;  %v86_v21 = vmul.f32 0.2, %v54_v11  ;;  %v87_v25 = vmul.f32 0.2, %v55_v16  ;;  %v59_v42 = vadd.f32 %v494_v2, %v20_v27 }
   0x7   :  { %v114_v23 = vmax.f32 %v50_v3, %v82_v14  ;;  %v115_v24 = vmax.f32 %v51_v4, %v83_v15  ;;  %v88_v26 = vmul.f32 0.2, %v56_v17  ;;  %v116_v29 = vmax.f32 %v52_v8, %v84_v19  ;;  %v22_v33 = vld [vmem:[%s666_s0 + $0x58] sm:$0xff]  ;;  %v23_v34 = vld [vmem:[%s666_s0 + $0x60] sm:$0xff]  ;;  %v24_v39 = vld [vmem:[%s666_s0 + $0x68] sm:$0xff] }
   0x8   :  { %v117_v30 = vmax.f32 %v53_v9, %v85_v20  ;;  %v118_v31 = vmax.f32 %v54_v11, %v86_v21  ;;  %v89_v32 = vmul.f32 0.2, %v57_v22  ;;  %v119_v36 = vmax.f32 %v55_v16, %v87_v25  ;;  %v25_v44 = vld [vmem:[%s666_s0 + $0x70] sm:$0xff]  ;;  %v26_v49 = vld [vmem:[%s666_s0 + $0x78] sm:$0xff]  ;;  %v27_v54 = vld [vmem:[%s666_s0 + $0x80] sm:$0xff] }
   0x9   :  { %v378_v35 = vpack.c.bf16 %v115_v24, %v114_v23  ;;  %v120_v37 = vmax.f32 %v56_v17, %v88_v26  ;;  %v60_v43 = vadd.f32 %v494_v2, %v21_v28  ;;  %v90_v46 = vmul.f32 0.2, %v58_v38  ;;  %v28_v59 = vld [vmem:[%s666_s0 + $0x88] sm:$0xff]  ;;  %v29_v0 = vld [vmem:[%s666_s0 + $0x90] sm:$0xff]  ;;  %v30_v6 = vld [vmem:[%s666_s0 + $0x98] sm:$0xff] }
   0xa   :  { %v383_v40 = vpack.c.bf16 %v117_v30, %v116_v29  ;;  %v121_v41 = vmax.f32 %v57_v22, %v89_v32  ;;  %v388_v45 = vpack.c.bf16 %v119_v36, %v118_v31  ;;  %v61_v47 = vadd.f32 %v494_v2, %v22_v33  ;;  %v31_v11 = vld [vmem:[%s666_s0 + $0xa0] sm:$0xff]  ;;  %v32_v12 = vld [vmem:[%s666_s0 + $0xa8] sm:$0xff]  ;;  %v33_v17 = vld [vmem:[%s666_s0 + $0xb0] sm:$0xff] }
   0xb   :  { %379 = vst [vmem:[%s668_s2] sm:$0xff] %v378_v35   ;;  %v62_v48 = vadd.f32 %v494_v2, %v23_v34  ;;  %v91_v51 = vmul.f32 0.2, %v59_v42  ;;  %v92_v52 = vmul.f32 0.2, %v60_v43  ;;  %v63_v53 = vadd.f32 %v494_v2, %v24_v39  ;;  %v34_v22 = vld [vmem:[%s666_s0 + $0xb8] sm:$0xff]  ;;  %v35_v27 = vld [vmem:[%s666_s0 + $0xc0] sm:$0xff] }
   0xc   :  { %455 = vst [vmem:[%s668_s2 + $0x8] sm:$0xff] %v383_v40   ;;  %v393_v50 = vpack.c.bf16 %v121_v41, %v120_v37  ;;  %456 = vst [vmem:[%s668_s2 + $0x10] sm:$0xff] %v388_v45   ;;  %v122_v55 = vmax.f32 %v58_v38, %v90_v46  ;;  %v93_v56 = vmul.f32 0.2, %v61_v47  ;;  %v64_v58 = vadd.f32 %v494_v2, %v25_v44  ;;  %v36_v32 = vld [vmem:[%s666_s0 + $0xc8] sm:$0xff]  ;;  %v37_v37 = vld [vmem:[%s666_s0 + $0xd0] sm:$0xff] }
   0xd   :  { %v94_v57 = vmul.f32 0.2, %v62_v48  ;;  %v123_v60 = vmax.f32 %v59_v42, %v91_v51  ;;  %v124_v61 = vmax.f32 %v60_v43, %v92_v52  ;;  %v95_v62 = vmul.f32 0.2, %v63_v53  ;;  %v38_v42 = vld [vmem:[%s666_s0 + $0xd8] sm:$0xff] }
   0xe   :  { %457 = vst [vmem:[%s668_s2 + $0x18] sm:$0xff] %v393_v50   ;;  %v65_v63 = vadd.f32 %v494_v2, %v26_v49  ;;  %v125_v1 = vmax.f32 %v61_v47, %v93_v56  ;;  %v96_v4 = vmul.f32 0.2, %v64_v58  ;;  %v66_v5 = vadd.f32 %v494_v2, %v27_v54  ;;  %v39_v47 = vld [vmem:[%s666_s0 + $0xe0] sm:$0xff] }
   0xf   :  { %v126_v3 = vmax.f32 %v62_v48, %v94_v57  ;;  %v398_v7 = vpack.c.bf16 %v123_v60, %v122_v55  ;;  %v127_v8 = vmax.f32 %v63_v53, %v95_v62  ;;  %v67_v10 = vadd.f32 %v494_v2, %v28_v59  ;;  %v40_v48 = vld [vmem:[%s666_s0 + $0xe8] sm:$0xff]  ;;  %v41_v53 = vld [vmem:[%s666_s0 + $0xf0] sm:$0xff] }
  0x10   :  { %v97_v9 = vmul.f32 0.2, %v65_v63  ;;  %v403_v13 = vpack.c.bf16 %v125_v1, %v124_v61  ;;  %v128_v14 = vmax.f32 %v64_v58, %v96_v4  ;;  %v98_v15 = vmul.f32 0.2, %v66_v5  ;;  %v42_v58 = vld [vmem:[%s666_s0 + $0xf8] sm:$0xff] }
  0x11   :  { %v68_v16 = vadd.f32 %v494_v2, %v29_v0  ;;  %458 = vst [vmem:[%s668_s2 + $0x20] sm:$0xff] %v398_v7   ;;  %v408_v18 = vpack.c.bf16 %v127_v8, %v126_v3  ;;  %v99_v20 = vmul.f32 0.2, %v67_v10  ;;  %v69_v21 = vadd.f32 %v494_v2, %v30_v6 }
  0x12   :  { %v129_v19 = vmax.f32 %v65_v63, %v97_v9  ;;  %459 = vst [vmem:[%s668_s2 + $0x28] sm:$0xff] %v403_v13   ;;  %v130_v23 = vmax.f32 %v66_v5, %v98_v15  ;;  %v70_v25 = vadd.f32 %v494_v2, %v31_v11  ;;  %v71_v26 = vadd.f32 %v494_v2, %v32_v12 }
  0x13   :  { %v100_v24 = vmul.f32 0.2, %v68_v16  ;;  %460 = vst [vmem:[%s668_s2 + $0x30] sm:$0xff] %v408_v18   ;;  %v131_v29 = vmax.f32 %v67_v10, %v99_v20  ;;  %v101_v30 = vmul.f32 0.2, %v69_v21  ;;  %v72_v31 = vadd.f32 %v494_v2, %v33_v17 }
  0x14   :  { %v413_v28 = vpack.c.bf16 %v129_v19, %v128_v14  ;;  %v102_v34 = vmul.f32 0.2, %v70_v25  ;;  %v103_v35 = vmul.f32 0.2, %v71_v26  ;;  %v73_v36 = vadd.f32 %v494_v2, %v34_v22 }
  0x15   :  { %v132_v33 = vmax.f32 %v68_v16, %v100_v24  ;;  %v418_v38 = vpack.c.bf16 %v131_v29, %v130_v23  ;;  %v133_v39 = vmax.f32 %v69_v21, %v101_v30  ;;  %v104_v40 = vmul.f32 0.2, %v72_v31 }
  0x16   :  { %461 = vst [vmem:[%s668_s2 + $0x38] sm:$0xff] %v413_v28   ;;  %v74_v41 = vadd.f32 %v494_v2, %v35_v27  ;;  %v134_v43 = vmax.f32 %v70_v25, %v102_v34  ;;  %v135_v44 = vmax.f32 %v71_v26, %v103_v35  ;;  %v105_v45 = vmul.f32 0.2, %v73_v36 }
  0x17   :  { %v75_v46 = vadd.f32 %v494_v2, %v36_v32  ;;  %462 = vst [vmem:[%s668_s2 + $0x40] sm:$0xff] %v418_v38   ;;  %v423_v49 = vpack.c.bf16 %v133_v39, %v132_v33  ;;  %v136_v50 = vmax.f32 %v72_v31, %v104_v40  ;;  %v76_v52 = vadd.f32 %v494_v2, %v37_v37 }
  0x18   :  { %v106_v51 = vmul.f32 0.2, %v74_v41  ;;  %v428_v54 = vpack.c.bf16 %v135_v44, %v134_v43  ;;  %v137_v55 = vmax.f32 %v73_v36, %v105_v45  ;;  %v77_v57 = vadd.f32 %v494_v2, %v38_v42 }
  0x19   :  { %v107_v56 = vmul.f32 0.2, %v75_v46  ;;  %463 = vst [vmem:[%s668_s2 + $0x48] sm:$0xff] %v423_v49   ;;  %v108_v60 = vmul.f32 0.2, %v76_v52  ;;  %v78_v61 = vadd.f32 %v494_v2, %v39_v47  ;;  %v79_v62 = vadd.f32 %v494_v2, %v40_v48 }
  0x1a   :  { %v138_v59 = vmax.f32 %v74_v41, %v106_v51  ;;  %464 = vst [vmem:[%s668_s2 + $0x50] sm:$0xff] %v428_v54   ;;  %v433_v63 = vpack.c.bf16 %v137_v55, %v136_v50  ;;  %v109_v1 = vmul.f32 0.2, %v77_v57  ;;  %v80_v3 = vadd.f32 %v494_v2, %v41_v53 }
  0x1b   :  { %v139_v0 = vmax.f32 %v75_v46, %v107_v56  ;;  %v140_v4 = vmax.f32 %v76_v52, %v108_v60  ;;  %v110_v5 = vmul.f32 0.2, %v78_v61  ;;  %v111_v6 = vmul.f32 0.2, %v79_v62 }
  0x1c   :  { %v81_v7 = vadd.f32 %v494_v2, %v42_v58  ;;  %465 = vst [vmem:[%s668_s2 + $0x58] sm:$0xff] %v433_v63   ;;  %v141_v9 = vmax.f32 %v77_v57, %v109_v1  ;;  %v112_v10 = vmul.f32 0.2, %v80_v3 }
  0x1d   :  { %v438_v8 = vpack.c.bf16 %v139_v0, %v138_v59  ;;  %v142_v11 = vmax.f32 %v78_v61, %v110_v5  ;;  %v143_v12 = vmax.f32 %v79_v62, %v111_v6 }
  0x1e   :  { %v113_v13 = vmul.f32 0.2, %v81_v7  ;;  %v443_v14 = vpack.c.bf16 %v141_v9, %v140_v4  ;;  %v144_v15 = vmax.f32 %v80_v3, %v112_v10 }
  0x1f   :  { %466 = vst [vmem:[%s668_s2 + $0x60] sm:$0xff] %v438_v8   ;;  %v448_v16 = vpack.c.bf16 %v143_v12, %v142_v11 }
  0x20   :  { %v145_v17 = vmax.f32 %v81_v7, %v113_v13  ;;  %467 = vst [vmem:[%s668_s2 + $0x68] sm:$0xff] %v443_v14  }
  0x21   :  { %468 = vst [vmem:[%s668_s2 + $0x70] sm:$0xff] %v448_v16  }
  0x22   :  { %v453_v2 = vpack.c.bf16 %v145_v17, %v144_v15 }
  0x24   :  { %469 = vst [vmem:[%s668_s2 + $0x78] sm:$0xff] %v453_v2  }

// kernel: risley_speeds_forward.11
= control target key start
LH: loop header
LB: loop body
LE: loop exit
PB: predicated region body
PF: predicated region fallthrough
CT: control target
= control target key end

     0   :  { %s1290_s0 = inlined_call_operand.vmem [shape: f32[512,128], index: 0, kind: input, shape index: {}]   ;;  %s1291_s1 = inlined_call_operand.vmem [shape: f32[1,128], index: 1, kind: input, shape index: {}]   ;;  %s1292_s2 = inlined_call_operand.vmem [shape: bf16[512,128], index: 2, kind: output, shape index: {}]  }
   0x1   :  { %v11_v0 = vld [vmem:[%s1290_s0] sm:$0xff]  ;;  %v12_v1 = vld [vmem:[%s1290_s0 + $0x8] sm:$0xff]  ;;  %v13_v5 = vld [vmem:[%s1290_s0 + $0x10] sm:$0xff] }
   0x2   :  { %v942_v2 = vld [vmem:[%s1291_s1] ss:$0 sm:$0xff]  ;;  %v14_v6 = vld [vmem:[%s1290_s0 + $0x18] sm:$0xff]  ;;  %v16_v10 = vld [vmem:[%s1290_s0 + $0x28] sm:$0xff] }
   0x3   :  { %v82_v3 = vadd.f32 %v942_v2, %v11_v0  ;;  %v83_v4 = vadd.f32 %v942_v2, %v12_v1  ;;  %v15_v7 = vld [vmem:[%s1290_s0 + $0x20] sm:$0xff]  ;;  %v84_v8 = vadd.f32 %v942_v2, %v13_v5  ;;  %v85_v9 = vadd.f32 %v942_v2, %v14_v6  ;;  %v17_v12 = vld [vmem:[%s1290_s0 + $0x30] sm:$0xff]  ;;  %v18_v13 = vld [vmem:[%s1290_s0 + $0x38] sm:$0xff] }
   0x4   :  { %v86_v11 = vadd.f32 %v942_v2, %v15_v7  ;;  %v87_v16 = vadd.f32 %v942_v2, %v16_v10  ;;  %v88_v17 = vadd.f32 %v942_v2, %v17_v12  ;;  %v19_v18 = vld [vmem:[%s1290_s0 + $0x40] sm:$0xff]  ;;  %v89_v22 = vadd.f32 %v942_v2, %v18_v13  ;;  %v20_v27 = vld [vmem:[%s1290_s0 + $0x48] sm:$0xff]  ;;  %v21_v28 = vld [vmem:[%s1290_s0 + $0x50] sm:$0xff] }
   0x5   :  { %v146_v14 = vmul.f32 0.2, %v82_v3  ;;  %v147_v15 = vmul.f32 0.2, %v83_v4  ;;  %v148_v19 = vmul.f32 0.2, %v84_v8  ;;  %v90_v38 = vadd.f32 %v942_v2, %v19_v18 }
   0x6   :  { %v149_v20 = vmul.f32 0.2, %v85_v9  ;;  %v150_v21 = vmul.f32 0.2, %v86_v11  ;;  %v151_v25 = vmul.f32 0.2, %v87_v16  ;;  %v91_v42 = vadd.f32 %v942_v2, %v20_v27 }
   0x7   :  { %v210_v23 = vmax.f32 %v82_v3, %v146_v14  ;;  %v211_v24 = vmax.f32 %v83_v4, %v147_v15  ;;  %v152_v26 = vmul.f32 0.2, %v88_v17  ;;  %v212_v29 = vmax.f32 %v84_v8, %v148_v19  ;;  %v22_v33 = vld [vmem:[%s1290_s0 + $0x58] sm:$0xff]  ;;  %v23_v34 = vld [vmem:[%s1290_s0 + $0x60] sm:$0xff]  ;;  %v24_v39 = vld [vmem:[%s1290_s0 + $0x68] sm:$0xff] }
   0x8   :  { %v213_v30 = vmax.f32 %v85_v9, %v149_v20  ;;  %v214_v31 = vmax.f32 %v86_v11, %v150_v21  ;;  %v153_v32 = vmul.f32 0.2, %v89_v22  ;;  %v215_v36 = vmax.f32 %v87_v16, %v151_v25  ;;  %v25_v44 = vld [vmem:[%s1290_s0 + $0x70] sm:$0xff]  ;;  %v26_v49 = vld [vmem:[%s1290_s0 + $0x78] sm:$0xff]  ;;  %v27_v54 = vld [vmem:[%s1290_s0 + $0x80] sm:$0xff] }
   0x9   :  { %v730_v35 = vpack.c.bf16 %v211_v24, %v210_v23  ;;  %v216_v37 = vmax.f32 %v88_v17, %v152_v26  ;;  %v92_v43 = vadd.f32 %v942_v2, %v21_v28  ;;  %v154_v46 = vmul.f32 0.2, %v90_v38  ;;  %v28_v59 = vld [vmem:[%s1290_s0 + $0x88] sm:$0xff]  ;;  %v29_v0 = vld [vmem:[%s1290_s0 + $0x90] sm:$0xff]  ;;  %v30_v6 = vld [vmem:[%s1290_s0 + $0x98] sm:$0xff] }
   0xa   :  { %v735_v40 = vpack.c.bf16 %v213_v30, %v212_v29  ;;  %v217_v41 = vmax.f32 %v89_v22, %v153_v32  ;;  %v740_v45 = vpack.c.bf16 %v215_v36, %v214_v31  ;;  %v93_v47 = vadd.f32 %v942_v2, %v22_v33  ;;  %v31_v11 = vld [vmem:[%s1290_s0 + $0xa0] sm:$0xff]  ;;  %v32_v12 = vld [vmem:[%s1290_s0 + $0xa8] sm:$0xff]  ;;  %v33_v17 = vld [vmem:[%s1290_s0 + $0xb0] sm:$0xff] }
   0xb   :  { %731 = vst [vmem:[%s1292_s2] sm:$0xff] %v730_v35   ;;  %v94_v48 = vadd.f32 %v942_v2, %v23_v34  ;;  %v155_v51 = vmul.f32 0.2, %v91_v42  ;;  %v156_v52 = vmul.f32 0.2, %v92_v43  ;;  %v95_v53 = vadd.f32 %v942_v2, %v24_v39  ;;  %v34_v22 = vld [vmem:[%s1290_s0 + $0xb8] sm:$0xff]  ;;  %v35_v27 = vld [vmem:[%s1290_s0 + $0xc0] sm:$0xff] }
   0xc   :  { %887 = vst [vmem:[%s1292_s2 + $0x8] sm:$0xff] %v735_v40   ;;  %v745_v50 = vpack.c.bf16 %v217_v41, %v216_v37  ;;  %888 = vst [vmem:[%s1292_s2 + $0x10] sm:$0xff] %v740_v45   ;;  %v218_v55 = vmax.f32 %v90_v38, %v154_v46  ;;  %v157_v56 = vmul.f32 0.2, %v93_v47  ;;  %v96_v58 = vadd.f32 %v942_v2, %v25_v44  ;;  %v36_v32 = vld [vmem:[%s1290_s0 + $0xc8] sm:$0xff]  ;;  %v37_v37 = vld [vmem:[%s1290_s0 + $0xd0] sm:$0xff] }
   0xd   :  { %v158_v57 = vmul.f32 0.2, %v94_v48  ;;  %v219_v60 = vmax.f32 %v91_v42, %v155_v51  ;;  %v220_v61 = vmax.f32 %v92_v43, %v156_v52  ;;  %v159_v62 = vmul.f32 0.2, %v95_v53  ;;  %v38_v42 = vld [vmem:[%s1290_s0 + $0xd8] sm:$0xff] }
   0xe   :  { %889 = vst [vmem:[%s1292_s2 + $0x18] sm:$0xff] %v745_v50   ;;  %v97_v63 = vadd.f32 %v942_v2, %v26_v49  ;;  %v221_v1 = vmax.f32 %v93_v47, %v157_v56  ;;  %v160_v4 = vmul.f32 0.2, %v96_v58  ;;  %v98_v5 = vadd.f32 %v942_v2, %v27_v54  ;;  %v39_v47 = vld [vmem:[%s1290_s0 + $0xe0] sm:$0xff] }
   0xf   :  { %v222_v3 = vmax.f32 %v94_v48, %v158_v57  ;;  %v750_v7 = vpack.c.bf16 %v219_v60, %v218_v55  ;;  %v223_v8 = vmax.f32 %v95_v53, %v159_v62  ;;  %v99_v10 = vadd.f32 %v942_v2, %v28_v59  ;;  %v40_v48 = vld [vmem:[%s1290_s0 + $0xe8] sm:$0xff]  ;;  %v41_v53 = vld [vmem:[%s1290_s0 + $0xf0] sm:$0xff] }
  0x10   :  { %v161_v9 = vmul.f32 0.2, %v97_v63  ;;  %v755_v13 = vpack.c.bf16 %v221_v1, %v220_v61  ;;  %v224_v14 = vmax.f32 %v96_v58, %v160_v4  ;;  %v162_v15 = vmul.f32 0.2, %v98_v5  ;;  %v42_v58 = vld [vmem:[%s1290_s0 + $0xf8] sm:$0xff] }
  0x11   :  { %v100_v16 = vadd.f32 %v942_v2, %v29_v0  ;;  %890 = vst [vmem:[%s1292_s2 + $0x20] sm:$0xff] %v750_v7   ;;  %v760_v18 = vpack.c.bf16 %v223_v8, %v222_v3  ;;  %v163_v20 = vmul.f32 0.2, %v99_v10  ;;  %v101_v21 = vadd.f32 %v942_v2, %v30_v6 }
  0x12   :  { %v225_v19 = vmax.f32 %v97_v63, %v161_v9  ;;  %891 = vst [vmem:[%s1292_s2 + $0x28] sm:$0xff] %v755_v13   ;;  %v226_v23 = vmax.f32 %v98_v5, %v162_v15  ;;  %v102_v25 = vadd.f32 %v942_v2, %v31_v11  ;;  %v103_v26 = vadd.f32 %v942_v2, %v32_v12  ;;  %v43_v63 = vld [vmem:[%s1290_s0 + $0x100] sm:$0xff]  ;;  %v44_v5 = vld [vmem:[%s1290_s0 + $0x108] sm:$0xff]  ;;  %v46_v15 = vld [vmem:[%s1290_s0 + $0x118] sm:$0xff] }
  0x13   :  { %v164_v24 = vmul.f32 0.2, %v100_v16  ;;  %892 = vst [vmem:[%s1292_s2 + $0x30] sm:$0xff] %v760_v18   ;;  %v227_v29 = vmax.f32 %v99_v10, %v163_v20  ;;  %v165_v30 = vmul.f32 0.2, %v101_v21  ;;  %v104_v31 = vadd.f32 %v942_v2, %v33_v17  ;;  %v45_v10 = vld [vmem:[%s1290_s0 + $0x110] sm:$0xff] }
  0x14   :  { %v765_v28 = vpack.c.bf16 %v225_v19, %v224_v14  ;;  %v166_v34 = vmul.f32 0.2, %v102_v25  ;;  %v167_v35 = vmul.f32 0.2, %v103_v26  ;;  %v105_v36 = vadd.f32 %v942_v2, %v34_v22  ;;  %v47_v20 = vld [vmem:[%s1290_s0 + $0x120] sm:$0xff] }
  0x15   :  { %v228_v33 = vmax.f32 %v100_v16, %v164_v24  ;;  %v770_v38 = vpack.c.bf16 %v227_v29, %v226_v23  ;;  %v229_v39 = vmax.f32 %v101_v21, %v165_v30  ;;  %v168_v40 = vmul.f32 0.2, %v104_v31  ;;  %v48_v21 = vld [vmem:[%s1290_s0 + $0x128] sm:$0xff] }
  0x16   :  { %893 = vst [vmem:[%s1292_s2 + $0x38] sm:$0xff] %v765_v28   ;;  %v106_v41 = vadd.f32 %v942_v2, %v35_v27  ;;  %v230_v43 = vmax.f32 %v102_v25, %v166_v34  ;;  %v231_v44 = vmax.f32 %v103_v26, %v167_v35  ;;  %v169_v45 = vmul.f32 0.2, %v105_v36  ;;  %v49_v26 = vld [vmem:[%s1290_s0 + $0x130] sm:$0xff] }
  0x17   :  { %v107_v46 = vadd.f32 %v942_v2, %v36_v32  ;;  %894 = vst [vmem:[%s1292_s2 + $0x40] sm:$0xff] %v770_v38   ;;  %v775_v49 = vpack.c.bf16 %v229_v39, %v228_v33  ;;  %v232_v50 = vmax.f32 %v104_v31, %v168_v40  ;;  %v108_v52 = vadd.f32 %v942_v2, %v37_v37  ;;  %v50_v31 = vld [vmem:[%s1290_s0 + $0x138] sm:$0xff] }
  0x18   :  { %v170_v51 = vmul.f32 0.2, %v106_v41  ;;  %v780_v54 = vpack.c.bf16 %v231_v44, %v230_v43  ;;  %v233_v55 = vmax.f32 %v105_v36, %v169_v45  ;;  %v109_v57 = vadd.f32 %v942_v2, %v38_v42  ;;  %v51_v36 = vld [vmem:[%s1290_s0 + $0x140] sm:$0xff] }
  0x19   :  { %v171_v56 = vmul.f32 0.2, %v107_v46  ;;  %895 = vst [vmem:[%s1292_s2 + $0x48] sm:$0xff] %v775_v49   ;;  %v172_v60 = vmul.f32 0.2, %v108_v52  ;;  %v110_v61 = vadd.f32 %v942_v2, %v39_v47  ;;  %v111_v62 = vadd.f32 %v942_v2, %v40_v48 }
  0x1a   :  { %v234_v59 = vmax.f32 %v106_v41, %v170_v51  ;;  %896 = vst [vmem:[%s1292_s2 + $0x50] sm:$0xff] %v780_v54   ;;  %v785_v0 = vpack.c.bf16 %v233_v55, %v232_v50  ;;  %v173_v3 = vmul.f32 0.2, %v109_v57  ;;  %v112_v4 = vadd.f32 %v942_v2, %v41_v53  ;;  %v52_v41 = vld [vmem:[%s1290_s0 + $0x148] sm:$0xff]  ;;  %v54_v51 = vld [vmem:[%s1290_s0 + $0x158] sm:$0xff] }
  0x1b   :  { %v235_v1 = vmax.f32 %v107_v46, %v171_v56  ;;  %v236_v6 = vmax.f32 %v108_v52, %v172_v60  ;;  %v174_v7 = vmul.f32 0.2, %v110_v61  ;;  %v175_v8 = vmul.f32 0.2, %v111_v62  ;;  %v53_v46 = vld [vmem:[%s1290_s0 + $0x150] sm:$0xff]  ;;  %v55_v56 = vld [vmem:[%s1290_s0 + $0x160] sm:$0xff] }
  0x1c   :  { %v113_v9 = vadd.f32 %v942_v2, %v42_v58  ;;  %897 = vst [vmem:[%s1292_s2 + $0x58] sm:$0xff] %v785_v0   ;;  %v237_v12 = vmax.f32 %v109_v57, %v173_v3  ;;  %v176_v13 = vmul.f32 0.2, %v112_v4  ;;  %v114_v14 = vadd.f32 %v942_v2, %v43_v63  ;;  %v56_v57 = vld [vmem:[%s1290_s0 + $0x168] sm:$0xff] }
  0x1d   :  { %v790_v11 = vpack.c.bf16 %v235_v1, %v234_v59  ;;  %v238_v16 = vmax.f32 %v110_v61, %v174_v7  ;;  %v239_v17 = vmax.f32 %v111_v62, %v175_v8  ;;  %v115_v19 = vadd.f32 %v942_v2, %v44_v5  ;;  %v57_v62 = vld [vmem:[%s1290_s0 + $0x170] sm:$0xff] }
  0x1e   :  { %v177_v18 = vmul.f32 0.2, %v113_v9  ;;  %v795_v22 = vpack.c.bf16 %v237_v12, %v236_v6  ;;  %v240_v23 = vmax.f32 %v112_v4, %v176_v13  ;;  %v178_v24 = vmul.f32 0.2, %v114_v14  ;;  %v58_v4 = vld [vmem:[%s1290_s0 + $0x178] sm:$0xff] }
  0x1f   :  { %898 = vst [vmem:[%s1292_s2 + $0x60] sm:$0xff] %v790_v11   ;;  %v116_v25 = vadd.f32 %v942_v2, %v45_v10  ;;  %v800_v27 = vpack.c.bf16 %v239_v17, %v238_v16  ;;  %v179_v29 = vmul.f32 0.2, %v115_v19  ;;  %v117_v30 = vadd.f32 %v942_v2, %v46_v15 }
  0x20   :  { %v241_v28 = vmax.f32 %v113_v9, %v177_v18  ;;  %899 = vst [vmem:[%s1292_s2 + $0x68] sm:$0xff] %v795_v22   ;;  %v242_v32 = vmax.f32 %v114_v14, %v178_v24  ;;  %v118_v34 = vadd.f32 %v942_v2, %v47_v20  ;;  %v119_v35 = vadd.f32 %v942_v2, %v48_v21  ;;  %v59_v9 = vld [vmem:[%s1290_s0 + $0x180] sm:$0xff]  ;;  %v60_v14 = vld [vmem:[%s1290_s0 + $0x188] sm:$0xff]  ;;  %v62_v24 = vld [vmem:[%s1290_s0 + $0x198] sm:$0xff] }
  0x21   :  { %v180_v33 = vmul.f32 0.2, %v116_v25  ;;  %900 = vst [vmem:[%s1292_s2 + $0x70] sm:$0xff] %v800_v27   ;;  %v243_v38 = vmax.f32 %v115_v19, %v179_v29  ;;  %v181_v39 = vmul.f32 0.2, %v117_v30  ;;  %v120_v40 = vadd.f32 %v942_v2, %v49_v26  ;;  %v61_v19 = vld [vmem:[%s1290_s0 + $0x190] sm:$0xff] }
  0x22   :  { %v805_v37 = vpack.c.bf16 %v241_v28, %v240_v23  ;;  %v182_v43 = vmul.f32 0.2, %v118_v34  ;;  %v183_v44 = vmul.f32 0.2, %v119_v35  ;;  %v121_v45 = vadd.f32 %v942_v2, %v50_v31  ;;  %v63_v29 = vld [vmem:[%s1290_s0 + $0x1a0] sm:$0xff] }
  0x23   :  { %v244_v42 = vmax.f32 %v116_v25, %v180_v33  ;;  %v810_v47 = vpack.c.bf16 %v243_v38, %v242_v32  ;;  %v245_v48 = vmax.f32 %v117_v30, %v181_v39  ;;  %v184_v49 = vmul.f32 0.2, %v120_v40  ;;  %v64_v30 = vld [vmem:[%s1290_s0 + $0x1a8] sm:$0xff] }
  0x24   :  { %901 = vst [vmem:[%s1292_s2 + $0x78] sm:$0xff] %v805_v37   ;;  %v122_v50 = vadd.f32 %v942_v2, %v51_v36  ;;  %v246_v52 = vmax.f32 %v118_v34, %v182_v43  ;;  %v247_v53 = vmax.f32 %v119_v35, %v183_v44  ;;  %v185_v54 = vmul.f32 0.2, %v121_v45  ;;  %v65_v35 = vld [vmem:[%s1290_s0 + $0x1b0] sm:$0xff] }
  0x25   :  { %v123_v55 = vadd.f32 %v942_v2, %v52_v41  ;;  %902 = vst [vmem:[%s1292_s2 + $0x80] sm:$0xff] %v810_v47   ;;  %v815_v58 = vpack.c.bf16 %v245_v48, %v244_v42  ;;  %v248_v59 = vmax.f32 %v120_v40, %v184_v49  ;;  %v124_v61 = vadd.f32 %v942_v2, %v53_v46  ;;  %v66_v40 = vld [vmem:[%s1290_s0 + $0x1b8] sm:$0xff] }
  0x26   :  { %v186_v60 = vmul.f32 0.2, %v122_v50  ;;  %v820_v63 = vpack.c.bf16 %v247_v53, %v246_v52  ;;  %v249_v0 = vmax.f32 %v121_v45, %v185_v54  ;;  %v125_v3 = vadd.f32 %v942_v2, %v54_v51  ;;  %v67_v45 = vld [vmem:[%s1290_s0 + $0x1c0] sm:$0xff] }
  0x27   :  { %v187_v1 = vmul.f32 0.2, %v123_v55  ;;  %903 = vst [vmem:[%s1292_s2 + $0x88] sm:$0xff] %v815_v58   ;;  %v188_v6 = vmul.f32 0.2, %v124_v61  ;;  %v126_v7 = vadd.f32 %v942_v2, %v55_v56  ;;  %v127_v8 = vadd.f32 %v942_v2, %v56_v57 }
  0x28   :  { %v250_v5 = vmax.f32 %v122_v50, %v186_v60  ;;  %904 = vst [vmem:[%s1292_s2 + $0x90] sm:$0xff] %v820_v63   ;;  %v825_v10 = vpack.c.bf16 %v249_v0, %v248_v59  ;;  %v189_v12 = vmul.f32 0.2, %v125_v3  ;;  %v128_v13 = vadd.f32 %v942_v2, %v57_v62  ;;  %v68_v50 = vld [vmem:[%s1290_s0 + $0x1c8] sm:$0xff]  ;;  %v70_v60 = vld [vmem:[%s1290_s0 + $0x1d8] sm:$0xff] }
  0x29   :  { %v251_v11 = vmax.f32 %v123_v55, %v187_v1  ;;  %v252_v15 = vmax.f32 %v124_v61, %v188_v6  ;;  %v190_v16 = vmul.f32 0.2, %v126_v7  ;;  %v191_v17 = vmul.f32 0.2, %v127_v8  ;;  %v69_v55 = vld [vmem:[%s1290_s0 + $0x1d0] sm:$0xff]  ;;  %v71_v1 = vld [vmem:[%s1290_s0 + $0x1e0] sm:$0xff] }
  0x2a   :  { %v129_v18 = vadd.f32 %v942_v2, %v58_v4  ;;  %905 = vst [vmem:[%s1292_s2 + $0x98] sm:$0xff] %v825_v10   ;;  %v253_v21 = vmax.f32 %v125_v3, %v189_v12  ;;  %v192_v22 = vmul.f32 0.2, %v128_v13  ;;  %v130_v23 = vadd.f32 %v942_v2, %v59_v9  ;;  %v72_v3 = vld [vmem:[%s1290_s0 + $0x1e8] sm:$0xff] }
  0x2b   :  { %v830_v20 = vpack.c.bf16 %v251_v11, %v250_v5  ;;  %v254_v25 = vmax.f32 %v126_v7, %v190_v16  ;;  %v255_v26 = vmax.f32 %v127_v8, %v191_v17  ;;  %v131_v28 = vadd.f32 %v942_v2, %v60_v14  ;;  %v73_v8 = vld [vmem:[%s1290_s0 + $0x1f0] sm:$0xff] }
  0x2c   :  { %v193_v27 = vmul.f32 0.2, %v129_v18  ;;  %v835_v31 = vpack.c.bf16 %v253_v21, %v252_v15  ;;  %v256_v32 = vmax.f32 %v128_v13, %v192_v22  ;;  %v194_v33 = vmul.f32 0.2, %v130_v23  ;;  %v74_v13 = vld [vmem:[%s1290_s0 + $0x1f8] sm:$0xff] }
  0x2d   :  { %906 = vst [vmem:[%s1292_s2 + $0xa0] sm:$0xff] %v830_v20   ;;  %v132_v34 = vadd.f32 %v942_v2, %v61_v19  ;;  %v840_v36 = vpack.c.bf16 %v255_v26, %v254_v25  ;;  %v195_v38 = vmul.f32 0.2, %v131_v28  ;;  %v133_v39 = vadd.f32 %v942_v2, %v62_v24 }
  0x2e   :  { %v257_v37 = vmax.f32 %v129_v18, %v193_v27  ;;  %907 = vst [vmem:[%s1292_s2 + $0xa8] sm:$0xff] %v835_v31   ;;  %v258_v41 = vmax.f32 %v130_v23, %v194_v33  ;;  %v134_v43 = vadd.f32 %v942_v2, %v63_v29  ;;  %v135_v44 = vadd.f32 %v942_v2, %v64_v30 }
  0x2f   :  { %v196_v42 = vmul.f32 0.2, %v132_v34  ;;  %908 = vst [vmem:[%s1292_s2 + $0xb0] sm:$0xff] %v840_v36   ;;  %v259_v47 = vmax.f32 %v131_v28, %v195_v38  ;;  %v197_v48 = vmul.f32 0.2, %v133_v39  ;;  %v136_v49 = vadd.f32 %v942_v2, %v65_v35 }
  0x30   :  { %v845_v46 = vpack.c.bf16 %v257_v37, %v256_v32  ;;  %v198_v52 = vmul.f32 0.2, %v134_v43  ;;  %v199_v53 = vmul.f32 0.2, %v135_v44  ;;  %v137_v54 = vadd.f32 %v942_v2, %v66_v40 }
  0x31   :  { %v260_v51 = vmax.f32 %v132_v34, %v196_v42  ;;  %v850_v56 = vpack.c.bf16 %v259_v47, %v258_v41  ;;  %v261_v57 = vmax.f32 %v133_v39, %v197_v48  ;;  %v200_v58 = vmul.f32 0.2, %v136_v49 }
  0x32   :  { %909 = vst [vmem:[%s1292_s2 + $0xb8] sm:$0xff] %v845_v46   ;;  %v138_v59 = vadd.f32 %v942_v2, %v67_v45  ;;  %v262_v61 = vmax.f32 %v134_v43, %v198_v52  ;;  %v263_v62 = vmax.f32 %v135_v44, %v199_v53  ;;  %v201_v63 = vmul.f32 0.2, %v137_v54 }
  0x33   :  { %v139_v0 = vadd.f32 %v942_v2, %v68_v50  ;;  %910 = vst [vmem:[%s1292_s2 + $0xc0] sm:$0xff] %v850_v56   ;;  %v855_v4 = vpack.c.bf16 %v261_v57, %v260_v51  ;;  %v264_v5 = vmax.f32 %v136_v49, %v200_v58  ;;  %v140_v7 = vadd.f32 %v942_v2, %v69_v55 }
  0x34   :  { %v202_v6 = vmul.f32 0.2, %v138_v59  ;;  %v860_v9 = vpack.c.bf16 %v263_v62, %v262_v61  ;;  %v265_v10 = vmax.f32 %v137_v54, %v201_v63  ;;  %v141_v12 = vadd.f32 %v942_v2, %v70_v60 }
  0x35   :  { %v203_v11 = vmul.f32 0.2, %v139_v0  ;;  %911 = vst [vmem:[%s1292_s2 + $0xc8] sm:$0xff] %v855_v4   ;;  %v204_v15 = vmul.f32 0.2, %v140_v7  ;;  %v142_v16 = vadd.f32 %v942_v2, %v71_v1  ;;  %v143_v17 = vadd.f32 %v942_v2, %v72_v3 }
  0x36   :  { %v266_v14 = vmax.f32 %v138_v59, %v202_v6  ;;  %912 = vst [vmem:[%s1292_s2 + $0xd0] sm:$0xff] %v860_v9   ;;  %v865_v18 = vpack.c.bf16 %v265_v10, %v264_v5  ;;  %v205_v20 = vmul.f32 0.2, %v141_v12  ;;  %v144_v21 = vadd.f32 %v942_v2, %v73_v8 }
  0x37   :  { %v267_v19 = vmax.f32 %v139_v0, %v203_v11  ;;  %v268_v22 = vmax.f32 %v140_v7, %v204_v15  ;;  %v206_v23 = vmul.f32 0.2, %v142_v16  ;;  %v207_v24 = vmul.f32 0.2, %v143_v17 }
  0x38   :  { %v145_v25 = vadd.f32 %v942_v2, %v74_v13  ;;  %913 = vst [vmem:[%s1292_s2 + $0xd8] sm:$0xff] %v865_v18   ;;  %v269_v27 = vmax.f32 %v141_v12, %v205_v20  ;;  %v208_v28 = vmul.f32 0.2, %v144_v21 }
  0x39   :  { %v870_v26 = vpack.c.bf16 %v267_v19, %v266_v14  ;;  %v270_v29 = vmax.f32 %v142_v16, %v206_v23  ;;  %v271_v30 = vmax.f32 %v143_v17, %v207_v24 }
  0x3a   :  { %v209_v31 = vmul.f32 0.2, %v145_v25  ;;  %v875_v32 = vpack.c.bf16 %v269_v27, %v268_v22  ;;  %v272_v33 = vmax.f32 %v144_v21, %v208_v28 }
  0x3b   :  { %914 = vst [vmem:[%s1292_s2 + $0xe0] sm:$0xff] %v870_v26   ;;  %v880_v34 = vpack.c.bf16 %v271_v30, %v270_v29 }
  0x3c   :  { %v273_v35 = vmax.f32 %v145_v25, %v209_v31  ;;  %915 = vst [vmem:[%s1292_s2 + $0xe8] sm:$0xff] %v875_v32  }
  0x3d   :  { %916 = vst [vmem:[%s1292_s2 + $0xf0] sm:$0xff] %v880_v34  }
  0x3e   :  { %v885_v2 = vpack.c.bf16 %v273_v35, %v272_v33 }
  0x40   :  { %917 = vst [vmem:[%s1292_s2 + $0xf8] sm:$0xff] %v885_v2  }

// kernel: risley_speeds_forward.12
= control target key start
LH: loop header
LB: loop body
LE: loop exit
PB: predicated region body
PF: predicated region fallthrough
CT: control target
= control target key end

     0   :  { %s188_s0 = inlined_call_operand.vmem [shape: f32[64,128], index: 0, kind: input, shape index: {}]   ;;  %s189_s1 = inlined_call_operand.vmem [shape: f32[1,128], index: 1, kind: input, shape index: {}]   ;;  %s190_s2 = inlined_call_operand.vmem [shape: bf16[64,128], index: 2, kind: output, shape index: {}]  }
   0x1   :  { %v11_v0 = vld [vmem:[%s188_s0] sm:$0xff]  ;;  %v12_v1 = vld [vmem:[%s188_s0 + $0x8] sm:$0xff]  ;;  %v13_v5 = vld [vmem:[%s188_s0 + $0x10] sm:$0xff] }
   0x2   :  { %v94_v2 = vld [vmem:[%s189_s1] ss:$0 sm:$0xff]  ;;  %v14_v6 = vld [vmem:[%s188_s0 + $0x18] sm:$0xff]  ;;  %v16_v10 = vld [vmem:[%s188_s0 + $0x28] sm:$0xff] }
   0x3   :  { %v26_v3 = vadd.f32 %v94_v2, %v11_v0  ;;  %v27_v4 = vadd.f32 %v94_v2, %v12_v1  ;;  %v15_v7 = vld [vmem:[%s188_s0 + $0x20] sm:$0xff]  ;;  %v28_v8 = vadd.f32 %v94_v2, %v13_v5  ;;  %v29_v9 = vadd.f32 %v94_v2, %v14_v6  ;;  %v17_v12 = vld [vmem:[%s188_s0 + $0x30] sm:$0xff]  ;;  %v18_v13 = vld [vmem:[%s188_s0 + $0x38] sm:$0xff] }
   0x4   :  { %v30_v11 = vadd.f32 %v94_v2, %v15_v7  ;;  %v31_v16 = vadd.f32 %v94_v2, %v16_v10  ;;  %v32_v17 = vadd.f32 %v94_v2, %v17_v12  ;;  %v33_v21 = vadd.f32 %v94_v2, %v18_v13 }
   0x5   :  { %v34_v14 = vmul.f32 0.2, %v26_v3  ;;  %v35_v15 = vmul.f32 0.2, %v27_v4  ;;  %v36_v18 = vmul.f32 0.2, %v28_v8 }
   0x6   :  { %v37_v19 = vmul.f32 0.2, %v29_v9  ;;  %v38_v20 = vmul.f32 0.2, %v30_v11  ;;  %v39_v24 = vmul.f32 0.2, %v31_v16 }
   0x7   :  { %v42_v22 = vmax.f32 %v26_v3, %v34_v14  ;;  %v43_v23 = vmax.f32 %v27_v4, %v35_v15  ;;  %v40_v25 = vmul.f32 0.2, %v32_v17  ;;  %v44_v26 = vmax.f32 %v28_v8, %v36_v18 }
   0x8   :  { %v45_v27 = vmax.f32 %v29_v9, %v37_v19  ;;  %v46_v28 = vmax.f32 %v30_v11, %v38_v20  ;;  %v41_v29 = vmul.f32 0.2, %v33_v21  ;;  %v47_v31 = vmax.f32 %v31_v16, %v39_v24 }
   0x9   :  { %v114_v30 = vpack.c.bf16 %v43_v23, %v42_v22  ;;  %v48_v32 = vmax.f32 %v32_v17, %v40_v25 }
   0xa   :  { %v119_v33 = vpack.c.bf16 %v45_v27, %v44_v26  ;;  %v49_v34 = vmax.f32 %v33_v21, %v41_v29  ;;  %v124_v35 = vpack.c.bf16 %v47_v31, %v46_v28 }
   0xb   :  { %115 = vst [vmem:[%s190_s2] sm:$0xff] %v114_v30  }
   0xc   :  { %131 = vst [vmem:[%s190_s2 + $0x8] sm:$0xff] %v119_v33   ;;  %v129_v36 = vpack.c.bf16 %v49_v34, %v48_v32  ;;  %132 = vst [vmem:[%s190_s2 + $0x10] sm:$0xff] %v124_v35  }
   0xe   :  { %133 = vst [vmem:[%s190_s2 + $0x18] sm:$0xff] %v129_v36  }

// kernel: risley_speeds_forward.13
= control target key start
LH: loop header
LB: loop body
LE: loop exit
PB: predicated region body
PF: predicated region fallthrough
CT: control target
= control target key end

     0   :  { %v29_v0 = vlaneseq  ;;  %s253_s1 = inlined_call_operand.vmem [shape: f32[1,256], index: 1, kind: input, shape index: {}]   ;;  %s254_s0 = inlined_call_operand.vmem [shape: f32[64,256], index: 0, kind: input, shape index: {}]   ;;  %s255_s2 = inlined_call_operand.vmem [shape: bf16[64,256], index: 2, kind: output, shape index: {}]  }
   0x1   :  { %v27_v2 = vld [vmem:[%s253_s1] sm:$0x3]  ;;  %v12_v4 = vld [vmem:[%s254_s0 + $0x8] sm:$0xff]  ;;  %v13_v7 = vld [vmem:[%s254_s0 + $0x10] sm:$0xff] }
   0x2   :  { %v30_v1 = vshrl.u32 %v29_v0, 7  ;;  %v11_v3 = vld [vmem:[%s254_s0] sm:$0xff]  ;;  %v14_v8 = vld [vmem:[%s254_s0 + $0x18] sm:$0xff]  ;;  %v16_v12 = vld [vmem:[%s254_s0 + $0x28] sm:$0xff] }
   0x3   :  { %v15_v9 = vld [vmem:[%s254_s0 + $0x20] sm:$0xff]  ;;  %v17_v13 = vld [vmem:[%s254_s0 + $0x30] sm:$0xff]  ;;  %v18_v14 = vld [vmem:[%s254_s0 + $0x38] sm:$0xff] }
   0x4   :  { %v31_v5 = vsub.s32 0, %v30_v1  ;;  %v35_v6 = vsub.s32 1, %v30_v1  ;;  %v19_v15 = vld [vmem:[%s254_s0 + $0x40] sm:$0xff]  ;;  %v20_v20 = vld [vmem:[%s254_s0 + $0x48] sm:$0xff]  ;;  %v21_v37 = vld [vmem:[%s254_s0 + $0x50] sm:$0xff] }
   0x5   :  { %v22_v42 = vld [vmem:[%s254_s0 + $0x58] sm:$0xff]  ;;  %v23_v43 = vld [vmem:[%s254_s0 + $0x60] sm:$0xff]  ;;  %v24_v48 = vld [vmem:[%s254_s0 + $0x68] sm:$0xff] }
   0x6   :  { %v32_v10 = vrot.slane %v27_v2, %v31_v5  ;;  %v36_v11 = vrot.slane %v27_v2, %v35_v6  ;;  %v25_v49 = vld [vmem:[%s254_s0 + $0x70] sm:$0xff]  ;;  %v26_v54 = vld [vmem:[%s254_s0 + $0x78] sm:$0xff] }
   0x8   :  { %v39_v16 = vadd.f32 %v32_v10, %v11_v3  ;;  %v40_v17 = vadd.f32 %v36_v11, %v12_v4  ;;  %v41_v18 = vadd.f32 %v32_v10, %v13_v7  ;;  %v42_v19 = vadd.f32 %v36_v11, %v14_v8 }
   0x9   :  { %v43_v21 = vadd.f32 %v32_v10, %v15_v9  ;;  %v44_v22 = vadd.f32 %v36_v11, %v16_v12  ;;  %v45_v23 = vadd.f32 %v32_v10, %v17_v13  ;;  %v46_v24 = vadd.f32 %v36_v11, %v18_v14 }
   0xa   :  { %v55_v25 = vmul.f32 0.2, %v39_v16  ;;  %v56_v26 = vmul.f32 0.2, %v40_v17  ;;  %v57_v27 = vmul.f32 0.2, %v41_v18  ;;  %v47_v28 = vadd.f32 %v32_v10, %v19_v15 }
   0xb   :  { %v58_v29 = vmul.f32 0.2, %v42_v19  ;;  %v59_v30 = vmul.f32 0.2, %v43_v21  ;;  %v60_v31 = vmul.f32 0.2, %v44_v22  ;;  %v48_v32 = vadd.f32 %v36_v11, %v20_v20 }
   0xc   :  { %v71_v33 = vmax.f32 %v39_v16, %v55_v25  ;;  %v72_v34 = vmax.f32 %v40_v17, %v56_v26  ;;  %v73_v35 = vmax.f32 %v41_v18, %v57_v27  ;;  %v61_v36 = vmul.f32 0.2, %v45_v23 }
   0xd   :  { %v74_v38 = vmax.f32 %v42_v19, %v58_v29  ;;  %v75_v39 = vmax.f32 %v43_v21, %v59_v30  ;;  %v76_v40 = vmax.f32 %v44_v22, %v60_v31  ;;  %v62_v41 = vmul.f32 0.2, %v46_v24 }
   0xe   :  { %v155_v44 = vpack.c.bf16 %v72_v34, %v71_v33  ;;  %v77_v45 = vmax.f32 %v45_v23, %v61_v36  ;;  %v63_v46 = vmul.f32 0.2, %v47_v28  ;;  %v64_v47 = vmul.f32 0.2, %v48_v32 }
   0xf   :  { %v156_v50 = vpack.c.bf16 %v74_v38, %v73_v35  ;;  %v157_v51 = vpack.c.bf16 %v76_v40, %v75_v39  ;;  %v78_v52 = vmax.f32 %v46_v24, %v62_v41  ;;  %v49_v53 = vadd.f32 %v32_v10, %v21_v37 }
  0x10   :  { %135 = vst [vmem:[%s255_s2] sm:$0xff] %v155_v44  ;;  %v79_v55 = vmax.f32 %v47_v28, %v63_v46  ;;  %v80_v56 = vmax.f32 %v48_v32, %v64_v47  ;;  %v50_v57 = vadd.f32 %v36_v11, %v22_v42  ;;  %v51_v58 = vadd.f32 %v32_v10, %v23_v43 }
  0x11   :  { %136 = vst [vmem:[%s255_s2 + $0x8] sm:$0xff] %v156_v50  ;;  %137 = vst [vmem:[%s255_s2 + $0x10] sm:$0xff] %v157_v51  ;;  %v158_v59 = vpack.c.bf16 %v78_v52, %v77_v45  ;;  %v65_v60 = vmul.f32 0.2, %v49_v53  ;;  %v52_v61 = vadd.f32 %v36_v11, %v24_v48  ;;  %v53_v62 = vadd.f32 %v32_v10, %v25_v49 }
  0x12   :  { %v159_v63 = vpack.c.bf16 %v80_v56, %v79_v55  ;;  %v66_v0 = vmul.f32 0.2, %v50_v57  ;;  %v67_v1 = vmul.f32 0.2, %v51_v58  ;;  %v54_v2 = vadd.f32 %v36_v11, %v26_v54 }
  0x13   :  { %138 = vst [vmem:[%s255_s2 + $0x18] sm:$0xff] %v158_v59  ;;  %v81_v3 = vmax.f32 %v49_v53, %v65_v60  ;;  %v68_v4 = vmul.f32 0.2, %v52_v61  ;;  %v69_v5 = vmul.f32 0.2, %v53_v62 }
  0x14   :  { %139 = vst [vmem:[%s255_s2 + $0x20] sm:$0xff] %v159_v63  ;;  %v82_v6 = vmax.f32 %v50_v57, %v66_v0  ;;  %v83_v7 = vmax.f32 %v51_v58, %v67_v1  ;;  %v70_v8 = vmul.f32 0.2, %v54_v2 }
  0x15   :  { %v84_v9 = vmax.f32 %v52_v61, %v68_v4  ;;  %v85_v10 = vmax.f32 %v53_v62, %v69_v5 }
  0x16   :  { %v160_v12 = vpack.c.bf16 %v82_v6, %v81_v3  ;;  %v86_v13 = vmax.f32 %v54_v2, %v70_v8 }
  0x17   :  { %v161_v14 = vpack.c.bf16 %v84_v9, %v83_v7 }
  0x18   :  { %140 = vst [vmem:[%s255_s2 + $0x28] sm:$0xff] %v160_v12  ;;  %v162_v11 = vpack.c.bf16 %v86_v13, %v85_v10 }
  0x19   :  { %141 = vst [vmem:[%s255_s2 + $0x30] sm:$0xff] %v161_v14 }
  0x1a   :  { %142 = vst [vmem:[%s255_s2 + $0x38] sm:$0xff] %v162_v11 }

// kernel: risley_speeds_forward.14
= control target key start
LH: loop header
LB: loop body
LE: loop exit
PB: predicated region body
PF: predicated region fallthrough
CT: control target
= control target key end

     0   :  { %v15_v0 = vlaneseq  ;;  %s73_s1 = inlined_call_operand.vmem [shape: f32[1,256], index: 1, kind: input, shape index: {}]   ;;  %s74_s0 = inlined_call_operand.vmem [shape: f32[8,256], index: 0, kind: input, shape index: {}]   ;;  %s75_s2 = inlined_call_operand.vmem [shape: bf16[8,256], index: 2, kind: output, shape index: {}]  }
   0x1   :  { %v13_v2 = vld [vmem:[%s73_s1] sm:$0x3]  ;;  %v12_v6 = vld [vmem:[%s74_s0 + $0x8] sm:$0xff] }
   0x2   :  { %v16_v1 = vshrl.u32 %v15_v0, 7  ;;  %v11_v5 = vld [vmem:[%s74_s0] sm:$0xff] }
   0x4   :  { %v17_v3 = vsub.s32 0, %v16_v1  ;;  %v21_v4 = vsub.s32 1, %v16_v1 }
   0x6   :  { %v18_v7 = vrot.slane %v13_v2, %v17_v3  ;;  %v22_v8 = vrot.slane %v13_v2, %v21_v4 }
   0x8   :  { %v25_v9 = vadd.f32 %v18_v7, %v11_v5  ;;  %v26_v10 = vadd.f32 %v22_v8, %v12_v6 }
   0xa   :  { %v27_v11 = vmul.f32 0.2, %v25_v9  ;;  %v28_v12 = vmul.f32 0.2, %v26_v10 }
   0xc   :  { %v29_v13 = vmax.f32 %v25_v9, %v27_v11  ;;  %v30_v14 = vmax.f32 %v26_v10, %v28_v12 }
   0xe   :  { %v45_v15 = vpack.c.bf16 %v30_v14, %v29_v13 }
  0x10   :  { %39 = vst [vmem:[%s75_s2] sm:$0xff] %v45_v15 }

// kernel: reverse
= control target key start
LH: loop header
LB: loop body
LE: loop exit
PB: predicated region body
PF: predicated region fallthrough
CT: control target
= control target key end

     0   :  { %s13675_s6 = smov 0   ;;  %s13677_s7 = smov 0   ;;  %s14864_s0 = inlined_call_operand.vmem [shape: bf16[3,3,3,256,512], index: 0, kind: input, shape index: {}]   ;;  %s14865_s1 = inlined_call_operand.vmem [shape: bf16[3,3,3,256,512], index: 1, kind: output, shape index: {}]  }
   0x1   :  { %s13679_s8 = smov 0  }
   0x2 LB: > { %s40_s9 = sadd.s32 1, %s13659_s7  ;;  %p10155_p0 = scmp.ge.s32.totalorder %s13663_s8, 1  ;;  %s13663_s8 = sphi %s13679_s8, %s7_s8   ;;  %s13659_s7 = sphi %s13677_s7, %s14867_s7   ;;  %s13655_s6 = sphi %s13675_s6, %s14866_s6  }
   0x3   : > { %p42_p1 = scmp.ge.s32.totalorder %s40_s9, 3  ;;  %p90_p2 = scmp.lt.s32.totalorder %s13663_s8, 4 }
   0x5   : > { %s14869_s9 = smov (%p42_p1, %s40_s9), 0  ;;  %p91_p3 = pnand %p10155_p0, %p90_p2 }
   0x6   : > { %s151_s10 = ssub.s32 (!%p91_p3), 2, %s13655_s6  ;;  %p189_p4 = scmp.lt.s32.totalorder (!%p91_p3), %s13655_s6, 2 }
   0x7   : > { %94 = sbr.rel (%p91_p3) target bundleno = 307 (0x133), region = 20  ;;  %p158_p5 = scmp.lt.s32.totalorder (!%p91_p3), %s151_s10, 2 }
   0xe   : > { %s14871_s6 = smov (!%p189_p4, %s13655_s6), 2  ;;  %s14873_s10 = smov (!%p158_p5, %s151_s10), 2 }
   0xf   : > { %s13039_s11 = smul.u32 4608, %s14873_s10 }
  0x10   : > { %s13040_s15 = smul.u32 4608, %s14871_s6 }
  0x11   : > { %s13696_s14 = scalar_lea.vmem %s14864_s0, %s13039_s11 }
  0x12   : > { %s13701_s18 = scalar_lea.vmem %s14865_s1, %s13040_s15  ;;  %v13065_v0 = vld [vmem:[%s13696_s14 + $0x1000] sm:$0xff]   ;;  %v13074_v9 = vld [vmem:[%s13696_s14 + $0x1010] sm:$0xff]  }
  0x13   : > { %v13066_v1 = vld [vmem:[%s13696_s14 + $0xa00] sm:$0xff]   ;;  %10448 = vst [vmem:[%s13701_s18] sm:$0xff] %v13065_v0  ;;  %v13075_v10 = vld [vmem:[%s13696_s14 + $0xa10] sm:$0xff]   ;;  %10484 = vst [vmem:[%s13701_s18 + $0x10] sm:$0xff] %v13074_v9 }
  0x14   : > { %v13067_v2 = vld [vmem:[%s13696_s14 + $0x400] sm:$0xff]   ;;  %10452 = vst [vmem:[%s13701_s18 + $0x600] sm:$0xff] %v13066_v1  ;;  %v13076_v11 = vld [vmem:[%s13696_s14 + $0x410] sm:$0xff]   ;;  %10488 = vst [vmem:[%s13701_s18 + $0x610] sm:$0xff] %v13075_v10 }
  0x15   : > { %v13068_v3 = vld [vmem:[%s13696_s14 + $0xe00] sm:$0xff]   ;;  %10456 = vst [vmem:[%s13701_s18 + $0xc00] sm:$0xff] %v13067_v2  ;;  %v13077_v12 = vld [vmem:[%s13696_s14 + $0xe10] sm:$0xff]   ;;  %10492 = vst [vmem:[%s13701_s18 + $0xc10] sm:$0xff] %v13076_v11 }
  0x16   : > { %v13069_v4 = vld [vmem:[%s13696_s14 + $0x800] sm:$0xff]   ;;  %10460 = vst [vmem:[%s13701_s18 + $0x200] sm:$0xff] %v13068_v3  ;;  %v13078_v13 = vld [vmem:[%s13696_s14 + $0x810] sm:$0xff]   ;;  %10496 = vst [vmem:[%s13701_s18 + $0x210] sm:$0xff] %v13077_v12 }
  0x17   : > { %v13070_v5 = vld [vmem:[%s13696_s14 + $0x200] sm:$0xff]   ;;  %10464 = vst [vmem:[%s13701_s18 + $0x800] sm:$0xff] %v13069_v4  ;;  %v13079_v14 = vld [vmem:[%s13696_s14 + $0x210] sm:$0xff]   ;;  %10500 = vst [vmem:[%s13701_s18 + $0x810] sm:$0xff] %v13078_v13 }
  0x18   : > { %v13071_v6 = vld [vmem:[%s13696_s14 + $0xc00] sm:$0xff]   ;;  %10468 = vst [vmem:[%s13701_s18 + $0xe00] sm:$0xff] %v13070_v5  ;;  %v13080_v15 = vld [vmem:[%s13696_s14 + $0xc10] sm:$0xff]   ;;  %10504 = vst [vmem:[%s13701_s18 + $0xe10] sm:$0xff] %v13079_v14 }
  0x19   : > { %v13072_v7 = vld [vmem:[%s13696_s14 + $0x600] sm:$0xff]   ;;  %10472 = vst [vmem:[%s13701_s18 + $0x400] sm:$0xff] %v13071_v6  ;;  %v13081_v16 = vld [vmem:[%s13696_s14 + $0x610] sm:$0xff]   ;;  %10508 = vst [vmem:[%s13701_s18 + $0x410] sm:$0xff] %v13080_v15 }
  0x1a   : > { %v13073_v8 = vld [vmem:[%s13696_s14] sm:$0xff]   ;;  %10476 = vst [vmem:[%s13701_s18 + $0xa00] sm:$0xff] %v13072_v7  ;;  %v13082_v17 = vld [vmem:[%s13696_s14 + $0x10] sm:$0xff]   ;;  %10512 = vst [vmem:[%s13701_s18 + $0xa10] sm:$0xff] %v13081_v16 }
  0x1b   : > { %10480 = vst [vmem:[%s13701_s18 + $0x1000] sm:$0xff] %v13073_v8  ;;  %v13083_v18 = vld [vmem:[%s13696_s14 + $0x1020] sm:$0xff]   ;;  %10516 = vst [vmem:[%s13701_s18 + $0x1010] sm:$0xff] %v13082_v17  ;;  %v13092_v27 = vld [vmem:[%s13696_s14 + $0x1030] sm:$0xff]  }
  0x1c   : > { %v13084_v19 = vld [vmem:[%s13696_s14 + $0xa20] sm:$0xff]   ;;  %10520 = vst [vmem:[%s13701_s18 + $0x20] sm:$0xff] %v13083_v18  ;;  %v13093_v28 = vld [vmem:[%s13696_s14 + $0xa30] sm:$0xff]   ;;  %10556 = vst [vmem:[%s13701_s18 + $0x30] sm:$0xff] %v13092_v27 }
  0x1d   : > { %v13085_v20 = vld [vmem:[%s13696_s14 + $0x420] sm:$0xff]   ;;  %10524 = vst [vmem:[%s13701_s18 + $0x620] sm:$0xff] %v13084_v19  ;;  %v13094_v29 = vld [vmem:[%s13696_s14 + $0x430] sm:$0xff]   ;;  %10560 = vst [vmem:[%s13701_s18 + $0x630] sm:$0xff] %v13093_v28 }
  0x1e   : > { %v13086_v21 = vld [vmem:[%s13696_s14 + $0xe20] sm:$0xff]   ;;  %10528 = vst [vmem:[%s13701_s18 + $0xc20] sm:$0xff] %v13085_v20  ;;  %v13095_v30 = vld [vmem:[%s13696_s14 + $0xe30] sm:$0xff]   ;;  %10564 = vst [vmem:[%s13701_s18 + $0xc30] sm:$0xff] %v13094_v29 }
  0x1f   : > { %v13087_v22 = vld [vmem:[%s13696_s14 + $0x820] sm:$0xff]   ;;  %10532 = vst [vmem:[%s13701_s18 + $0x220] sm:$0xff] %v13086_v21  ;;  %v13096_v31 = vld [vmem:[%s13696_s14 + $0x830] sm:$0xff]   ;;  %10568 = vst [vmem:[%s13701_s18 + $0x230] sm:$0xff] %v13095_v30 }
  0x20   : > { %v13088_v23 = vld [vmem:[%s13696_s14 + $0x220] sm:$0xff]   ;;  %10536 = vst [vmem:[%s13701_s18 + $0x820] sm:$0xff] %v13087_v22  ;;  %v13097_v32 = vld [vmem:[%s13696_s14 + $0x230] sm:$0xff]   ;;  %10572 = vst [vmem:[%s13701_s18 + $0x830] sm:$0xff] %v13096_v31 }
  0x21   : > { %v13089_v24 = vld [vmem:[%s13696_s14 + $0xc20] sm:$0xff]   ;;  %10540 = vst [vmem:[%s13701_s18 + $0xe20] sm:$0xff] %v13088_v23  ;;  %v13098_v33 = vld [vmem:[%s13696_s14 + $0xc30] sm:$0xff]   ;;  %10576 = vst [vmem:[%s13701_s18 + $0xe30] sm:$0xff] %v13097_v32 }
  0x22   : > { %v13090_v25 = vld [vmem:[%s13696_s14 + $0x620] sm:$0xff]   ;;  %10544 = vst [vmem:[%s13701_s18 + $0x420] sm:$0xff] %v13089_v24  ;;  %v13099_v34 = vld [vmem:[%s13696_s14 + $0x630] sm:$0xff]   ;;  %10580 = vst [vmem:[%s13701_s18 + $0x430] sm:$0xff] %v13098_v33 }
  0x23   : > { %v13091_v26 = vld [vmem:[%s13696_s14 + $0x20] sm:$0xff]   ;;  %10548 = vst [vmem:[%s13701_s18 + $0xa20] sm:$0xff] %v13090_v25  ;;  %v13100_v35 = vld [vmem:[%s13696_s14 + $0x30] sm:$0xff]   ;;  %10584 = vst [vmem:[%s13701_s18 + $0xa30] sm:$0xff] %v13099_v34 }
  0x24   : > { %10552 = vst [vmem:[%s13701_s18 + $0x1020] sm:$0xff] %v13091_v26  ;;  %v13101_v36 = vld [vmem:[%s13696_s14 + $0x1040] sm:$0xff]   ;;  %10588 = vst [vmem:[%s13701_s18 + $0x1030] sm:$0xff] %v13100_v35  ;;  %v13110_v45 = vld [vmem:[%s13696_s14 + $0x1050] sm:$0xff]  }
  0x25   : > { %v13102_v37 = vld [vmem:[%s13696_s14 + $0xa40] sm:$0xff]   ;;  %10592 = vst [vmem:[%s13701_s18 + $0x40] sm:$0xff] %v13101_v36  ;;  %v13111_v46 = vld [vmem:[%s13696_s14 + $0xa50] sm:$0xff]   ;;  %10628 = vst [vmem:[%s13701_s18 + $0x50] sm:$0xff] %v13110_v45 }
  0x26   : > { %v13103_v38 = vld [vmem:[%s13696_s14 + $0x440] sm:$0xff]   ;;  %10596 = vst [vmem:[%s13701_s18 + $0x640] sm:$0xff] %v13102_v37  ;;  %v13112_v47 = vld [vmem:[%s13696_s14 + $0x450] sm:$0xff]   ;;  %10632 = vst [vmem:[%s13701_s18 + $0x650] sm:$0xff] %v13111_v46 }
  0x27   : > { %v13104_v39 = vld [vmem:[%s13696_s14 + $0xe40] sm:$0xff]   ;;  %10600 = vst [vmem:[%s13701_s18 + $0xc40] sm:$0xff] %v13103_v38  ;;  %v13113_v48 = vld [vmem:[%s13696_s14 + $0xe50] sm:$0xff]   ;;  %10636 = vst [vmem:[%s13701_s18 + $0xc50] sm:$0xff] %v13112_v47 }
  0x28   : > { %v13105_v40 = vld [vmem:[%s13696_s14 + $0x840] sm:$0xff]   ;;  %10604 = vst [vmem:[%s13701_s18 + $0x240] sm:$0xff] %v13104_v39  ;;  %v13114_v49 = vld [vmem:[%s13696_s14 + $0x850] sm:$0xff]   ;;  %10640 = vst [vmem:[%s13701_s18 + $0x250] sm:$0xff] %v13113_v48 }
  0x29   : > { %v13106_v41 = vld [vmem:[%s13696_s14 + $0x240] sm:$0xff]   ;;  %10608 = vst [vmem:[%s13701_s18 + $0x840] sm:$0xff] %v13105_v40  ;;  %v13115_v50 = vld [vmem:[%s13696_s14 + $0x250] sm:$0xff]   ;;  %10644 = vst [vmem:[%s13701_s18 + $0x850] sm:$0xff] %v13114_v49 }
  0x2a   : > { %v13107_v42 = vld [vmem:[%s13696_s14 + $0xc40] sm:$0xff]   ;;  %10612 = vst [vmem:[%s13701_s18 + $0xe40] sm:$0xff] %v13106_v41  ;;  %v13116_v51 = vld [vmem:[%s13696_s14 + $0xc50] sm:$0xff]   ;;  %10648 = vst [vmem:[%s13701_s18 + $0xe50] sm:$0xff] %v13115_v50 }
  0x2b   : > { %v13108_v43 = vld [vmem:[%s13696_s14 + $0x640] sm:$0xff]   ;;  %10616 = vst [vmem:[%s13701_s18 + $0x440] sm:$0xff] %v13107_v42  ;;  %v13117_v52 = vld [vmem:[%s13696_s14 + $0x650] sm:$0xff]   ;;  %10652 = vst [vmem:[%s13701_s18 + $0x450] sm:$0xff] %v13116_v51 }
  0x2c   : > { %v13109_v44 = vld [vmem:[%s13696_s14 + $0x40] sm:$0xff]   ;;  %10620 = vst [vmem:[%s13701_s18 + $0xa40] sm:$0xff] %v13108_v43  ;;  %v13118_v53 = vld [vmem:[%s13696_s14 + $0x50] sm:$0xff]   ;;  %10656 = vst [vmem:[%s13701_s18 + $0xa50] sm:$0xff] %v13117_v52 }
  0x2d   : > { %10624 = vst [vmem:[%s13701_s18 + $0x1040] sm:$0xff] %v13109_v44  ;;  %v13119_v54 = vld [vmem:[%s13696_s14 + $0x1060] sm:$0xff]   ;;  %10660 = vst [vmem:[%s13701_s18 + $0x1050] sm:$0xff] %v13118_v53  ;;  %v13128_v63 = vld [vmem:[%s13696_s14 + $0x1070] sm:$0xff]  }
  0x2e   : > { %v13120_v55 = vld [vmem:[%s13696_s14 + $0xa60] sm:$0xff]   ;;  %10664 = vst [vmem:[%s13701_s18 + $0x60] sm:$0xff] %v13119_v54  ;;  %v13129_v0 = vld [vmem:[%s13696_s14 + $0xa70] sm:$0xff]   ;;  %10700 = vst [vmem:[%s13701_s18 + $0x70] sm:$0xff] %v13128_v63 }
  0x2f   : > { %v13121_v56 = vld [vmem:[%s13696_s14 + $0x460] sm:$0xff]   ;;  %10668 = vst [vmem:[%s13701_s18 + $0x660] sm:$0xff] %v13120_v55  ;;  %v13130_v1 = vld [vmem:[%s13696_s14 + $0x470] sm:$0xff]   ;;  %10704 = vst [vmem:[%s13701_s18 + $0x670] sm:$0xff] %v13129_v0 }
  0x30   : > { %v13122_v57 = vld [vmem:[%s13696_s14 + $0xe60] sm:$0xff]   ;;  %10672 = vst [vmem:[%s13701_s18 + $0xc60] sm:$0xff] %v13121_v56  ;;  %v13131_v2 = vld [vmem:[%s13696_s14 + $0xe70] sm:$0xff]   ;;  %10708 = vst [vmem:[%s13701_s18 + $0xc70] sm:$0xff] %v13130_v1 }
  0x31   : > { %v13123_v58 = vld [vmem:[%s13696_s14 + $0x860] sm:$0xff]   ;;  %10676 = vst [vmem:[%s13701_s18 + $0x260] sm:$0xff] %v13122_v57  ;;  %v13132_v3 = vld [vmem:[%s13696_s14 + $0x870] sm:$0xff]   ;;  %10712 = vst [vmem:[%s13701_s18 + $0x270] sm:$0xff] %v13131_v2 }
  0x32   : > { %v13124_v59 = vld [vmem:[%s13696_s14 + $0x260] sm:$0xff]   ;;  %10680 = vst [vmem:[%s13701_s18 + $0x860] sm:$0xff] %v13123_v58  ;;  %v13133_v4 = vld [vmem:[%s13696_s14 + $0x270] sm:$0xff]   ;;  %10716 = vst [vmem:[%s13701_s18 + $0x870] sm:$0xff] %v13132_v3 }
  0x33   : > { %v13125_v60 = vld [vmem:[%s13696_s14 + $0xc60] sm:$0xff]   ;;  %10684 = vst [vmem:[%s13701_s18 + $0xe60] sm:$0xff] %v13124_v59  ;;  %v13134_v5 = vld [vmem:[%s13696_s14 + $0xc70] sm:$0xff]   ;;  %10720 = vst [vmem:[%s13701_s18 + $0xe70] sm:$0xff] %v13133_v4 }
  0x34   : > { %v13126_v61 = vld [vmem:[%s13696_s14 + $0x660] sm:$0xff]   ;;  %10688 = vst [vmem:[%s13701_s18 + $0x460] sm:$0xff] %v13125_v60  ;;  %v13135_v6 = vld [vmem:[%s13696_s14 + $0x670] sm:$0xff]   ;;  %10724 = vst [vmem:[%s13701_s18 + $0x470] sm:$0xff] %v13134_v5 }
  0x35   : > { %v13127_v62 = vld [vmem:[%s13696_s14 + $0x60] sm:$0xff]   ;;  %10692 = vst [vmem:[%s13701_s18 + $0xa60] sm:$0xff] %v13126_v61  ;;  %v13136_v7 = vld [vmem:[%s13696_s14 + $0x70] sm:$0xff]   ;;  %10728 = vst [vmem:[%s13701_s18 + $0xa70] sm:$0xff] %v13135_v6 }
  0x36   : > { %10696 = vst [vmem:[%s13701_s18 + $0x1060] sm:$0xff] %v13127_v62  ;;  %v13137_v8 = vld [vmem:[%s13696_s14 + $0x1080] sm:$0xff]   ;;  %10732 = vst [vmem:[%s13701_s18 + $0x1070] sm:$0xff] %v13136_v7  ;;  %v13146_v17 = vld [vmem:[%s13696_s14 + $0x1090] sm:$0xff]  }
  0x37   : > { %v13138_v9 = vld [vmem:[%s13696_s14 + $0xa80] sm:$0xff]   ;;  %10736 = vst [vmem:[%s13701_s18 + $0x80] sm:$0xff] %v13137_v8  ;;  %v13147_v18 = vld [vmem:[%s13696_s14 + $0xa90] sm:$0xff]   ;;  %10772 = vst [vmem:[%s13701_s18 + $0x90] sm:$0xff] %v13146_v17 }
  0x38   : > { %v13139_v10 = vld [vmem:[%s13696_s14 + $0x480] sm:$0xff]   ;;  %10740 = vst [vmem:[%s13701_s18 + $0x680] sm:$0xff] %v13138_v9  ;;  %v13148_v19 = vld [vmem:[%s13696_s14 + $0x490] sm:$0xff]   ;;  %10776 = vst [vmem:[%s13701_s18 + $0x690] sm:$0xff] %v13147_v18 }
  0x39   : > { %v13140_v11 = vld [vmem:[%s13696_s14 + $0xe80] sm:$0xff]   ;;  %10744 = vst [vmem:[%s13701_s18 + $0xc80] sm:$0xff] %v13139_v10  ;;  %v13149_v20 = vld [vmem:[%s13696_s14 + $0xe90] sm:$0xff]   ;;  %10780 = vst [vmem:[%s13701_s18 + $0xc90] sm:$0xff] %v13148_v19 }
  0x3a   : > { %v13141_v12 = vld [vmem:[%s13696_s14 + $0x880] sm:$0xff]   ;;  %10748 = vst [vmem:[%s13701_s18 + $0x280] sm:$0xff] %v13140_v11  ;;  %v13150_v21 = vld [vmem:[%s13696_s14 + $0x890] sm:$0xff]   ;;  %10784 = vst [vmem:[%s13701_s18 + $0x290] sm:$0xff] %v13149_v20 }
  0x3b   : > { %v13142_v13 = vld [vmem:[%s13696_s14 + $0x280] sm:$0xff]   ;;  %10752 = vst [vmem:[%s13701_s18 + $0x880] sm:$0xff] %v13141_v12  ;;  %v13151_v22 = vld [vmem:[%s13696_s14 + $0x290] sm:$0xff]   ;;  %10788 = vst [vmem:[%s13701_s18 + $0x890] sm:$0xff] %v13150_v21 }
  0x3c   : > { %v13143_v14 = vld [vmem:[%s13696_s14 + $0xc80] sm:$0xff]   ;;  %10756 = vst [vmem:[%s13701_s18 + $0xe80] sm:$0xff] %v13142_v13  ;;  %v13152_v23 = vld [vmem:[%s13696_s14 + $0xc90] sm:$0xff]   ;;  %10792 = vst [vmem:[%s13701_s18 + $0xe90] sm:$0xff] %v13151_v22 }
  0x3d   : > { %v13144_v15 = vld [vmem:[%s13696_s14 + $0x680] sm:$0xff]   ;;  %10760 = vst [vmem:[%s13701_s18 + $0x480] sm:$0xff] %v13143_v14  ;;  %v13153_v24 = vld [vmem:[%s13696_s14 + $0x690] sm:$0xff]   ;;  %10796 = vst [vmem:[%s13701_s18 + $0x490] sm:$0xff] %v13152_v23 }
  0x3e   : > { %v13145_v16 = vld [vmem:[%s13696_s14 + $0x80] sm:$0xff]   ;;  %10764 = vst [vmem:[%s13701_s18 + $0xa80] sm:$0xff] %v13144_v15  ;;  %v13154_v25 = vld [vmem:[%s13696_s14 + $0x90] sm:$0xff]   ;;  %10800 = vst [vmem:[%s13701_s18 + $0xa90] sm:$0xff] %v13153_v24 }
  0x3f   : > { %10768 = vst [vmem:[%s13701_s18 + $0x1080] sm:$0xff] %v13145_v16  ;;  %v13155_v26 = vld [vmem:[%s13696_s14 + $0x10a0] sm:$0xff]   ;;  %10804 = vst [vmem:[%s13701_s18 + $0x1090] sm:$0xff] %v13154_v25  ;;  %v13164_v35 = vld [vmem:[%s13696_s14 + $0x10b0] sm:$0xff]  }
  0x40   : > { %v13156_v27 = vld [vmem:[%s13696_s14 + $0xaa0] sm:$0xff]   ;;  %10808 = vst [vmem:[%s13701_s18 + $0xa0] sm:$0xff] %v13155_v26  ;;  %v13165_v36 = vld [vmem:[%s13696_s14 + $0xab0] sm:$0xff]   ;;  %10844 = vst [vmem:[%s13701_s18 + $0xb0] sm:$0xff] %v13164_v35 }
  0x41   : > { %v13157_v28 = vld [vmem:[%s13696_s14 + $0x4a0] sm:$0xff]   ;;  %10812 = vst [vmem:[%s13701_s18 + $0x6a0] sm:$0xff] %v13156_v27  ;;  %v13166_v37 = vld [vmem:[%s13696_s14 + $0x4b0] sm:$0xff]   ;;  %10848 = vst [vmem:[%s13701_s18 + $0x6b0] sm:$0xff] %v13165_v36 }
  0x42   : > { %v13158_v29 = vld [vmem:[%s13696_s14 + $0xea0] sm:$0xff]   ;;  %10816 = vst [vmem:[%s13701_s18 + $0xca0] sm:$0xff] %v13157_v28  ;;  %v13167_v38 = vld [vmem:[%s13696_s14 + $0xeb0] sm:$0xff]   ;;  %10852 = vst [vmem:[%s13701_s18 + $0xcb0] sm:$0xff] %v13166_v37 }
  0x43   : > { %v13159_v30 = vld [vmem:[%s13696_s14 + $0x8a0] sm:$0xff]   ;;  %10820 = vst [vmem:[%s13701_s18 + $0x2a0] sm:$0xff] %v13158_v29  ;;  %v13168_v39 = vld [vmem:[%s13696_s14 + $0x8b0] sm:$0xff]   ;;  %10856 = vst [vmem:[%s13701_s18 + $0x2b0] sm:$0xff] %v13167_v38 }
  0x44   : > { %v13160_v31 = vld [vmem:[%s13696_s14 + $0x2a0] sm:$0xff]   ;;  %10824 = vst [vmem:[%s13701_s18 + $0x8a0] sm:$0xff] %v13159_v30  ;;  %v13169_v40 = vld [vmem:[%s13696_s14 + $0x2b0] sm:$0xff]   ;;  %10860 = vst [vmem:[%s13701_s18 + $0x8b0] sm:$0xff] %v13168_v39 }
  0x45   : > { %v13161_v32 = vld [vmem:[%s13696_s14 + $0xca0] sm:$0xff]   ;;  %10828 = vst [vmem:[%s13701_s18 + $0xea0] sm:$0xff] %v13160_v31  ;;  %v13170_v41 = vld [vmem:[%s13696_s14 + $0xcb0] sm:$0xff]   ;;  %10864 = vst [vmem:[%s13701_s18 + $0xeb0] sm:$0xff] %v13169_v40 }
  0x46   : > { %v13162_v33 = vld [vmem:[%s13696_s14 + $0x6a0] sm:$0xff]   ;;  %10832 = vst [vmem:[%s13701_s18 + $0x4a0] sm:$0xff] %v13161_v32  ;;  %v13171_v42 = vld [vmem:[%s13696_s14 + $0x6b0] sm:$0xff]   ;;  %10868 = vst [vmem:[%s13701_s18 + $0x4b0] sm:$0xff] %v13170_v41 }
  0x47   : > { %v13163_v34 = vld [vmem:[%s13696_s14 + $0xa0] sm:$0xff]   ;;  %10836 = vst [vmem:[%s13701_s18 + $0xaa0] sm:$0xff] %v13162_v33  ;;  %v13172_v43 = vld [vmem:[%s13696_s14 + $0xb0] sm:$0xff]   ;;  %10872 = vst [vmem:[%s13701_s18 + $0xab0] sm:$0xff] %v13171_v42 }
  0x48   : > { %10840 = vst [vmem:[%s13701_s18 + $0x10a0] sm:$0xff] %v13163_v34  ;;  %v13173_v44 = vld [vmem:[%s13696_s14 + $0x10c0] sm:$0xff]   ;;  %10876 = vst [vmem:[%s13701_s18 + $0x10b0] sm:$0xff] %v13172_v43  ;;  %v13182_v53 = vld [vmem:[%s13696_s14 + $0x10d0] sm:$0xff]  }
  0x49   : > { %v13174_v45 = vld [vmem:[%s13696_s14 + $0xac0] sm:$0xff]   ;;  %10880 = vst [vmem:[%s13701_s18 + $0xc0] sm:$0xff] %v13173_v44  ;;  %v13183_v54 = vld [vmem:[%s13696_s14 + $0xad0] sm:$0xff]   ;;  %10916 = vst [vmem:[%s13701_s18 + $0xd0] sm:$0xff] %v13182_v53 }
  0x4a   : > { %v13175_v46 = vld [vmem:[%s13696_s14 + $0x4c0] sm:$0xff]   ;;  %10884 = vst [vmem:[%s13701_s18 + $0x6c0] sm:$0xff] %v13174_v45  ;;  %v13184_v55 = vld [vmem:[%s13696_s14 + $0x4d0] sm:$0xff]   ;;  %10920 = vst [vmem:[%s13701_s18 + $0x6d0] sm:$0xff] %v13183_v54 }
  0x4b   : > { %v13176_v47 = vld [vmem:[%s13696_s14 + $0xec0] sm:$0xff]   ;;  %10888 = vst [vmem:[%s13701_s18 + $0xcc0] sm:$0xff] %v13175_v46  ;;  %v13185_v56 = vld [vmem:[%s13696_s14 + $0xed0] sm:$0xff]   ;;  %10924 = vst [vmem:[%s13701_s18 + $0xcd0] sm:$0xff] %v13184_v55 }
  0x4c   : > { %v13177_v48 = vld [vmem:[%s13696_s14 + $0x8c0] sm:$0xff]   ;;  %10892 = vst [vmem:[%s13701_s18 + $0x2c0] sm:$0xff] %v13176_v47  ;;  %v13186_v57 = vld [vmem:[%s13696_s14 + $0x8d0] sm:$0xff]   ;;  %10928 = vst [vmem:[%s13701_s18 + $0x2d0] sm:$0xff] %v13185_v56 }
  0x4d   : > { %v13178_v49 = vld [vmem:[%s13696_s14 + $0x2c0] sm:$0xff]   ;;  %10896 = vst [vmem:[%s13701_s18 + $0x8c0] sm:$0xff] %v13177_v48  ;;  %v13187_v58 = vld [vmem:[%s13696_s14 + $0x2d0] sm:$0xff]   ;;  %10932 = vst [vmem:[%s13701_s18 + $0x8d0] sm:$0xff] %v13186_v57 }
  0x4e   : > { %v13179_v50 = vld [vmem:[%s13696_s14 + $0xcc0] sm:$0xff]   ;;  %10900 = vst [vmem:[%s13701_s18 + $0xec0] sm:$0xff] %v13178_v49  ;;  %v13188_v59 = vld [vmem:[%s13696_s14 + $0xcd0] sm:$0xff]   ;;  %10936 = vst [vmem:[%s13701_s18 + $0xed0] sm:$0xff] %v13187_v58 }
  0x4f   : > { %v13180_v51 = vld [vmem:[%s13696_s14 + $0x6c0] sm:$0xff]   ;;  %10904 = vst [vmem:[%s13701_s18 + $0x4c0] sm:$0xff] %v13179_v50  ;;  %v13189_v60 = vld [vmem:[%s13696_s14 + $0x6d0] sm:$0xff]   ;;  %10940 = vst [vmem:[%s13701_s18 + $0x4d0] sm:$0xff] %v13188_v59 }
  0x50   : > { %v13181_v52 = vld [vmem:[%s13696_s14 + $0xc0] sm:$0xff]   ;;  %10908 = vst [vmem:[%s13701_s18 + $0xac0] sm:$0xff] %v13180_v51  ;;  %v13190_v61 = vld [vmem:[%s13696_s14 + $0xd0] sm:$0xff]   ;;  %10944 = vst [vmem:[%s13701_s18 + $0xad0] sm:$0xff] %v13189_v60 }
  0x51   : > { %10912 = vst [vmem:[%s13701_s18 + $0x10c0] sm:$0xff] %v13181_v52  ;;  %v13191_v62 = vld [vmem:[%s13696_s14 + $0x10e0] sm:$0xff]   ;;  %10948 = vst [vmem:[%s13701_s18 + $0x10d0] sm:$0xff] %v13190_v61  ;;  %v13200_v7 = vld [vmem:[%s13696_s14 + $0x10f0] sm:$0xff]  }
  0x52   : > { %v13192_v63 = vld [vmem:[%s13696_s14 + $0xae0] sm:$0xff]   ;;  %10952 = vst [vmem:[%s13701_s18 + $0xe0] sm:$0xff] %v13191_v62  ;;  %v13201_v8 = vld [vmem:[%s13696_s14 + $0xaf0] sm:$0xff]   ;;  %10988 = vst [vmem:[%s13701_s18 + $0xf0] sm:$0xff] %v13200_v7 }
  0x53   : > { %v13193_v0 = vld [vmem:[%s13696_s14 + $0x4e0] sm:$0xff]   ;;  %10956 = vst [vmem:[%s13701_s18 + $0x6e0] sm:$0xff] %v13192_v63  ;;  %v13202_v9 = vld [vmem:[%s13696_s14 + $0x4f0] sm:$0xff]   ;;  %10992 = vst [vmem:[%s13701_s18 + $0x6f0] sm:$0xff] %v13201_v8 }
  0x54   : > { %v13194_v1 = vld [vmem:[%s13696_s14 + $0xee0] sm:$0xff]   ;;  %10960 = vst [vmem:[%s13701_s18 + $0xce0] sm:$0xff] %v13193_v0  ;;  %v13203_v10 = vld [vmem:[%s13696_s14 + $0xef0] sm:$0xff]   ;;  %10996 = vst [vmem:[%s13701_s18 + $0xcf0] sm:$0xff] %v13202_v9 }
  0x55   : > { %v13195_v2 = vld [vmem:[%s13696_s14 + $0x8e0] sm:$0xff]   ;;  %10964 = vst [vmem:[%s13701_s18 + $0x2e0] sm:$0xff] %v13194_v1  ;;  %v13204_v11 = vld [vmem:[%s13696_s14 + $0x8f0] sm:$0xff]   ;;  %11000 = vst [vmem:[%s13701_s18 + $0x2f0] sm:$0xff] %v13203_v10 }
  0x56   : > { %v13196_v3 = vld [vmem:[%s13696_s14 + $0x2e0] sm:$0xff]   ;;  %10968 = vst [vmem:[%s13701_s18 + $0x8e0] sm:$0xff] %v13195_v2  ;;  %v13205_v12 = vld [vmem:[%s13696_s14 + $0x2f0] sm:$0xff]   ;;  %11004 = vst [vmem:[%s13701_s18 + $0x8f0] sm:$0xff] %v13204_v11 }
  0x57   : > { %v13197_v4 = vld [vmem:[%s13696_s14 + $0xce0] sm:$0xff]   ;;  %10972 = vst [vmem:[%s13701_s18 + $0xee0] sm:$0xff] %v13196_v3  ;;  %v13206_v13 = vld [vmem:[%s13696_s14 + $0xcf0] sm:$0xff]   ;;  %11008 = vst [vmem:[%s13701_s18 + $0xef0] sm:$0xff] %v13205_v12 }
  0x58   : > { %v13198_v5 = vld [vmem:[%s13696_s14 + $0x6e0] sm:$0xff]   ;;  %10976 = vst [vmem:[%s13701_s18 + $0x4e0] sm:$0xff] %v13197_v4  ;;  %v13207_v14 = vld [vmem:[%s13696_s14 + $0x6f0] sm:$0xff]   ;;  %11012 = vst [vmem:[%s13701_s18 + $0x4f0] sm:$0xff] %v13206_v13 }
  0x59   : > { %v13199_v6 = vld [vmem:[%s13696_s14 + $0xe0] sm:$0xff]   ;;  %10980 = vst [vmem:[%s13701_s18 + $0xae0] sm:$0xff] %v13198_v5  ;;  %v13208_v15 = vld [vmem:[%s13696_s14 + $0xf0] sm:$0xff]   ;;  %11016 = vst [vmem:[%s13701_s18 + $0xaf0] sm:$0xff] %v13207_v14 }
  0x5a   : > { %10984 = vst [vmem:[%s13701_s18 + $0x10e0] sm:$0xff] %v13199_v6  ;;  %v13209_v16 = vld [vmem:[%s13696_s14 + $0x1100] sm:$0xff]   ;;  %11020 = vst [vmem:[%s13701_s18 + $0x10f0] sm:$0xff] %v13208_v15  ;;  %v13218_v25 = vld [vmem:[%s13696_s14 + $0x1110] sm:$0xff]  }
  0x5b   : > { %v13210_v17 = vld [vmem:[%s13696_s14 + $0xb00] sm:$0xff]   ;;  %11024 = vst [vmem:[%s13701_s18 + $0x100] sm:$0xff] %v13209_v16  ;;  %v13219_v26 = vld [vmem:[%s13696_s14 + $0xb10] sm:$0xff]   ;;  %11060 = vst [vmem:[%s13701_s18 + $0x110] sm:$0xff] %v13218_v25 }
  0x5c   : > { %v13211_v18 = vld [vmem:[%s13696_s14 + $0x500] sm:$0xff]   ;;  %11028 = vst [vmem:[%s13701_s18 + $0x700] sm:$0xff] %v13210_v17  ;;  %v13220_v27 = vld [vmem:[%s13696_s14 + $0x510] sm:$0xff]   ;;  %11064 = vst [vmem:[%s13701_s18 + $0x710] sm:$0xff] %v13219_v26 }
  0x5d   : > { %v13212_v19 = vld [vmem:[%s13696_s14 + $0xf00] sm:$0xff]   ;;  %11032 = vst [vmem:[%s13701_s18 + $0xd00] sm:$0xff] %v13211_v18  ;;  %v13221_v28 = vld [vmem:[%s13696_s14 + $0xf10] sm:$0xff]   ;;  %11068 = vst [vmem:[%s13701_s18 + $0xd10] sm:$0xff] %v13220_v27 }
  0x5e   : > { %v13213_v20 = vld [vmem:[%s13696_s14 + $0x900] sm:$0xff]   ;;  %11036 = vst [vmem:[%s13701_s18 + $0x300] sm:$0xff] %v13212_v19  ;;  %v13222_v29 = vld [vmem:[%s13696_s14 + $0x910] sm:$0xff]   ;;  %11072 = vst [vmem:[%s13701_s18 + $0x310] sm:$0xff] %v13221_v28 }
  0x5f   : > { %v13214_v21 = vld [vmem:[%s13696_s14 + $0x300] sm:$0xff]   ;;  %11040 = vst [vmem:[%s13701_s18 + $0x900] sm:$0xff] %v13213_v20  ;;  %v13223_v30 = vld [vmem:[%s13696_s14 + $0x310] sm:$0xff]   ;;  %11076 = vst [vmem:[%s13701_s18 + $0x910] sm:$0xff] %v13222_v29 }
  0x60   : > { %v13215_v22 = vld [vmem:[%s13696_s14 + $0xd00] sm:$0xff]   ;;  %11044 = vst [vmem:[%s13701_s18 + $0xf00] sm:$0xff] %v13214_v21  ;;  %v13224_v31 = vld [vmem:[%s13696_s14 + $0xd10] sm:$0xff]   ;;  %11080 = vst [vmem:[%s13701_s18 + $0xf10] sm:$0xff] %v13223_v30 }
  0x61   : > { %v13216_v23 = vld [vmem:[%s13696_s14 + $0x700] sm:$0xff]   ;;  %11048 = vst [vmem:[%s13701_s18 + $0x500] sm:$0xff] %v13215_v22  ;;  %v13225_v32 = vld [vmem:[%s13696_s14 + $0x710] sm:$0xff]   ;;  %11084 = vst [vmem:[%s13701_s18 + $0x510] sm:$0xff] %v13224_v31 }
  0x62   : > { %v13217_v24 = vld [vmem:[%s13696_s14 + $0x100] sm:$0xff]   ;;  %11052 = vst [vmem:[%s13701_s18 + $0xb00] sm:$0xff] %v13216_v23  ;;  %v13226_v33 = vld [vmem:[%s13696_s14 + $0x110] sm:$0xff]   ;;  %11088 = vst [vmem:[%s13701_s18 + $0xb10] sm:$0xff] %v13225_v32 }
  0x63   : > { %11056 = vst [vmem:[%s13701_s18 + $0x1100] sm:$0xff] %v13217_v24  ;;  %v13227_v34 = vld [vmem:[%s13696_s14 + $0x1120] sm:$0xff]   ;;  %11092 = vst [vmem:[%s13701_s18 + $0x1110] sm:$0xff] %v13226_v33  ;;  %v13236_v43 = vld [vmem:[%s13696_s14 + $0x1130] sm:$0xff]  }
  0x64   : > { %v13228_v35 = vld [vmem:[%s13696_s14 + $0xb20] sm:$0xff]   ;;  %11096 = vst [vmem:[%s13701_s18 + $0x120] sm:$0xff] %v13227_v34  ;;  %v13237_v44 = vld [vmem:[%s13696_s14 + $0xb30] sm:$0xff]   ;;  %11132 = vst [vmem:[%s13701_s18 + $0x130] sm:$0xff] %v13236_v43 }
  0x65   : > { %v13229_v36 = vld [vmem:[%s13696_s14 + $0x520] sm:$0xff]   ;;  %11100 = vst [vmem:[%s13701_s18 + $0x720] sm:$0xff] %v13228_v35  ;;  %v13238_v45 = vld [vmem:[%s13696_s14 + $0x530] sm:$0xff]   ;;  %11136 = vst [vmem:[%s13701_s18 + $0x730] sm:$0xff] %v13237_v44 }
  0x66   : > { %v13230_v37 = vld [vmem:[%s13696_s14 + $0xf20] sm:$0xff]   ;;  %11104 = vst [vmem:[%s13701_s18 + $0xd20] sm:$0xff] %v13229_v36  ;;  %v13239_v46 = vld [vmem:[%s13696_s14 + $0xf30] sm:$0xff]   ;;  %11140 = vst [vmem:[%s13701_s18 + $0xd30] sm:$0xff] %v13238_v45 }
  0x67   : > { %v13231_v38 = vld [vmem:[%s13696_s14 + $0x920] sm:$0xff]   ;;  %11108 = vst [vmem:[%s13701_s18 + $0x320] sm:$0xff] %v13230_v37  ;;  %v13240_v47 = vld [vmem:[%s13696_s14 + $0x930] sm:$0xff]   ;;  %11144 = vst [vmem:[%s13701_s18 + $0x330] sm:$0xff] %v13239_v46 }
  0x68   : > { %v13232_v39 = vld [vmem:[%s13696_s14 + $0x320] sm:$0xff]   ;;  %11112 = vst [vmem:[%s13701_s18 + $0x920] sm:$0xff] %v13231_v38  ;;  %v13241_v48 = vld [vmem:[%s13696_s14 + $0x330] sm:$0xff]   ;;  %11148 = vst [vmem:[%s13701_s18 + $0x930] sm:$0xff] %v13240_v47 }
  0x69   : > { %v13233_v40 = vld [vmem:[%s13696_s14 + $0xd20] sm:$0xff]   ;;  %11116 = vst [vmem:[%s13701_s18 + $0xf20] sm:$0xff] %v13232_v39  ;;  %v13242_v49 = vld [vmem:[%s13696_s14 + $0xd30] sm:$0xff]   ;;  %11152 = vst [vmem:[%s13701_s18 + $0xf30] sm:$0xff] %v13241_v48 }
  0x6a   : > { %v13234_v41 = vld [vmem:[%s13696_s14 + $0x720] sm:$0xff]   ;;  %11120 = vst [vmem:[%s13701_s18 + $0x520] sm:$0xff] %v13233_v40  ;;  %v13243_v50 = vld [vmem:[%s13696_s14 + $0x730] sm:$0xff]   ;;  %11156 = vst [vmem:[%s13701_s18 + $0x530] sm:$0xff] %v13242_v49 }
  0x6b   : > { %v13235_v42 = vld [vmem:[%s13696_s14 + $0x120] sm:$0xff]   ;;  %11124 = vst [vmem:[%s13701_s18 + $0xb20] sm:$0xff] %v13234_v41  ;;  %v13244_v51 = vld [vmem:[%s13696_s14 + $0x130] sm:$0xff]   ;;  %11160 = vst [vmem:[%s13701_s18 + $0xb30] sm:$0xff] %v13243_v50 }
  0x6c   : > { %11128 = vst [vmem:[%s13701_s18 + $0x1120] sm:$0xff] %v13235_v42  ;;  %v13245_v52 = vld [vmem:[%s13696_s14 + $0x1140] sm:$0xff]   ;;  %11164 = vst [vmem:[%s13701_s18 + $0x1130] sm:$0xff] %v13244_v51  ;;  %v13254_v61 = vld [vmem:[%s13696_s14 + $0x1150] sm:$0xff]  }
  0x6d   : > { %v13246_v53 = vld [vmem:[%s13696_s14 + $0xb40] sm:$0xff]   ;;  %11168 = vst [vmem:[%s13701_s18 + $0x140] sm:$0xff] %v13245_v52  ;;  %v13255_v62 = vld [vmem:[%s13696_s14 + $0xb50] sm:$0xff]   ;;  %11204 = vst [vmem:[%s13701_s18 + $0x150] sm:$0xff] %v13254_v61 }
  0x6e   : > { %v13247_v54 = vld [vmem:[%s13696_s14 + $0x540] sm:$0xff]   ;;  %11172 = vst [vmem:[%s13701_s18 + $0x740] sm:$0xff] %v13246_v53  ;;  %v13256_v63 = vld [vmem:[%s13696_s14 + $0x550] sm:$0xff]   ;;  %11208 = vst [vmem:[%s13701_s18 + $0x750] sm:$0xff] %v13255_v62 }
  0x6f   : > { %v13248_v55 = vld [vmem:[%s13696_s14 + $0xf40] sm:$0xff]   ;;  %11176 = vst [vmem:[%s13701_s18 + $0xd40] sm:$0xff] %v13247_v54  ;;  %v13257_v0 = vld [vmem:[%s13696_s14 + $0xf50] sm:$0xff]   ;;  %11212 = vst [vmem:[%s13701_s18 + $0xd50] sm:$0xff] %v13256_v63 }
  0x70   : > { %v13249_v56 = vld [vmem:[%s13696_s14 + $0x940] sm:$0xff]   ;;  %11180 = vst [vmem:[%s13701_s18 + $0x340] sm:$0xff] %v13248_v55  ;;  %v13258_v1 = vld [vmem:[%s13696_s14 + $0x950] sm:$0xff]   ;;  %11216 = vst [vmem:[%s13701_s18 + $0x350] sm:$0xff] %v13257_v0 }
  0x71   : > { %v13250_v57 = vld [vmem:[%s13696_s14 + $0x340] sm:$0xff]   ;;  %11184 = vst [vmem:[%s13701_s18 + $0x940] sm:$0xff] %v13249_v56  ;;  %v13259_v2 = vld [vmem:[%s13696_s14 + $0x350] sm:$0xff]   ;;  %11220 = vst [vmem:[%s13701_s18 + $0x950] sm:$0xff] %v13258_v1 }
  0x72   : > { %v13251_v58 = vld [vmem:[%s13696_s14 + $0xd40] sm:$0xff]   ;;  %11188 = vst [vmem:[%s13701_s18 + $0xf40] sm:$0xff] %v13250_v57  ;;  %v13260_v3 = vld [vmem:[%s13696_s14 + $0xd50] sm:$0xff]   ;;  %11224 = vst [vmem:[%s13701_s18 + $0xf50] sm:$0xff] %v13259_v2 }
  0x73   : > { %v13252_v59 = vld [vmem:[%s13696_s14 + $0x740] sm:$0xff]   ;;  %11192 = vst [vmem:[%s13701_s18 + $0x540] sm:$0xff] %v13251_v58  ;;  %v13261_v4 = vld [vmem:[%s13696_s14 + $0x750] sm:$0xff]   ;;  %11228 = vst [vmem:[%s13701_s18 + $0x550] sm:$0xff] %v13260_v3 }
  0x74   : > { %v13253_v60 = vld [vmem:[%s13696_s14 + $0x140] sm:$0xff]   ;;  %11196 = vst [vmem:[%s13701_s18 + $0xb40] sm:$0xff] %v13252_v59  ;;  %v13262_v5 = vld [vmem:[%s13696_s14 + $0x150] sm:$0xff]   ;;  %11232 = vst [vmem:[%s13701_s18 + $0xb50] sm:$0xff] %v13261_v4 }
  0x75   : > { %11200 = vst [vmem:[%s13701_s18 + $0x1140] sm:$0xff] %v13253_v60  ;;  %v13263_v6 = vld [vmem:[%s13696_s14 + $0x1160] sm:$0xff]   ;;  %11236 = vst [vmem:[%s13701_s18 + $0x1150] sm:$0xff] %v13262_v5  ;;  %v13272_v15 = vld [vmem:[%s13696_s14 + $0x1170] sm:$0xff]  }
  0x76   : > { %v13264_v7 = vld [vmem:[%s13696_s14 + $0xb60] sm:$0xff]   ;;  %11240 = vst [vmem:[%s13701_s18 + $0x160] sm:$0xff] %v13263_v6  ;;  %v13273_v16 = vld [vmem:[%s13696_s14 + $0xb70] sm:$0xff]   ;;  %11276 = vst [vmem:[%s13701_s18 + $0x170] sm:$0xff] %v13272_v15 }
  0x77   : > { %v13265_v8 = vld [vmem:[%s13696_s14 + $0x560] sm:$0xff]   ;;  %11244 = vst [vmem:[%s13701_s18 + $0x760] sm:$0xff] %v13264_v7  ;;  %v13274_v17 = vld [vmem:[%s13696_s14 + $0x570] sm:$0xff]   ;;  %11280 = vst [vmem:[%s13701_s18 + $0x770] sm:$0xff] %v13273_v16 }
  0x78   : > { %v13266_v9 = vld [vmem:[%s13696_s14 + $0xf60] sm:$0xff]   ;;  %11248 = vst [vmem:[%s13701_s18 + $0xd60] sm:$0xff] %v13265_v8  ;;  %v13275_v18 = vld [vmem:[%s13696_s14 + $0xf70] sm:$0xff]   ;;  %11284 = vst [vmem:[%s13701_s18 + $0xd70] sm:$0xff] %v13274_v17 }
  0x79   : > { %v13267_v10 = vld [vmem:[%s13696_s14 + $0x960] sm:$0xff]   ;;  %11252 = vst [vmem:[%s13701_s18 + $0x360] sm:$0xff] %v13266_v9  ;;  %v13276_v19 = vld [vmem:[%s13696_s14 + $0x970] sm:$0xff]   ;;  %11288 = vst [vmem:[%s13701_s18 + $0x370] sm:$0xff] %v13275_v18 }
  0x7a   : > { %v13268_v11 = vld [vmem:[%s13696_s14 + $0x360] sm:$0xff]   ;;  %11256 = vst [vmem:[%s13701_s18 + $0x960] sm:$0xff] %v13267_v10  ;;  %v13277_v20 = vld [vmem:[%s13696_s14 + $0x370] sm:$0xff]   ;;  %11292 = vst [vmem:[%s13701_s18 + $0x970] sm:$0xff] %v13276_v19 }
  0x7b   : > { %v13269_v12 = vld [vmem:[%s13696_s14 + $0xd60] sm:$0xff]   ;;  %11260 = vst [vmem:[%s13701_s18 + $0xf60] sm:$0xff] %v13268_v11  ;;  %v13278_v21 = vld [vmem:[%s13696_s14 + $0xd70] sm:$0xff]   ;;  %11296 = vst [vmem:[%s13701_s18 + $0xf70] sm:$0xff] %v13277_v20 }
  0x7c   : > { %v13270_v13 = vld [vmem:[%s13696_s14 + $0x760] sm:$0xff]   ;;  %11264 = vst [vmem:[%s13701_s18 + $0x560] sm:$0xff] %v13269_v12  ;;  %v13279_v22 = vld [vmem:[%s13696_s14 + $0x770] sm:$0xff]   ;;  %11300 = vst [vmem:[%s13701_s18 + $0x570] sm:$0xff] %v13278_v21 }
  0x7d   : > { %v13271_v14 = vld [vmem:[%s13696_s14 + $0x160] sm:$0xff]   ;;  %11268 = vst [vmem:[%s13701_s18 + $0xb60] sm:$0xff] %v13270_v13  ;;  %v13280_v23 = vld [vmem:[%s13696_s14 + $0x170] sm:$0xff]   ;;  %11304 = vst [vmem:[%s13701_s18 + $0xb70] sm:$0xff] %v13279_v22 }
  0x7e   : > { %11272 = vst [vmem:[%s13701_s18 + $0x1160] sm:$0xff] %v13271_v14  ;;  %v13281_v24 = vld [vmem:[%s13696_s14 + $0x1180] sm:$0xff]   ;;  %11308 = vst [vmem:[%s13701_s18 + $0x1170] sm:$0xff] %v13280_v23  ;;  %v13290_v33 = vld [vmem:[%s13696_s14 + $0x1190] sm:$0xff]  }
  0x7f   : > { %v13282_v25 = vld [vmem:[%s13696_s14 + $0xb80] sm:$0xff]   ;;  %11312 = vst [vmem:[%s13701_s18 + $0x180] sm:$0xff] %v13281_v24  ;;  %v13291_v34 = vld [vmem:[%s13696_s14 + $0xb90] sm:$0xff]   ;;  %11348 = vst [vmem:[%s13701_s18 + $0x190] sm:$0xff] %v13290_v33 }
  0x80   : > { %v13283_v26 = vld [vmem:[%s13696_s14 + $0x580] sm:$0xff]   ;;  %11316 = vst [vmem:[%s13701_s18 + $0x780] sm:$0xff] %v13282_v25  ;;  %v13292_v35 = vld [vmem:[%s13696_s14 + $0x590] sm:$0xff]   ;;  %11352 = vst [vmem:[%s13701_s18 + $0x790] sm:$0xff] %v13291_v34 }
  0x81   : > { %v13284_v27 = vld [vmem:[%s13696_s14 + $0xf80] sm:$0xff]   ;;  %11320 = vst [vmem:[%s13701_s18 + $0xd80] sm:$0xff] %v13283_v26  ;;  %v13293_v36 = vld [vmem:[%s13696_s14 + $0xf90] sm:$0xff]   ;;  %11356 = vst [vmem:[%s13701_s18 + $0xd90] sm:$0xff] %v13292_v35 }
  0x82   : > { %v13285_v28 = vld [vmem:[%s13696_s14 + $0x980] sm:$0xff]   ;;  %11324 = vst [vmem:[%s13701_s18 + $0x380] sm:$0xff] %v13284_v27  ;;  %v13294_v37 = vld [vmem:[%s13696_s14 + $0x990] sm:$0xff]   ;;  %11360 = vst [vmem:[%s13701_s18 + $0x390] sm:$0xff] %v13293_v36 }
  0x83   : > { %v13286_v29 = vld [vmem:[%s13696_s14 + $0x380] sm:$0xff]   ;;  %11328 = vst [vmem:[%s13701_s18 + $0x980] sm:$0xff] %v13285_v28  ;;  %v13295_v38 = vld [vmem:[%s13696_s14 + $0x390] sm:$0xff]   ;;  %11364 = vst [vmem:[%s13701_s18 + $0x990] sm:$0xff] %v13294_v37 }
  0x84   : > { %v13287_v30 = vld [vmem:[%s13696_s14 + $0xd80] sm:$0xff]   ;;  %11332 = vst [vmem:[%s13701_s18 + $0xf80] sm:$0xff] %v13286_v29  ;;  %v13296_v39 = vld [vmem:[%s13696_s14 + $0xd90] sm:$0xff]   ;;  %11368 = vst [vmem:[%s13701_s18 + $0xf90] sm:$0xff] %v13295_v38 }
  0x85   : > { %v13288_v31 = vld [vmem:[%s13696_s14 + $0x780] sm:$0xff]   ;;  %11336 = vst [vmem:[%s13701_s18 + $0x580] sm:$0xff] %v13287_v30  ;;  %v13297_v40 = vld [vmem:[%s13696_s14 + $0x790] sm:$0xff]   ;;  %11372 = vst [vmem:[%s13701_s18 + $0x590] sm:$0xff] %v13296_v39 }
  0x86   : > { %v13289_v32 = vld [vmem:[%s13696_s14 + $0x180] sm:$0xff]   ;;  %11340 = vst [vmem:[%s13701_s18 + $0xb80] sm:$0xff] %v13288_v31  ;;  %v13298_v41 = vld [vmem:[%s13696_s14 + $0x190] sm:$0xff]   ;;  %11376 = vst [vmem:[%s13701_s18 + $0xb90] sm:$0xff] %v13297_v40 }
  0x87   : > { %11344 = vst [vmem:[%s13701_s18 + $0x1180] sm:$0xff] %v13289_v32  ;;  %v13299_v42 = vld [vmem:[%s13696_s14 + $0x11a0] sm:$0xff]   ;;  %11380 = vst [vmem:[%s13701_s18 + $0x1190] sm:$0xff] %v13298_v41  ;;  %v13308_v51 = vld [vmem:[%s13696_s14 + $0x11b0] sm:$0xff]  }
  0x88   : > { %v13300_v43 = vld [vmem:[%s13696_s14 + $0xba0] sm:$0xff]   ;;  %11384 = vst [vmem:[%s13701_s18 + $0x1a0] sm:$0xff] %v13299_v42  ;;  %v13309_v52 = vld [vmem:[%s13696_s14 + $0xbb0] sm:$0xff]   ;;  %11420 = vst [vmem:[%s13701_s18 + $0x1b0] sm:$0xff] %v13308_v51 }
  0x89   : > { %v13301_v44 = vld [vmem:[%s13696_s14 + $0x5a0] sm:$0xff]   ;;  %11388 = vst [vmem:[%s13701_s18 + $0x7a0] sm:$0xff] %v13300_v43  ;;  %v13310_v53 = vld [vmem:[%s13696_s14 + $0x5b0] sm:$0xff]   ;;  %11424 = vst [vmem:[%s13701_s18 + $0x7b0] sm:$0xff] %v13309_v52 }
  0x8a   : > { %v13302_v45 = vld [vmem:[%s13696_s14 + $0xfa0] sm:$0xff]   ;;  %11392 = vst [vmem:[%s13701_s18 + $0xda0] sm:$0xff] %v13301_v44  ;;  %v13311_v54 = vld [vmem:[%s13696_s14 + $0xfb0] sm:$0xff]   ;;  %11428 = vst [vmem:[%s13701_s18 + $0xdb0] sm:$0xff] %v13310_v53 }
  0x8b   : > { %v13303_v46 = vld [vmem:[%s13696_s14 + $0x9a0] sm:$0xff]   ;;  %11396 = vst [vmem:[%s13701_s18 + $0x3a0] sm:$0xff] %v13302_v45  ;;  %v13312_v55 = vld [vmem:[%s13696_s14 + $0x9b0] sm:$0xff]   ;;  %11432 = vst [vmem:[%s13701_s18 + $0x3b0] sm:$0xff] %v13311_v54 }
  0x8c   : > { %v13304_v47 = vld [vmem:[%s13696_s14 + $0x3a0] sm:$0xff]   ;;  %11400 = vst [vmem:[%s13701_s18 + $0x9a0] sm:$0xff] %v13303_v46  ;;  %v13313_v56 = vld [vmem:[%s13696_s14 + $0x3b0] sm:$0xff]   ;;  %11436 = vst [vmem:[%s13701_s18 + $0x9b0] sm:$0xff] %v13312_v55 }
  0x8d   : > { %v13305_v48 = vld [vmem:[%s13696_s14 + $0xda0] sm:$0xff]   ;;  %11404 = vst [vmem:[%s13701_s18 + $0xfa0] sm:$0xff] %v13304_v47  ;;  %v13314_v57 = vld [vmem:[%s13696_s14 + $0xdb0] sm:$0xff]   ;;  %11440 = vst [vmem:[%s13701_s18 + $0xfb0] sm:$0xff] %v13313_v56 }
  0x8e   : > { %v13306_v49 = vld [vmem:[%s13696_s14 + $0x7a0] sm:$0xff]   ;;  %11408 = vst [vmem:[%s13701_s18 + $0x5a0] sm:$0xff] %v13305_v48  ;;  %v13315_v58 = vld [vmem:[%s13696_s14 + $0x7b0] sm:$0xff]   ;;  %11444 = vst [vmem:[%s13701_s18 + $0x5b0] sm:$0xff] %v13314_v57 }
  0x8f   : > { %v13307_v50 = vld [vmem:[%s13696_s14 + $0x1a0] sm:$0xff]   ;;  %11412 = vst [vmem:[%s13701_s18 + $0xba0] sm:$0xff] %v13306_v49  ;;  %v13316_v59 = vld [vmem:[%s13696_s14 + $0x1b0] sm:$0xff]   ;;  %11448 = vst [vmem:[%s13701_s18 + $0xbb0] sm:$0xff] %v13315_v58 }
  0x90   : > { %11416 = vst [vmem:[%s13701_s18 + $0x11a0] sm:$0xff] %v13307_v50  ;;  %v13317_v60 = vld [vmem:[%s13696_s14 + $0x11c0] sm:$0xff]   ;;  %11452 = vst [vmem:[%s13701_s18 + $0x11b0] sm:$0xff] %v13316_v59  ;;  %v13326_v5 = vld [vmem:[%s13696_s14 + $0x11d0] sm:$0xff]  }
  0x91   : > { %v13318_v61 = vld [vmem:[%s13696_s14 + $0xbc0] sm:$0xff]   ;;  %11456 = vst [vmem:[%s13701_s18 + $0x1c0] sm:$0xff] %v13317_v60  ;;  %v13327_v6 = vld [vmem:[%s13696_s14 + $0xbd0] sm:$0xff]   ;;  %11492 = vst [vmem:[%s13701_s18 + $0x1d0] sm:$0xff] %v13326_v5 }
  0x92   : > { %v13319_v62 = vld [vmem:[%s13696_s14 + $0x5c0] sm:$0xff]   ;;  %11460 = vst [vmem:[%s13701_s18 + $0x7c0] sm:$0xff] %v13318_v61  ;;  %v13328_v7 = vld [vmem:[%s13696_s14 + $0x5d0] sm:$0xff]   ;;  %11496 = vst [vmem:[%s13701_s18 + $0x7d0] sm:$0xff] %v13327_v6 }
  0x93   : > { %v13320_v63 = vld [vmem:[%s13696_s14 + $0xfc0] sm:$0xff]   ;;  %11464 = vst [vmem:[%s13701_s18 + $0xdc0] sm:$0xff] %v13319_v62  ;;  %v13329_v8 = vld [vmem:[%s13696_s14 + $0xfd0] sm:$0xff]   ;;  %11500 = vst [vmem:[%s13701_s18 + $0xdd0] sm:$0xff] %v13328_v7 }
  0x94   : > { %v13321_v0 = vld [vmem:[%s13696_s14 + $0x9c0] sm:$0xff]   ;;  %11468 = vst [vmem:[%s13701_s18 + $0x3c0] sm:$0xff] %v13320_v63  ;;  %v13330_v9 = vld [vmem:[%s13696_s14 + $0x9d0] sm:$0xff]   ;;  %11504 = vst [vmem:[%s13701_s18 + $0x3d0] sm:$0xff] %v13329_v8 }
  0x95   : > { %v13322_v1 = vld [vmem:[%s13696_s14 + $0x3c0] sm:$0xff]   ;;  %11472 = vst [vmem:[%s13701_s18 + $0x9c0] sm:$0xff] %v13321_v0  ;;  %v13331_v10 = vld [vmem:[%s13696_s14 + $0x3d0] sm:$0xff]   ;;  %11508 = vst [vmem:[%s13701_s18 + $0x9d0] sm:$0xff] %v13330_v9 }
  0x96   : > { %v13323_v2 = vld [vmem:[%s13696_s14 + $0xdc0] sm:$0xff]   ;;  %11476 = vst [vmem:[%s13701_s18 + $0xfc0] sm:$0xff] %v13322_v1  ;;  %v13332_v11 = vld [vmem:[%s13696_s14 + $0xdd0] sm:$0xff]   ;;  %11512 = vst [vmem:[%s13701_s18 + $0xfd0] sm:$0xff] %v13331_v10 }
  0x97   : > { %v13324_v3 = vld [vmem:[%s13696_s14 + $0x7c0] sm:$0xff]   ;;  %11480 = vst [vmem:[%s13701_s18 + $0x5c0] sm:$0xff] %v13323_v2  ;;  %v13333_v12 = vld [vmem:[%s13696_s14 + $0x7d0] sm:$0xff]   ;;  %11516 = vst [vmem:[%s13701_s18 + $0x5d0] sm:$0xff] %v13332_v11 }
  0x98   : > { %v13325_v4 = vld [vmem:[%s13696_s14 + $0x1c0] sm:$0xff]   ;;  %11484 = vst [vmem:[%s13701_s18 + $0xbc0] sm:$0xff] %v13324_v3  ;;  %v13334_v13 = vld [vmem:[%s13696_s14 + $0x1d0] sm:$0xff]   ;;  %11520 = vst [vmem:[%s13701_s18 + $0xbd0] sm:$0xff] %v13333_v12 }
  0x99   : > { %11488 = vst [vmem:[%s13701_s18 + $0x11c0] sm:$0xff] %v13325_v4  ;;  %v13335_v14 = vld [vmem:[%s13696_s14 + $0x11e0] sm:$0xff]   ;;  %11524 = vst [vmem:[%s13701_s18 + $0x11d0] sm:$0xff] %v13334_v13  ;;  %v13344_v23 = vld [vmem:[%s13696_s14 + $0x11f0] sm:$0xff]  }
  0x9a   : > { %v13336_v15 = vld [vmem:[%s13696_s14 + $0xbe0] sm:$0xff]   ;;  %11528 = vst [vmem:[%s13701_s18 + $0x1e0] sm:$0xff] %v13335_v14  ;;  %v13345_v24 = vld [vmem:[%s13696_s14 + $0xbf0] sm:$0xff]   ;;  %11564 = vst [vmem:[%s13701_s18 + $0x1f0] sm:$0xff] %v13344_v23 }
  0x9b   : > { %v13337_v16 = vld [vmem:[%s13696_s14 + $0x5e0] sm:$0xff]   ;;  %11532 = vst [vmem:[%s13701_s18 + $0x7e0] sm:$0xff] %v13336_v15  ;;  %v13346_v25 = vld [vmem:[%s13696_s14 + $0x5f0] sm:$0xff]   ;;  %11568 = vst [vmem:[%s13701_s18 + $0x7f0] sm:$0xff] %v13345_v24 }
  0x9c   : > { %v13338_v17 = vld [vmem:[%s13696_s14 + $0xfe0] sm:$0xff]   ;;  %11536 = vst [vmem:[%s13701_s18 + $0xde0] sm:$0xff] %v13337_v16  ;;  %v13347_v26 = vld [vmem:[%s13696_s14 + $0xff0] sm:$0xff]   ;;  %11572 = vst [vmem:[%s13701_s18 + $0xdf0] sm:$0xff] %v13346_v25 }
  0x9d   : > { %v13339_v18 = vld [vmem:[%s13696_s14 + $0x9e0] sm:$0xff]   ;;  %11540 = vst [vmem:[%s13701_s18 + $0x3e0] sm:$0xff] %v13338_v17  ;;  %v13348_v27 = vld [vmem:[%s13696_s14 + $0x9f0] sm:$0xff]   ;;  %11576 = vst [vmem:[%s13701_s18 + $0x3f0] sm:$0xff] %v13347_v26 }
  0x9e   : > { %v13340_v19 = vld [vmem:[%s13696_s14 + $0x3e0] sm:$0xff]   ;;  %11544 = vst [vmem:[%s13701_s18 + $0x9e0] sm:$0xff] %v13339_v18  ;;  %v13349_v28 = vld [vmem:[%s13696_s14 + $0x3f0] sm:$0xff]   ;;  %11580 = vst [vmem:[%s13701_s18 + $0x9f0] sm:$0xff] %v13348_v27 }
  0x9f   : > { %v13341_v20 = vld [vmem:[%s13696_s14 + $0xde0] sm:$0xff]   ;;  %11548 = vst [vmem:[%s13701_s18 + $0xfe0] sm:$0xff] %v13340_v19  ;;  %v13350_v29 = vld [vmem:[%s13696_s14 + $0xdf0] sm:$0xff]   ;;  %11584 = vst [vmem:[%s13701_s18 + $0xff0] sm:$0xff] %v13349_v28 }
  0xa0   : > { %v13342_v21 = vld [vmem:[%s13696_s14 + $0x7e0] sm:$0xff]   ;;  %11552 = vst [vmem:[%s13701_s18 + $0x5e0] sm:$0xff] %v13341_v20  ;;  %v13351_v30 = vld [vmem:[%s13696_s14 + $0x7f0] sm:$0xff]   ;;  %11588 = vst [vmem:[%s13701_s18 + $0x5f0] sm:$0xff] %v13350_v29 }
  0xa1   : > { %v13343_v22 = vld [vmem:[%s13696_s14 + $0x1e0] sm:$0xff]   ;;  %11556 = vst [vmem:[%s13701_s18 + $0xbe0] sm:$0xff] %v13342_v21  ;;  %v13352_v31 = vld [vmem:[%s13696_s14 + $0x1f0] sm:$0xff]   ;;  %11592 = vst [vmem:[%s13701_s18 + $0xbf0] sm:$0xff] %v13351_v30 }
  0xa2   : > { %11560 = vst [vmem:[%s13701_s18 + $0x11e0] sm:$0xff] %v13343_v22  ;;  %11596 = vst [vmem:[%s13701_s18 + $0x11f0] sm:$0xff] %v13352_v31  ;;  %v13353_v32 = vld [vmem:[%s13696_s14 + $0x1008] sm:$0xff]   ;;  %v13362_v41 = vld [vmem:[%s13696_s14 + $0x1018] sm:$0xff]  }
  0xa3   : > { %v13354_v33 = vld [vmem:[%s13696_s14 + $0xa08] sm:$0xff]   ;;  %11888 = vst [vmem:[%s13701_s18 + $0x8] sm:$0xff] %v13353_v32  ;;  %v13363_v42 = vld [vmem:[%s13696_s14 + $0xa18] sm:$0xff]   ;;  %11924 = vst [vmem:[%s13701_s18 + $0x18] sm:$0xff] %v13362_v41 }
  0xa4   : > { %v13355_v34 = vld [vmem:[%s13696_s14 + $0x408] sm:$0xff]   ;;  %11892 = vst [vmem:[%s13701_s18 + $0x608] sm:$0xff] %v13354_v33  ;;  %v13364_v43 = vld [vmem:[%s13696_s14 + $0x418] sm:$0xff]   ;;  %11928 = vst [vmem:[%s13701_s18 + $0x618] sm:$0xff] %v13363_v42 }
  0xa5   : > { %v13356_v35 = vld [vmem:[%s13696_s14 + $0xe08] sm:$0xff]   ;;  %11896 = vst [vmem:[%s13701_s18 + $0xc08] sm:$0xff] %v13355_v34  ;;  %v13365_v44 = vld [vmem:[%s13696_s14 + $0xe18] sm:$0xff]   ;;  %11932 = vst [vmem:[%s13701_s18 + $0xc18] sm:$0xff] %v13364_v43 }
  0xa6   : > { %v13357_v36 = vld [vmem:[%s13696_s14 + $0x808] sm:$0xff]   ;;  %11900 = vst [vmem:[%s13701_s18 + $0x208] sm:$0xff] %v13356_v35  ;;  %v13366_v45 = vld [vmem:[%s13696_s14 + $0x818] sm:$0xff]   ;;  %11936 = vst [vmem:[%s13701_s18 + $0x218] sm:$0xff] %v13365_v44 }
  0xa7   : > { %v13358_v37 = vld [vmem:[%s13696_s14 + $0x208] sm:$0xff]   ;;  %11904 = vst [vmem:[%s13701_s18 + $0x808] sm:$0xff] %v13357_v36  ;;  %v13367_v46 = vld [vmem:[%s13696_s14 + $0x218] sm:$0xff]   ;;  %11940 = vst [vmem:[%s13701_s18 + $0x818] sm:$0xff] %v13366_v45 }
  0xa8   : > { %v13359_v38 = vld [vmem:[%s13696_s14 + $0xc08] sm:$0xff]   ;;  %11908 = vst [vmem:[%s13701_s18 + $0xe08] sm:$0xff] %v13358_v37  ;;  %v13368_v47 = vld [vmem:[%s13696_s14 + $0xc18] sm:$0xff]   ;;  %11944 = vst [vmem:[%s13701_s18 + $0xe18] sm:$0xff] %v13367_v46 }
  0xa9   : > { %v13360_v39 = vld [vmem:[%s13696_s14 + $0x608] sm:$0xff]   ;;  %11912 = vst [vmem:[%s13701_s18 + $0x408] sm:$0xff] %v13359_v38  ;;  %v13369_v48 = vld [vmem:[%s13696_s14 + $0x618] sm:$0xff]   ;;  %11948 = vst [vmem:[%s13701_s18 + $0x418] sm:$0xff] %v13368_v47 }
  0xaa   : > { %v13361_v40 = vld [vmem:[%s13696_s14 + $0x8] sm:$0xff]   ;;  %11916 = vst [vmem:[%s13701_s18 + $0xa08] sm:$0xff] %v13360_v39  ;;  %v13370_v49 = vld [vmem:[%s13696_s14 + $0x18] sm:$0xff]   ;;  %11952 = vst [vmem:[%s13701_s18 + $0xa18] sm:$0xff] %v13369_v48 }
  0xab   : > { %11920 = vst [vmem:[%s13701_s18 + $0x1008] sm:$0xff] %v13361_v40  ;;  %v13371_v50 = vld [vmem:[%s13696_s14 + $0x1028] sm:$0xff]   ;;  %11956 = vst [vmem:[%s13701_s18 + $0x1018] sm:$0xff] %v13370_v49  ;;  %v13380_v59 = vld [vmem:[%s13696_s14 + $0x1038] sm:$0xff]  }
  0xac   : > { %v13372_v51 = vld [vmem:[%s13696_s14 + $0xa28] sm:$0xff]   ;;  %11960 = vst [vmem:[%s13701_s18 + $0x28] sm:$0xff] %v13371_v50  ;;  %v13381_v60 = vld [vmem:[%s13696_s14 + $0xa38] sm:$0xff]   ;;  %11996 = vst [vmem:[%s13701_s18 + $0x38] sm:$0xff] %v13380_v59 }
  0xad   : > { %v13373_v52 = vld [vmem:[%s13696_s14 + $0x428] sm:$0xff]   ;;  %11964 = vst [vmem:[%s13701_s18 + $0x628] sm:$0xff] %v13372_v51  ;;  %v13382_v61 = vld [vmem:[%s13696_s14 + $0x438] sm:$0xff]   ;;  %12000 = vst [vmem:[%s13701_s18 + $0x638] sm:$0xff] %v13381_v60 }
  0xae   : > { %v13374_v53 = vld [vmem:[%s13696_s14 + $0xe28] sm:$0xff]   ;;  %11968 = vst [vmem:[%s13701_s18 + $0xc28] sm:$0xff] %v13373_v52  ;;  %v13383_v62 = vld [vmem:[%s13696_s14 + $0xe38] sm:$0xff]   ;;  %12004 = vst [vmem:[%s13701_s18 + $0xc38] sm:$0xff] %v13382_v61 }
  0xaf   : > { %v13375_v54 = vld [vmem:[%s13696_s14 + $0x828] sm:$0xff]   ;;  %11972 = vst [vmem:[%s13701_s18 + $0x228] sm:$0xff] %v13374_v53  ;;  %v13384_v63 = vld [vmem:[%s13696_s14 + $0x838] sm:$0xff]   ;;  %12008 = vst [vmem:[%s13701_s18 + $0x238] sm:$0xff] %v13383_v62 }
  0xb0   : > { %v13376_v55 = vld [vmem:[%s13696_s14 + $0x228] sm:$0xff]   ;;  %11976 = vst [vmem:[%s13701_s18 + $0x828] sm:$0xff] %v13375_v54  ;;  %v13385_v0 = vld [vmem:[%s13696_s14 + $0x238] sm:$0xff]   ;;  %12012 = vst [vmem:[%s13701_s18 + $0x838] sm:$0xff] %v13384_v63 }
  0xb1   : > { %v13377_v56 = vld [vmem:[%s13696_s14 + $0xc28] sm:$0xff]   ;;  %11980 = vst [vmem:[%s13701_s18 + $0xe28] sm:$0xff] %v13376_v55  ;;  %v13386_v1 = vld [vmem:[%s13696_s14 + $0xc38] sm:$0xff]   ;;  %12016 = vst [vmem:[%s13701_s18 + $0xe38] sm:$0xff] %v13385_v0 }
  0xb2   : > { %v13378_v57 = vld [vmem:[%s13696_s14 + $0x628] sm:$0xff]   ;;  %11984 = vst [vmem:[%s13701_s18 + $0x428] sm:$0xff] %v13377_v56  ;;  %v13387_v2 = vld [vmem:[%s13696_s14 + $0x638] sm:$0xff]   ;;  %12020 = vst [vmem:[%s13701_s18 + $0x438] sm:$0xff] %v13386_v1 }
  0xb3   : > { %v13379_v58 = vld [vmem:[%s13696_s14 + $0x28] sm:$0xff]   ;;  %11988 = vst [vmem:[%s13701_s18 + $0xa28] sm:$0xff] %v13378_v57  ;;  %v13388_v3 = vld [vmem:[%s13696_s14 + $0x38] sm:$0xff]   ;;  %12024 = vst [vmem:[%s13701_s18 + $0xa38] sm:$0xff] %v13387_v2 }
  0xb4   : > { %11992 = vst [vmem:[%s13701_s18 + $0x1028] sm:$0xff] %v13379_v58  ;;  %v13389_v4 = vld [vmem:[%s13696_s14 + $0x1048] sm:$0xff]   ;;  %12028 = vst [vmem:[%s13701_s18 + $0x1038] sm:$0xff] %v13388_v3  ;;  %v13398_v13 = vld [vmem:[%s13696_s14 + $0x1058] sm:$0xff]  }
  0xb5   : > { %v13390_v5 = vld [vmem:[%s13696_s14 + $0xa48] sm:$0xff]   ;;  %12032 = vst [vmem:[%s13701_s18 + $0x48] sm:$0xff] %v13389_v4  ;;  %v13399_v14 = vld [vmem:[%s13696_s14 + $0xa58] sm:$0xff]   ;;  %12068 = vst [vmem:[%s13701_s18 + $0x58] sm:$0xff] %v13398_v13 }
  0xb6   : > { %v13391_v6 = vld [vmem:[%s13696_s14 + $0x448] sm:$0xff]   ;;  %12036 = vst [vmem:[%s13701_s18 + $0x648] sm:$0xff] %v13390_v5  ;;  %v13400_v15 = vld [vmem:[%s13696_s14 + $0x458] sm:$0xff]   ;;  %12072 = vst [vmem:[%s13701_s18 + $0x658] sm:$0xff] %v13399_v14 }
  0xb7   : > { %v13392_v7 = vld [vmem:[%s13696_s14 + $0xe48] sm:$0xff]   ;;  %12040 = vst [vmem:[%s13701_s18 + $0xc48] sm:$0xff] %v13391_v6  ;;  %v13401_v16 = vld [vmem:[%s13696_s14 + $0xe58] sm:$0xff]   ;;  %12076 = vst [vmem:[%s13701_s18 + $0xc58] sm:$0xff] %v13400_v15 }
  0xb8   : > { %v13393_v8 = vld [vmem:[%s13696_s14 + $0x848] sm:$0xff]   ;;  %12044 = vst [vmem:[%s13701_s18 + $0x248] sm:$0xff] %v13392_v7  ;;  %v13402_v17 = vld [vmem:[%s13696_s14 + $0x858] sm:$0xff]   ;;  %12080 = vst [vmem:[%s13701_s18 + $0x258] sm:$0xff] %v13401_v16 }
  0xb9   : > { %v13394_v9 = vld [vmem:[%s13696_s14 + $0x248] sm:$0xff]   ;;  %12048 = vst [vmem:[%s13701_s18 + $0x848] sm:$0xff] %v13393_v8  ;;  %v13403_v18 = vld [vmem:[%s13696_s14 + $0x258] sm:$0xff]   ;;  %12084 = vst [vmem:[%s13701_s18 + $0x858] sm:$0xff] %v13402_v17 }
  0xba   : > { %v13395_v10 = vld [vmem:[%s13696_s14 + $0xc48] sm:$0xff]   ;;  %12052 = vst [vmem:[%s13701_s18 + $0xe48] sm:$0xff] %v13394_v9  ;;  %v13404_v19 = vld [vmem:[%s13696_s14 + $0xc58] sm:$0xff]   ;;  %12088 = vst [vmem:[%s13701_s18 + $0xe58] sm:$0xff] %v13403_v18 }
  0xbb   : > { %v13396_v11 = vld [vmem:[%s13696_s14 + $0x648] sm:$0xff]   ;;  %12056 = vst [vmem:[%s13701_s18 + $0x448] sm:$0xff] %v13395_v10  ;;  %v13405_v20 = vld [vmem:[%s13696_s14 + $0x658] sm:$0xff]   ;;  %12092 = vst [vmem:[%s13701_s18 + $0x458] sm:$0xff] %v13404_v19 }
  0xbc   : > { %v13397_v12 = vld [vmem:[%s13696_s14 + $0x48] sm:$0xff]   ;;  %12060 = vst [vmem:[%s13701_s18 + $0xa48] sm:$0xff] %v13396_v11  ;;  %v13406_v21 = vld [vmem:[%s13696_s14 + $0x58] sm:$0xff]   ;;  %12096 = vst [vmem:[%s13701_s18 + $0xa58] sm:$0xff] %v13405_v20 }
  0xbd   : > { %12064 = vst [vmem:[%s13701_s18 + $0x1048] sm:$0xff] %v13397_v12  ;;  %v13407_v22 = vld [vmem:[%s13696_s14 + $0x1068] sm:$0xff]   ;;  %12100 = vst [vmem:[%s13701_s18 + $0x1058] sm:$0xff] %v13406_v21  ;;  %v13416_v31 = vld [vmem:[%s13696_s14 + $0x1078] sm:$0xff]  }
  0xbe   : > { %v13408_v23 = vld [vmem:[%s13696_s14 + $0xa68] sm:$0xff]   ;;  %12104 = vst [vmem:[%s13701_s18 + $0x68] sm:$0xff] %v13407_v22  ;;  %v13417_v32 = vld [vmem:[%s13696_s14 + $0xa78] sm:$0xff]   ;;  %12140 = vst [vmem:[%s13701_s18 + $0x78] sm:$0xff] %v13416_v31 }
  0xbf   : > { %v13409_v24 = vld [vmem:[%s13696_s14 + $0x468] sm:$0xff]   ;;  %12108 = vst [vmem:[%s13701_s18 + $0x668] sm:$0xff] %v13408_v23  ;;  %v13418_v33 = vld [vmem:[%s13696_s14 + $0x478] sm:$0xff]   ;;  %12144 = vst [vmem:[%s13701_s18 + $0x678] sm:$0xff] %v13417_v32 }
  0xc0   : > { %v13410_v25 = vld [vmem:[%s13696_s14 + $0xe68] sm:$0xff]   ;;  %12112 = vst [vmem:[%s13701_s18 + $0xc68] sm:$0xff] %v13409_v24  ;;  %v13419_v34 = vld [vmem:[%s13696_s14 + $0xe78] sm:$0xff]   ;;  %12148 = vst [vmem:[%s13701_s18 + $0xc78] sm:$0xff] %v13418_v33 }
  0xc1   : > { %v13411_v26 = vld [vmem:[%s13696_s14 + $0x868] sm:$0xff]   ;;  %12116 = vst [vmem:[%s13701_s18 + $0x268] sm:$0xff] %v13410_v25  ;;  %v13420_v35 = vld [vmem:[%s13696_s14 + $0x878] sm:$0xff]   ;;  %12152 = vst [vmem:[%s13701_s18 + $0x278] sm:$0xff] %v13419_v34 }
  0xc2   : > { %v13412_v27 = vld [vmem:[%s13696_s14 + $0x268] sm:$0xff]   ;;  %12120 = vst [vmem:[%s13701_s18 + $0x868] sm:$0xff] %v13411_v26  ;;  %v13421_v36 = vld [vmem:[%s13696_s14 + $0x278] sm:$0xff]   ;;  %12156 = vst [vmem:[%s13701_s18 + $0x878] sm:$0xff] %v13420_v35 }
  0xc3   : > { %v13413_v28 = vld [vmem:[%s13696_s14 + $0xc68] sm:$0xff]   ;;  %12124 = vst [vmem:[%s13701_s18 + $0xe68] sm:$0xff] %v13412_v27  ;;  %v13422_v37 = vld [vmem:[%s13696_s14 + $0xc78] sm:$0xff]   ;;  %12160 = vst [vmem:[%s13701_s18 + $0xe78] sm:$0xff] %v13421_v36 }
  0xc4   : > { %v13414_v29 = vld [vmem:[%s13696_s14 + $0x668] sm:$0xff]   ;;  %12128 = vst [vmem:[%s13701_s18 + $0x468] sm:$0xff] %v13413_v28  ;;  %v13423_v38 = vld [vmem:[%s13696_s14 + $0x678] sm:$0xff]   ;;  %12164 = vst [vmem:[%s13701_s18 + $0x478] sm:$0xff] %v13422_v37 }
  0xc5   : > { %v13415_v30 = vld [vmem:[%s13696_s14 + $0x68] sm:$0xff]   ;;  %12132 = vst [vmem:[%s13701_s18 + $0xa68] sm:$0xff] %v13414_v29  ;;  %v13424_v39 = vld [vmem:[%s13696_s14 + $0x78] sm:$0xff]   ;;  %12168 = vst [vmem:[%s13701_s18 + $0xa78] sm:$0xff] %v13423_v38 }
  0xc6   : > { %12136 = vst [vmem:[%s13701_s18 + $0x1068] sm:$0xff] %v13415_v30  ;;  %v13425_v40 = vld [vmem:[%s13696_s14 + $0x1088] sm:$0xff]   ;;  %12172 = vst [vmem:[%s13701_s18 + $0x1078] sm:$0xff] %v13424_v39  ;;  %v13434_v49 = vld [vmem:[%s13696_s14 + $0x1098] sm:$0xff]  }
  0xc7   : > { %v13426_v41 = vld [vmem:[%s13696_s14 + $0xa88] sm:$0xff]   ;;  %12176 = vst [vmem:[%s13701_s18 + $0x88] sm:$0xff] %v13425_v40  ;;  %v13435_v50 = vld [vmem:[%s13696_s14 + $0xa98] sm:$0xff]   ;;  %12212 = vst [vmem:[%s13701_s18 + $0x98] sm:$0xff] %v13434_v49 }
  0xc8   : > { %v13427_v42 = vld [vmem:[%s13696_s14 + $0x488] sm:$0xff]   ;;  %12180 = vst [vmem:[%s13701_s18 + $0x688] sm:$0xff] %v13426_v41  ;;  %v13436_v51 = vld [vmem:[%s13696_s14 + $0x498] sm:$0xff]   ;;  %12216 = vst [vmem:[%s13701_s18 + $0x698] sm:$0xff] %v13435_v50 }
  0xc9   : > { %v13428_v43 = vld [vmem:[%s13696_s14 + $0xe88] sm:$0xff]   ;;  %12184 = vst [vmem:[%s13701_s18 + $0xc88] sm:$0xff] %v13427_v42  ;;  %v13437_v52 = vld [vmem:[%s13696_s14 + $0xe98] sm:$0xff]   ;;  %12220 = vst [vmem:[%s13701_s18 + $0xc98] sm:$0xff] %v13436_v51 }
  0xca   : > { %v13429_v44 = vld [vmem:[%s13696_s14 + $0x888] sm:$0xff]   ;;  %12188 = vst [vmem:[%s13701_s18 + $0x288] sm:$0xff] %v13428_v43  ;;  %v13438_v53 = vld [vmem:[%s13696_s14 + $0x898] sm:$0xff]   ;;  %12224 = vst [vmem:[%s13701_s18 + $0x298] sm:$0xff] %v13437_v52 }
  0xcb   : > { %v13430_v45 = vld [vmem:[%s13696_s14 + $0x288] sm:$0xff]   ;;  %12192 = vst [vmem:[%s13701_s18 + $0x888] sm:$0xff] %v13429_v44  ;;  %v13439_v54 = vld [vmem:[%s13696_s14 + $0x298] sm:$0xff]   ;;  %12228 = vst [vmem:[%s13701_s18 + $0x898] sm:$0xff] %v13438_v53 }
  0xcc   : > { %v13431_v46 = vld [vmem:[%s13696_s14 + $0xc88] sm:$0xff]   ;;  %12196 = vst [vmem:[%s13701_s18 + $0xe88] sm:$0xff] %v13430_v45  ;;  %v13440_v55 = vld [vmem:[%s13696_s14 + $0xc98] sm:$0xff]   ;;  %12232 = vst [vmem:[%s13701_s18 + $0xe98] sm:$0xff] %v13439_v54 }
  0xcd   : > { %v13432_v47 = vld [vmem:[%s13696_s14 + $0x688] sm:$0xff]   ;;  %12200 = vst [vmem:[%s13701_s18 + $0x488] sm:$0xff] %v13431_v46  ;;  %v13441_v56 = vld [vmem:[%s13696_s14 + $0x698] sm:$0xff]   ;;  %12236 = vst [vmem:[%s13701_s18 + $0x498] sm:$0xff] %v13440_v55 }
  0xce   : > { %v13433_v48 = vld [vmem:[%s13696_s14 + $0x88] sm:$0xff]   ;;  %12204 = vst [vmem:[%s13701_s18 + $0xa88] sm:$0xff] %v13432_v47  ;;  %v13442_v57 = vld [vmem:[%s13696_s14 + $0x98] sm:$0xff]   ;;  %12240 = vst [vmem:[%s13701_s18 + $0xa98] sm:$0xff] %v13441_v56 }
  0xcf   : > { %12208 = vst [vmem:[%s13701_s18 + $0x1088] sm:$0xff] %v13433_v48  ;;  %v13443_v58 = vld [vmem:[%s13696_s14 + $0x10a8] sm:$0xff]   ;;  %12244 = vst [vmem:[%s13701_s18 + $0x1098] sm:$0xff] %v13442_v57  ;;  %v13452_v3 = vld [vmem:[%s13696_s14 + $0x10b8] sm:$0xff]  }
  0xd0   : > { %v13444_v59 = vld [vmem:[%s13696_s14 + $0xaa8] sm:$0xff]   ;;  %12248 = vst [vmem:[%s13701_s18 + $0xa8] sm:$0xff] %v13443_v58  ;;  %v13453_v4 = vld [vmem:[%s13696_s14 + $0xab8] sm:$0xff]   ;;  %12284 = vst [vmem:[%s13701_s18 + $0xb8] sm:$0xff] %v13452_v3 }
  0xd1   : > { %v13445_v60 = vld [vmem:[%s13696_s14 + $0x4a8] sm:$0xff]   ;;  %12252 = vst [vmem:[%s13701_s18 + $0x6a8] sm:$0xff] %v13444_v59  ;;  %v13454_v5 = vld [vmem:[%s13696_s14 + $0x4b8] sm:$0xff]   ;;  %12288 = vst [vmem:[%s13701_s18 + $0x6b8] sm:$0xff] %v13453_v4 }
  0xd2   : > { %v13446_v61 = vld [vmem:[%s13696_s14 + $0xea8] sm:$0xff]   ;;  %12256 = vst [vmem:[%s13701_s18 + $0xca8] sm:$0xff] %v13445_v60  ;;  %v13455_v6 = vld [vmem:[%s13696_s14 + $0xeb8] sm:$0xff]   ;;  %12292 = vst [vmem:[%s13701_s18 + $0xcb8] sm:$0xff] %v13454_v5 }
  0xd3   : > { %v13447_v62 = vld [vmem:[%s13696_s14 + $0x8a8] sm:$0xff]   ;;  %12260 = vst [vmem:[%s13701_s18 + $0x2a8] sm:$0xff] %v13446_v61  ;;  %v13456_v7 = vld [vmem:[%s13696_s14 + $0x8b8] sm:$0xff]   ;;  %12296 = vst [vmem:[%s13701_s18 + $0x2b8] sm:$0xff] %v13455_v6 }
  0xd4   : > { %v13448_v63 = vld [vmem:[%s13696_s14 + $0x2a8] sm:$0xff]   ;;  %12264 = vst [vmem:[%s13701_s18 + $0x8a8] sm:$0xff] %v13447_v62  ;;  %v13457_v8 = vld [vmem:[%s13696_s14 + $0x2b8] sm:$0xff]   ;;  %12300 = vst [vmem:[%s13701_s18 + $0x8b8] sm:$0xff] %v13456_v7 }
  0xd5   : > { %v13449_v0 = vld [vmem:[%s13696_s14 + $0xca8] sm:$0xff]   ;;  %12268 = vst [vmem:[%s13701_s18 + $0xea8] sm:$0xff] %v13448_v63  ;;  %v13458_v9 = vld [vmem:[%s13696_s14 + $0xcb8] sm:$0xff]   ;;  %12304 = vst [vmem:[%s13701_s18 + $0xeb8] sm:$0xff] %v13457_v8 }
  0xd6   : > { %v13450_v1 = vld [vmem:[%s13696_s14 + $0x6a8] sm:$0xff]   ;;  %12272 = vst [vmem:[%s13701_s18 + $0x4a8] sm:$0xff] %v13449_v0  ;;  %v13459_v10 = vld [vmem:[%s13696_s14 + $0x6b8] sm:$0xff]   ;;  %12308 = vst [vmem:[%s13701_s18 + $0x4b8] sm:$0xff] %v13458_v9 }
  0xd7   : > { %v13451_v2 = vld [vmem:[%s13696_s14 + $0xa8] sm:$0xff]   ;;  %12276 = vst [vmem:[%s13701_s18 + $0xaa8] sm:$0xff] %v13450_v1  ;;  %v13460_v11 = vld [vmem:[%s13696_s14 + $0xb8] sm:$0xff]   ;;  %12312 = vst [vmem:[%s13701_s18 + $0xab8] sm:$0xff] %v13459_v10 }
  0xd8   : > { %12280 = vst [vmem:[%s13701_s18 + $0x10a8] sm:$0xff] %v13451_v2  ;;  %v13461_v12 = vld [vmem:[%s13696_s14 + $0x10c8] sm:$0xff]   ;;  %12316 = vst [vmem:[%s13701_s18 + $0x10b8] sm:$0xff] %v13460_v11  ;;  %v13470_v21 = vld [vmem:[%s13696_s14 + $0x10d8] sm:$0xff]  }
  0xd9   : > { %v13462_v13 = vld [vmem:[%s13696_s14 + $0xac8] sm:$0xff]   ;;  %12320 = vst [vmem:[%s13701_s18 + $0xc8] sm:$0xff] %v13461_v12  ;;  %v13471_v22 = vld [vmem:[%s13696_s14 + $0xad8] sm:$0xff]   ;;  %12356 = vst [vmem:[%s13701_s18 + $0xd8] sm:$0xff] %v13470_v21 }
  0xda   : > { %v13463_v14 = vld [vmem:[%s13696_s14 + $0x4c8] sm:$0xff]   ;;  %12324 = vst [vmem:[%s13701_s18 + $0x6c8] sm:$0xff] %v13462_v13  ;;  %v13472_v23 = vld [vmem:[%s13696_s14 + $0x4d8] sm:$0xff]   ;;  %12360 = vst [vmem:[%s13701_s18 + $0x6d8] sm:$0xff] %v13471_v22 }
  0xdb   : > { %v13464_v15 = vld [vmem:[%s13696_s14 + $0xec8] sm:$0xff]   ;;  %12328 = vst [vmem:[%s13701_s18 + $0xcc8] sm:$0xff] %v13463_v14  ;;  %v13473_v24 = vld [vmem:[%s13696_s14 + $0xed8] sm:$0xff]   ;;  %12364 = vst [vmem:[%s13701_s18 + $0xcd8] sm:$0xff] %v13472_v23 }
  0xdc   : > { %v13465_v16 = vld [vmem:[%s13696_s14 + $0x8c8] sm:$0xff]   ;;  %12332 = vst [vmem:[%s13701_s18 + $0x2c8] sm:$0xff] %v13464_v15  ;;  %v13474_v25 = vld [vmem:[%s13696_s14 + $0x8d8] sm:$0xff]   ;;  %12368 = vst [vmem:[%s13701_s18 + $0x2d8] sm:$0xff] %v13473_v24 }
  0xdd   : > { %v13466_v17 = vld [vmem:[%s13696_s14 + $0x2c8] sm:$0xff]   ;;  %12336 = vst [vmem:[%s13701_s18 + $0x8c8] sm:$0xff] %v13465_v16  ;;  %v13475_v26 = vld [vmem:[%s13696_s14 + $0x2d8] sm:$0xff]   ;;  %12372 = vst [vmem:[%s13701_s18 + $0x8d8] sm:$0xff] %v13474_v25 }
  0xde   : > { %v13467_v18 = vld [vmem:[%s13696_s14 + $0xcc8] sm:$0xff]   ;;  %12340 = vst [vmem:[%s13701_s18 + $0xec8] sm:$0xff] %v13466_v17  ;;  %v13476_v27 = vld [vmem:[%s13696_s14 + $0xcd8] sm:$0xff]   ;;  %12376 = vst [vmem:[%s13701_s18 + $0xed8] sm:$0xff] %v13475_v26 }
  0xdf   : > { %v13468_v19 = vld [vmem:[%s13696_s14 + $0x6c8] sm:$0xff]   ;;  %12344 = vst [vmem:[%s13701_s18 + $0x4c8] sm:$0xff] %v13467_v18  ;;  %v13477_v28 = vld [vmem:[%s13696_s14 + $0x6d8] sm:$0xff]   ;;  %12380 = vst [vmem:[%s13701_s18 + $0x4d8] sm:$0xff] %v13476_v27 }
  0xe0   : > { %v13469_v20 = vld [vmem:[%s13696_s14 + $0xc8] sm:$0xff]   ;;  %12348 = vst [vmem:[%s13701_s18 + $0xac8] sm:$0xff] %v13468_v19  ;;  %v13478_v29 = vld [vmem:[%s13696_s14 + $0xd8] sm:$0xff]   ;;  %12384 = vst [vmem:[%s13701_s18 + $0xad8] sm:$0xff] %v13477_v28 }
  0xe1   : > { %12352 = vst [vmem:[%s13701_s18 + $0x10c8] sm:$0xff] %v13469_v20  ;;  %v13479_v30 = vld [vmem:[%s13696_s14 + $0x10e8] sm:$0xff]   ;;  %12388 = vst [vmem:[%s13701_s18 + $0x10d8] sm:$0xff] %v13478_v29  ;;  %v13488_v39 = vld [vmem:[%s13696_s14 + $0x10f8] sm:$0xff]  }
  0xe2   : > { %v13480_v31 = vld [vmem:[%s13696_s14 + $0xae8] sm:$0xff]   ;;  %12392 = vst [vmem:[%s13701_s18 + $0xe8] sm:$0xff] %v13479_v30  ;;  %v13489_v40 = vld [vmem:[%s13696_s14 + $0xaf8] sm:$0xff]   ;;  %12428 = vst [vmem:[%s13701_s18 + $0xf8] sm:$0xff] %v13488_v39 }
  0xe3   : > { %v13481_v32 = vld [vmem:[%s13696_s14 + $0x4e8] sm:$0xff]   ;;  %12396 = vst [vmem:[%s13701_s18 + $0x6e8] sm:$0xff] %v13480_v31  ;;  %v13490_v41 = vld [vmem:[%s13696_s14 + $0x4f8] sm:$0xff]   ;;  %12432 = vst [vmem:[%s13701_s18 + $0x6f8] sm:$0xff] %v13489_v40 }
  0xe4   : > { %v13482_v33 = vld [vmem:[%s13696_s14 + $0xee8] sm:$0xff]   ;;  %12400 = vst [vmem:[%s13701_s18 + $0xce8] sm:$0xff] %v13481_v32  ;;  %v13491_v42 = vld [vmem:[%s13696_s14 + $0xef8] sm:$0xff]   ;;  %12436 = vst [vmem:[%s13701_s18 + $0xcf8] sm:$0xff] %v13490_v41 }
  0xe5   : > { %v13483_v34 = vld [vmem:[%s13696_s14 + $0x8e8] sm:$0xff]   ;;  %12404 = vst [vmem:[%s13701_s18 + $0x2e8] sm:$0xff] %v13482_v33  ;;  %v13492_v43 = vld [vmem:[%s13696_s14 + $0x8f8] sm:$0xff]   ;;  %12440 = vst [vmem:[%s13701_s18 + $0x2f8] sm:$0xff] %v13491_v42 }
  0xe6   : > { %v13484_v35 = vld [vmem:[%s13696_s14 + $0x2e8] sm:$0xff]   ;;  %12408 = vst [vmem:[%s13701_s18 + $0x8e8] sm:$0xff] %v13483_v34  ;;  %v13493_v44 = vld [vmem:[%s13696_s14 + $0x2f8] sm:$0xff]   ;;  %12444 = vst [vmem:[%s13701_s18 + $0x8f8] sm:$0xff] %v13492_v43 }
  0xe7   : > { %v13485_v36 = vld [vmem:[%s13696_s14 + $0xce8] sm:$0xff]   ;;  %12412 = vst [vmem:[%s13701_s18 + $0xee8] sm:$0xff] %v13484_v35  ;;  %v13494_v45 = vld [vmem:[%s13696_s14 + $0xcf8] sm:$0xff]   ;;  %12448 = vst [vmem:[%s13701_s18 + $0xef8] sm:$0xff] %v13493_v44 }
  0xe8   : > { %v13486_v37 = vld [vmem:[%s13696_s14 + $0x6e8] sm:$0xff]   ;;  %12416 = vst [vmem:[%s13701_s18 + $0x4e8] sm:$0xff] %v13485_v36  ;;  %v13495_v46 = vld [vmem:[%s13696_s14 + $0x6f8] sm:$0xff]   ;;  %12452 = vst [vmem:[%s13701_s18 + $0x4f8] sm:$0xff] %v13494_v45 }
  0xe9   : > { %v13487_v38 = vld [vmem:[%s13696_s14 + $0xe8] sm:$0xff]   ;;  %12420 = vst [vmem:[%s13701_s18 + $0xae8] sm:$0xff] %v13486_v37  ;;  %v13496_v47 = vld [vmem:[%s13696_s14 + $0xf8] sm:$0xff]   ;;  %12456 = vst [vmem:[%s13701_s18 + $0xaf8] sm:$0xff] %v13495_v46 }
  0xea   : > { %12424 = vst [vmem:[%s13701_s18 + $0x10e8] sm:$0xff] %v13487_v38  ;;  %v13497_v48 = vld [vmem:[%s13696_s14 + $0x1108] sm:$0xff]   ;;  %12460 = vst [vmem:[%s13701_s18 + $0x10f8] sm:$0xff] %v13496_v47  ;;  %v13506_v57 = vld [vmem:[%s13696_s14 + $0x1118] sm:$0xff]  }
  0xeb   : > { %v13498_v49 = vld [vmem:[%s13696_s14 + $0xb08] sm:$0xff]   ;;  %12464 = vst [vmem:[%s13701_s18 + $0x108] sm:$0xff] %v13497_v48  ;;  %v13507_v58 = vld [vmem:[%s13696_s14 + $0xb18] sm:$0xff]   ;;  %12500 = vst [vmem:[%s13701_s18 + $0x118] sm:$0xff] %v13506_v57 }
  0xec   : > { %v13499_v50 = vld [vmem:[%s13696_s14 + $0x508] sm:$0xff]   ;;  %12468 = vst [vmem:[%s13701_s18 + $0x708] sm:$0xff] %v13498_v49  ;;  %v13508_v59 = vld [vmem:[%s13696_s14 + $0x518] sm:$0xff]   ;;  %12504 = vst [vmem:[%s13701_s18 + $0x718] sm:$0xff] %v13507_v58 }
  0xed   : > { %v13500_v51 = vld [vmem:[%s13696_s14 + $0xf08] sm:$0xff]   ;;  %12472 = vst [vmem:[%s13701_s18 + $0xd08] sm:$0xff] %v13499_v50  ;;  %v13509_v60 = vld [vmem:[%s13696_s14 + $0xf18] sm:$0xff]   ;;  %12508 = vst [vmem:[%s13701_s18 + $0xd18] sm:$0xff] %v13508_v59 }
  0xee   : > { %v13501_v52 = vld [vmem:[%s13696_s14 + $0x908] sm:$0xff]   ;;  %12476 = vst [vmem:[%s13701_s18 + $0x308] sm:$0xff] %v13500_v51  ;;  %v13510_v61 = vld [vmem:[%s13696_s14 + $0x918] sm:$0xff]   ;;  %12512 = vst [vmem:[%s13701_s18 + $0x318] sm:$0xff] %v13509_v60 }
  0xef   : > { %v13502_v53 = vld [vmem:[%s13696_s14 + $0x308] sm:$0xff]   ;;  %12480 = vst [vmem:[%s13701_s18 + $0x908] sm:$0xff] %v13501_v52  ;;  %v13511_v62 = vld [vmem:[%s13696_s14 + $0x318] sm:$0xff]   ;;  %12516 = vst [vmem:[%s13701_s18 + $0x918] sm:$0xff] %v13510_v61 }
  0xf0   : > { %v13503_v54 = vld [vmem:[%s13696_s14 + $0xd08] sm:$0xff]   ;;  %12484 = vst [vmem:[%s13701_s18 + $0xf08] sm:$0xff] %v13502_v53  ;;  %v13512_v63 = vld [vmem:[%s13696_s14 + $0xd18] sm:$0xff]   ;;  %12520 = vst [vmem:[%s13701_s18 + $0xf18] sm:$0xff] %v13511_v62 }
  0xf1   : > { %v13504_v55 = vld [vmem:[%s13696_s14 + $0x708] sm:$0xff]   ;;  %12488 = vst [vmem:[%s13701_s18 + $0x508] sm:$0xff] %v13503_v54  ;;  %v13513_v0 = vld [vmem:[%s13696_s14 + $0x718] sm:$0xff]   ;;  %12524 = vst [vmem:[%s13701_s18 + $0x518] sm:$0xff] %v13512_v63 }
  0xf2   : > { %v13505_v56 = vld [vmem:[%s13696_s14 + $0x108] sm:$0xff]   ;;  %12492 = vst [vmem:[%s13701_s18 + $0xb08] sm:$0xff] %v13504_v55  ;;  %v13514_v1 = vld [vmem:[%s13696_s14 + $0x118] sm:$0xff]   ;;  %12528 = vst [vmem:[%s13701_s18 + $0xb18] sm:$0xff] %v13513_v0 }
  0xf3   : > { %12496 = vst [vmem:[%s13701_s18 + $0x1108] sm:$0xff] %v13505_v56  ;;  %v13515_v2 = vld [vmem:[%s13696_s14 + $0x1128] sm:$0xff]   ;;  %12532 = vst [vmem:[%s13701_s18 + $0x1118] sm:$0xff] %v13514_v1  ;;  %v13524_v11 = vld [vmem:[%s13696_s14 + $0x1138] sm:$0xff]  }
  0xf4   : > { %v13516_v3 = vld [vmem:[%s13696_s14 + $0xb28] sm:$0xff]   ;;  %12536 = vst [vmem:[%s13701_s18 + $0x128] sm:$0xff] %v13515_v2  ;;  %v13525_v12 = vld [vmem:[%s13696_s14 + $0xb38] sm:$0xff]   ;;  %12572 = vst [vmem:[%s13701_s18 + $0x138] sm:$0xff] %v13524_v11 }
  0xf5   : > { %v13517_v4 = vld [vmem:[%s13696_s14 + $0x528] sm:$0xff]   ;;  %12540 = vst [vmem:[%s13701_s18 + $0x728] sm:$0xff] %v13516_v3  ;;  %v13526_v13 = vld [vmem:[%s13696_s14 + $0x538] sm:$0xff]   ;;  %12576 = vst [vmem:[%s13701_s18 + $0x738] sm:$0xff] %v13525_v12 }
  0xf6   : > { %v13518_v5 = vld [vmem:[%s13696_s14 + $0xf28] sm:$0xff]   ;;  %12544 = vst [vmem:[%s13701_s18 + $0xd28] sm:$0xff] %v13517_v4  ;;  %v13527_v14 = vld [vmem:[%s13696_s14 + $0xf38] sm:$0xff]   ;;  %12580 = vst [vmem:[%s13701_s18 + $0xd38] sm:$0xff] %v13526_v13 }
  0xf7   : > { %v13519_v6 = vld [vmem:[%s13696_s14 + $0x928] sm:$0xff]   ;;  %12548 = vst [vmem:[%s13701_s18 + $0x328] sm:$0xff] %v13518_v5  ;;  %v13528_v15 = vld [vmem:[%s13696_s14 + $0x938] sm:$0xff]   ;;  %12584 = vst [vmem:[%s13701_s18 + $0x338] sm:$0xff] %v13527_v14 }
  0xf8   : > { %v13520_v7 = vld [vmem:[%s13696_s14 + $0x328] sm:$0xff]   ;;  %12552 = vst [vmem:[%s13701_s18 + $0x928] sm:$0xff] %v13519_v6  ;;  %v13529_v16 = vld [vmem:[%s13696_s14 + $0x338] sm:$0xff]   ;;  %12588 = vst [vmem:[%s13701_s18 + $0x938] sm:$0xff] %v13528_v15 }
  0xf9   : > { %v13521_v8 = vld [vmem:[%s13696_s14 + $0xd28] sm:$0xff]   ;;  %12556 = vst [vmem:[%s13701_s18 + $0xf28] sm:$0xff] %v13520_v7  ;;  %v13530_v17 = vld [vmem:[%s13696_s14 + $0xd38] sm:$0xff]   ;;  %12592 = vst [vmem:[%s13701_s18 + $0xf38] sm:$0xff] %v13529_v16 }
  0xfa   : > { %v13522_v9 = vld [vmem:[%s13696_s14 + $0x728] sm:$0xff]   ;;  %12560 = vst [vmem:[%s13701_s18 + $0x528] sm:$0xff] %v13521_v8  ;;  %v13531_v18 = vld [vmem:[%s13696_s14 + $0x738] sm:$0xff]   ;;  %12596 = vst [vmem:[%s13701_s18 + $0x538] sm:$0xff] %v13530_v17 }
  0xfb   : > { %v13523_v10 = vld [vmem:[%s13696_s14 + $0x128] sm:$0xff]   ;;  %12564 = vst [vmem:[%s13701_s18 + $0xb28] sm:$0xff] %v13522_v9  ;;  %v13532_v19 = vld [vmem:[%s13696_s14 + $0x138] sm:$0xff]   ;;  %12600 = vst [vmem:[%s13701_s18 + $0xb38] sm:$0xff] %v13531_v18 }
  0xfc   : > { %12568 = vst [vmem:[%s13701_s18 + $0x1128] sm:$0xff] %v13523_v10  ;;  %v13533_v20 = vld [vmem:[%s13696_s14 + $0x1148] sm:$0xff]   ;;  %12604 = vst [vmem:[%s13701_s18 + $0x1138] sm:$0xff] %v13532_v19  ;;  %v13542_v29 = vld [vmem:[%s13696_s14 + $0x1158] sm:$0xff]  }
  0xfd   : > { %v13534_v21 = vld [vmem:[%s13696_s14 + $0xb48] sm:$0xff]   ;;  %12608 = vst [vmem:[%s13701_s18 + $0x148] sm:$0xff] %v13533_v20  ;;  %v13543_v30 = vld [vmem:[%s13696_s14 + $0xb58] sm:$0xff]   ;;  %12644 = vst [vmem:[%s13701_s18 + $0x158] sm:$0xff] %v13542_v29 }
  0xfe   : > { %v13535_v22 = vld [vmem:[%s13696_s14 + $0x548] sm:$0xff]   ;;  %12612 = vst [vmem:[%s13701_s18 + $0x748] sm:$0xff] %v13534_v21  ;;  %v13544_v31 = vld [vmem:[%s13696_s14 + $0x558] sm:$0xff]   ;;  %12648 = vst [vmem:[%s13701_s18 + $0x758] sm:$0xff] %v13543_v30 }
  0xff   : > { %v13536_v23 = vld [vmem:[%s13696_s14 + $0xf48] sm:$0xff]   ;;  %12616 = vst [vmem:[%s13701_s18 + $0xd48] sm:$0xff] %v13535_v22  ;;  %v13545_v32 = vld [vmem:[%s13696_s14 + $0xf58] sm:$0xff]   ;;  %12652 = vst [vmem:[%s13701_s18 + $0xd58] sm:$0xff] %v13544_v31 }
 0x100   : > { %v13537_v24 = vld [vmem:[%s13696_s14 + $0x948] sm:$0xff]   ;;  %12620 = vst [vmem:[%s13701_s18 + $0x348] sm:$0xff] %v13536_v23  ;;  %v13546_v33 = vld [vmem:[%s13696_s14 + $0x958] sm:$0xff]   ;;  %12656 = vst [vmem:[%s13701_s18 + $0x358] sm:$0xff] %v13545_v32 }
 0x101   : > { %v13538_v25 = vld [vmem:[%s13696_s14 + $0x348] sm:$0xff]   ;;  %12624 = vst [vmem:[%s13701_s18 + $0x948] sm:$0xff] %v13537_v24  ;;  %v13547_v34 = vld [vmem:[%s13696_s14 + $0x358] sm:$0xff]   ;;  %12660 = vst [vmem:[%s13701_s18 + $0x958] sm:$0xff] %v13546_v33 }
 0x102   : > { %v13539_v26 = vld [vmem:[%s13696_s14 + $0xd48] sm:$0xff]   ;;  %12628 = vst [vmem:[%s13701_s18 + $0xf48] sm:$0xff] %v13538_v25  ;;  %v13548_v35 = vld [vmem:[%s13696_s14 + $0xd58] sm:$0xff]   ;;  %12664 = vst [vmem:[%s13701_s18 + $0xf58] sm:$0xff] %v13547_v34 }
 0x103   : > { %v13540_v27 = vld [vmem:[%s13696_s14 + $0x748] sm:$0xff]   ;;  %12632 = vst [vmem:[%s13701_s18 + $0x548] sm:$0xff] %v13539_v26  ;;  %v13549_v36 = vld [vmem:[%s13696_s14 + $0x758] sm:$0xff]   ;;  %12668 = vst [vmem:[%s13701_s18 + $0x558] sm:$0xff] %v13548_v35 }
 0x104   : > { %v13541_v28 = vld [vmem:[%s13696_s14 + $0x148] sm:$0xff]   ;;  %12636 = vst [vmem:[%s13701_s18 + $0xb48] sm:$0xff] %v13540_v27  ;;  %v13550_v37 = vld [vmem:[%s13696_s14 + $0x158] sm:$0xff]   ;;  %12672 = vst [vmem:[%s13701_s18 + $0xb58] sm:$0xff] %v13549_v36 }
 0x105   : > { %12640 = vst [vmem:[%s13701_s18 + $0x1148] sm:$0xff] %v13541_v28  ;;  %v13551_v38 = vld [vmem:[%s13696_s14 + $0x1168] sm:$0xff]   ;;  %12676 = vst [vmem:[%s13701_s18 + $0x1158] sm:$0xff] %v13550_v37  ;;  %v13560_v47 = vld [vmem:[%s13696_s14 + $0x1178] sm:$0xff]  }
 0x106   : > { %v13552_v39 = vld [vmem:[%s13696_s14 + $0xb68] sm:$0xff]   ;;  %12680 = vst [vmem:[%s13701_s18 + $0x168] sm:$0xff] %v13551_v38  ;;  %v13561_v48 = vld [vmem:[%s13696_s14 + $0xb78] sm:$0xff]   ;;  %12716 = vst [vmem:[%s13701_s18 + $0x178] sm:$0xff] %v13560_v47 }
 0x107   : > { %v13553_v40 = vld [vmem:[%s13696_s14 + $0x568] sm:$0xff]   ;;  %12684 = vst [vmem:[%s13701_s18 + $0x768] sm:$0xff] %v13552_v39  ;;  %v13562_v49 = vld [vmem:[%s13696_s14 + $0x578] sm:$0xff]   ;;  %12720 = vst [vmem:[%s13701_s18 + $0x778] sm:$0xff] %v13561_v48 }
 0x108   : > { %v13554_v41 = vld [vmem:[%s13696_s14 + $0xf68] sm:$0xff]   ;;  %12688 = vst [vmem:[%s13701_s18 + $0xd68] sm:$0xff] %v13553_v40  ;;  %v13563_v50 = vld [vmem:[%s13696_s14 + $0xf78] sm:$0xff]   ;;  %12724 = vst [vmem:[%s13701_s18 + $0xd78] sm:$0xff] %v13562_v49 }
 0x109   : > { %v13555_v42 = vld [vmem:[%s13696_s14 + $0x968] sm:$0xff]   ;;  %12692 = vst [vmem:[%s13701_s18 + $0x368] sm:$0xff] %v13554_v41  ;;  %v13564_v51 = vld [vmem:[%s13696_s14 + $0x978] sm:$0xff]   ;;  %12728 = vst [vmem:[%s13701_s18 + $0x378] sm:$0xff] %v13563_v50 }
 0x10a   : > { %v13556_v43 = vld [vmem:[%s13696_s14 + $0x368] sm:$0xff]   ;;  %12696 = vst [vmem:[%s13701_s18 + $0x968] sm:$0xff] %v13555_v42  ;;  %v13565_v52 = vld [vmem:[%s13696_s14 + $0x378] sm:$0xff]   ;;  %12732 = vst [vmem:[%s13701_s18 + $0x978] sm:$0xff] %v13564_v51 }
 0x10b   : > { %v13557_v44 = vld [vmem:[%s13696_s14 + $0xd68] sm:$0xff]   ;;  %12700 = vst [vmem:[%s13701_s18 + $0xf68] sm:$0xff] %v13556_v43  ;;  %v13566_v53 = vld [vmem:[%s13696_s14 + $0xd78] sm:$0xff]   ;;  %12736 = vst [vmem:[%s13701_s18 + $0xf78] sm:$0xff] %v13565_v52 }
 0x10c   : > { %v13558_v45 = vld [vmem:[%s13696_s14 + $0x768] sm:$0xff]   ;;  %12704 = vst [vmem:[%s13701_s18 + $0x568] sm:$0xff] %v13557_v44  ;;  %v13567_v54 = vld [vmem:[%s13696_s14 + $0x778] sm:$0xff]   ;;  %12740 = vst [vmem:[%s13701_s18 + $0x578] sm:$0xff] %v13566_v53 }
 0x10d   : > { %v13559_v46 = vld [vmem:[%s13696_s14 + $0x168] sm:$0xff]   ;;  %12708 = vst [vmem:[%s13701_s18 + $0xb68] sm:$0xff] %v13558_v45  ;;  %v13568_v55 = vld [vmem:[%s13696_s14 + $0x178] sm:$0xff]   ;;  %12744 = vst [vmem:[%s13701_s18 + $0xb78] sm:$0xff] %v13567_v54 }
 0x10e   : > { %12712 = vst [vmem:[%s13701_s18 + $0x1168] sm:$0xff] %v13559_v46  ;;  %v13569_v56 = vld [vmem:[%s13696_s14 + $0x1188] sm:$0xff]   ;;  %12748 = vst [vmem:[%s13701_s18 + $0x1178] sm:$0xff] %v13568_v55  ;;  %v13578_v1 = vld [vmem:[%s13696_s14 + $0x1198] sm:$0xff]  }
 0x10f   : > { %v13570_v57 = vld [vmem:[%s13696_s14 + $0xb88] sm:$0xff]   ;;  %12752 = vst [vmem:[%s13701_s18 + $0x188] sm:$0xff] %v13569_v56  ;;  %v13579_v2 = vld [vmem:[%s13696_s14 + $0xb98] sm:$0xff]   ;;  %12788 = vst [vmem:[%s13701_s18 + $0x198] sm:$0xff] %v13578_v1 }
 0x110   : > { %v13571_v58 = vld [vmem:[%s13696_s14 + $0x588] sm:$0xff]   ;;  %12756 = vst [vmem:[%s13701_s18 + $0x788] sm:$0xff] %v13570_v57  ;;  %v13580_v3 = vld [vmem:[%s13696_s14 + $0x598] sm:$0xff]   ;;  %12792 = vst [vmem:[%s13701_s18 + $0x798] sm:$0xff] %v13579_v2 }
 0x111   : > { %v13572_v59 = vld [vmem:[%s13696_s14 + $0xf88] sm:$0xff]   ;;  %12760 = vst [vmem:[%s13701_s18 + $0xd88] sm:$0xff] %v13571_v58  ;;  %v13581_v4 = vld [vmem:[%s13696_s14 + $0xf98] sm:$0xff]   ;;  %12796 = vst [vmem:[%s13701_s18 + $0xd98] sm:$0xff] %v13580_v3 }
 0x112   : > { %v13573_v60 = vld [vmem:[%s13696_s14 + $0x988] sm:$0xff]   ;;  %12764 = vst [vmem:[%s13701_s18 + $0x388] sm:$0xff] %v13572_v59  ;;  %v13582_v5 = vld [vmem:[%s13696_s14 + $0x998] sm:$0xff]   ;;  %12800 = vst [vmem:[%s13701_s18 + $0x398] sm:$0xff] %v13581_v4 }
 0x113   : > { %v13574_v61 = vld [vmem:[%s13696_s14 + $0x388] sm:$0xff]   ;;  %12768 = vst [vmem:[%s13701_s18 + $0x988] sm:$0xff] %v13573_v60  ;;  %v13583_v6 = vld [vmem:[%s13696_s14 + $0x398] sm:$0xff]   ;;  %12804 = vst [vmem:[%s13701_s18 + $0x998] sm:$0xff] %v13582_v5 }
 0x114   : > { %v13575_v62 = vld [vmem:[%s13696_s14 + $0xd88] sm:$0xff]   ;;  %12772 = vst [vmem:[%s13701_s18 + $0xf88] sm:$0xff] %v13574_v61  ;;  %v13584_v7 = vld [vmem:[%s13696_s14 + $0xd98] sm:$0xff]   ;;  %12808 = vst [vmem:[%s13701_s18 + $0xf98] sm:$0xff] %v13583_v6 }
 0x115   : > { %v13576_v63 = vld [vmem:[%s13696_s14 + $0x788] sm:$0xff]   ;;  %12776 = vst [vmem:[%s13701_s18 + $0x588] sm:$0xff] %v13575_v62  ;;  %v13585_v8 = vld [vmem:[%s13696_s14 + $0x798] sm:$0xff]   ;;  %12812 = vst [vmem:[%s13701_s18 + $0x598] sm:$0xff] %v13584_v7 }
 0x116   : > { %v13577_v0 = vld [vmem:[%s13696_s14 + $0x188] sm:$0xff]   ;;  %12780 = vst [vmem:[%s13701_s18 + $0xb88] sm:$0xff] %v13576_v63  ;;  %v13586_v9 = vld [vmem:[%s13696_s14 + $0x198] sm:$0xff]   ;;  %12816 = vst [vmem:[%s13701_s18 + $0xb98] sm:$0xff] %v13585_v8 }
 0x117   : > { %12784 = vst [vmem:[%s13701_s18 + $0x1188] sm:$0xff] %v13577_v0  ;;  %v13587_v10 = vld [vmem:[%s13696_s14 + $0x11a8] sm:$0xff]   ;;  %12820 = vst [vmem:[%s13701_s18 + $0x1198] sm:$0xff] %v13586_v9  ;;  %v13596_v19 = vld [vmem:[%s13696_s14 + $0x11b8] sm:$0xff]  }
 0x118   : > { %v13588_v11 = vld [vmem:[%s13696_s14 + $0xba8] sm:$0xff]   ;;  %12824 = vst [vmem:[%s13701_s18 + $0x1a8] sm:$0xff] %v13587_v10  ;;  %v13597_v20 = vld [vmem:[%s13696_s14 + $0xbb8] sm:$0xff]   ;;  %12860 = vst [vmem:[%s13701_s18 + $0x1b8] sm:$0xff] %v13596_v19 }
 0x119   : > { %v13589_v12 = vld [vmem:[%s13696_s14 + $0x5a8] sm:$0xff]   ;;  %12828 = vst [vmem:[%s13701_s18 + $0x7a8] sm:$0xff] %v13588_v11  ;;  %v13598_v21 = vld [vmem:[%s13696_s14 + $0x5b8] sm:$0xff]   ;;  %12864 = vst [vmem:[%s13701_s18 + $0x7b8] sm:$0xff] %v13597_v20 }
 0x11a   : > { %v13590_v13 = vld [vmem:[%s13696_s14 + $0xfa8] sm:$0xff]   ;;  %12832 = vst [vmem:[%s13701_s18 + $0xda8] sm:$0xff] %v13589_v12  ;;  %v13599_v22 = vld [vmem:[%s13696_s14 + $0xfb8] sm:$0xff]   ;;  %12868 = vst [vmem:[%s13701_s18 + $0xdb8] sm:$0xff] %v13598_v21 }
 0x11b   : > { %v13591_v14 = vld [vmem:[%s13696_s14 + $0x9a8] sm:$0xff]   ;;  %12836 = vst [vmem:[%s13701_s18 + $0x3a8] sm:$0xff] %v13590_v13  ;;  %v13600_v23 = vld [vmem:[%s13696_s14 + $0x9b8] sm:$0xff]   ;;  %12872 = vst [vmem:[%s13701_s18 + $0x3b8] sm:$0xff] %v13599_v22 }
 0x11c   : > { %v13592_v15 = vld [vmem:[%s13696_s14 + $0x3a8] sm:$0xff]   ;;  %12840 = vst [vmem:[%s13701_s18 + $0x9a8] sm:$0xff] %v13591_v14  ;;  %v13601_v24 = vld [vmem:[%s13696_s14 + $0x3b8] sm:$0xff]   ;;  %12876 = vst [vmem:[%s13701_s18 + $0x9b8] sm:$0xff] %v13600_v23 }
 0x11d   : > { %v13593_v16 = vld [vmem:[%s13696_s14 + $0xda8] sm:$0xff]   ;;  %12844 = vst [vmem:[%s13701_s18 + $0xfa8] sm:$0xff] %v13592_v15  ;;  %v13602_v25 = vld [vmem:[%s13696_s14 + $0xdb8] sm:$0xff]   ;;  %12880 = vst [vmem:[%s13701_s18 + $0xfb8] sm:$0xff] %v13601_v24 }
 0x11e   : > { %v13594_v17 = vld [vmem:[%s13696_s14 + $0x7a8] sm:$0xff]   ;;  %12848 = vst [vmem:[%s13701_s18 + $0x5a8] sm:$0xff] %v13593_v16  ;;  %v13603_v26 = vld [vmem:[%s13696_s14 + $0x7b8] sm:$0xff]   ;;  %12884 = vst [vmem:[%s13701_s18 + $0x5b8] sm:$0xff] %v13602_v25 }
 0x11f   : > { %v13595_v18 = vld [vmem:[%s13696_s14 + $0x1a8] sm:$0xff]   ;;  %12852 = vst [vmem:[%s13701_s18 + $0xba8] sm:$0xff] %v13594_v17  ;;  %v13604_v27 = vld [vmem:[%s13696_s14 + $0x1b8] sm:$0xff]   ;;  %12888 = vst [vmem:[%s13701_s18 + $0xbb8] sm:$0xff] %v13603_v26 }
 0x120   : > { %12856 = vst [vmem:[%s13701_s18 + $0x11a8] sm:$0xff] %v13595_v18  ;;  %v13605_v28 = vld [vmem:[%s13696_s14 + $0x11c8] sm:$0xff]   ;;  %12892 = vst [vmem:[%s13701_s18 + $0x11b8] sm:$0xff] %v13604_v27  ;;  %v13614_v37 = vld [vmem:[%s13696_s14 + $0x11d8] sm:$0xff]  }
 0x121   : > { %v13606_v29 = vld [vmem:[%s13696_s14 + $0xbc8] sm:$0xff]   ;;  %12896 = vst [vmem:[%s13701_s18 + $0x1c8] sm:$0xff] %v13605_v28  ;;  %v13615_v38 = vld [vmem:[%s13696_s14 + $0xbd8] sm:$0xff]   ;;  %12932 = vst [vmem:[%s13701_s18 + $0x1d8] sm:$0xff] %v13614_v37 }
 0x122   : > { %v13607_v30 = vld [vmem:[%s13696_s14 + $0x5c8] sm:$0xff]   ;;  %12900 = vst [vmem:[%s13701_s18 + $0x7c8] sm:$0xff] %v13606_v29  ;;  %v13616_v39 = vld [vmem:[%s13696_s14 + $0x5d8] sm:$0xff]   ;;  %12936 = vst [vmem:[%s13701_s18 + $0x7d8] sm:$0xff] %v13615_v38 }
 0x123   : > { %v13608_v31 = vld [vmem:[%s13696_s14 + $0xfc8] sm:$0xff]   ;;  %12904 = vst [vmem:[%s13701_s18 + $0xdc8] sm:$0xff] %v13607_v30  ;;  %v13617_v40 = vld [vmem:[%s13696_s14 + $0xfd8] sm:$0xff]   ;;  %12940 = vst [vmem:[%s13701_s18 + $0xdd8] sm:$0xff] %v13616_v39 }
 0x124   : > { %v13609_v32 = vld [vmem:[%s13696_s14 + $0x9c8] sm:$0xff]   ;;  %12908 = vst [vmem:[%s13701_s18 + $0x3c8] sm:$0xff] %v13608_v31  ;;  %v13618_v41 = vld [vmem:[%s13696_s14 + $0x9d8] sm:$0xff]   ;;  %12944 = vst [vmem:[%s13701_s18 + $0x3d8] sm:$0xff] %v13617_v40 }
 0x125   : > { %v13610_v33 = vld [vmem:[%s13696_s14 + $0x3c8] sm:$0xff]   ;;  %12912 = vst [vmem:[%s13701_s18 + $0x9c8] sm:$0xff] %v13609_v32  ;;  %v13619_v42 = vld [vmem:[%s13696_s14 + $0x3d8] sm:$0xff]   ;;  %12948 = vst [vmem:[%s13701_s18 + $0x9d8] sm:$0xff] %v13618_v41 }
 0x126   : > { %v13611_v34 = vld [vmem:[%s13696_s14 + $0xdc8] sm:$0xff]   ;;  %12916 = vst [vmem:[%s13701_s18 + $0xfc8] sm:$0xff] %v13610_v33  ;;  %v13620_v43 = vld [vmem:[%s13696_s14 + $0xdd8] sm:$0xff]   ;;  %12952 = vst [vmem:[%s13701_s18 + $0xfd8] sm:$0xff] %v13619_v42 }
 0x127   : > { %v13612_v35 = vld [vmem:[%s13696_s14 + $0x7c8] sm:$0xff]   ;;  %12920 = vst [vmem:[%s13701_s18 + $0x5c8] sm:$0xff] %v13611_v34  ;;  %v13621_v44 = vld [vmem:[%s13696_s14 + $0x7d8] sm:$0xff]   ;;  %12956 = vst [vmem:[%s13701_s18 + $0x5d8] sm:$0xff] %v13620_v43 }
 0x128   : > { %v13613_v36 = vld [vmem:[%s13696_s14 + $0x1c8] sm:$0xff]   ;;  %12924 = vst [vmem:[%s13701_s18 + $0xbc8] sm:$0xff] %v13612_v35  ;;  %v13622_v45 = vld [vmem:[%s13696_s14 + $0x1d8] sm:$0xff]   ;;  %12960 = vst [vmem:[%s13701_s18 + $0xbd8] sm:$0xff] %v13621_v44 }
 0x129   : > { %12928 = vst [vmem:[%s13701_s18 + $0x11c8] sm:$0xff] %v13613_v36  ;;  %v13623_v46 = vld [vmem:[%s13696_s14 + $0x11e8] sm:$0xff]   ;;  %12964 = vst [vmem:[%s13701_s18 + $0x11d8] sm:$0xff] %v13622_v45  ;;  %v13632_v55 = vld [vmem:[%s13696_s14 + $0x11f8] sm:$0xff]  }
 0x12a   : > { %v13624_v47 = vld [vmem:[%s13696_s14 + $0xbe8] sm:$0xff]   ;;  %12968 = vst [vmem:[%s13701_s18 + $0x1e8] sm:$0xff] %v13623_v46  ;;  %v13633_v56 = vld [vmem:[%s13696_s14 + $0xbf8] sm:$0xff]   ;;  %13004 = vst [vmem:[%s13701_s18 + $0x1f8] sm:$0xff] %v13632_v55 }
 0x12b   : > { %v13625_v48 = vld [vmem:[%s13696_s14 + $0x5e8] sm:$0xff]   ;;  %12972 = vst [vmem:[%s13701_s18 + $0x7e8] sm:$0xff] %v13624_v47  ;;  %v13634_v57 = vld [vmem:[%s13696_s14 + $0x5f8] sm:$0xff]   ;;  %13008 = vst [vmem:[%s13701_s18 + $0x7f8] sm:$0xff] %v13633_v56 }
 0x12c   : > { %v13626_v49 = vld [vmem:[%s13696_s14 + $0xfe8] sm:$0xff]   ;;  %12976 = vst [vmem:[%s13701_s18 + $0xde8] sm:$0xff] %v13625_v48  ;;  %v13635_v58 = vld [vmem:[%s13696_s14 + $0xff8] sm:$0xff]   ;;  %13012 = vst [vmem:[%s13701_s18 + $0xdf8] sm:$0xff] %v13634_v57 }
 0x12d   : > { %v13627_v50 = vld [vmem:[%s13696_s14 + $0x9e8] sm:$0xff]   ;;  %12980 = vst [vmem:[%s13701_s18 + $0x3e8] sm:$0xff] %v13626_v49  ;;  %v13636_v59 = vld [vmem:[%s13696_s14 + $0x9f8] sm:$0xff]   ;;  %13016 = vst [vmem:[%s13701_s18 + $0x3f8] sm:$0xff] %v13635_v58 }
 0x12e   : > { %v13628_v51 = vld [vmem:[%s13696_s14 + $0x3e8] sm:$0xff]   ;;  %12984 = vst [vmem:[%s13701_s18 + $0x9e8] sm:$0xff] %v13627_v50  ;;  %v13637_v60 = vld [vmem:[%s13696_s14 + $0x3f8] sm:$0xff]   ;;  %13020 = vst [vmem:[%s13701_s18 + $0x9f8] sm:$0xff] %v13636_v59 }
 0x12f   : > { %v13629_v52 = vld [vmem:[%s13696_s14 + $0xde8] sm:$0xff]   ;;  %12988 = vst [vmem:[%s13701_s18 + $0xfe8] sm:$0xff] %v13628_v51  ;;  %v13638_v61 = vld [vmem:[%s13696_s14 + $0xdf8] sm:$0xff]   ;;  %13024 = vst [vmem:[%s13701_s18 + $0xff8] sm:$0xff] %v13637_v60 }
 0x130   : > { %v13630_v53 = vld [vmem:[%s13696_s14 + $0x7e8] sm:$0xff]   ;;  %12992 = vst [vmem:[%s13701_s18 + $0x5e8] sm:$0xff] %v13629_v52  ;;  %v13639_v62 = vld [vmem:[%s13696_s14 + $0x7f8] sm:$0xff]   ;;  %13028 = vst [vmem:[%s13701_s18 + $0x5f8] sm:$0xff] %v13638_v61 }
 0x131   : > { %v13631_v54 = vld [vmem:[%s13696_s14 + $0x1e8] sm:$0xff]   ;;  %12996 = vst [vmem:[%s13701_s18 + $0xbe8] sm:$0xff] %v13630_v53  ;;  %v13640_v63 = vld [vmem:[%s13696_s14 + $0x1f8] sm:$0xff]   ;;  %13032 = vst [vmem:[%s13701_s18 + $0xbf8] sm:$0xff] %v13639_v62 }
 0x132   : > { %13000 = vst [vmem:[%s13701_s18 + $0x11e8] sm:$0xff] %v13631_v54  ;;  %13036 = vst [vmem:[%s13701_s18 + $0x11f8] sm:$0xff] %v13640_v63 }
 0x133 PF: > { %s7_s8 = sadd.s32 1, %s13663_s8   ;;  %s14866_s6 = smov %s13659_s7 }
 0x134   : > { %p4_p6 = scmp.ge.s32.totalorder %s7_s8, 5   ;;  %s14867_s7 = smov %s14869_s9 }
 0x136   :  { %6 = sbr.rel (!%p4_p6) target bundleno = 2 (0x2), region = 2919 }

// kernel: risley_speeds_forward.15
= control target key start
LH: loop header
LB: loop body
LE: loop exit
PB: predicated region body
PF: predicated region fallthrough
CT: control target
= control target key end

     0   :  { %v17_v0 = vlaneseq  ;;  %s111_s1 = inlined_call_operand.vmem [shape: f32[1,512], index: 1, kind: input, shape index: {}]   ;;  %s112_s0 = inlined_call_operand.vmem [shape: f32[8,512], index: 0, kind: input, shape index: {}]   ;;  %s113_s2 = inlined_call_operand.vmem [shape: bf16[8,512], index: 2, kind: output, shape index: {}]  }
   0x1   :  { %v15_v2 = vld [vmem:[%s111_s1] sm:$0xf]  ;;  %v12_v8 = vld [vmem:[%s112_s0 + $0x8] sm:$0xff]  ;;  %v13_v9 = vld [vmem:[%s112_s0 + $0x10] sm:$0xff] }
   0x2   :  { %v18_v1 = vshrl.u32 %v17_v0, 7  ;;  %v11_v3 = vld [vmem:[%s112_s0] sm:$0xff]  ;;  %v14_v10 = vld [vmem:[%s112_s0 + $0x18] sm:$0xff] }
   0x4   :  { %v19_v4 = vsub.s32 0, %v18_v1  ;;  %v23_v5 = vsub.s32 1, %v18_v1  ;;  %v27_v6 = vsub.s32 2, %v18_v1  ;;  %v31_v7 = vsub.s32 3, %v18_v1 }
   0x6   :  { %v20_v11 = vrot.slane %v15_v2, %v19_v4  ;;  %v24_v12 = vrot.slane %v15_v2, %v23_v5  ;;  %v28_v13 = vrot.slane %v15_v2, %v27_v6  ;;  %v32_v14 = vrot.slane %v15_v2, %v31_v7 }
   0x8   :  { %v37_v15 = vadd.f32 %v20_v11, %v11_v3  ;;  %v38_v16 = vadd.f32 %v24_v12, %v12_v8  ;;  %v39_v17 = vadd.f32 %v28_v13, %v13_v9  ;;  %v40_v18 = vadd.f32 %v32_v14, %v14_v10 }
   0xa   :  { %v41_v19 = vmul.f32 0.2, %v37_v15  ;;  %v42_v20 = vmul.f32 0.2, %v38_v16  ;;  %v43_v21 = vmul.f32 0.2, %v39_v17 }
   0xb   :  { %v44_v22 = vmul.f32 0.2, %v40_v18 }
   0xc   :  { %v45_v23 = vmax.f32 %v37_v15, %v41_v19  ;;  %v46_v24 = vmax.f32 %v38_v16, %v42_v20  ;;  %v47_v25 = vmax.f32 %v39_v17, %v43_v21 }
   0xd   :  { %v48_v26 = vmax.f32 %v40_v18, %v44_v22 }
   0xe   :  { %v73_v27 = vpack.c.bf16 %v46_v24, %v45_v23 }
   0xf   :  { %v74_v28 = vpack.c.bf16 %v48_v26, %v47_v25 }
  0x10   :  { %65 = vst [vmem:[%s113_s2] sm:$0xff] %v73_v27 }
  0x11   :  { %66 = vst [vmem:[%s113_s2 + $0x8] sm:$0xff] %v74_v28 }

// kernel: reverse.1
= control target key start
LH: loop header
LB: loop body
LE: loop exit
PB: predicated region body
PF: predicated region fallthrough
CT: control target
= control target key end

     0   :  { %s13714_s6 = smov 0   ;;  %s13716_s7 = smov 0   ;;  %s14921_s0 = inlined_call_operand.vmem [shape: bf16[3,3,3,512,512], index: 0, kind: input, shape index: {}]   ;;  %s14922_s1 = inlined_call_operand.vmem [shape: bf16[3,3,3,512,512], index: 1, kind: output, shape index: {}]  }
   0x1   :  { %s13718_s8 = smov 0   ;;  %s13720_s9 = smov 0  }
   0x2   :  { %s13722_s10 = smov 0  }
   0x3 LB: > { %s28_s11 = sadd.s32 1, %s13694_s8  ;;  %s40_s12 = sadd.s32 1, %s13698_s9  ;;  %s13702_s10 = sphi %s13722_s10, %s7_s10   ;;  %s13698_s9 = sphi %s13720_s9, %s14926_s9   ;;  %s13694_s8 = sphi %s13718_s8, %s14925_s8   ;;  %s13690_s7 = sphi %s13716_s7, %s14924_s7   ;;  %s13686_s6 = sphi %s13714_s6, %s14923_s6  }
   0x4   : > { %p30_p0 = scmp.ge.s32.totalorder %s28_s11, 2  ;;  %p10158_p1 = scmp.ge.s32.totalorder %s13702_s10, 1 }
   0x5   : > { %p90_p2 = scmp.lt.s32.totalorder %s13702_s10, 7 }
   0x6   : > { %s14928_s11 = smov (%p30_p0, %s28_s11), 0  ;;  %s14930_s12 = smov (!%p30_p0, %s40_s12), %s13698_s9 }
   0x7   : > { %p91_p3 = pnand %p10158_p1, %p90_p2  ;;  %p42_p4 = scmp.ge.s32.totalorder %s14930_s12, 3 }
   0x8   : > { %s151_s13 = ssub.s32 (!%p91_p3), 2, %s13690_s7  ;;  %s10159_s14 = sshll.u32 (!%p91_p3), %s13686_s6, 5 }
   0x9   : > { %s14932_s12 = smov (%p42_p4, %s14930_s12), 0  ;;  %94 = sbr.rel (%p91_p3) target bundleno = 312 (0x138), region = 20 }
   0xa   : > { %p158_p5 = scmp.lt.s32.totalorder (!%p91_p3), %s151_s13, 2  ;;  %p164_p6 = scmp.lt.s32.totalorder (!%p91_p3), %s10159_s14, 63 }
   0xb   : > { %p189_p7 = scmp.lt.s32.totalorder (!%p91_p3), %s13690_s7, 2 }
  0x10   : > { %s14934_s13 = smov (!%p158_p5, %s151_s13), 2  ;;  %s14936_s14 = smov (!%p164_p6, %s10159_s14), 63 }
  0x11   : > { %s13046_s15 = smul.u32 2304, %s14934_s13  ;;  %s10160_s16 = sshll.u32 %s14936_s14, 2 }
  0x12   : > { %s14938_s7 = smov (!%p189_p7, %s13690_s7), 2 }
  0x13   : > { %s175_s17 = sadd.s32 %s13046_s15, %s10160_s16  ;;  %s13047_s22 = smul.u32 2304, %s14938_s7 }
  0x14   : > { %s10161_s18 = sshll.u32 %s175_s17, 2 }
  0x15   : > { %s13747_s21 = scalar_lea.vmem %s14921_s0, %s10161_s18  ;;  %s206_s23 = sadd.s32 %s13047_s22, %s10160_s16 }
  0x16   : > { %v13088_v0 = vld [vmem:[%s13747_s21 + $0x2000] sm:$0xff]   ;;  %s10164_s24 = sshll.u32 %s206_s23, 2  ;;  %v13097_v9 = vld [vmem:[%s13747_s21 + $0x2010] sm:$0xff]  }
  0x17   : > { %v13089_v1 = vld [vmem:[%s13747_s21 + $0x1400] sm:$0xff]   ;;  %s13755_s27 = scalar_lea.vmem %s14922_s1, %s10164_s24  ;;  %v13098_v10 = vld [vmem:[%s13747_s21 + $0x1410] sm:$0xff]  }
  0x18   : > { %v13090_v2 = vld [vmem:[%s13747_s21 + $0x800] sm:$0xff]   ;;  %10455 = vst [vmem:[%s13755_s27] sm:$0xff] %v13088_v0  ;;  %10459 = vst [vmem:[%s13755_s27 + $0xc00] sm:$0xff] %v13089_v1  ;;  %v13099_v11 = vld [vmem:[%s13747_s21 + $0x810] sm:$0xff]  }
  0x19   : > { %10463 = vst [vmem:[%s13755_s27 + $0x1800] sm:$0xff] %v13090_v2  ;;  %v13091_v3 = vld [vmem:[%s13747_s21 + $0x1c00] sm:$0xff]   ;;  %10491 = vst [vmem:[%s13755_s27 + $0x10] sm:$0xff] %v13097_v9  ;;  %v13100_v12 = vld [vmem:[%s13747_s21 + $0x1c10] sm:$0xff]  }
  0x1a   : > { %v13092_v4 = vld [vmem:[%s13747_s21 + $0x1000] sm:$0xff]   ;;  %10467 = vst [vmem:[%s13755_s27 + $0x400] sm:$0xff] %v13091_v3  ;;  %10495 = vst [vmem:[%s13755_s27 + $0xc10] sm:$0xff] %v13098_v10  ;;  %v13101_v13 = vld [vmem:[%s13747_s21 + $0x1010] sm:$0xff]  }
  0x1b   : > { %v13093_v5 = vld [vmem:[%s13747_s21 + $0x400] sm:$0xff]   ;;  %10471 = vst [vmem:[%s13755_s27 + $0x1000] sm:$0xff] %v13092_v4  ;;  %10499 = vst [vmem:[%s13755_s27 + $0x1810] sm:$0xff] %v13099_v11  ;;  %v13102_v14 = vld [vmem:[%s13747_s21 + $0x410] sm:$0xff]  }
  0x1c   : > { %v13094_v6 = vld [vmem:[%s13747_s21 + $0x1800] sm:$0xff]   ;;  %10475 = vst [vmem:[%s13755_s27 + $0x1c00] sm:$0xff] %v13093_v5  ;;  %10503 = vst [vmem:[%s13755_s27 + $0x410] sm:$0xff] %v13100_v12  ;;  %v13103_v15 = vld [vmem:[%s13747_s21 + $0x1810] sm:$0xff]  }
  0x1d   : > { %v13095_v7 = vld [vmem:[%s13747_s21 + $0xc00] sm:$0xff]   ;;  %10479 = vst [vmem:[%s13755_s27 + $0x800] sm:$0xff] %v13094_v6  ;;  %10507 = vst [vmem:[%s13755_s27 + $0x1010] sm:$0xff] %v13101_v13  ;;  %v13104_v16 = vld [vmem:[%s13747_s21 + $0xc10] sm:$0xff]  }
  0x1e   : > { %v13096_v8 = vld [vmem:[%s13747_s21] sm:$0xff]   ;;  %10483 = vst [vmem:[%s13755_s27 + $0x1400] sm:$0xff] %v13095_v7  ;;  %10511 = vst [vmem:[%s13755_s27 + $0x1c10] sm:$0xff] %v13102_v14  ;;  %v13105_v17 = vld [vmem:[%s13747_s21 + $0x10] sm:$0xff]  }
  0x1f   : > { %10487 = vst [vmem:[%s13755_s27 + $0x2000] sm:$0xff] %v13096_v8  ;;  %10515 = vst [vmem:[%s13755_s27 + $0x810] sm:$0xff] %v13103_v15  ;;  %v13106_v18 = vld [vmem:[%s13747_s21 + $0x2020] sm:$0xff]   ;;  %v13115_v27 = vld [vmem:[%s13747_s21 + $0x2030] sm:$0xff]  }
  0x20   : > { %10519 = vst [vmem:[%s13755_s27 + $0x1410] sm:$0xff] %v13104_v16  ;;  %10523 = vst [vmem:[%s13755_s27 + $0x2010] sm:$0xff] %v13105_v17  ;;  %v13107_v19 = vld [vmem:[%s13747_s21 + $0x1420] sm:$0xff]   ;;  %v13116_v28 = vld [vmem:[%s13747_s21 + $0x1430] sm:$0xff]  }
  0x21   : > { %v13108_v20 = vld [vmem:[%s13747_s21 + $0x820] sm:$0xff]   ;;  %10527 = vst [vmem:[%s13755_s27 + $0x20] sm:$0xff] %v13106_v18  ;;  %10531 = vst [vmem:[%s13755_s27 + $0xc20] sm:$0xff] %v13107_v19  ;;  %v13117_v29 = vld [vmem:[%s13747_s21 + $0x830] sm:$0xff]  }
  0x22   : > { %v13109_v21 = vld [vmem:[%s13747_s21 + $0x1c20] sm:$0xff]   ;;  %10535 = vst [vmem:[%s13755_s27 + $0x1820] sm:$0xff] %v13108_v20  ;;  %10563 = vst [vmem:[%s13755_s27 + $0x30] sm:$0xff] %v13115_v27  ;;  %v13118_v30 = vld [vmem:[%s13747_s21 + $0x1c30] sm:$0xff]  }
  0x23   : > { %v13110_v22 = vld [vmem:[%s13747_s21 + $0x1020] sm:$0xff]   ;;  %10539 = vst [vmem:[%s13755_s27 + $0x420] sm:$0xff] %v13109_v21  ;;  %10567 = vst [vmem:[%s13755_s27 + $0xc30] sm:$0xff] %v13116_v28  ;;  %v13119_v31 = vld [vmem:[%s13747_s21 + $0x1030] sm:$0xff]  }
  0x24   : > { %v13111_v23 = vld [vmem:[%s13747_s21 + $0x420] sm:$0xff]   ;;  %10543 = vst [vmem:[%s13755_s27 + $0x1020] sm:$0xff] %v13110_v22  ;;  %10571 = vst [vmem:[%s13755_s27 + $0x1830] sm:$0xff] %v13117_v29  ;;  %v13120_v32 = vld [vmem:[%s13747_s21 + $0x430] sm:$0xff]  }
  0x25   : > { %v13112_v24 = vld [vmem:[%s13747_s21 + $0x1820] sm:$0xff]   ;;  %10547 = vst [vmem:[%s13755_s27 + $0x1c20] sm:$0xff] %v13111_v23  ;;  %10575 = vst [vmem:[%s13755_s27 + $0x430] sm:$0xff] %v13118_v30  ;;  %v13121_v33 = vld [vmem:[%s13747_s21 + $0x1830] sm:$0xff]  }
  0x26   : > { %v13113_v25 = vld [vmem:[%s13747_s21 + $0xc20] sm:$0xff]   ;;  %10551 = vst [vmem:[%s13755_s27 + $0x820] sm:$0xff] %v13112_v24  ;;  %10579 = vst [vmem:[%s13755_s27 + $0x1030] sm:$0xff] %v13119_v31  ;;  %v13122_v34 = vld [vmem:[%s13747_s21 + $0xc30] sm:$0xff]  }
  0x27   : > { %v13114_v26 = vld [vmem:[%s13747_s21 + $0x20] sm:$0xff]   ;;  %10555 = vst [vmem:[%s13755_s27 + $0x1420] sm:$0xff] %v13113_v25  ;;  %10583 = vst [vmem:[%s13755_s27 + $0x1c30] sm:$0xff] %v13120_v32  ;;  %v13123_v35 = vld [vmem:[%s13747_s21 + $0x30] sm:$0xff]  }
  0x28   : > { %10559 = vst [vmem:[%s13755_s27 + $0x2020] sm:$0xff] %v13114_v26  ;;  %10587 = vst [vmem:[%s13755_s27 + $0x830] sm:$0xff] %v13121_v33  ;;  %v13124_v36 = vld [vmem:[%s13747_s21 + $0x2040] sm:$0xff]   ;;  %v13133_v45 = vld [vmem:[%s13747_s21 + $0x2050] sm:$0xff]  }
  0x29   : > { %10591 = vst [vmem:[%s13755_s27 + $0x1430] sm:$0xff] %v13122_v34  ;;  %10595 = vst [vmem:[%s13755_s27 + $0x2030] sm:$0xff] %v13123_v35  ;;  %v13125_v37 = vld [vmem:[%s13747_s21 + $0x1440] sm:$0xff]   ;;  %v13134_v46 = vld [vmem:[%s13747_s21 + $0x1450] sm:$0xff]  }
  0x2a   : > { %v13126_v38 = vld [vmem:[%s13747_s21 + $0x840] sm:$0xff]   ;;  %10599 = vst [vmem:[%s13755_s27 + $0x40] sm:$0xff] %v13124_v36  ;;  %10603 = vst [vmem:[%s13755_s27 + $0xc40] sm:$0xff] %v13125_v37  ;;  %v13135_v47 = vld [vmem:[%s13747_s21 + $0x850] sm:$0xff]  }
  0x2b   : > { %v13127_v39 = vld [vmem:[%s13747_s21 + $0x1c40] sm:$0xff]   ;;  %10607 = vst [vmem:[%s13755_s27 + $0x1840] sm:$0xff] %v13126_v38  ;;  %10635 = vst [vmem:[%s13755_s27 + $0x50] sm:$0xff] %v13133_v45  ;;  %v13136_v48 = vld [vmem:[%s13747_s21 + $0x1c50] sm:$0xff]  }
  0x2c   : > { %v13128_v40 = vld [vmem:[%s13747_s21 + $0x1040] sm:$0xff]   ;;  %10611 = vst [vmem:[%s13755_s27 + $0x440] sm:$0xff] %v13127_v39  ;;  %10639 = vst [vmem:[%s13755_s27 + $0xc50] sm:$0xff] %v13134_v46  ;;  %v13137_v49 = vld [vmem:[%s13747_s21 + $0x1050] sm:$0xff]  }
  0x2d   : > { %v13129_v41 = vld [vmem:[%s13747_s21 + $0x440] sm:$0xff]   ;;  %10615 = vst [vmem:[%s13755_s27 + $0x1040] sm:$0xff] %v13128_v40  ;;  %10643 = vst [vmem:[%s13755_s27 + $0x1850] sm:$0xff] %v13135_v47  ;;  %v13138_v50 = vld [vmem:[%s13747_s21 + $0x450] sm:$0xff]  }
  0x2e   : > { %v13130_v42 = vld [vmem:[%s13747_s21 + $0x1840] sm:$0xff]   ;;  %10619 = vst [vmem:[%s13755_s27 + $0x1c40] sm:$0xff] %v13129_v41  ;;  %10647 = vst [vmem:[%s13755_s27 + $0x450] sm:$0xff] %v13136_v48  ;;  %v13139_v51 = vld [vmem:[%s13747_s21 + $0x1850] sm:$0xff]  }
  0x2f   : > { %v13131_v43 = vld [vmem:[%s13747_s21 + $0xc40] sm:$0xff]   ;;  %10623 = vst [vmem:[%s13755_s27 + $0x840] sm:$0xff] %v13130_v42  ;;  %10651 = vst [vmem:[%s13755_s27 + $0x1050] sm:$0xff] %v13137_v49  ;;  %v13140_v52 = vld [vmem:[%s13747_s21 + $0xc50] sm:$0xff]  }
  0x30   : > { %v13132_v44 = vld [vmem:[%s13747_s21 + $0x40] sm:$0xff]   ;;  %10627 = vst [vmem:[%s13755_s27 + $0x1440] sm:$0xff] %v13131_v43  ;;  %10655 = vst [vmem:[%s13755_s27 + $0x1c50] sm:$0xff] %v13138_v50  ;;  %v13141_v53 = vld [vmem:[%s13747_s21 + $0x50] sm:$0xff]  }
  0x31   : > { %10631 = vst [vmem:[%s13755_s27 + $0x2040] sm:$0xff] %v13132_v44  ;;  %10659 = vst [vmem:[%s13755_s27 + $0x850] sm:$0xff] %v13139_v51  ;;  %v13142_v54 = vld [vmem:[%s13747_s21 + $0x2060] sm:$0xff]   ;;  %v13151_v63 = vld [vmem:[%s13747_s21 + $0x2070] sm:$0xff]  }
  0x32   : > { %10663 = vst [vmem:[%s13755_s27 + $0x1450] sm:$0xff] %v13140_v52  ;;  %10667 = vst [vmem:[%s13755_s27 + $0x2050] sm:$0xff] %v13141_v53  ;;  %v13143_v55 = vld [vmem:[%s13747_s21 + $0x1460] sm:$0xff]   ;;  %v13152_v0 = vld [vmem:[%s13747_s21 + $0x1470] sm:$0xff]  }
  0x33   : > { %v13144_v56 = vld [vmem:[%s13747_s21 + $0x860] sm:$0xff]   ;;  %10671 = vst [vmem:[%s13755_s27 + $0x60] sm:$0xff] %v13142_v54  ;;  %10675 = vst [vmem:[%s13755_s27 + $0xc60] sm:$0xff] %v13143_v55  ;;  %v13153_v1 = vld [vmem:[%s13747_s21 + $0x870] sm:$0xff]  }
  0x34   : > { %v13145_v57 = vld [vmem:[%s13747_s21 + $0x1c60] sm:$0xff]   ;;  %10679 = vst [vmem:[%s13755_s27 + $0x1860] sm:$0xff] %v13144_v56  ;;  %10707 = vst [vmem:[%s13755_s27 + $0x70] sm:$0xff] %v13151_v63  ;;  %v13154_v2 = vld [vmem:[%s13747_s21 + $0x1c70] sm:$0xff]  }
  0x35   : > { %v13146_v58 = vld [vmem:[%s13747_s21 + $0x1060] sm:$0xff]   ;;  %10683 = vst [vmem:[%s13755_s27 + $0x460] sm:$0xff] %v13145_v57  ;;  %10711 = vst [vmem:[%s13755_s27 + $0xc70] sm:$0xff] %v13152_v0  ;;  %v13155_v3 = vld [vmem:[%s13747_s21 + $0x1070] sm:$0xff]  }
  0x36   : > { %v13147_v59 = vld [vmem:[%s13747_s21 + $0x460] sm:$0xff]   ;;  %10687 = vst [vmem:[%s13755_s27 + $0x1060] sm:$0xff] %v13146_v58  ;;  %10715 = vst [vmem:[%s13755_s27 + $0x1870] sm:$0xff] %v13153_v1  ;;  %v13156_v4 = vld [vmem:[%s13747_s21 + $0x470] sm:$0xff]  }
  0x37   : > { %v13148_v60 = vld [vmem:[%s13747_s21 + $0x1860] sm:$0xff]   ;;  %10691 = vst [vmem:[%s13755_s27 + $0x1c60] sm:$0xff] %v13147_v59  ;;  %10719 = vst [vmem:[%s13755_s27 + $0x470] sm:$0xff] %v13154_v2  ;;  %v13157_v5 = vld [vmem:[%s13747_s21 + $0x1870] sm:$0xff]  }
  0x38   : > { %v13149_v61 = vld [vmem:[%s13747_s21 + $0xc60] sm:$0xff]   ;;  %10695 = vst [vmem:[%s13755_s27 + $0x860] sm:$0xff] %v13148_v60  ;;  %10723 = vst [vmem:[%s13755_s27 + $0x1070] sm:$0xff] %v13155_v3  ;;  %v13158_v6 = vld [vmem:[%s13747_s21 + $0xc70] sm:$0xff]  }
  0x39   : > { %v13150_v62 = vld [vmem:[%s13747_s21 + $0x60] sm:$0xff]   ;;  %10699 = vst [vmem:[%s13755_s27 + $0x1460] sm:$0xff] %v13149_v61  ;;  %10727 = vst [vmem:[%s13755_s27 + $0x1c70] sm:$0xff] %v13156_v4  ;;  %v13159_v7 = vld [vmem:[%s13747_s21 + $0x70] sm:$0xff]  }
  0x3a   : > { %10703 = vst [vmem:[%s13755_s27 + $0x2060] sm:$0xff] %v13150_v62  ;;  %10731 = vst [vmem:[%s13755_s27 + $0x870] sm:$0xff] %v13157_v5  ;;  %v13160_v8 = vld [vmem:[%s13747_s21 + $0x2080] sm:$0xff]   ;;  %v13169_v17 = vld [vmem:[%s13747_s21 + $0x2090] sm:$0xff]  }
  0x3b   : > { %10735 = vst [vmem:[%s13755_s27 + $0x1470] sm:$0xff] %v13158_v6  ;;  %10739 = vst [vmem:[%s13755_s27 + $0x2070] sm:$0xff] %v13159_v7  ;;  %v13161_v9 = vld [vmem:[%s13747_s21 + $0x1480] sm:$0xff]   ;;  %v13170_v18 = vld [vmem:[%s13747_s21 + $0x1490] sm:$0xff]  }
  0x3c   : > { %v13162_v10 = vld [vmem:[%s13747_s21 + $0x880] sm:$0xff]   ;;  %10743 = vst [vmem:[%s13755_s27 + $0x80] sm:$0xff] %v13160_v8  ;;  %10747 = vst [vmem:[%s13755_s27 + $0xc80] sm:$0xff] %v13161_v9  ;;  %v13171_v19 = vld [vmem:[%s13747_s21 + $0x890] sm:$0xff]  }
  0x3d   : > { %v13163_v11 = vld [vmem:[%s13747_s21 + $0x1c80] sm:$0xff]   ;;  %10751 = vst [vmem:[%s13755_s27 + $0x1880] sm:$0xff] %v13162_v10  ;;  %10779 = vst [vmem:[%s13755_s27 + $0x90] sm:$0xff] %v13169_v17  ;;  %v13172_v20 = vld [vmem:[%s13747_s21 + $0x1c90] sm:$0xff]  }
  0x3e   : > { %v13164_v12 = vld [vmem:[%s13747_s21 + $0x1080] sm:$0xff]   ;;  %10755 = vst [vmem:[%s13755_s27 + $0x480] sm:$0xff] %v13163_v11  ;;  %10783 = vst [vmem:[%s13755_s27 + $0xc90] sm:$0xff] %v13170_v18  ;;  %v13173_v21 = vld [vmem:[%s13747_s21 + $0x1090] sm:$0xff]  }
  0x3f   : > { %v13165_v13 = vld [vmem:[%s13747_s21 + $0x480] sm:$0xff]   ;;  %10759 = vst [vmem:[%s13755_s27 + $0x1080] sm:$0xff] %v13164_v12  ;;  %10787 = vst [vmem:[%s13755_s27 + $0x1890] sm:$0xff] %v13171_v19  ;;  %v13174_v22 = vld [vmem:[%s13747_s21 + $0x490] sm:$0xff]  }
  0x40   : > { %v13166_v14 = vld [vmem:[%s13747_s21 + $0x1880] sm:$0xff]   ;;  %10763 = vst [vmem:[%s13755_s27 + $0x1c80] sm:$0xff] %v13165_v13  ;;  %10791 = vst [vmem:[%s13755_s27 + $0x490] sm:$0xff] %v13172_v20  ;;  %v13175_v23 = vld [vmem:[%s13747_s21 + $0x1890] sm:$0xff]  }
  0x41   : > { %v13167_v15 = vld [vmem:[%s13747_s21 + $0xc80] sm:$0xff]   ;;  %10767 = vst [vmem:[%s13755_s27 + $0x880] sm:$0xff] %v13166_v14  ;;  %10795 = vst [vmem:[%s13755_s27 + $0x1090] sm:$0xff] %v13173_v21  ;;  %v13176_v24 = vld [vmem:[%s13747_s21 + $0xc90] sm:$0xff]  }
  0x42   : > { %v13168_v16 = vld [vmem:[%s13747_s21 + $0x80] sm:$0xff]   ;;  %10771 = vst [vmem:[%s13755_s27 + $0x1480] sm:$0xff] %v13167_v15  ;;  %10799 = vst [vmem:[%s13755_s27 + $0x1c90] sm:$0xff] %v13174_v22  ;;  %v13177_v25 = vld [vmem:[%s13747_s21 + $0x90] sm:$0xff]  }
  0x43   : > { %10775 = vst [vmem:[%s13755_s27 + $0x2080] sm:$0xff] %v13168_v16  ;;  %10803 = vst [vmem:[%s13755_s27 + $0x890] sm:$0xff] %v13175_v23  ;;  %v13178_v26 = vld [vmem:[%s13747_s21 + $0x20a0] sm:$0xff]   ;;  %v13187_v35 = vld [vmem:[%s13747_s21 + $0x20b0] sm:$0xff]  }
  0x44   : > { %10807 = vst [vmem:[%s13755_s27 + $0x1490] sm:$0xff] %v13176_v24  ;;  %10811 = vst [vmem:[%s13755_s27 + $0x2090] sm:$0xff] %v13177_v25  ;;  %v13179_v27 = vld [vmem:[%s13747_s21 + $0x14a0] sm:$0xff]   ;;  %v13188_v36 = vld [vmem:[%s13747_s21 + $0x14b0] sm:$0xff]  }
  0x45   : > { %v13180_v28 = vld [vmem:[%s13747_s21 + $0x8a0] sm:$0xff]   ;;  %10815 = vst [vmem:[%s13755_s27 + $0xa0] sm:$0xff] %v13178_v26  ;;  %10819 = vst [vmem:[%s13755_s27 + $0xca0] sm:$0xff] %v13179_v27  ;;  %v13189_v37 = vld [vmem:[%s13747_s21 + $0x8b0] sm:$0xff]  }
  0x46   : > { %v13181_v29 = vld [vmem:[%s13747_s21 + $0x1ca0] sm:$0xff]   ;;  %10823 = vst [vmem:[%s13755_s27 + $0x18a0] sm:$0xff] %v13180_v28  ;;  %10851 = vst [vmem:[%s13755_s27 + $0xb0] sm:$0xff] %v13187_v35  ;;  %v13190_v38 = vld [vmem:[%s13747_s21 + $0x1cb0] sm:$0xff]  }
  0x47   : > { %v13182_v30 = vld [vmem:[%s13747_s21 + $0x10a0] sm:$0xff]   ;;  %10827 = vst [vmem:[%s13755_s27 + $0x4a0] sm:$0xff] %v13181_v29  ;;  %10855 = vst [vmem:[%s13755_s27 + $0xcb0] sm:$0xff] %v13188_v36  ;;  %v13191_v39 = vld [vmem:[%s13747_s21 + $0x10b0] sm:$0xff]  }
  0x48   : > { %v13183_v31 = vld [vmem:[%s13747_s21 + $0x4a0] sm:$0xff]   ;;  %10831 = vst [vmem:[%s13755_s27 + $0x10a0] sm:$0xff] %v13182_v30  ;;  %10859 = vst [vmem:[%s13755_s27 + $0x18b0] sm:$0xff] %v13189_v37  ;;  %v13192_v40 = vld [vmem:[%s13747_s21 + $0x4b0] sm:$0xff]  }
  0x49   : > { %v13184_v32 = vld [vmem:[%s13747_s21 + $0x18a0] sm:$0xff]   ;;  %10835 = vst [vmem:[%s13755_s27 + $0x1ca0] sm:$0xff] %v13183_v31  ;;  %10863 = vst [vmem:[%s13755_s27 + $0x4b0] sm:$0xff] %v13190_v38  ;;  %v13193_v41 = vld [vmem:[%s13747_s21 + $0x18b0] sm:$0xff]  }
  0x4a   : > { %v13185_v33 = vld [vmem:[%s13747_s21 + $0xca0] sm:$0xff]   ;;  %10839 = vst [vmem:[%s13755_s27 + $0x8a0] sm:$0xff] %v13184_v32  ;;  %10867 = vst [vmem:[%s13755_s27 + $0x10b0] sm:$0xff] %v13191_v39  ;;  %v13194_v42 = vld [vmem:[%s13747_s21 + $0xcb0] sm:$0xff]  }
  0x4b   : > { %v13186_v34 = vld [vmem:[%s13747_s21 + $0xa0] sm:$0xff]   ;;  %10843 = vst [vmem:[%s13755_s27 + $0x14a0] sm:$0xff] %v13185_v33  ;;  %10871 = vst [vmem:[%s13755_s27 + $0x1cb0] sm:$0xff] %v13192_v40  ;;  %v13195_v43 = vld [vmem:[%s13747_s21 + $0xb0] sm:$0xff]  }
  0x4c   : > { %10847 = vst [vmem:[%s13755_s27 + $0x20a0] sm:$0xff] %v13186_v34  ;;  %10875 = vst [vmem:[%s13755_s27 + $0x8b0] sm:$0xff] %v13193_v41  ;;  %v13196_v44 = vld [vmem:[%s13747_s21 + $0x20c0] sm:$0xff]   ;;  %v13205_v53 = vld [vmem:[%s13747_s21 + $0x20d0] sm:$0xff]  }
  0x4d   : > { %10879 = vst [vmem:[%s13755_s27 + $0x14b0] sm:$0xff] %v13194_v42  ;;  %10883 = vst [vmem:[%s13755_s27 + $0x20b0] sm:$0xff] %v13195_v43  ;;  %v13197_v45 = vld [vmem:[%s13747_s21 + $0x14c0] sm:$0xff]   ;;  %v13206_v54 = vld [vmem:[%s13747_s21 + $0x14d0] sm:$0xff]  }
  0x4e   : > { %v13198_v46 = vld [vmem:[%s13747_s21 + $0x8c0] sm:$0xff]   ;;  %10887 = vst [vmem:[%s13755_s27 + $0xc0] sm:$0xff] %v13196_v44  ;;  %10891 = vst [vmem:[%s13755_s27 + $0xcc0] sm:$0xff] %v13197_v45  ;;  %v13207_v55 = vld [vmem:[%s13747_s21 + $0x8d0] sm:$0xff]  }
  0x4f   : > { %v13199_v47 = vld [vmem:[%s13747_s21 + $0x1cc0] sm:$0xff]   ;;  %10895 = vst [vmem:[%s13755_s27 + $0x18c0] sm:$0xff] %v13198_v46  ;;  %10923 = vst [vmem:[%s13755_s27 + $0xd0] sm:$0xff] %v13205_v53  ;;  %v13208_v56 = vld [vmem:[%s13747_s21 + $0x1cd0] sm:$0xff]  }
  0x50   : > { %v13200_v48 = vld [vmem:[%s13747_s21 + $0x10c0] sm:$0xff]   ;;  %10899 = vst [vmem:[%s13755_s27 + $0x4c0] sm:$0xff] %v13199_v47  ;;  %10927 = vst [vmem:[%s13755_s27 + $0xcd0] sm:$0xff] %v13206_v54  ;;  %v13209_v57 = vld [vmem:[%s13747_s21 + $0x10d0] sm:$0xff]  }
  0x51   : > { %v13201_v49 = vld [vmem:[%s13747_s21 + $0x4c0] sm:$0xff]   ;;  %10903 = vst [vmem:[%s13755_s27 + $0x10c0] sm:$0xff] %v13200_v48  ;;  %10931 = vst [vmem:[%s13755_s27 + $0x18d0] sm:$0xff] %v13207_v55  ;;  %v13210_v58 = vld [vmem:[%s13747_s21 + $0x4d0] sm:$0xff]  }
  0x52   : > { %v13202_v50 = vld [vmem:[%s13747_s21 + $0x18c0] sm:$0xff]   ;;  %10907 = vst [vmem:[%s13755_s27 + $0x1cc0] sm:$0xff] %v13201_v49  ;;  %10935 = vst [vmem:[%s13755_s27 + $0x4d0] sm:$0xff] %v13208_v56  ;;  %v13211_v59 = vld [vmem:[%s13747_s21 + $0x18d0] sm:$0xff]  }
  0x53   : > { %v13203_v51 = vld [vmem:[%s13747_s21 + $0xcc0] sm:$0xff]   ;;  %10911 = vst [vmem:[%s13755_s27 + $0x8c0] sm:$0xff] %v13202_v50  ;;  %10939 = vst [vmem:[%s13755_s27 + $0x10d0] sm:$0xff] %v13209_v57  ;;  %v13212_v60 = vld [vmem:[%s13747_s21 + $0xcd0] sm:$0xff]  }
  0x54   : > { %v13204_v52 = vld [vmem:[%s13747_s21 + $0xc0] sm:$0xff]   ;;  %10915 = vst [vmem:[%s13755_s27 + $0x14c0] sm:$0xff] %v13203_v51  ;;  %10943 = vst [vmem:[%s13755_s27 + $0x1cd0] sm:$0xff] %v13210_v58  ;;  %v13213_v61 = vld [vmem:[%s13747_s21 + $0xd0] sm:$0xff]  }
  0x55   : > { %10919 = vst [vmem:[%s13755_s27 + $0x20c0] sm:$0xff] %v13204_v52  ;;  %10947 = vst [vmem:[%s13755_s27 + $0x8d0] sm:$0xff] %v13211_v59  ;;  %v13214_v62 = vld [vmem:[%s13747_s21 + $0x20e0] sm:$0xff]   ;;  %v13223_v7 = vld [vmem:[%s13747_s21 + $0x20f0] sm:$0xff]  }
  0x56   : > { %10951 = vst [vmem:[%s13755_s27 + $0x14d0] sm:$0xff] %v13212_v60  ;;  %10955 = vst [vmem:[%s13755_s27 + $0x20d0] sm:$0xff] %v13213_v61  ;;  %v13215_v63 = vld [vmem:[%s13747_s21 + $0x14e0] sm:$0xff]   ;;  %v13224_v8 = vld [vmem:[%s13747_s21 + $0x14f0] sm:$0xff]  }
  0x57   : > { %v13216_v0 = vld [vmem:[%s13747_s21 + $0x8e0] sm:$0xff]   ;;  %10959 = vst [vmem:[%s13755_s27 + $0xe0] sm:$0xff] %v13214_v62  ;;  %10963 = vst [vmem:[%s13755_s27 + $0xce0] sm:$0xff] %v13215_v63  ;;  %v13225_v9 = vld [vmem:[%s13747_s21 + $0x8f0] sm:$0xff]  }
  0x58   : > { %v13217_v1 = vld [vmem:[%s13747_s21 + $0x1ce0] sm:$0xff]   ;;  %10967 = vst [vmem:[%s13755_s27 + $0x18e0] sm:$0xff] %v13216_v0  ;;  %10995 = vst [vmem:[%s13755_s27 + $0xf0] sm:$0xff] %v13223_v7  ;;  %v13226_v10 = vld [vmem:[%s13747_s21 + $0x1cf0] sm:$0xff]  }
  0x59   : > { %v13218_v2 = vld [vmem:[%s13747_s21 + $0x10e0] sm:$0xff]   ;;  %10971 = vst [vmem:[%s13755_s27 + $0x4e0] sm:$0xff] %v13217_v1  ;;  %10999 = vst [vmem:[%s13755_s27 + $0xcf0] sm:$0xff] %v13224_v8  ;;  %v13227_v11 = vld [vmem:[%s13747_s21 + $0x10f0] sm:$0xff]  }
  0x5a   : > { %v13219_v3 = vld [vmem:[%s13747_s21 + $0x4e0] sm:$0xff]   ;;  %10975 = vst [vmem:[%s13755_s27 + $0x10e0] sm:$0xff] %v13218_v2  ;;  %11003 = vst [vmem:[%s13755_s27 + $0x18f0] sm:$0xff] %v13225_v9  ;;  %v13228_v12 = vld [vmem:[%s13747_s21 + $0x4f0] sm:$0xff]  }
  0x5b   : > { %v13220_v4 = vld [vmem:[%s13747_s21 + $0x18e0] sm:$0xff]   ;;  %10979 = vst [vmem:[%s13755_s27 + $0x1ce0] sm:$0xff] %v13219_v3  ;;  %11007 = vst [vmem:[%s13755_s27 + $0x4f0] sm:$0xff] %v13226_v10  ;;  %v13229_v13 = vld [vmem:[%s13747_s21 + $0x18f0] sm:$0xff]  }
  0x5c   : > { %v13221_v5 = vld [vmem:[%s13747_s21 + $0xce0] sm:$0xff]   ;;  %10983 = vst [vmem:[%s13755_s27 + $0x8e0] sm:$0xff] %v13220_v4  ;;  %11011 = vst [vmem:[%s13755_s27 + $0x10f0] sm:$0xff] %v13227_v11  ;;  %v13230_v14 = vld [vmem:[%s13747_s21 + $0xcf0] sm:$0xff]  }
  0x5d   : > { %v13222_v6 = vld [vmem:[%s13747_s21 + $0xe0] sm:$0xff]   ;;  %10987 = vst [vmem:[%s13755_s27 + $0x14e0] sm:$0xff] %v13221_v5  ;;  %11015 = vst [vmem:[%s13755_s27 + $0x1cf0] sm:$0xff] %v13228_v12  ;;  %v13231_v15 = vld [vmem:[%s13747_s21 + $0xf0] sm:$0xff]  }
  0x5e   : > { %10991 = vst [vmem:[%s13755_s27 + $0x20e0] sm:$0xff] %v13222_v6  ;;  %11019 = vst [vmem:[%s13755_s27 + $0x8f0] sm:$0xff] %v13229_v13  ;;  %v13232_v16 = vld [vmem:[%s13747_s21 + $0x2100] sm:$0xff]   ;;  %v13241_v25 = vld [vmem:[%s13747_s21 + $0x2110] sm:$0xff]  }
  0x5f   : > { %11023 = vst [vmem:[%s13755_s27 + $0x14f0] sm:$0xff] %v13230_v14  ;;  %11027 = vst [vmem:[%s13755_s27 + $0x20f0] sm:$0xff] %v13231_v15  ;;  %v13233_v17 = vld [vmem:[%s13747_s21 + $0x1500] sm:$0xff]   ;;  %v13242_v26 = vld [vmem:[%s13747_s21 + $0x1510] sm:$0xff]  }
  0x60   : > { %v13234_v18 = vld [vmem:[%s13747_s21 + $0x900] sm:$0xff]   ;;  %11031 = vst [vmem:[%s13755_s27 + $0x100] sm:$0xff] %v13232_v16  ;;  %11035 = vst [vmem:[%s13755_s27 + $0xd00] sm:$0xff] %v13233_v17  ;;  %v13243_v27 = vld [vmem:[%s13747_s21 + $0x910] sm:$0xff]  }
  0x61   : > { %v13235_v19 = vld [vmem:[%s13747_s21 + $0x1d00] sm:$0xff]   ;;  %11039 = vst [vmem:[%s13755_s27 + $0x1900] sm:$0xff] %v13234_v18  ;;  %11067 = vst [vmem:[%s13755_s27 + $0x110] sm:$0xff] %v13241_v25  ;;  %v13244_v28 = vld [vmem:[%s13747_s21 + $0x1d10] sm:$0xff]  }
  0x62   : > { %v13236_v20 = vld [vmem:[%s13747_s21 + $0x1100] sm:$0xff]   ;;  %11043 = vst [vmem:[%s13755_s27 + $0x500] sm:$0xff] %v13235_v19  ;;  %11071 = vst [vmem:[%s13755_s27 + $0xd10] sm:$0xff] %v13242_v26  ;;  %v13245_v29 = vld [vmem:[%s13747_s21 + $0x1110] sm:$0xff]  }
  0x63   : > { %v13237_v21 = vld [vmem:[%s13747_s21 + $0x500] sm:$0xff]   ;;  %11047 = vst [vmem:[%s13755_s27 + $0x1100] sm:$0xff] %v13236_v20  ;;  %11075 = vst [vmem:[%s13755_s27 + $0x1910] sm:$0xff] %v13243_v27  ;;  %v13246_v30 = vld [vmem:[%s13747_s21 + $0x510] sm:$0xff]  }
  0x64   : > { %v13238_v22 = vld [vmem:[%s13747_s21 + $0x1900] sm:$0xff]   ;;  %11051 = vst [vmem:[%s13755_s27 + $0x1d00] sm:$0xff] %v13237_v21  ;;  %11079 = vst [vmem:[%s13755_s27 + $0x510] sm:$0xff] %v13244_v28  ;;  %v13247_v31 = vld [vmem:[%s13747_s21 + $0x1910] sm:$0xff]  }
  0x65   : > { %v13239_v23 = vld [vmem:[%s13747_s21 + $0xd00] sm:$0xff]   ;;  %11055 = vst [vmem:[%s13755_s27 + $0x900] sm:$0xff] %v13238_v22  ;;  %11083 = vst [vmem:[%s13755_s27 + $0x1110] sm:$0xff] %v13245_v29  ;;  %v13248_v32 = vld [vmem:[%s13747_s21 + $0xd10] sm:$0xff]  }
  0x66   : > { %v13240_v24 = vld [vmem:[%s13747_s21 + $0x100] sm:$0xff]   ;;  %11059 = vst [vmem:[%s13755_s27 + $0x1500] sm:$0xff] %v13239_v23  ;;  %11087 = vst [vmem:[%s13755_s27 + $0x1d10] sm:$0xff] %v13246_v30  ;;  %v13249_v33 = vld [vmem:[%s13747_s21 + $0x110] sm:$0xff]  }
  0x67   : > { %11063 = vst [vmem:[%s13755_s27 + $0x2100] sm:$0xff] %v13240_v24  ;;  %11091 = vst [vmem:[%s13755_s27 + $0x910] sm:$0xff] %v13247_v31  ;;  %v13250_v34 = vld [vmem:[%s13747_s21 + $0x2120] sm:$0xff]   ;;  %v13259_v43 = vld [vmem:[%s13747_s21 + $0x2130] sm:$0xff]  }
  0x68   : > { %11095 = vst [vmem:[%s13755_s27 + $0x1510] sm:$0xff] %v13248_v32  ;;  %11099 = vst [vmem:[%s13755_s27 + $0x2110] sm:$0xff] %v13249_v33  ;;  %v13251_v35 = vld [vmem:[%s13747_s21 + $0x1520] sm:$0xff]   ;;  %v13260_v44 = vld [vmem:[%s13747_s21 + $0x1530] sm:$0xff]  }
  0x69   : > { %v13252_v36 = vld [vmem:[%s13747_s21 + $0x920] sm:$0xff]   ;;  %11103 = vst [vmem:[%s13755_s27 + $0x120] sm:$0xff] %v13250_v34  ;;  %11107 = vst [vmem:[%s13755_s27 + $0xd20] sm:$0xff] %v13251_v35  ;;  %v13261_v45 = vld [vmem:[%s13747_s21 + $0x930] sm:$0xff]  }
  0x6a   : > { %v13253_v37 = vld [vmem:[%s13747_s21 + $0x1d20] sm:$0xff]   ;;  %11111 = vst [vmem:[%s13755_s27 + $0x1920] sm:$0xff] %v13252_v36  ;;  %11139 = vst [vmem:[%s13755_s27 + $0x130] sm:$0xff] %v13259_v43  ;;  %v13262_v46 = vld [vmem:[%s13747_s21 + $0x1d30] sm:$0xff]  }
  0x6b   : > { %v13254_v38 = vld [vmem:[%s13747_s21 + $0x1120] sm:$0xff]   ;;  %11115 = vst [vmem:[%s13755_s27 + $0x520] sm:$0xff] %v13253_v37  ;;  %11143 = vst [vmem:[%s13755_s27 + $0xd30] sm:$0xff] %v13260_v44  ;;  %v13263_v47 = vld [vmem:[%s13747_s21 + $0x1130] sm:$0xff]  }
  0x6c   : > { %v13255_v39 = vld [vmem:[%s13747_s21 + $0x520] sm:$0xff]   ;;  %11119 = vst [vmem:[%s13755_s27 + $0x1120] sm:$0xff] %v13254_v38  ;;  %11147 = vst [vmem:[%s13755_s27 + $0x1930] sm:$0xff] %v13261_v45  ;;  %v13264_v48 = vld [vmem:[%s13747_s21 + $0x530] sm:$0xff]  }
  0x6d   : > { %v13256_v40 = vld [vmem:[%s13747_s21 + $0x1920] sm:$0xff]   ;;  %11123 = vst [vmem:[%s13755_s27 + $0x1d20] sm:$0xff] %v13255_v39  ;;  %11151 = vst [vmem:[%s13755_s27 + $0x530] sm:$0xff] %v13262_v46  ;;  %v13265_v49 = vld [vmem:[%s13747_s21 + $0x1930] sm:$0xff]  }
  0x6e   : > { %v13257_v41 = vld [vmem:[%s13747_s21 + $0xd20] sm:$0xff]   ;;  %11127 = vst [vmem:[%s13755_s27 + $0x920] sm:$0xff] %v13256_v40  ;;  %11155 = vst [vmem:[%s13755_s27 + $0x1130] sm:$0xff] %v13263_v47  ;;  %v13266_v50 = vld [vmem:[%s13747_s21 + $0xd30] sm:$0xff]  }
  0x6f   : > { %v13258_v42 = vld [vmem:[%s13747_s21 + $0x120] sm:$0xff]   ;;  %11131 = vst [vmem:[%s13755_s27 + $0x1520] sm:$0xff] %v13257_v41  ;;  %11159 = vst [vmem:[%s13755_s27 + $0x1d30] sm:$0xff] %v13264_v48  ;;  %v13267_v51 = vld [vmem:[%s13747_s21 + $0x130] sm:$0xff]  }
  0x70   : > { %11135 = vst [vmem:[%s13755_s27 + $0x2120] sm:$0xff] %v13258_v42  ;;  %11163 = vst [vmem:[%s13755_s27 + $0x930] sm:$0xff] %v13265_v49  ;;  %v13268_v52 = vld [vmem:[%s13747_s21 + $0x2140] sm:$0xff]   ;;  %v13277_v61 = vld [vmem:[%s13747_s21 + $0x2150] sm:$0xff]  }
  0x71   : > { %11167 = vst [vmem:[%s13755_s27 + $0x1530] sm:$0xff] %v13266_v50  ;;  %11171 = vst [vmem:[%s13755_s27 + $0x2130] sm:$0xff] %v13267_v51  ;;  %v13269_v53 = vld [vmem:[%s13747_s21 + $0x1540] sm:$0xff]   ;;  %v13278_v62 = vld [vmem:[%s13747_s21 + $0x1550] sm:$0xff]  }
  0x72   : > { %v13270_v54 = vld [vmem:[%s13747_s21 + $0x940] sm:$0xff]   ;;  %11175 = vst [vmem:[%s13755_s27 + $0x140] sm:$0xff] %v13268_v52  ;;  %11179 = vst [vmem:[%s13755_s27 + $0xd40] sm:$0xff] %v13269_v53  ;;  %v13279_v63 = vld [vmem:[%s13747_s21 + $0x950] sm:$0xff]  }
  0x73   : > { %v13271_v55 = vld [vmem:[%s13747_s21 + $0x1d40] sm:$0xff]   ;;  %11183 = vst [vmem:[%s13755_s27 + $0x1940] sm:$0xff] %v13270_v54  ;;  %11211 = vst [vmem:[%s13755_s27 + $0x150] sm:$0xff] %v13277_v61  ;;  %v13280_v0 = vld [vmem:[%s13747_s21 + $0x1d50] sm:$0xff]  }
  0x74   : > { %v13272_v56 = vld [vmem:[%s13747_s21 + $0x1140] sm:$0xff]   ;;  %11187 = vst [vmem:[%s13755_s27 + $0x540] sm:$0xff] %v13271_v55  ;;  %11215 = vst [vmem:[%s13755_s27 + $0xd50] sm:$0xff] %v13278_v62  ;;  %v13281_v1 = vld [vmem:[%s13747_s21 + $0x1150] sm:$0xff]  }
  0x75   : > { %v13273_v57 = vld [vmem:[%s13747_s21 + $0x540] sm:$0xff]   ;;  %11191 = vst [vmem:[%s13755_s27 + $0x1140] sm:$0xff] %v13272_v56  ;;  %11219 = vst [vmem:[%s13755_s27 + $0x1950] sm:$0xff] %v13279_v63  ;;  %v13282_v2 = vld [vmem:[%s13747_s21 + $0x550] sm:$0xff]  }
  0x76   : > { %v13274_v58 = vld [vmem:[%s13747_s21 + $0x1940] sm:$0xff]   ;;  %11195 = vst [vmem:[%s13755_s27 + $0x1d40] sm:$0xff] %v13273_v57  ;;  %11223 = vst [vmem:[%s13755_s27 + $0x550] sm:$0xff] %v13280_v0  ;;  %v13283_v3 = vld [vmem:[%s13747_s21 + $0x1950] sm:$0xff]  }
  0x77   : > { %v13275_v59 = vld [vmem:[%s13747_s21 + $0xd40] sm:$0xff]   ;;  %11199 = vst [vmem:[%s13755_s27 + $0x940] sm:$0xff] %v13274_v58  ;;  %11227 = vst [vmem:[%s13755_s27 + $0x1150] sm:$0xff] %v13281_v1  ;;  %v13284_v4 = vld [vmem:[%s13747_s21 + $0xd50] sm:$0xff]  }
  0x78   : > { %v13276_v60 = vld [vmem:[%s13747_s21 + $0x140] sm:$0xff]   ;;  %11203 = vst [vmem:[%s13755_s27 + $0x1540] sm:$0xff] %v13275_v59  ;;  %11231 = vst [vmem:[%s13755_s27 + $0x1d50] sm:$0xff] %v13282_v2  ;;  %v13285_v5 = vld [vmem:[%s13747_s21 + $0x150] sm:$0xff]  }
  0x79   : > { %11207 = vst [vmem:[%s13755_s27 + $0x2140] sm:$0xff] %v13276_v60  ;;  %11235 = vst [vmem:[%s13755_s27 + $0x950] sm:$0xff] %v13283_v3  ;;  %v13286_v6 = vld [vmem:[%s13747_s21 + $0x2160] sm:$0xff]   ;;  %v13295_v15 = vld [vmem:[%s13747_s21 + $0x2170] sm:$0xff]  }
  0x7a   : > { %11239 = vst [vmem:[%s13755_s27 + $0x1550] sm:$0xff] %v13284_v4  ;;  %11243 = vst [vmem:[%s13755_s27 + $0x2150] sm:$0xff] %v13285_v5  ;;  %v13287_v7 = vld [vmem:[%s13747_s21 + $0x1560] sm:$0xff]   ;;  %v13296_v16 = vld [vmem:[%s13747_s21 + $0x1570] sm:$0xff]  }
  0x7b   : > { %v13288_v8 = vld [vmem:[%s13747_s21 + $0x960] sm:$0xff]   ;;  %11247 = vst [vmem:[%s13755_s27 + $0x160] sm:$0xff] %v13286_v6  ;;  %11251 = vst [vmem:[%s13755_s27 + $0xd60] sm:$0xff] %v13287_v7  ;;  %v13297_v17 = vld [vmem:[%s13747_s21 + $0x970] sm:$0xff]  }
  0x7c   : > { %v13289_v9 = vld [vmem:[%s13747_s21 + $0x1d60] sm:$0xff]   ;;  %11255 = vst [vmem:[%s13755_s27 + $0x1960] sm:$0xff] %v13288_v8  ;;  %11283 = vst [vmem:[%s13755_s27 + $0x170] sm:$0xff] %v13295_v15  ;;  %v13298_v18 = vld [vmem:[%s13747_s21 + $0x1d70] sm:$0xff]  }
  0x7d   : > { %v13290_v10 = vld [vmem:[%s13747_s21 + $0x1160] sm:$0xff]   ;;  %11259 = vst [vmem:[%s13755_s27 + $0x560] sm:$0xff] %v13289_v9  ;;  %11287 = vst [vmem:[%s13755_s27 + $0xd70] sm:$0xff] %v13296_v16  ;;  %v13299_v19 = vld [vmem:[%s13747_s21 + $0x1170] sm:$0xff]  }
  0x7e   : > { %v13291_v11 = vld [vmem:[%s13747_s21 + $0x560] sm:$0xff]   ;;  %11263 = vst [vmem:[%s13755_s27 + $0x1160] sm:$0xff] %v13290_v10  ;;  %11291 = vst [vmem:[%s13755_s27 + $0x1970] sm:$0xff] %v13297_v17  ;;  %v13300_v20 = vld [vmem:[%s13747_s21 + $0x570] sm:$0xff]  }
  0x7f   : > { %v13292_v12 = vld [vmem:[%s13747_s21 + $0x1960] sm:$0xff]   ;;  %11267 = vst [vmem:[%s13755_s27 + $0x1d60] sm:$0xff] %v13291_v11  ;;  %11295 = vst [vmem:[%s13755_s27 + $0x570] sm:$0xff] %v13298_v18  ;;  %v13301_v21 = vld [vmem:[%s13747_s21 + $0x1970] sm:$0xff]  }
  0x80   : > { %v13293_v13 = vld [vmem:[%s13747_s21 + $0xd60] sm:$0xff]   ;;  %11271 = vst [vmem:[%s13755_s27 + $0x960] sm:$0xff] %v13292_v12  ;;  %11299 = vst [vmem:[%s13755_s27 + $0x1170] sm:$0xff] %v13299_v19  ;;  %v13302_v22 = vld [vmem:[%s13747_s21 + $0xd70] sm:$0xff]  }
  0x81   : > { %v13294_v14 = vld [vmem:[%s13747_s21 + $0x160] sm:$0xff]   ;;  %11275 = vst [vmem:[%s13755_s27 + $0x1560] sm:$0xff] %v13293_v13  ;;  %11303 = vst [vmem:[%s13755_s27 + $0x1d70] sm:$0xff] %v13300_v20  ;;  %v13303_v23 = vld [vmem:[%s13747_s21 + $0x170] sm:$0xff]  }
  0x82   : > { %11279 = vst [vmem:[%s13755_s27 + $0x2160] sm:$0xff] %v13294_v14  ;;  %11307 = vst [vmem:[%s13755_s27 + $0x970] sm:$0xff] %v13301_v21  ;;  %v13304_v24 = vld [vmem:[%s13747_s21 + $0x2180] sm:$0xff]   ;;  %v13313_v33 = vld [vmem:[%s13747_s21 + $0x2190] sm:$0xff]  }
  0x83   : > { %11311 = vst [vmem:[%s13755_s27 + $0x1570] sm:$0xff] %v13302_v22  ;;  %11315 = vst [vmem:[%s13755_s27 + $0x2170] sm:$0xff] %v13303_v23  ;;  %v13305_v25 = vld [vmem:[%s13747_s21 + $0x1580] sm:$0xff]   ;;  %v13314_v34 = vld [vmem:[%s13747_s21 + $0x1590] sm:$0xff]  }
  0x84   : > { %v13306_v26 = vld [vmem:[%s13747_s21 + $0x980] sm:$0xff]   ;;  %11319 = vst [vmem:[%s13755_s27 + $0x180] sm:$0xff] %v13304_v24  ;;  %11323 = vst [vmem:[%s13755_s27 + $0xd80] sm:$0xff] %v13305_v25  ;;  %v13315_v35 = vld [vmem:[%s13747_s21 + $0x990] sm:$0xff]  }
  0x85   : > { %v13307_v27 = vld [vmem:[%s13747_s21 + $0x1d80] sm:$0xff]   ;;  %11327 = vst [vmem:[%s13755_s27 + $0x1980] sm:$0xff] %v13306_v26  ;;  %11355 = vst [vmem:[%s13755_s27 + $0x190] sm:$0xff] %v13313_v33  ;;  %v13316_v36 = vld [vmem:[%s13747_s21 + $0x1d90] sm:$0xff]  }
  0x86   : > { %v13308_v28 = vld [vmem:[%s13747_s21 + $0x1180] sm:$0xff]   ;;  %11331 = vst [vmem:[%s13755_s27 + $0x580] sm:$0xff] %v13307_v27  ;;  %11359 = vst [vmem:[%s13755_s27 + $0xd90] sm:$0xff] %v13314_v34  ;;  %v13317_v37 = vld [vmem:[%s13747_s21 + $0x1190] sm:$0xff]  }
  0x87   : > { %v13309_v29 = vld [vmem:[%s13747_s21 + $0x580] sm:$0xff]   ;;  %11335 = vst [vmem:[%s13755_s27 + $0x1180] sm:$0xff] %v13308_v28  ;;  %11363 = vst [vmem:[%s13755_s27 + $0x1990] sm:$0xff] %v13315_v35  ;;  %v13318_v38 = vld [vmem:[%s13747_s21 + $0x590] sm:$0xff]  }
  0x88   : > { %v13310_v30 = vld [vmem:[%s13747_s21 + $0x1980] sm:$0xff]   ;;  %11339 = vst [vmem:[%s13755_s27 + $0x1d80] sm:$0xff] %v13309_v29  ;;  %11367 = vst [vmem:[%s13755_s27 + $0x590] sm:$0xff] %v13316_v36  ;;  %v13319_v39 = vld [vmem:[%s13747_s21 + $0x1990] sm:$0xff]  }
  0x89   : > { %v13311_v31 = vld [vmem:[%s13747_s21 + $0xd80] sm:$0xff]   ;;  %11343 = vst [vmem:[%s13755_s27 + $0x980] sm:$0xff] %v13310_v30  ;;  %11371 = vst [vmem:[%s13755_s27 + $0x1190] sm:$0xff] %v13317_v37  ;;  %v13320_v40 = vld [vmem:[%s13747_s21 + $0xd90] sm:$0xff]  }
  0x8a   : > { %v13312_v32 = vld [vmem:[%s13747_s21 + $0x180] sm:$0xff]   ;;  %11347 = vst [vmem:[%s13755_s27 + $0x1580] sm:$0xff] %v13311_v31  ;;  %11375 = vst [vmem:[%s13755_s27 + $0x1d90] sm:$0xff] %v13318_v38  ;;  %v13321_v41 = vld [vmem:[%s13747_s21 + $0x190] sm:$0xff]  }
  0x8b   : > { %11351 = vst [vmem:[%s13755_s27 + $0x2180] sm:$0xff] %v13312_v32  ;;  %11379 = vst [vmem:[%s13755_s27 + $0x990] sm:$0xff] %v13319_v39  ;;  %v13322_v42 = vld [vmem:[%s13747_s21 + $0x21a0] sm:$0xff]   ;;  %v13331_v51 = vld [vmem:[%s13747_s21 + $0x21b0] sm:$0xff]  }
  0x8c   : > { %11383 = vst [vmem:[%s13755_s27 + $0x1590] sm:$0xff] %v13320_v40  ;;  %11387 = vst [vmem:[%s13755_s27 + $0x2190] sm:$0xff] %v13321_v41  ;;  %v13323_v43 = vld [vmem:[%s13747_s21 + $0x15a0] sm:$0xff]   ;;  %v13332_v52 = vld [vmem:[%s13747_s21 + $0x15b0] sm:$0xff]  }
  0x8d   : > { %v13324_v44 = vld [vmem:[%s13747_s21 + $0x9a0] sm:$0xff]   ;;  %11391 = vst [vmem:[%s13755_s27 + $0x1a0] sm:$0xff] %v13322_v42  ;;  %11395 = vst [vmem:[%s13755_s27 + $0xda0] sm:$0xff] %v13323_v43  ;;  %v13333_v53 = vld [vmem:[%s13747_s21 + $0x9b0] sm:$0xff]  }
  0x8e   : > { %v13325_v45 = vld [vmem:[%s13747_s21 + $0x1da0] sm:$0xff]   ;;  %11399 = vst [vmem:[%s13755_s27 + $0x19a0] sm:$0xff] %v13324_v44  ;;  %11427 = vst [vmem:[%s13755_s27 + $0x1b0] sm:$0xff] %v13331_v51  ;;  %v13334_v54 = vld [vmem:[%s13747_s21 + $0x1db0] sm:$0xff]  }
  0x8f   : > { %v13326_v46 = vld [vmem:[%s13747_s21 + $0x11a0] sm:$0xff]   ;;  %11403 = vst [vmem:[%s13755_s27 + $0x5a0] sm:$0xff] %v13325_v45  ;;  %11431 = vst [vmem:[%s13755_s27 + $0xdb0] sm:$0xff] %v13332_v52  ;;  %v13335_v55 = vld [vmem:[%s13747_s21 + $0x11b0] sm:$0xff]  }
  0x90   : > { %v13327_v47 = vld [vmem:[%s13747_s21 + $0x5a0] sm:$0xff]   ;;  %11407 = vst [vmem:[%s13755_s27 + $0x11a0] sm:$0xff] %v13326_v46  ;;  %11435 = vst [vmem:[%s13755_s27 + $0x19b0] sm:$0xff] %v13333_v53  ;;  %v13336_v56 = vld [vmem:[%s13747_s21 + $0x5b0] sm:$0xff]  }
  0x91   : > { %v13328_v48 = vld [vmem:[%s13747_s21 + $0x19a0] sm:$0xff]   ;;  %11411 = vst [vmem:[%s13755_s27 + $0x1da0] sm:$0xff] %v13327_v47  ;;  %11439 = vst [vmem:[%s13755_s27 + $0x5b0] sm:$0xff] %v13334_v54  ;;  %v13337_v57 = vld [vmem:[%s13747_s21 + $0x19b0] sm:$0xff]  }
  0x92   : > { %v13329_v49 = vld [vmem:[%s13747_s21 + $0xda0] sm:$0xff]   ;;  %11415 = vst [vmem:[%s13755_s27 + $0x9a0] sm:$0xff] %v13328_v48  ;;  %11443 = vst [vmem:[%s13755_s27 + $0x11b0] sm:$0xff] %v13335_v55  ;;  %v13338_v58 = vld [vmem:[%s13747_s21 + $0xdb0] sm:$0xff]  }
  0x93   : > { %v13330_v50 = vld [vmem:[%s13747_s21 + $0x1a0] sm:$0xff]   ;;  %11419 = vst [vmem:[%s13755_s27 + $0x15a0] sm:$0xff] %v13329_v49  ;;  %11447 = vst [vmem:[%s13755_s27 + $0x1db0] sm:$0xff] %v13336_v56  ;;  %v13339_v59 = vld [vmem:[%s13747_s21 + $0x1b0] sm:$0xff]  }
  0x94   : > { %11423 = vst [vmem:[%s13755_s27 + $0x21a0] sm:$0xff] %v13330_v50  ;;  %11451 = vst [vmem:[%s13755_s27 + $0x9b0] sm:$0xff] %v13337_v57  ;;  %v13340_v60 = vld [vmem:[%s13747_s21 + $0x21c0] sm:$0xff]   ;;  %v13349_v5 = vld [vmem:[%s13747_s21 + $0x21d0] sm:$0xff]  }
  0x95   : > { %11455 = vst [vmem:[%s13755_s27 + $0x15b0] sm:$0xff] %v13338_v58  ;;  %11459 = vst [vmem:[%s13755_s27 + $0x21b0] sm:$0xff] %v13339_v59  ;;  %v13341_v61 = vld [vmem:[%s13747_s21 + $0x15c0] sm:$0xff]   ;;  %v13350_v6 = vld [vmem:[%s13747_s21 + $0x15d0] sm:$0xff]  }
  0x96   : > { %v13342_v62 = vld [vmem:[%s13747_s21 + $0x9c0] sm:$0xff]   ;;  %11463 = vst [vmem:[%s13755_s27 + $0x1c0] sm:$0xff] %v13340_v60  ;;  %11467 = vst [vmem:[%s13755_s27 + $0xdc0] sm:$0xff] %v13341_v61  ;;  %v13351_v7 = vld [vmem:[%s13747_s21 + $0x9d0] sm:$0xff]  }
  0x97   : > { %v13343_v63 = vld [vmem:[%s13747_s21 + $0x1dc0] sm:$0xff]   ;;  %11471 = vst [vmem:[%s13755_s27 + $0x19c0] sm:$0xff] %v13342_v62  ;;  %11499 = vst [vmem:[%s13755_s27 + $0x1d0] sm:$0xff] %v13349_v5  ;;  %v13352_v8 = vld [vmem:[%s13747_s21 + $0x1dd0] sm:$0xff]  }
  0x98   : > { %v13344_v0 = vld [vmem:[%s13747_s21 + $0x11c0] sm:$0xff]   ;;  %11475 = vst [vmem:[%s13755_s27 + $0x5c0] sm:$0xff] %v13343_v63  ;;  %11503 = vst [vmem:[%s13755_s27 + $0xdd0] sm:$0xff] %v13350_v6  ;;  %v13353_v9 = vld [vmem:[%s13747_s21 + $0x11d0] sm:$0xff]  }
  0x99   : > { %v13345_v1 = vld [vmem:[%s13747_s21 + $0x5c0] sm:$0xff]   ;;  %11479 = vst [vmem:[%s13755_s27 + $0x11c0] sm:$0xff] %v13344_v0  ;;  %11507 = vst [vmem:[%s13755_s27 + $0x19d0] sm:$0xff] %v13351_v7  ;;  %v13354_v10 = vld [vmem:[%s13747_s21 + $0x5d0] sm:$0xff]  }
  0x9a   : > { %v13346_v2 = vld [vmem:[%s13747_s21 + $0x19c0] sm:$0xff]   ;;  %11483 = vst [vmem:[%s13755_s27 + $0x1dc0] sm:$0xff] %v13345_v1  ;;  %11511 = vst [vmem:[%s13755_s27 + $0x5d0] sm:$0xff] %v13352_v8  ;;  %v13355_v11 = vld [vmem:[%s13747_s21 + $0x19d0] sm:$0xff]  }
  0x9b   : > { %v13347_v3 = vld [vmem:[%s13747_s21 + $0xdc0] sm:$0xff]   ;;  %11487 = vst [vmem:[%s13755_s27 + $0x9c0] sm:$0xff] %v13346_v2  ;;  %11515 = vst [vmem:[%s13755_s27 + $0x11d0] sm:$0xff] %v13353_v9  ;;  %v13356_v12 = vld [vmem:[%s13747_s21 + $0xdd0] sm:$0xff]  }
  0x9c   : > { %v13348_v4 = vld [vmem:[%s13747_s21 + $0x1c0] sm:$0xff]   ;;  %11491 = vst [vmem:[%s13755_s27 + $0x15c0] sm:$0xff] %v13347_v3  ;;  %11519 = vst [vmem:[%s13755_s27 + $0x1dd0] sm:$0xff] %v13354_v10  ;;  %v13357_v13 = vld [vmem:[%s13747_s21 + $0x1d0] sm:$0xff]  }
  0x9d   : > { %11495 = vst [vmem:[%s13755_s27 + $0x21c0] sm:$0xff] %v13348_v4  ;;  %11523 = vst [vmem:[%s13755_s27 + $0x9d0] sm:$0xff] %v13355_v11  ;;  %v13358_v14 = vld [vmem:[%s13747_s21 + $0x21e0] sm:$0xff]   ;;  %v13367_v23 = vld [vmem:[%s13747_s21 + $0x21f0] sm:$0xff]  }
  0x9e   : > { %11527 = vst [vmem:[%s13755_s27 + $0x15d0] sm:$0xff] %v13356_v12  ;;  %11531 = vst [vmem:[%s13755_s27 + $0x21d0] sm:$0xff] %v13357_v13  ;;  %v13359_v15 = vld [vmem:[%s13747_s21 + $0x15e0] sm:$0xff]   ;;  %v13368_v24 = vld [vmem:[%s13747_s21 + $0x15f0] sm:$0xff]  }
  0x9f   : > { %v13360_v16 = vld [vmem:[%s13747_s21 + $0x9e0] sm:$0xff]   ;;  %11535 = vst [vmem:[%s13755_s27 + $0x1e0] sm:$0xff] %v13358_v14  ;;  %11539 = vst [vmem:[%s13755_s27 + $0xde0] sm:$0xff] %v13359_v15  ;;  %v13369_v25 = vld [vmem:[%s13747_s21 + $0x9f0] sm:$0xff]  }
  0xa0   : > { %v13361_v17 = vld [vmem:[%s13747_s21 + $0x1de0] sm:$0xff]   ;;  %11543 = vst [vmem:[%s13755_s27 + $0x19e0] sm:$0xff] %v13360_v16  ;;  %11571 = vst [vmem:[%s13755_s27 + $0x1f0] sm:$0xff] %v13367_v23  ;;  %v13370_v26 = vld [vmem:[%s13747_s21 + $0x1df0] sm:$0xff]  }
  0xa1   : > { %v13362_v18 = vld [vmem:[%s13747_s21 + $0x11e0] sm:$0xff]   ;;  %11547 = vst [vmem:[%s13755_s27 + $0x5e0] sm:$0xff] %v13361_v17  ;;  %11575 = vst [vmem:[%s13755_s27 + $0xdf0] sm:$0xff] %v13368_v24  ;;  %v13371_v27 = vld [vmem:[%s13747_s21 + $0x11f0] sm:$0xff]  }
  0xa2   : > { %v13363_v19 = vld [vmem:[%s13747_s21 + $0x5e0] sm:$0xff]   ;;  %11551 = vst [vmem:[%s13755_s27 + $0x11e0] sm:$0xff] %v13362_v18  ;;  %11579 = vst [vmem:[%s13755_s27 + $0x19f0] sm:$0xff] %v13369_v25  ;;  %v13372_v28 = vld [vmem:[%s13747_s21 + $0x5f0] sm:$0xff]  }
  0xa3   : > { %v13364_v20 = vld [vmem:[%s13747_s21 + $0x19e0] sm:$0xff]   ;;  %11555 = vst [vmem:[%s13755_s27 + $0x1de0] sm:$0xff] %v13363_v19  ;;  %11583 = vst [vmem:[%s13755_s27 + $0x5f0] sm:$0xff] %v13370_v26  ;;  %v13373_v29 = vld [vmem:[%s13747_s21 + $0x19f0] sm:$0xff]  }
  0xa4   : > { %v13365_v21 = vld [vmem:[%s13747_s21 + $0xde0] sm:$0xff]   ;;  %11559 = vst [vmem:[%s13755_s27 + $0x9e0] sm:$0xff] %v13364_v20  ;;  %11587 = vst [vmem:[%s13755_s27 + $0x11f0] sm:$0xff] %v13371_v27  ;;  %v13374_v30 = vld [vmem:[%s13747_s21 + $0xdf0] sm:$0xff]  }
  0xa5   : > { %v13366_v22 = vld [vmem:[%s13747_s21 + $0x1e0] sm:$0xff]   ;;  %11563 = vst [vmem:[%s13755_s27 + $0x15e0] sm:$0xff] %v13365_v21  ;;  %11591 = vst [vmem:[%s13755_s27 + $0x1df0] sm:$0xff] %v13372_v28  ;;  %v13375_v31 = vld [vmem:[%s13747_s21 + $0x1f0] sm:$0xff]  }
  0xa6   : > { %11567 = vst [vmem:[%s13755_s27 + $0x21e0] sm:$0xff] %v13366_v22  ;;  %11595 = vst [vmem:[%s13755_s27 + $0x9f0] sm:$0xff] %v13373_v29  ;;  %v13376_v32 = vld [vmem:[%s13747_s21 + $0x2008] sm:$0xff]   ;;  %v13385_v41 = vld [vmem:[%s13747_s21 + $0x2018] sm:$0xff]  }
  0xa7   : > { %11599 = vst [vmem:[%s13755_s27 + $0x15f0] sm:$0xff] %v13374_v30  ;;  %11603 = vst [vmem:[%s13755_s27 + $0x21f0] sm:$0xff] %v13375_v31  ;;  %v13377_v33 = vld [vmem:[%s13747_s21 + $0x1408] sm:$0xff]   ;;  %v13386_v42 = vld [vmem:[%s13747_s21 + $0x1418] sm:$0xff]  }
  0xa8   : > { %v13378_v34 = vld [vmem:[%s13747_s21 + $0x808] sm:$0xff]   ;;  %11895 = vst [vmem:[%s13755_s27 + $0x8] sm:$0xff] %v13376_v32  ;;  %11899 = vst [vmem:[%s13755_s27 + $0xc08] sm:$0xff] %v13377_v33  ;;  %v13387_v43 = vld [vmem:[%s13747_s21 + $0x818] sm:$0xff]  }
  0xa9   : > { %v13379_v35 = vld [vmem:[%s13747_s21 + $0x1c08] sm:$0xff]   ;;  %11903 = vst [vmem:[%s13755_s27 + $0x1808] sm:$0xff] %v13378_v34  ;;  %11931 = vst [vmem:[%s13755_s27 + $0x18] sm:$0xff] %v13385_v41  ;;  %v13388_v44 = vld [vmem:[%s13747_s21 + $0x1c18] sm:$0xff]  }
  0xaa   : > { %v13380_v36 = vld [vmem:[%s13747_s21 + $0x1008] sm:$0xff]   ;;  %11907 = vst [vmem:[%s13755_s27 + $0x408] sm:$0xff] %v13379_v35  ;;  %11935 = vst [vmem:[%s13755_s27 + $0xc18] sm:$0xff] %v13386_v42  ;;  %v13389_v45 = vld [vmem:[%s13747_s21 + $0x1018] sm:$0xff]  }
  0xab   : > { %v13381_v37 = vld [vmem:[%s13747_s21 + $0x408] sm:$0xff]   ;;  %11911 = vst [vmem:[%s13755_s27 + $0x1008] sm:$0xff] %v13380_v36  ;;  %11939 = vst [vmem:[%s13755_s27 + $0x1818] sm:$0xff] %v13387_v43  ;;  %v13390_v46 = vld [vmem:[%s13747_s21 + $0x418] sm:$0xff]  }
  0xac   : > { %v13382_v38 = vld [vmem:[%s13747_s21 + $0x1808] sm:$0xff]   ;;  %11915 = vst [vmem:[%s13755_s27 + $0x1c08] sm:$0xff] %v13381_v37  ;;  %11943 = vst [vmem:[%s13755_s27 + $0x418] sm:$0xff] %v13388_v44  ;;  %v13391_v47 = vld [vmem:[%s13747_s21 + $0x1818] sm:$0xff]  }
  0xad   : > { %v13383_v39 = vld [vmem:[%s13747_s21 + $0xc08] sm:$0xff]   ;;  %11919 = vst [vmem:[%s13755_s27 + $0x808] sm:$0xff] %v13382_v38  ;;  %11947 = vst [vmem:[%s13755_s27 + $0x1018] sm:$0xff] %v13389_v45  ;;  %v13392_v48 = vld [vmem:[%s13747_s21 + $0xc18] sm:$0xff]  }
  0xae   : > { %v13384_v40 = vld [vmem:[%s13747_s21 + $0x8] sm:$0xff]   ;;  %11923 = vst [vmem:[%s13755_s27 + $0x1408] sm:$0xff] %v13383_v39  ;;  %11951 = vst [vmem:[%s13755_s27 + $0x1c18] sm:$0xff] %v13390_v46  ;;  %v13393_v49 = vld [vmem:[%s13747_s21 + $0x18] sm:$0xff]  }
  0xaf   : > { %11927 = vst [vmem:[%s13755_s27 + $0x2008] sm:$0xff] %v13384_v40  ;;  %11955 = vst [vmem:[%s13755_s27 + $0x818] sm:$0xff] %v13391_v47  ;;  %v13394_v50 = vld [vmem:[%s13747_s21 + $0x2028] sm:$0xff]   ;;  %v13403_v59 = vld [vmem:[%s13747_s21 + $0x2038] sm:$0xff]  }
  0xb0   : > { %11959 = vst [vmem:[%s13755_s27 + $0x1418] sm:$0xff] %v13392_v48  ;;  %11963 = vst [vmem:[%s13755_s27 + $0x2018] sm:$0xff] %v13393_v49  ;;  %v13395_v51 = vld [vmem:[%s13747_s21 + $0x1428] sm:$0xff]   ;;  %v13404_v60 = vld [vmem:[%s13747_s21 + $0x1438] sm:$0xff]  }
  0xb1   : > { %v13396_v52 = vld [vmem:[%s13747_s21 + $0x828] sm:$0xff]   ;;  %11967 = vst [vmem:[%s13755_s27 + $0x28] sm:$0xff] %v13394_v50  ;;  %11971 = vst [vmem:[%s13755_s27 + $0xc28] sm:$0xff] %v13395_v51  ;;  %v13405_v61 = vld [vmem:[%s13747_s21 + $0x838] sm:$0xff]  }
  0xb2   : > { %v13397_v53 = vld [vmem:[%s13747_s21 + $0x1c28] sm:$0xff]   ;;  %11975 = vst [vmem:[%s13755_s27 + $0x1828] sm:$0xff] %v13396_v52  ;;  %12003 = vst [vmem:[%s13755_s27 + $0x38] sm:$0xff] %v13403_v59  ;;  %v13406_v62 = vld [vmem:[%s13747_s21 + $0x1c38] sm:$0xff]  }
  0xb3   : > { %v13398_v54 = vld [vmem:[%s13747_s21 + $0x1028] sm:$0xff]   ;;  %11979 = vst [vmem:[%s13755_s27 + $0x428] sm:$0xff] %v13397_v53  ;;  %12007 = vst [vmem:[%s13755_s27 + $0xc38] sm:$0xff] %v13404_v60  ;;  %v13407_v63 = vld [vmem:[%s13747_s21 + $0x1038] sm:$0xff]  }
  0xb4   : > { %v13399_v55 = vld [vmem:[%s13747_s21 + $0x428] sm:$0xff]   ;;  %11983 = vst [vmem:[%s13755_s27 + $0x1028] sm:$0xff] %v13398_v54  ;;  %12011 = vst [vmem:[%s13755_s27 + $0x1838] sm:$0xff] %v13405_v61  ;;  %v13408_v0 = vld [vmem:[%s13747_s21 + $0x438] sm:$0xff]  }
  0xb5   : > { %v13400_v56 = vld [vmem:[%s13747_s21 + $0x1828] sm:$0xff]   ;;  %11987 = vst [vmem:[%s13755_s27 + $0x1c28] sm:$0xff] %v13399_v55  ;;  %12015 = vst [vmem:[%s13755_s27 + $0x438] sm:$0xff] %v13406_v62  ;;  %v13409_v1 = vld [vmem:[%s13747_s21 + $0x1838] sm:$0xff]  }
  0xb6   : > { %v13401_v57 = vld [vmem:[%s13747_s21 + $0xc28] sm:$0xff]   ;;  %11991 = vst [vmem:[%s13755_s27 + $0x828] sm:$0xff] %v13400_v56  ;;  %12019 = vst [vmem:[%s13755_s27 + $0x1038] sm:$0xff] %v13407_v63  ;;  %v13410_v2 = vld [vmem:[%s13747_s21 + $0xc38] sm:$0xff]  }
  0xb7   : > { %v13402_v58 = vld [vmem:[%s13747_s21 + $0x28] sm:$0xff]   ;;  %11995 = vst [vmem:[%s13755_s27 + $0x1428] sm:$0xff] %v13401_v57  ;;  %12023 = vst [vmem:[%s13755_s27 + $0x1c38] sm:$0xff] %v13408_v0  ;;  %v13411_v3 = vld [vmem:[%s13747_s21 + $0x38] sm:$0xff]  }
  0xb8   : > { %11999 = vst [vmem:[%s13755_s27 + $0x2028] sm:$0xff] %v13402_v58  ;;  %12027 = vst [vmem:[%s13755_s27 + $0x838] sm:$0xff] %v13409_v1  ;;  %v13412_v4 = vld [vmem:[%s13747_s21 + $0x2048] sm:$0xff]   ;;  %v13421_v13 = vld [vmem:[%s13747_s21 + $0x2058] sm:$0xff]  }
  0xb9   : > { %12031 = vst [vmem:[%s13755_s27 + $0x1438] sm:$0xff] %v13410_v2  ;;  %12035 = vst [vmem:[%s13755_s27 + $0x2038] sm:$0xff] %v13411_v3  ;;  %v13413_v5 = vld [vmem:[%s13747_s21 + $0x1448] sm:$0xff]   ;;  %v13422_v14 = vld [vmem:[%s13747_s21 + $0x1458] sm:$0xff]  }
  0xba   : > { %v13414_v6 = vld [vmem:[%s13747_s21 + $0x848] sm:$0xff]   ;;  %12039 = vst [vmem:[%s13755_s27 + $0x48] sm:$0xff] %v13412_v4  ;;  %12043 = vst [vmem:[%s13755_s27 + $0xc48] sm:$0xff] %v13413_v5  ;;  %v13423_v15 = vld [vmem:[%s13747_s21 + $0x858] sm:$0xff]  }
  0xbb   : > { %v13415_v7 = vld [vmem:[%s13747_s21 + $0x1c48] sm:$0xff]   ;;  %12047 = vst [vmem:[%s13755_s27 + $0x1848] sm:$0xff] %v13414_v6  ;;  %12075 = vst [vmem:[%s13755_s27 + $0x58] sm:$0xff] %v13421_v13  ;;  %v13424_v16 = vld [vmem:[%s13747_s21 + $0x1c58] sm:$0xff]  }
  0xbc   : > { %v13416_v8 = vld [vmem:[%s13747_s21 + $0x1048] sm:$0xff]   ;;  %12051 = vst [vmem:[%s13755_s27 + $0x448] sm:$0xff] %v13415_v7  ;;  %12079 = vst [vmem:[%s13755_s27 + $0xc58] sm:$0xff] %v13422_v14  ;;  %v13425_v17 = vld [vmem:[%s13747_s21 + $0x1058] sm:$0xff]  }
  0xbd   : > { %v13417_v9 = vld [vmem:[%s13747_s21 + $0x448] sm:$0xff]   ;;  %12055 = vst [vmem:[%s13755_s27 + $0x1048] sm:$0xff] %v13416_v8  ;;  %12083 = vst [vmem:[%s13755_s27 + $0x1858] sm:$0xff] %v13423_v15  ;;  %v13426_v18 = vld [vmem:[%s13747_s21 + $0x458] sm:$0xff]  }
  0xbe   : > { %v13418_v10 = vld [vmem:[%s13747_s21 + $0x1848] sm:$0xff]   ;;  %12059 = vst [vmem:[%s13755_s27 + $0x1c48] sm:$0xff] %v13417_v9  ;;  %12087 = vst [vmem:[%s13755_s27 + $0x458] sm:$0xff] %v13424_v16  ;;  %v13427_v19 = vld [vmem:[%s13747_s21 + $0x1858] sm:$0xff]  }
  0xbf   : > { %v13419_v11 = vld [vmem:[%s13747_s21 + $0xc48] sm:$0xff]   ;;  %12063 = vst [vmem:[%s13755_s27 + $0x848] sm:$0xff] %v13418_v10  ;;  %12091 = vst [vmem:[%s13755_s27 + $0x1058] sm:$0xff] %v13425_v17  ;;  %v13428_v20 = vld [vmem:[%s13747_s21 + $0xc58] sm:$0xff]  }
  0xc0   : > { %v13420_v12 = vld [vmem:[%s13747_s21 + $0x48] sm:$0xff]   ;;  %12067 = vst [vmem:[%s13755_s27 + $0x1448] sm:$0xff] %v13419_v11  ;;  %12095 = vst [vmem:[%s13755_s27 + $0x1c58] sm:$0xff] %v13426_v18  ;;  %v13429_v21 = vld [vmem:[%s13747_s21 + $0x58] sm:$0xff]  }
  0xc1   : > { %12071 = vst [vmem:[%s13755_s27 + $0x2048] sm:$0xff] %v13420_v12  ;;  %12099 = vst [vmem:[%s13755_s27 + $0x858] sm:$0xff] %v13427_v19  ;;  %v13430_v22 = vld [vmem:[%s13747_s21 + $0x2068] sm:$0xff]   ;;  %v13439_v31 = vld [vmem:[%s13747_s21 + $0x2078] sm:$0xff]  }
  0xc2   : > { %12103 = vst [vmem:[%s13755_s27 + $0x1458] sm:$0xff] %v13428_v20  ;;  %12107 = vst [vmem:[%s13755_s27 + $0x2058] sm:$0xff] %v13429_v21  ;;  %v13431_v23 = vld [vmem:[%s13747_s21 + $0x1468] sm:$0xff]   ;;  %v13440_v32 = vld [vmem:[%s13747_s21 + $0x1478] sm:$0xff]  }
  0xc3   : > { %v13432_v24 = vld [vmem:[%s13747_s21 + $0x868] sm:$0xff]   ;;  %12111 = vst [vmem:[%s13755_s27 + $0x68] sm:$0xff] %v13430_v22  ;;  %12115 = vst [vmem:[%s13755_s27 + $0xc68] sm:$0xff] %v13431_v23  ;;  %v13441_v33 = vld [vmem:[%s13747_s21 + $0x878] sm:$0xff]  }
  0xc4   : > { %v13433_v25 = vld [vmem:[%s13747_s21 + $0x1c68] sm:$0xff]   ;;  %12119 = vst [vmem:[%s13755_s27 + $0x1868] sm:$0xff] %v13432_v24  ;;  %12147 = vst [vmem:[%s13755_s27 + $0x78] sm:$0xff] %v13439_v31  ;;  %v13442_v34 = vld [vmem:[%s13747_s21 + $0x1c78] sm:$0xff]  }
  0xc5   : > { %v13434_v26 = vld [vmem:[%s13747_s21 + $0x1068] sm:$0xff]   ;;  %12123 = vst [vmem:[%s13755_s27 + $0x468] sm:$0xff] %v13433_v25  ;;  %12151 = vst [vmem:[%s13755_s27 + $0xc78] sm:$0xff] %v13440_v32  ;;  %v13443_v35 = vld [vmem:[%s13747_s21 + $0x1078] sm:$0xff]  }
  0xc6   : > { %v13435_v27 = vld [vmem:[%s13747_s21 + $0x468] sm:$0xff]   ;;  %12127 = vst [vmem:[%s13755_s27 + $0x1068] sm:$0xff] %v13434_v26  ;;  %12155 = vst [vmem:[%s13755_s27 + $0x1878] sm:$0xff] %v13441_v33  ;;  %v13444_v36 = vld [vmem:[%s13747_s21 + $0x478] sm:$0xff]  }
  0xc7   : > { %v13436_v28 = vld [vmem:[%s13747_s21 + $0x1868] sm:$0xff]   ;;  %12131 = vst [vmem:[%s13755_s27 + $0x1c68] sm:$0xff] %v13435_v27  ;;  %12159 = vst [vmem:[%s13755_s27 + $0x478] sm:$0xff] %v13442_v34  ;;  %v13445_v37 = vld [vmem:[%s13747_s21 + $0x1878] sm:$0xff]  }
  0xc8   : > { %v13437_v29 = vld [vmem:[%s13747_s21 + $0xc68] sm:$0xff]   ;;  %12135 = vst [vmem:[%s13755_s27 + $0x868] sm:$0xff] %v13436_v28  ;;  %12163 = vst [vmem:[%s13755_s27 + $0x1078] sm:$0xff] %v13443_v35  ;;  %v13446_v38 = vld [vmem:[%s13747_s21 + $0xc78] sm:$0xff]  }
  0xc9   : > { %v13438_v30 = vld [vmem:[%s13747_s21 + $0x68] sm:$0xff]   ;;  %12139 = vst [vmem:[%s13755_s27 + $0x1468] sm:$0xff] %v13437_v29  ;;  %12167 = vst [vmem:[%s13755_s27 + $0x1c78] sm:$0xff] %v13444_v36  ;;  %v13447_v39 = vld [vmem:[%s13747_s21 + $0x78] sm:$0xff]  }
  0xca   : > { %12143 = vst [vmem:[%s13755_s27 + $0x2068] sm:$0xff] %v13438_v30  ;;  %12171 = vst [vmem:[%s13755_s27 + $0x878] sm:$0xff] %v13445_v37  ;;  %v13448_v40 = vld [vmem:[%s13747_s21 + $0x2088] sm:$0xff]   ;;  %v13457_v49 = vld [vmem:[%s13747_s21 + $0x2098] sm:$0xff]  }
  0xcb   : > { %12175 = vst [vmem:[%s13755_s27 + $0x1478] sm:$0xff] %v13446_v38  ;;  %12179 = vst [vmem:[%s13755_s27 + $0x2078] sm:$0xff] %v13447_v39  ;;  %v13449_v41 = vld [vmem:[%s13747_s21 + $0x1488] sm:$0xff]   ;;  %v13458_v50 = vld [vmem:[%s13747_s21 + $0x1498] sm:$0xff]  }
  0xcc   : > { %v13450_v42 = vld [vmem:[%s13747_s21 + $0x888] sm:$0xff]   ;;  %12183 = vst [vmem:[%s13755_s27 + $0x88] sm:$0xff] %v13448_v40  ;;  %12187 = vst [vmem:[%s13755_s27 + $0xc88] sm:$0xff] %v13449_v41  ;;  %v13459_v51 = vld [vmem:[%s13747_s21 + $0x898] sm:$0xff]  }
  0xcd   : > { %v13451_v43 = vld [vmem:[%s13747_s21 + $0x1c88] sm:$0xff]   ;;  %12191 = vst [vmem:[%s13755_s27 + $0x1888] sm:$0xff] %v13450_v42  ;;  %12219 = vst [vmem:[%s13755_s27 + $0x98] sm:$0xff] %v13457_v49  ;;  %v13460_v52 = vld [vmem:[%s13747_s21 + $0x1c98] sm:$0xff]  }
  0xce   : > { %v13452_v44 = vld [vmem:[%s13747_s21 + $0x1088] sm:$0xff]   ;;  %12195 = vst [vmem:[%s13755_s27 + $0x488] sm:$0xff] %v13451_v43  ;;  %12223 = vst [vmem:[%s13755_s27 + $0xc98] sm:$0xff] %v13458_v50  ;;  %v13461_v53 = vld [vmem:[%s13747_s21 + $0x1098] sm:$0xff]  }
  0xcf   : > { %v13453_v45 = vld [vmem:[%s13747_s21 + $0x488] sm:$0xff]   ;;  %12199 = vst [vmem:[%s13755_s27 + $0x1088] sm:$0xff] %v13452_v44  ;;  %12227 = vst [vmem:[%s13755_s27 + $0x1898] sm:$0xff] %v13459_v51  ;;  %v13462_v54 = vld [vmem:[%s13747_s21 + $0x498] sm:$0xff]  }
  0xd0   : > { %v13454_v46 = vld [vmem:[%s13747_s21 + $0x1888] sm:$0xff]   ;;  %12203 = vst [vmem:[%s13755_s27 + $0x1c88] sm:$0xff] %v13453_v45  ;;  %12231 = vst [vmem:[%s13755_s27 + $0x498] sm:$0xff] %v13460_v52  ;;  %v13463_v55 = vld [vmem:[%s13747_s21 + $0x1898] sm:$0xff]  }
  0xd1   : > { %v13455_v47 = vld [vmem:[%s13747_s21 + $0xc88] sm:$0xff]   ;;  %12207 = vst [vmem:[%s13755_s27 + $0x888] sm:$0xff] %v13454_v46  ;;  %12235 = vst [vmem:[%s13755_s27 + $0x1098] sm:$0xff] %v13461_v53  ;;  %v13464_v56 = vld [vmem:[%s13747_s21 + $0xc98] sm:$0xff]  }
  0xd2   : > { %v13456_v48 = vld [vmem:[%s13747_s21 + $0x88] sm:$0xff]   ;;  %12211 = vst [vmem:[%s13755_s27 + $0x1488] sm:$0xff] %v13455_v47  ;;  %12239 = vst [vmem:[%s13755_s27 + $0x1c98] sm:$0xff] %v13462_v54  ;;  %v13465_v57 = vld [vmem:[%s13747_s21 + $0x98] sm:$0xff]  }
  0xd3   : > { %12215 = vst [vmem:[%s13755_s27 + $0x2088] sm:$0xff] %v13456_v48  ;;  %12243 = vst [vmem:[%s13755_s27 + $0x898] sm:$0xff] %v13463_v55  ;;  %v13466_v58 = vld [vmem:[%s13747_s21 + $0x20a8] sm:$0xff]   ;;  %v13475_v3 = vld [vmem:[%s13747_s21 + $0x20b8] sm:$0xff]  }
  0xd4   : > { %12247 = vst [vmem:[%s13755_s27 + $0x1498] sm:$0xff] %v13464_v56  ;;  %12251 = vst [vmem:[%s13755_s27 + $0x2098] sm:$0xff] %v13465_v57  ;;  %v13467_v59 = vld [vmem:[%s13747_s21 + $0x14a8] sm:$0xff]   ;;  %v13476_v4 = vld [vmem:[%s13747_s21 + $0x14b8] sm:$0xff]  }
  0xd5   : > { %v13468_v60 = vld [vmem:[%s13747_s21 + $0x8a8] sm:$0xff]   ;;  %12255 = vst [vmem:[%s13755_s27 + $0xa8] sm:$0xff] %v13466_v58  ;;  %12259 = vst [vmem:[%s13755_s27 + $0xca8] sm:$0xff] %v13467_v59  ;;  %v13477_v5 = vld [vmem:[%s13747_s21 + $0x8b8] sm:$0xff]  }
  0xd6   : > { %v13469_v61 = vld [vmem:[%s13747_s21 + $0x1ca8] sm:$0xff]   ;;  %12263 = vst [vmem:[%s13755_s27 + $0x18a8] sm:$0xff] %v13468_v60  ;;  %12291 = vst [vmem:[%s13755_s27 + $0xb8] sm:$0xff] %v13475_v3  ;;  %v13478_v6 = vld [vmem:[%s13747_s21 + $0x1cb8] sm:$0xff]  }
  0xd7   : > { %v13470_v62 = vld [vmem:[%s13747_s21 + $0x10a8] sm:$0xff]   ;;  %12267 = vst [vmem:[%s13755_s27 + $0x4a8] sm:$0xff] %v13469_v61  ;;  %12295 = vst [vmem:[%s13755_s27 + $0xcb8] sm:$0xff] %v13476_v4  ;;  %v13479_v7 = vld [vmem:[%s13747_s21 + $0x10b8] sm:$0xff]  }
  0xd8   : > { %v13471_v63 = vld [vmem:[%s13747_s21 + $0x4a8] sm:$0xff]   ;;  %12271 = vst [vmem:[%s13755_s27 + $0x10a8] sm:$0xff] %v13470_v62  ;;  %12299 = vst [vmem:[%s13755_s27 + $0x18b8] sm:$0xff] %v13477_v5  ;;  %v13480_v8 = vld [vmem:[%s13747_s21 + $0x4b8] sm:$0xff]  }
  0xd9   : > { %v13472_v0 = vld [vmem:[%s13747_s21 + $0x18a8] sm:$0xff]   ;;  %12275 = vst [vmem:[%s13755_s27 + $0x1ca8] sm:$0xff] %v13471_v63  ;;  %12303 = vst [vmem:[%s13755_s27 + $0x4b8] sm:$0xff] %v13478_v6  ;;  %v13481_v9 = vld [vmem:[%s13747_s21 + $0x18b8] sm:$0xff]  }
  0xda   : > { %v13473_v1 = vld [vmem:[%s13747_s21 + $0xca8] sm:$0xff]   ;;  %12279 = vst [vmem:[%s13755_s27 + $0x8a8] sm:$0xff] %v13472_v0  ;;  %12307 = vst [vmem:[%s13755_s27 + $0x10b8] sm:$0xff] %v13479_v7  ;;  %v13482_v10 = vld [vmem:[%s13747_s21 + $0xcb8] sm:$0xff]  }
  0xdb   : > { %v13474_v2 = vld [vmem:[%s13747_s21 + $0xa8] sm:$0xff]   ;;  %12283 = vst [vmem:[%s13755_s27 + $0x14a8] sm:$0xff] %v13473_v1  ;;  %12311 = vst [vmem:[%s13755_s27 + $0x1cb8] sm:$0xff] %v13480_v8  ;;  %v13483_v11 = vld [vmem:[%s13747_s21 + $0xb8] sm:$0xff]  }
  0xdc   : > { %12287 = vst [vmem:[%s13755_s27 + $0x20a8] sm:$0xff] %v13474_v2  ;;  %12315 = vst [vmem:[%s13755_s27 + $0x8b8] sm:$0xff] %v13481_v9  ;;  %v13484_v12 = vld [vmem:[%s13747_s21 + $0x20c8] sm:$0xff]   ;;  %v13493_v21 = vld [vmem:[%s13747_s21 + $0x20d8] sm:$0xff]  }
  0xdd   : > { %12319 = vst [vmem:[%s13755_s27 + $0x14b8] sm:$0xff] %v13482_v10  ;;  %12323 = vst [vmem:[%s13755_s27 + $0x20b8] sm:$0xff] %v13483_v11  ;;  %v13485_v13 = vld [vmem:[%s13747_s21 + $0x14c8] sm:$0xff]   ;;  %v13494_v22 = vld [vmem:[%s13747_s21 + $0x14d8] sm:$0xff]  }
  0xde   : > { %v13486_v14 = vld [vmem:[%s13747_s21 + $0x8c8] sm:$0xff]   ;;  %12327 = vst [vmem:[%s13755_s27 + $0xc8] sm:$0xff] %v13484_v12  ;;  %12331 = vst [vmem:[%s13755_s27 + $0xcc8] sm:$0xff] %v13485_v13  ;;  %v13495_v23 = vld [vmem:[%s13747_s21 + $0x8d8] sm:$0xff]  }
  0xdf   : > { %v13487_v15 = vld [vmem:[%s13747_s21 + $0x1cc8] sm:$0xff]   ;;  %12335 = vst [vmem:[%s13755_s27 + $0x18c8] sm:$0xff] %v13486_v14  ;;  %12363 = vst [vmem:[%s13755_s27 + $0xd8] sm:$0xff] %v13493_v21  ;;  %v13496_v24 = vld [vmem:[%s13747_s21 + $0x1cd8] sm:$0xff]  }
  0xe0   : > { %v13488_v16 = vld [vmem:[%s13747_s21 + $0x10c8] sm:$0xff]   ;;  %12339 = vst [vmem:[%s13755_s27 + $0x4c8] sm:$0xff] %v13487_v15  ;;  %12367 = vst [vmem:[%s13755_s27 + $0xcd8] sm:$0xff] %v13494_v22  ;;  %v13497_v25 = vld [vmem:[%s13747_s21 + $0x10d8] sm:$0xff]  }
  0xe1   : > { %v13489_v17 = vld [vmem:[%s13747_s21 + $0x4c8] sm:$0xff]   ;;  %12343 = vst [vmem:[%s13755_s27 + $0x10c8] sm:$0xff] %v13488_v16  ;;  %12371 = vst [vmem:[%s13755_s27 + $0x18d8] sm:$0xff] %v13495_v23  ;;  %v13498_v26 = vld [vmem:[%s13747_s21 + $0x4d8] sm:$0xff]  }
  0xe2   : > { %v13490_v18 = vld [vmem:[%s13747_s21 + $0x18c8] sm:$0xff]   ;;  %12347 = vst [vmem:[%s13755_s27 + $0x1cc8] sm:$0xff] %v13489_v17  ;;  %12375 = vst [vmem:[%s13755_s27 + $0x4d8] sm:$0xff] %v13496_v24  ;;  %v13499_v27 = vld [vmem:[%s13747_s21 + $0x18d8] sm:$0xff]  }
  0xe3   : > { %v13491_v19 = vld [vmem:[%s13747_s21 + $0xcc8] sm:$0xff]   ;;  %12351 = vst [vmem:[%s13755_s27 + $0x8c8] sm:$0xff] %v13490_v18  ;;  %12379 = vst [vmem:[%s13755_s27 + $0x10d8] sm:$0xff] %v13497_v25  ;;  %v13500_v28 = vld [vmem:[%s13747_s21 + $0xcd8] sm:$0xff]  }
  0xe4   : > { %v13492_v20 = vld [vmem:[%s13747_s21 + $0xc8] sm:$0xff]   ;;  %12355 = vst [vmem:[%s13755_s27 + $0x14c8] sm:$0xff] %v13491_v19  ;;  %12383 = vst [vmem:[%s13755_s27 + $0x1cd8] sm:$0xff] %v13498_v26  ;;  %v13501_v29 = vld [vmem:[%s13747_s21 + $0xd8] sm:$0xff]  }
  0xe5   : > { %12359 = vst [vmem:[%s13755_s27 + $0x20c8] sm:$0xff] %v13492_v20  ;;  %12387 = vst [vmem:[%s13755_s27 + $0x8d8] sm:$0xff] %v13499_v27  ;;  %v13502_v30 = vld [vmem:[%s13747_s21 + $0x20e8] sm:$0xff]   ;;  %v13511_v39 = vld [vmem:[%s13747_s21 + $0x20f8] sm:$0xff]  }
  0xe6   : > { %12391 = vst [vmem:[%s13755_s27 + $0x14d8] sm:$0xff] %v13500_v28  ;;  %12395 = vst [vmem:[%s13755_s27 + $0x20d8] sm:$0xff] %v13501_v29  ;;  %v13503_v31 = vld [vmem:[%s13747_s21 + $0x14e8] sm:$0xff]   ;;  %v13512_v40 = vld [vmem:[%s13747_s21 + $0x14f8] sm:$0xff]  }
  0xe7   : > { %v13504_v32 = vld [vmem:[%s13747_s21 + $0x8e8] sm:$0xff]   ;;  %12399 = vst [vmem:[%s13755_s27 + $0xe8] sm:$0xff] %v13502_v30  ;;  %12403 = vst [vmem:[%s13755_s27 + $0xce8] sm:$0xff] %v13503_v31  ;;  %v13513_v41 = vld [vmem:[%s13747_s21 + $0x8f8] sm:$0xff]  }
  0xe8   : > { %v13505_v33 = vld [vmem:[%s13747_s21 + $0x1ce8] sm:$0xff]   ;;  %12407 = vst [vmem:[%s13755_s27 + $0x18e8] sm:$0xff] %v13504_v32  ;;  %12435 = vst [vmem:[%s13755_s27 + $0xf8] sm:$0xff] %v13511_v39  ;;  %v13514_v42 = vld [vmem:[%s13747_s21 + $0x1cf8] sm:$0xff]  }
  0xe9   : > { %v13506_v34 = vld [vmem:[%s13747_s21 + $0x10e8] sm:$0xff]   ;;  %12411 = vst [vmem:[%s13755_s27 + $0x4e8] sm:$0xff] %v13505_v33  ;;  %12439 = vst [vmem:[%s13755_s27 + $0xcf8] sm:$0xff] %v13512_v40  ;;  %v13515_v43 = vld [vmem:[%s13747_s21 + $0x10f8] sm:$0xff]  }
  0xea   : > { %v13507_v35 = vld [vmem:[%s13747_s21 + $0x4e8] sm:$0xff]   ;;  %12415 = vst [vmem:[%s13755_s27 + $0x10e8] sm:$0xff] %v13506_v34  ;;  %12443 = vst [vmem:[%s13755_s27 + $0x18f8] sm:$0xff] %v13513_v41  ;;  %v13516_v44 = vld [vmem:[%s13747_s21 + $0x4f8] sm:$0xff]  }
  0xeb   : > { %v13508_v36 = vld [vmem:[%s13747_s21 + $0x18e8] sm:$0xff]   ;;  %12419 = vst [vmem:[%s13755_s27 + $0x1ce8] sm:$0xff] %v13507_v35  ;;  %12447 = vst [vmem:[%s13755_s27 + $0x4f8] sm:$0xff] %v13514_v42  ;;  %v13517_v45 = vld [vmem:[%s13747_s21 + $0x18f8] sm:$0xff]  }
  0xec   : > { %v13509_v37 = vld [vmem:[%s13747_s21 + $0xce8] sm:$0xff]   ;;  %12423 = vst [vmem:[%s13755_s27 + $0x8e8] sm:$0xff] %v13508_v36  ;;  %12451 = vst [vmem:[%s13755_s27 + $0x10f8] sm:$0xff] %v13515_v43  ;;  %v13518_v46 = vld [vmem:[%s13747_s21 + $0xcf8] sm:$0xff]  }
  0xed   : > { %v13510_v38 = vld [vmem:[%s13747_s21 + $0xe8] sm:$0xff]   ;;  %12427 = vst [vmem:[%s13755_s27 + $0x14e8] sm:$0xff] %v13509_v37  ;;  %12455 = vst [vmem:[%s13755_s27 + $0x1cf8] sm:$0xff] %v13516_v44  ;;  %v13519_v47 = vld [vmem:[%s13747_s21 + $0xf8] sm:$0xff]  }
  0xee   : > { %12431 = vst [vmem:[%s13755_s27 + $0x20e8] sm:$0xff] %v13510_v38  ;;  %12459 = vst [vmem:[%s13755_s27 + $0x8f8] sm:$0xff] %v13517_v45  ;;  %v13520_v48 = vld [vmem:[%s13747_s21 + $0x2108] sm:$0xff]   ;;  %v13529_v57 = vld [vmem:[%s13747_s21 + $0x2118] sm:$0xff]  }
  0xef   : > { %12463 = vst [vmem:[%s13755_s27 + $0x14f8] sm:$0xff] %v13518_v46  ;;  %12467 = vst [vmem:[%s13755_s27 + $0x20f8] sm:$0xff] %v13519_v47  ;;  %v13521_v49 = vld [vmem:[%s13747_s21 + $0x1508] sm:$0xff]   ;;  %v13530_v58 = vld [vmem:[%s13747_s21 + $0x1518] sm:$0xff]  }
  0xf0   : > { %v13522_v50 = vld [vmem:[%s13747_s21 + $0x908] sm:$0xff]   ;;  %12471 = vst [vmem:[%s13755_s27 + $0x108] sm:$0xff] %v13520_v48  ;;  %12475 = vst [vmem:[%s13755_s27 + $0xd08] sm:$0xff] %v13521_v49  ;;  %v13531_v59 = vld [vmem:[%s13747_s21 + $0x918] sm:$0xff]  }
  0xf1   : > { %v13523_v51 = vld [vmem:[%s13747_s21 + $0x1d08] sm:$0xff]   ;;  %12479 = vst [vmem:[%s13755_s27 + $0x1908] sm:$0xff] %v13522_v50  ;;  %12507 = vst [vmem:[%s13755_s27 + $0x118] sm:$0xff] %v13529_v57  ;;  %v13532_v60 = vld [vmem:[%s13747_s21 + $0x1d18] sm:$0xff]  }
  0xf2   : > { %v13524_v52 = vld [vmem:[%s13747_s21 + $0x1108] sm:$0xff]   ;;  %12483 = vst [vmem:[%s13755_s27 + $0x508] sm:$0xff] %v13523_v51  ;;  %12511 = vst [vmem:[%s13755_s27 + $0xd18] sm:$0xff] %v13530_v58  ;;  %v13533_v61 = vld [vmem:[%s13747_s21 + $0x1118] sm:$0xff]  }
  0xf3   : > { %v13525_v53 = vld [vmem:[%s13747_s21 + $0x508] sm:$0xff]   ;;  %12487 = vst [vmem:[%s13755_s27 + $0x1108] sm:$0xff] %v13524_v52  ;;  %12515 = vst [vmem:[%s13755_s27 + $0x1918] sm:$0xff] %v13531_v59  ;;  %v13534_v62 = vld [vmem:[%s13747_s21 + $0x518] sm:$0xff]  }
  0xf4   : > { %v13526_v54 = vld [vmem:[%s13747_s21 + $0x1908] sm:$0xff]   ;;  %12491 = vst [vmem:[%s13755_s27 + $0x1d08] sm:$0xff] %v13525_v53  ;;  %12519 = vst [vmem:[%s13755_s27 + $0x518] sm:$0xff] %v13532_v60  ;;  %v13535_v63 = vld [vmem:[%s13747_s21 + $0x1918] sm:$0xff]  }
  0xf5   : > { %v13527_v55 = vld [vmem:[%s13747_s21 + $0xd08] sm:$0xff]   ;;  %12495 = vst [vmem:[%s13755_s27 + $0x908] sm:$0xff] %v13526_v54  ;;  %12523 = vst [vmem:[%s13755_s27 + $0x1118] sm:$0xff] %v13533_v61  ;;  %v13536_v0 = vld [vmem:[%s13747_s21 + $0xd18] sm:$0xff]  }
  0xf6   : > { %v13528_v56 = vld [vmem:[%s13747_s21 + $0x108] sm:$0xff]   ;;  %12499 = vst [vmem:[%s13755_s27 + $0x1508] sm:$0xff] %v13527_v55  ;;  %12527 = vst [vmem:[%s13755_s27 + $0x1d18] sm:$0xff] %v13534_v62  ;;  %v13537_v1 = vld [vmem:[%s13747_s21 + $0x118] sm:$0xff]  }
  0xf7   : > { %12503 = vst [vmem:[%s13755_s27 + $0x2108] sm:$0xff] %v13528_v56  ;;  %12531 = vst [vmem:[%s13755_s27 + $0x918] sm:$0xff] %v13535_v63  ;;  %v13538_v2 = vld [vmem:[%s13747_s21 + $0x2128] sm:$0xff]   ;;  %v13547_v11 = vld [vmem:[%s13747_s21 + $0x2138] sm:$0xff]  }
  0xf8   : > { %12535 = vst [vmem:[%s13755_s27 + $0x1518] sm:$0xff] %v13536_v0  ;;  %12539 = vst [vmem:[%s13755_s27 + $0x2118] sm:$0xff] %v13537_v1  ;;  %v13539_v3 = vld [vmem:[%s13747_s21 + $0x1528] sm:$0xff]   ;;  %v13548_v12 = vld [vmem:[%s13747_s21 + $0x1538] sm:$0xff]  }
  0xf9   : > { %v13540_v4 = vld [vmem:[%s13747_s21 + $0x928] sm:$0xff]   ;;  %12543 = vst [vmem:[%s13755_s27 + $0x128] sm:$0xff] %v13538_v2  ;;  %12547 = vst [vmem:[%s13755_s27 + $0xd28] sm:$0xff] %v13539_v3  ;;  %v13549_v13 = vld [vmem:[%s13747_s21 + $0x938] sm:$0xff]  }
  0xfa   : > { %v13541_v5 = vld [vmem:[%s13747_s21 + $0x1d28] sm:$0xff]   ;;  %12551 = vst [vmem:[%s13755_s27 + $0x1928] sm:$0xff] %v13540_v4  ;;  %12579 = vst [vmem:[%s13755_s27 + $0x138] sm:$0xff] %v13547_v11  ;;  %v13550_v14 = vld [vmem:[%s13747_s21 + $0x1d38] sm:$0xff]  }
  0xfb   : > { %v13542_v6 = vld [vmem:[%s13747_s21 + $0x1128] sm:$0xff]   ;;  %12555 = vst [vmem:[%s13755_s27 + $0x528] sm:$0xff] %v13541_v5  ;;  %12583 = vst [vmem:[%s13755_s27 + $0xd38] sm:$0xff] %v13548_v12  ;;  %v13551_v15 = vld [vmem:[%s13747_s21 + $0x1138] sm:$0xff]  }
  0xfc   : > { %v13543_v7 = vld [vmem:[%s13747_s21 + $0x528] sm:$0xff]   ;;  %12559 = vst [vmem:[%s13755_s27 + $0x1128] sm:$0xff] %v13542_v6  ;;  %12587 = vst [vmem:[%s13755_s27 + $0x1938] sm:$0xff] %v13549_v13  ;;  %v13552_v16 = vld [vmem:[%s13747_s21 + $0x538] sm:$0xff]  }
  0xfd   : > { %v13544_v8 = vld [vmem:[%s13747_s21 + $0x1928] sm:$0xff]   ;;  %12563 = vst [vmem:[%s13755_s27 + $0x1d28] sm:$0xff] %v13543_v7  ;;  %12591 = vst [vmem:[%s13755_s27 + $0x538] sm:$0xff] %v13550_v14  ;;  %v13553_v17 = vld [vmem:[%s13747_s21 + $0x1938] sm:$0xff]  }
  0xfe   : > { %v13545_v9 = vld [vmem:[%s13747_s21 + $0xd28] sm:$0xff]   ;;  %12567 = vst [vmem:[%s13755_s27 + $0x928] sm:$0xff] %v13544_v8  ;;  %12595 = vst [vmem:[%s13755_s27 + $0x1138] sm:$0xff] %v13551_v15  ;;  %v13554_v18 = vld [vmem:[%s13747_s21 + $0xd38] sm:$0xff]  }
  0xff   : > { %v13546_v10 = vld [vmem:[%s13747_s21 + $0x128] sm:$0xff]   ;;  %12571 = vst [vmem:[%s13755_s27 + $0x1528] sm:$0xff] %v13545_v9  ;;  %12599 = vst [vmem:[%s13755_s27 + $0x1d38] sm:$0xff] %v13552_v16  ;;  %v13555_v19 = vld [vmem:[%s13747_s21 + $0x138] sm:$0xff]  }
 0x100   : > { %12575 = vst [vmem:[%s13755_s27 + $0x2128] sm:$0xff] %v13546_v10  ;;  %12603 = vst [vmem:[%s13755_s27 + $0x938] sm:$0xff] %v13553_v17  ;;  %v13556_v20 = vld [vmem:[%s13747_s21 + $0x2148] sm:$0xff]   ;;  %v13565_v29 = vld [vmem:[%s13747_s21 + $0x2158] sm:$0xff]  }
 0x101   : > { %12607 = vst [vmem:[%s13755_s27 + $0x1538] sm:$0xff] %v13554_v18  ;;  %12611 = vst [vmem:[%s13755_s27 + $0x2138] sm:$0xff] %v13555_v19  ;;  %v13557_v21 = vld [vmem:[%s13747_s21 + $0x1548] sm:$0xff]   ;;  %v13566_v30 = vld [vmem:[%s13747_s21 + $0x1558] sm:$0xff]  }
 0x102   : > { %v13558_v22 = vld [vmem:[%s13747_s21 + $0x948] sm:$0xff]   ;;  %12615 = vst [vmem:[%s13755_s27 + $0x148] sm:$0xff] %v13556_v20  ;;  %12619 = vst [vmem:[%s13755_s27 + $0xd48] sm:$0xff] %v13557_v21  ;;  %v13567_v31 = vld [vmem:[%s13747_s21 + $0x958] sm:$0xff]  }
 0x103   : > { %v13559_v23 = vld [vmem:[%s13747_s21 + $0x1d48] sm:$0xff]   ;;  %12623 = vst [vmem:[%s13755_s27 + $0x1948] sm:$0xff] %v13558_v22  ;;  %12651 = vst [vmem:[%s13755_s27 + $0x158] sm:$0xff] %v13565_v29  ;;  %v13568_v32 = vld [vmem:[%s13747_s21 + $0x1d58] sm:$0xff]  }
 0x104   : > { %v13560_v24 = vld [vmem:[%s13747_s21 + $0x1148] sm:$0xff]   ;;  %12627 = vst [vmem:[%s13755_s27 + $0x548] sm:$0xff] %v13559_v23  ;;  %12655 = vst [vmem:[%s13755_s27 + $0xd58] sm:$0xff] %v13566_v30  ;;  %v13569_v33 = vld [vmem:[%s13747_s21 + $0x1158] sm:$0xff]  }
 0x105   : > { %v13561_v25 = vld [vmem:[%s13747_s21 + $0x548] sm:$0xff]   ;;  %12631 = vst [vmem:[%s13755_s27 + $0x1148] sm:$0xff] %v13560_v24  ;;  %12659 = vst [vmem:[%s13755_s27 + $0x1958] sm:$0xff] %v13567_v31  ;;  %v13570_v34 = vld [vmem:[%s13747_s21 + $0x558] sm:$0xff]  }
 0x106   : > { %v13562_v26 = vld [vmem:[%s13747_s21 + $0x1948] sm:$0xff]   ;;  %12635 = vst [vmem:[%s13755_s27 + $0x1d48] sm:$0xff] %v13561_v25  ;;  %12663 = vst [vmem:[%s13755_s27 + $0x558] sm:$0xff] %v13568_v32  ;;  %v13571_v35 = vld [vmem:[%s13747_s21 + $0x1958] sm:$0xff]  }
 0x107   : > { %v13563_v27 = vld [vmem:[%s13747_s21 + $0xd48] sm:$0xff]   ;;  %12639 = vst [vmem:[%s13755_s27 + $0x948] sm:$0xff] %v13562_v26  ;;  %12667 = vst [vmem:[%s13755_s27 + $0x1158] sm:$0xff] %v13569_v33  ;;  %v13572_v36 = vld [vmem:[%s13747_s21 + $0xd58] sm:$0xff]  }
 0x108   : > { %v13564_v28 = vld [vmem:[%s13747_s21 + $0x148] sm:$0xff]   ;;  %12643 = vst [vmem:[%s13755_s27 + $0x1548] sm:$0xff] %v13563_v27  ;;  %12671 = vst [vmem:[%s13755_s27 + $0x1d58] sm:$0xff] %v13570_v34  ;;  %v13573_v37 = vld [vmem:[%s13747_s21 + $0x158] sm:$0xff]  }
 0x109   : > { %12647 = vst [vmem:[%s13755_s27 + $0x2148] sm:$0xff] %v13564_v28  ;;  %12675 = vst [vmem:[%s13755_s27 + $0x958] sm:$0xff] %v13571_v35  ;;  %v13574_v38 = vld [vmem:[%s13747_s21 + $0x2168] sm:$0xff]   ;;  %v13583_v47 = vld [vmem:[%s13747_s21 + $0x2178] sm:$0xff]  }
 0x10a   : > { %12679 = vst [vmem:[%s13755_s27 + $0x1558] sm:$0xff] %v13572_v36  ;;  %12683 = vst [vmem:[%s13755_s27 + $0x2158] sm:$0xff] %v13573_v37  ;;  %v13575_v39 = vld [vmem:[%s13747_s21 + $0x1568] sm:$0xff]   ;;  %v13584_v48 = vld [vmem:[%s13747_s21 + $0x1578] sm:$0xff]  }
 0x10b   : > { %v13576_v40 = vld [vmem:[%s13747_s21 + $0x968] sm:$0xff]   ;;  %12687 = vst [vmem:[%s13755_s27 + $0x168] sm:$0xff] %v13574_v38  ;;  %12691 = vst [vmem:[%s13755_s27 + $0xd68] sm:$0xff] %v13575_v39  ;;  %v13585_v49 = vld [vmem:[%s13747_s21 + $0x978] sm:$0xff]  }
 0x10c   : > { %v13577_v41 = vld [vmem:[%s13747_s21 + $0x1d68] sm:$0xff]   ;;  %12695 = vst [vmem:[%s13755_s27 + $0x1968] sm:$0xff] %v13576_v40  ;;  %12723 = vst [vmem:[%s13755_s27 + $0x178] sm:$0xff] %v13583_v47  ;;  %v13586_v50 = vld [vmem:[%s13747_s21 + $0x1d78] sm:$0xff]  }
 0x10d   : > { %v13578_v42 = vld [vmem:[%s13747_s21 + $0x1168] sm:$0xff]   ;;  %12699 = vst [vmem:[%s13755_s27 + $0x568] sm:$0xff] %v13577_v41  ;;  %12727 = vst [vmem:[%s13755_s27 + $0xd78] sm:$0xff] %v13584_v48  ;;  %v13587_v51 = vld [vmem:[%s13747_s21 + $0x1178] sm:$0xff]  }
 0x10e   : > { %v13579_v43 = vld [vmem:[%s13747_s21 + $0x568] sm:$0xff]   ;;  %12703 = vst [vmem:[%s13755_s27 + $0x1168] sm:$0xff] %v13578_v42  ;;  %12731 = vst [vmem:[%s13755_s27 + $0x1978] sm:$0xff] %v13585_v49  ;;  %v13588_v52 = vld [vmem:[%s13747_s21 + $0x578] sm:$0xff]  }
 0x10f   : > { %v13580_v44 = vld [vmem:[%s13747_s21 + $0x1968] sm:$0xff]   ;;  %12707 = vst [vmem:[%s13755_s27 + $0x1d68] sm:$0xff] %v13579_v43  ;;  %12735 = vst [vmem:[%s13755_s27 + $0x578] sm:$0xff] %v13586_v50  ;;  %v13589_v53 = vld [vmem:[%s13747_s21 + $0x1978] sm:$0xff]  }
 0x110   : > { %v13581_v45 = vld [vmem:[%s13747_s21 + $0xd68] sm:$0xff]   ;;  %12711 = vst [vmem:[%s13755_s27 + $0x968] sm:$0xff] %v13580_v44  ;;  %12739 = vst [vmem:[%s13755_s27 + $0x1178] sm:$0xff] %v13587_v51  ;;  %v13590_v54 = vld [vmem:[%s13747_s21 + $0xd78] sm:$0xff]  }
 0x111   : > { %v13582_v46 = vld [vmem:[%s13747_s21 + $0x168] sm:$0xff]   ;;  %12715 = vst [vmem:[%s13755_s27 + $0x1568] sm:$0xff] %v13581_v45  ;;  %12743 = vst [vmem:[%s13755_s27 + $0x1d78] sm:$0xff] %v13588_v52  ;;  %v13591_v55 = vld [vmem:[%s13747_s21 + $0x178] sm:$0xff]  }
 0x112   : > { %12719 = vst [vmem:[%s13755_s27 + $0x2168] sm:$0xff] %v13582_v46  ;;  %12747 = vst [vmem:[%s13755_s27 + $0x978] sm:$0xff] %v13589_v53  ;;  %v13592_v56 = vld [vmem:[%s13747_s21 + $0x2188] sm:$0xff]   ;;  %v13601_v1 = vld [vmem:[%s13747_s21 + $0x2198] sm:$0xff]  }
 0x113   : > { %12751 = vst [vmem:[%s13755_s27 + $0x1578] sm:$0xff] %v13590_v54  ;;  %12755 = vst [vmem:[%s13755_s27 + $0x2178] sm:$0xff] %v13591_v55  ;;  %v13593_v57 = vld [vmem:[%s13747_s21 + $0x1588] sm:$0xff]   ;;  %v13602_v2 = vld [vmem:[%s13747_s21 + $0x1598] sm:$0xff]  }
 0x114   : > { %v13594_v58 = vld [vmem:[%s13747_s21 + $0x988] sm:$0xff]   ;;  %12759 = vst [vmem:[%s13755_s27 + $0x188] sm:$0xff] %v13592_v56  ;;  %12763 = vst [vmem:[%s13755_s27 + $0xd88] sm:$0xff] %v13593_v57  ;;  %v13603_v3 = vld [vmem:[%s13747_s21 + $0x998] sm:$0xff]  }
 0x115   : > { %v13595_v59 = vld [vmem:[%s13747_s21 + $0x1d88] sm:$0xff]   ;;  %12767 = vst [vmem:[%s13755_s27 + $0x1988] sm:$0xff] %v13594_v58  ;;  %12795 = vst [vmem:[%s13755_s27 + $0x198] sm:$0xff] %v13601_v1  ;;  %v13604_v4 = vld [vmem:[%s13747_s21 + $0x1d98] sm:$0xff]  }
 0x116   : > { %v13596_v60 = vld [vmem:[%s13747_s21 + $0x1188] sm:$0xff]   ;;  %12771 = vst [vmem:[%s13755_s27 + $0x588] sm:$0xff] %v13595_v59  ;;  %12799 = vst [vmem:[%s13755_s27 + $0xd98] sm:$0xff] %v13602_v2  ;;  %v13605_v5 = vld [vmem:[%s13747_s21 + $0x1198] sm:$0xff]  }
 0x117   : > { %v13597_v61 = vld [vmem:[%s13747_s21 + $0x588] sm:$0xff]   ;;  %12775 = vst [vmem:[%s13755_s27 + $0x1188] sm:$0xff] %v13596_v60  ;;  %12803 = vst [vmem:[%s13755_s27 + $0x1998] sm:$0xff] %v13603_v3  ;;  %v13606_v6 = vld [vmem:[%s13747_s21 + $0x598] sm:$0xff]  }
 0x118   : > { %v13598_v62 = vld [vmem:[%s13747_s21 + $0x1988] sm:$0xff]   ;;  %12779 = vst [vmem:[%s13755_s27 + $0x1d88] sm:$0xff] %v13597_v61  ;;  %12807 = vst [vmem:[%s13755_s27 + $0x598] sm:$0xff] %v13604_v4  ;;  %v13607_v7 = vld [vmem:[%s13747_s21 + $0x1998] sm:$0xff]  }
 0x119   : > { %v13599_v63 = vld [vmem:[%s13747_s21 + $0xd88] sm:$0xff]   ;;  %12783 = vst [vmem:[%s13755_s27 + $0x988] sm:$0xff] %v13598_v62  ;;  %12811 = vst [vmem:[%s13755_s27 + $0x1198] sm:$0xff] %v13605_v5  ;;  %v13608_v8 = vld [vmem:[%s13747_s21 + $0xd98] sm:$0xff]  }
 0x11a   : > { %v13600_v0 = vld [vmem:[%s13747_s21 + $0x188] sm:$0xff]   ;;  %12787 = vst [vmem:[%s13755_s27 + $0x1588] sm:$0xff] %v13599_v63  ;;  %12815 = vst [vmem:[%s13755_s27 + $0x1d98] sm:$0xff] %v13606_v6  ;;  %v13609_v9 = vld [vmem:[%s13747_s21 + $0x198] sm:$0xff]  }
 0x11b   : > { %12791 = vst [vmem:[%s13755_s27 + $0x2188] sm:$0xff] %v13600_v0  ;;  %12819 = vst [vmem:[%s13755_s27 + $0x998] sm:$0xff] %v13607_v7  ;;  %v13610_v10 = vld [vmem:[%s13747_s21 + $0x21a8] sm:$0xff]   ;;  %v13619_v19 = vld [vmem:[%s13747_s21 + $0x21b8] sm:$0xff]  }
 0x11c   : > { %12823 = vst [vmem:[%s13755_s27 + $0x1598] sm:$0xff] %v13608_v8  ;;  %12827 = vst [vmem:[%s13755_s27 + $0x2198] sm:$0xff] %v13609_v9  ;;  %v13611_v11 = vld [vmem:[%s13747_s21 + $0x15a8] sm:$0xff]   ;;  %v13620_v20 = vld [vmem:[%s13747_s21 + $0x15b8] sm:$0xff]  }
 0x11d   : > { %v13612_v12 = vld [vmem:[%s13747_s21 + $0x9a8] sm:$0xff]   ;;  %12831 = vst [vmem:[%s13755_s27 + $0x1a8] sm:$0xff] %v13610_v10  ;;  %12835 = vst [vmem:[%s13755_s27 + $0xda8] sm:$0xff] %v13611_v11  ;;  %v13621_v21 = vld [vmem:[%s13747_s21 + $0x9b8] sm:$0xff]  }
 0x11e   : > { %v13613_v13 = vld [vmem:[%s13747_s21 + $0x1da8] sm:$0xff]   ;;  %12839 = vst [vmem:[%s13755_s27 + $0x19a8] sm:$0xff] %v13612_v12  ;;  %12867 = vst [vmem:[%s13755_s27 + $0x1b8] sm:$0xff] %v13619_v19  ;;  %v13622_v22 = vld [vmem:[%s13747_s21 + $0x1db8] sm:$0xff]  }
 0x11f   : > { %v13614_v14 = vld [vmem:[%s13747_s21 + $0x11a8] sm:$0xff]   ;;  %12843 = vst [vmem:[%s13755_s27 + $0x5a8] sm:$0xff] %v13613_v13  ;;  %12871 = vst [vmem:[%s13755_s27 + $0xdb8] sm:$0xff] %v13620_v20  ;;  %v13623_v23 = vld [vmem:[%s13747_s21 + $0x11b8] sm:$0xff]  }
 0x120   : > { %v13615_v15 = vld [vmem:[%s13747_s21 + $0x5a8] sm:$0xff]   ;;  %12847 = vst [vmem:[%s13755_s27 + $0x11a8] sm:$0xff] %v13614_v14  ;;  %12875 = vst [vmem:[%s13755_s27 + $0x19b8] sm:$0xff] %v13621_v21  ;;  %v13624_v24 = vld [vmem:[%s13747_s21 + $0x5b8] sm:$0xff]  }
 0x121   : > { %v13616_v16 = vld [vmem:[%s13747_s21 + $0x19a8] sm:$0xff]   ;;  %12851 = vst [vmem:[%s13755_s27 + $0x1da8] sm:$0xff] %v13615_v15  ;;  %12879 = vst [vmem:[%s13755_s27 + $0x5b8] sm:$0xff] %v13622_v22  ;;  %v13625_v25 = vld [vmem:[%s13747_s21 + $0x19b8] sm:$0xff]  }
 0x122   : > { %v13617_v17 = vld [vmem:[%s13747_s21 + $0xda8] sm:$0xff]   ;;  %12855 = vst [vmem:[%s13755_s27 + $0x9a8] sm:$0xff] %v13616_v16  ;;  %12883 = vst [vmem:[%s13755_s27 + $0x11b8] sm:$0xff] %v13623_v23  ;;  %v13626_v26 = vld [vmem:[%s13747_s21 + $0xdb8] sm:$0xff]  }
 0x123   : > { %v13618_v18 = vld [vmem:[%s13747_s21 + $0x1a8] sm:$0xff]   ;;  %12859 = vst [vmem:[%s13755_s27 + $0x15a8] sm:$0xff] %v13617_v17  ;;  %12887 = vst [vmem:[%s13755_s27 + $0x1db8] sm:$0xff] %v13624_v24  ;;  %v13627_v27 = vld [vmem:[%s13747_s21 + $0x1b8] sm:$0xff]  }
 0x124   : > { %12863 = vst [vmem:[%s13755_s27 + $0x21a8] sm:$0xff] %v13618_v18  ;;  %12891 = vst [vmem:[%s13755_s27 + $0x9b8] sm:$0xff] %v13625_v25  ;;  %v13628_v28 = vld [vmem:[%s13747_s21 + $0x21c8] sm:$0xff]   ;;  %v13637_v37 = vld [vmem:[%s13747_s21 + $0x21d8] sm:$0xff]  }
 0x125   : > { %12895 = vst [vmem:[%s13755_s27 + $0x15b8] sm:$0xff] %v13626_v26  ;;  %12899 = vst [vmem:[%s13755_s27 + $0x21b8] sm:$0xff] %v13627_v27  ;;  %v13629_v29 = vld [vmem:[%s13747_s21 + $0x15c8] sm:$0xff]   ;;  %v13638_v38 = vld [vmem:[%s13747_s21 + $0x15d8] sm:$0xff]  }
 0x126   : > { %v13630_v30 = vld [vmem:[%s13747_s21 + $0x9c8] sm:$0xff]   ;;  %12903 = vst [vmem:[%s13755_s27 + $0x1c8] sm:$0xff] %v13628_v28  ;;  %12907 = vst [vmem:[%s13755_s27 + $0xdc8] sm:$0xff] %v13629_v29  ;;  %v13639_v39 = vld [vmem:[%s13747_s21 + $0x9d8] sm:$0xff]  }
 0x127   : > { %v13631_v31 = vld [vmem:[%s13747_s21 + $0x1dc8] sm:$0xff]   ;;  %12911 = vst [vmem:[%s13755_s27 + $0x19c8] sm:$0xff] %v13630_v30  ;;  %12939 = vst [vmem:[%s13755_s27 + $0x1d8] sm:$0xff] %v13637_v37  ;;  %v13640_v40 = vld [vmem:[%s13747_s21 + $0x1dd8] sm:$0xff]  }
 0x128   : > { %v13632_v32 = vld [vmem:[%s13747_s21 + $0x11c8] sm:$0xff]   ;;  %12915 = vst [vmem:[%s13755_s27 + $0x5c8] sm:$0xff] %v13631_v31  ;;  %12943 = vst [vmem:[%s13755_s27 + $0xdd8] sm:$0xff] %v13638_v38  ;;  %v13641_v41 = vld [vmem:[%s13747_s21 + $0x11d8] sm:$0xff]  }
 0x129   : > { %v13633_v33 = vld [vmem:[%s13747_s21 + $0x5c8] sm:$0xff]   ;;  %12919 = vst [vmem:[%s13755_s27 + $0x11c8] sm:$0xff] %v13632_v32  ;;  %12947 = vst [vmem:[%s13755_s27 + $0x19d8] sm:$0xff] %v13639_v39  ;;  %v13642_v42 = vld [vmem:[%s13747_s21 + $0x5d8] sm:$0xff]  }
 0x12a   : > { %v13634_v34 = vld [vmem:[%s13747_s21 + $0x19c8] sm:$0xff]   ;;  %12923 = vst [vmem:[%s13755_s27 + $0x1dc8] sm:$0xff] %v13633_v33  ;;  %12951 = vst [vmem:[%s13755_s27 + $0x5d8] sm:$0xff] %v13640_v40  ;;  %v13643_v43 = vld [vmem:[%s13747_s21 + $0x19d8] sm:$0xff]  }
 0x12b   : > { %v13635_v35 = vld [vmem:[%s13747_s21 + $0xdc8] sm:$0xff]   ;;  %12927 = vst [vmem:[%s13755_s27 + $0x9c8] sm:$0xff] %v13634_v34  ;;  %12955 = vst [vmem:[%s13755_s27 + $0x11d8] sm:$0xff] %v13641_v41  ;;  %v13644_v44 = vld [vmem:[%s13747_s21 + $0xdd8] sm:$0xff]  }
 0x12c   : > { %v13636_v36 = vld [vmem:[%s13747_s21 + $0x1c8] sm:$0xff]   ;;  %12931 = vst [vmem:[%s13755_s27 + $0x15c8] sm:$0xff] %v13635_v35  ;;  %12959 = vst [vmem:[%s13755_s27 + $0x1dd8] sm:$0xff] %v13642_v42  ;;  %v13645_v45 = vld [vmem:[%s13747_s21 + $0x1d8] sm:$0xff]  }
 0x12d   : > { %12935 = vst [vmem:[%s13755_s27 + $0x21c8] sm:$0xff] %v13636_v36  ;;  %12963 = vst [vmem:[%s13755_s27 + $0x9d8] sm:$0xff] %v13643_v43  ;;  %v13646_v46 = vld [vmem:[%s13747_s21 + $0x21e8] sm:$0xff]   ;;  %v13655_v55 = vld [vmem:[%s13747_s21 + $0x21f8] sm:$0xff]  }
 0x12e   : > { %12967 = vst [vmem:[%s13755_s27 + $0x15d8] sm:$0xff] %v13644_v44  ;;  %12971 = vst [vmem:[%s13755_s27 + $0x21d8] sm:$0xff] %v13645_v45  ;;  %v13647_v47 = vld [vmem:[%s13747_s21 + $0x15e8] sm:$0xff]   ;;  %v13656_v56 = vld [vmem:[%s13747_s21 + $0x15f8] sm:$0xff]  }
 0x12f   : > { %v13648_v48 = vld [vmem:[%s13747_s21 + $0x9e8] sm:$0xff]   ;;  %12975 = vst [vmem:[%s13755_s27 + $0x1e8] sm:$0xff] %v13646_v46  ;;  %12979 = vst [vmem:[%s13755_s27 + $0xde8] sm:$0xff] %v13647_v47  ;;  %v13657_v57 = vld [vmem:[%s13747_s21 + $0x9f8] sm:$0xff]  }
 0x130   : > { %v13649_v49 = vld [vmem:[%s13747_s21 + $0x1de8] sm:$0xff]   ;;  %12983 = vst [vmem:[%s13755_s27 + $0x19e8] sm:$0xff] %v13648_v48  ;;  %13011 = vst [vmem:[%s13755_s27 + $0x1f8] sm:$0xff] %v13655_v55  ;;  %v13658_v58 = vld [vmem:[%s13747_s21 + $0x1df8] sm:$0xff]  }
 0x131   : > { %v13650_v50 = vld [vmem:[%s13747_s21 + $0x11e8] sm:$0xff]   ;;  %12987 = vst [vmem:[%s13755_s27 + $0x5e8] sm:$0xff] %v13649_v49  ;;  %13015 = vst [vmem:[%s13755_s27 + $0xdf8] sm:$0xff] %v13656_v56  ;;  %v13659_v59 = vld [vmem:[%s13747_s21 + $0x11f8] sm:$0xff]  }
 0x132   : > { %v13651_v51 = vld [vmem:[%s13747_s21 + $0x5e8] sm:$0xff]   ;;  %12991 = vst [vmem:[%s13755_s27 + $0x11e8] sm:$0xff] %v13650_v50  ;;  %13019 = vst [vmem:[%s13755_s27 + $0x19f8] sm:$0xff] %v13657_v57  ;;  %v13660_v60 = vld [vmem:[%s13747_s21 + $0x5f8] sm:$0xff]  }
 0x133   : > { %v13652_v52 = vld [vmem:[%s13747_s21 + $0x19e8] sm:$0xff]   ;;  %12995 = vst [vmem:[%s13755_s27 + $0x1de8] sm:$0xff] %v13651_v51  ;;  %13023 = vst [vmem:[%s13755_s27 + $0x5f8] sm:$0xff] %v13658_v58  ;;  %v13661_v61 = vld [vmem:[%s13747_s21 + $0x19f8] sm:$0xff]  }
 0x134   : > { %v13653_v53 = vld [vmem:[%s13747_s21 + $0xde8] sm:$0xff]   ;;  %12999 = vst [vmem:[%s13755_s27 + $0x9e8] sm:$0xff] %v13652_v52  ;;  %13027 = vst [vmem:[%s13755_s27 + $0x11f8] sm:$0xff] %v13659_v59  ;;  %v13662_v62 = vld [vmem:[%s13747_s21 + $0xdf8] sm:$0xff]  }
 0x135   : > { %v13654_v54 = vld [vmem:[%s13747_s21 + $0x1e8] sm:$0xff]   ;;  %13003 = vst [vmem:[%s13755_s27 + $0x15e8] sm:$0xff] %v13653_v53  ;;  %13031 = vst [vmem:[%s13755_s27 + $0x1df8] sm:$0xff] %v13660_v60  ;;  %v13663_v63 = vld [vmem:[%s13747_s21 + $0x1f8] sm:$0xff]  }
 0x136   : > { %13007 = vst [vmem:[%s13755_s27 + $0x21e8] sm:$0xff] %v13654_v54  ;;  %13035 = vst [vmem:[%s13755_s27 + $0x9f8] sm:$0xff] %v13661_v61 }
 0x137   : > { %13039 = vst [vmem:[%s13755_s27 + $0x15f8] sm:$0xff] %v13662_v62  ;;  %13043 = vst [vmem:[%s13755_s27 + $0x21f8] sm:$0xff] %v13663_v63 }
 0x138 PF: > { %s7_s10 = sadd.s32 1, %s13702_s10   ;;  %s14923_s6 = smov %s13694_s8 }
 0x139   : > { %p4_p8 = scmp.ge.s32.totalorder %s7_s10, 8   ;;  %s14924_s7 = smov %s13698_s9 }
 0x13a   : > { %s14925_s8 = smov %s14928_s11  ;;  %s14926_s9 = smov %s14932_s12 }
 0x13b   :  { %6 = sbr.rel (!%p4_p8) target bundleno = 3 (0x3), region = 2919 }

// kernel: risley_speeds_forward.16
= control target key start
LH: loop header
LB: loop body
LE: loop exit
PB: predicated region body
PF: predicated region fallthrough
CT: control target
= control target key end

     0   :  { %v14_v0 = vlaneseq  ;;  %v116_v1 = vmov 1983009808   ;;  %v117_v22 = vmov 1966171168   ;;  %s142_s1 = inlined_call_operand.vmem [shape: f32[1,512], index: 1, kind: input, shape index: {}]   ;;  %s143_s0 = inlined_call_operand.vmem [shape: f32[2,512], index: 0, kind: input, shape index: {}]   ;;  %s144_s2 = inlined_call_operand.vmem [shape: bf16[2,512], index: 2, kind: output, shape index: {}]  }
   0x1   :  { %v33_v2 = vunpack.c.l.s4 %v116_v1  ;;  %v12_v4 = vld [vmem:[%s142_s1] sm:$0xf]  ;;  %v84_v23 = vunpack.c.l.s4 %v117_v22 }
   0x2   :  { %v15_v3 = vshrl.u32 %v14_v0, 7  ;;  %v11_v19 = vld [vmem:[%s143_s0] sm:$0xff] }
   0x3   :  { %v34_v5 = vunpack.c.0.s8 %v33_v2  ;;  %v85_v26 = vunpack.c.0.s8 %v84_v23 }
   0x4   :  { %v16_v6 = vsub.s32 0, %v15_v3  ;;  %v20_v7 = vsub.s32 1, %v15_v3  ;;  %v24_v8 = vsub.s32 2, %v15_v3  ;;  %v28_v9 = vsub.s32 3, %v15_v3 }
   0x5   :  { %v37_v10 = vsub.s32 %v34_v5, %v15_v3  ;;  %v88_v31 = vsub.s32 %v85_v26, %v15_v3 }
   0x6   :  { %v17_v11 = vrot.slane %v12_v4, %v16_v6  ;;  %v21_v12 = vrot.slane %v12_v4, %v20_v7  ;;  %v25_v13 = vrot.slane %v12_v4, %v24_v8  ;;  %v29_v14 = vrot.slane %v12_v4, %v28_v9 }
   0x8   :  { %v30_v15 = vcombine.low %v17_v11, %v21_v12  ;;  %v31_v16 = vcombine.low %v25_v13, %v29_v14 }
   0xa   :  { %v38_v17 = vrot.slane %v30_v15, %v37_v10  ;;  %v45_v18 = vrot.slane %v31_v16, %v37_v10 }
   0xc   :  { %v46_v20 = vcombine.low %v38_v17, %v45_v18 }
   0xe   :  { %v48_v21 = vadd.f32 %v46_v20, %v11_v19 }
  0x10   :  { %v49_v24 = vmul.f32 0.2, %v48_v21 }
  0x12   :  { %v50_v25 = vmax.f32 %v48_v21, %v49_v24 }
  0x14   :  { %v52_v27 = vcombine.high %v50_v25, %v50_v25  ;;  %v59_v28 = vrot.slane %v50_v25, %v37_v10 }
  0x16   :  { %v66_v29 = vrot.slane %v52_v27, %v37_v10  ;;  %v67_v30 = vcombine.high %v59_v28, %v59_v28 }
  0x18   :  { %v68_v32 = vcombine.high %v66_v29, %v66_v29  ;;  %v111_v33 = vpack.c.bf16 %v67_v30, %v59_v28 }
  0x1a   :  { %v112_v34 = vpack.c.bf16 %v68_v32, %v66_v29  ;;  %v89_v35 = vrot.slane %v111_v33, %v88_v31 }
  0x1c   :  { %v96_v36 = vrot.slane %v112_v34, %v88_v31 }
  0x1e   :  { %v97_v37 = vcombine.low %v89_v35, %v96_v36 }
  0x20   :  { %113 = vst.sshfl [vmem:[%s144_s2] sm:$0x55 pattern:$0x73625140] %v97_v37 }

// kernel: risley_speeds_forward.17
= control target key start
LH: loop header
LB: loop body
LE: loop exit
PB: predicated region body
PF: predicated region fallthrough
CT: control target
= control target key end

     0   :  { %v3316_v35 = vmov 1966171168   ;;  %v299_v37 = vlaneseq  ;;  %s4403_s0 = inlined_call_operand.vmem [shape: bf16[2,512], index: 0, kind: input, shape index: {}]   ;;  %s4404_s1 = inlined_call_operand.vmem [shape: bf16[512,1024], index: 1, kind: input, shape index: {}]   ;;  %s4405_s2 = inlined_call_operand.vmem [shape: f32[1,1024], index: 2, kind: input, shape index: {}]   ;;  %s4406_s3 = inlined_call_operand.vmem [shape: bf16[1024,128], index: 3, kind: input, shape index: {}]   ;;  %s4407_s4 = inlined_call_operand.vmem [shape: f32[1,128], index: 4, kind: input, shape index: {}]   ;;  %s4408_s5 = inlined_call_operand.hbm [shape: f32[2,128], index: 5, kind: output, shape index: {}]  }
   0x1   :  { %v31_v0 = vld [vmem:[%s4404_s1] sm:$0xff]  ;;  %v32_v2 = vld [vmem:[%s4404_s1 + $0x8] sm:$0xff]  ;;  %v297_v36 = vunpack.c.l.s4 %v3316_v35 }
   0x2   :  { %v35_v1 = vld [vmem:[%s4404_s1 + $0x20] sm:$0xff]  ;;  %v36_v4 = vld [vmem:[%s4404_s1 + $0x28] sm:$0xff]  ;;  %v3421_v47 = vshrl.u32 %v299_v37, 7 }
   0x3   :  { %v2801_v3 = vcombine.high %v31_v0, %v35_v1  ;;  %v2800_v5 = vcombine.low %v31_v0, %v35_v1  ;;  %v39_v6 = vld [vmem:[%s4404_s1 + $0x40] sm:$0xff]  ;;  %v2803_v8 = vcombine.high %v32_v2, %v36_v4  ;;  %v2802_v9 = vcombine.low %v32_v2, %v36_v4  ;;  %v40_v11 = vld [vmem:[%s4404_s1 + $0x48] sm:$0xff] }
   0x4   :  { %v43_v7 = vld [vmem:[%s4404_s1 + $0x60] sm:$0xff]  ;;  %v44_v12 = vld [vmem:[%s4404_s1 + $0x68] sm:$0xff]  ;;  %v298_v46 = vunpack.c.0.s8 %v297_v36 }
   0x5   :  { %v2809_v10 = vcombine.high %v39_v6, %v43_v7  ;;  %v47_v13 = vld [vmem:[%s4404_s1 + $0x80] sm:$0xff]  ;;  %1596 = vmatprep.subr.bf16.mxu0 %v2801_v3  ;;  %v2811_v14 = vcombine.high %v40_v11, %v44_v12  ;;  %v48_v16 = vld [vmem:[%s4404_s1 + $0x88] sm:$0xff]  ;;  %1678 = vmatprep.subr.bf16.mxu1 %v2803_v8  ;;  %v2808_v18 = vcombine.low %v39_v6, %v43_v7 }
   0x6   :  { %v51_v15 = vld [vmem:[%s4404_s1 + $0xa0] sm:$0xff]  ;;  %v52_v17 = vld [vmem:[%s4404_s1 + $0xa8] sm:$0xff]  ;;  %1597 = vmatpush1.bf16.msra.mxu0 %v2800_v5  ;;  %1679 = vmatpush1.bf16.msra.mxu1 %v2802_v9  ;;  %v2810_v19 = vcombine.low %v40_v11, %v44_v12  ;;  %v3436_v56 = vsub.s32 %v298_v46, %v3421_v47 }
   0x7   :  { %1598 = vmatprep.subr.bf16.mxu0 %v2809_v10  ;;  %v2817_v20 = vcombine.high %v47_v13, %v51_v15  ;;  %1680 = vmatprep.subr.bf16.mxu1 %v2811_v14  ;;  %v2819_v21 = vcombine.high %v48_v16, %v52_v17  ;;  %v55_v22 = vld [vmem:[%s4404_s1 + $0xc0] sm:$0xff]  ;;  %v56_v24 = vld [vmem:[%s4404_s1 + $0xc8] sm:$0xff]  ;;  %v2816_v26 = vcombine.low %v47_v13, %v51_v15 }
   0x8   :  { %v59_v23 = vld [vmem:[%s4404_s1 + $0xe0] sm:$0xff]  ;;  %v60_v25 = vld [vmem:[%s4404_s1 + $0xe8] sm:$0xff]  ;;  %v2818_v27 = vcombine.low %v48_v16, %v52_v17 }
   0x9   :  { %v2825_v28 = vcombine.high %v55_v22, %v59_v23  ;;  %v2827_v29 = vcombine.high %v56_v24, %v60_v25  ;;  %v63_v30 = vld [vmem:[%s4404_s1 + $0x100] sm:$0xff]  ;;  %v64_v32 = vld [vmem:[%s4404_s1 + $0x108] sm:$0xff]  ;;  %v2824_v34 = vcombine.low %v55_v22, %v59_v23  ;;  %v2826_v38 = vcombine.low %v56_v24, %v60_v25 }
   0xa   :  { %1599 = vmatpush1.bf16.msra.mxu0 %v2808_v18  ;;  %1681 = vmatpush1.bf16.msra.mxu1 %v2810_v19  ;;  %v67_v31 = vld [vmem:[%s4404_s1 + $0x120] sm:$0xff]  ;;  %v68_v33 = vld [vmem:[%s4404_s1 + $0x128] sm:$0xff] }
   0xb   :  { %1600 = vmatprep.subr.bf16.mxu0 %v2817_v20  ;;  %1682 = vmatprep.subr.bf16.mxu1 %v2819_v21  ;;  %v2833_v39 = vcombine.high %v63_v30, %v67_v31  ;;  %v2835_v40 = vcombine.high %v64_v32, %v68_v33  ;;  %v71_v41 = vld [vmem:[%s4404_s1 + $0x140] sm:$0xff]  ;;  %v72_v43 = vld [vmem:[%s4404_s1 + $0x148] sm:$0xff]  ;;  %v2832_v45 = vcombine.low %v63_v30, %v67_v31 }
   0xc   :  { %v75_v42 = vld [vmem:[%s4404_s1 + $0x160] sm:$0xff]  ;;  %v76_v44 = vld [vmem:[%s4404_s1 + $0x168] sm:$0xff]  ;;  %v2834_v48 = vcombine.low %v64_v32, %v68_v33 }
   0xd   :  { %v2841_v49 = vcombine.high %v71_v41, %v75_v42  ;;  %v2843_v50 = vcombine.high %v72_v43, %v76_v44  ;;  %v79_v51 = vld [vmem:[%s4404_s1 + $0x180] sm:$0xff]  ;;  %v80_v53 = vld [vmem:[%s4404_s1 + $0x188] sm:$0xff]  ;;  %v2840_v55 = vcombine.low %v71_v41, %v75_v42  ;;  %v2842_v57 = vcombine.low %v72_v43, %v76_v44 }
   0xe   :  { %1601 = vmatpush1.bf16.msra.mxu0 %v2816_v26  ;;  %1683 = vmatpush1.bf16.msra.mxu1 %v2818_v27  ;;  %v83_v52 = vld [vmem:[%s4404_s1 + $0x1a0] sm:$0xff]  ;;  %v84_v54 = vld [vmem:[%s4404_s1 + $0x1a8] sm:$0xff] }
   0xf   :  { %1602 = vmatprep.subr.bf16.mxu0 %v2825_v28  ;;  %1684 = vmatprep.subr.bf16.mxu1 %v2827_v29  ;;  %v2849_v58 = vcombine.high %v79_v51, %v83_v52  ;;  %v3441_v59 = vld.sshfl [vmem:[%s4403_s0] sm:$0x33 pattern:$0x75316420]  ;;  %v2851_v60 = vcombine.high %v80_v53, %v84_v54  ;;  %v88_v0 = vld [vmem:[%s4404_s1 + $0x1c8] sm:$0xff]  ;;  %v2848_v2 = vcombine.low %v79_v51, %v83_v52 }
  0x10   :  { %v87_v61 = vld [vmem:[%s4404_s1 + $0x1c0] sm:$0xff]  ;;  %v295_v63 = vcombine.high %v3441_v59, %v3441_v59  ;;  %v92_v1 = vld [vmem:[%s4404_s1 + $0x1e8] sm:$0xff]  ;;  %v2850_v4 = vcombine.low %v80_v53, %v84_v54 }
  0x11   :  { %v91_v62 = vld [vmem:[%s4404_s1 + $0x1e0] sm:$0xff]  ;;  %v2859_v6 = vcombine.high %v88_v0, %v92_v1  ;;  %v96_v9 = vld [vmem:[%s4404_s1 + $0x208] sm:$0xff]  ;;  %v2858_v12 = vcombine.low %v88_v0, %v92_v1 }
  0x12   :  { %1603 = vmatpush1.bf16.msra.mxu0 %v2824_v34  ;;  %1685 = vmatpush1.bf16.msra.mxu1 %v2826_v38  ;;  %v3458_v3 = vrot.slane %v295_v63, %v3436_v56  ;;  %v2857_v5 = vcombine.high %v87_v61, %v91_v62  ;;  %v95_v7 = vld [vmem:[%s4404_s1 + $0x200] sm:$0xff]  ;;  %v100_v10 = vld [vmem:[%s4404_s1 + $0x228] sm:$0xff]  ;;  %v2856_v11 = vcombine.low %v87_v61, %v91_v62 }
  0x13   :  { %1604 = vmatprep.subr.bf16.mxu0 %v2833_v39  ;;  %1686 = vmatprep.subr.bf16.mxu1 %v2835_v40  ;;  %v99_v8 = vld [vmem:[%s4404_s1 + $0x220] sm:$0xff]  ;;  %v2867_v14 = vcombine.high %v96_v9, %v100_v10  ;;  %v104_v17 = vld [vmem:[%s4404_s1 + $0x248] sm:$0xff]  ;;  %v2866_v20 = vcombine.low %v96_v9, %v100_v10 }
  0x14   :  { %1628 = vmatprep.mubr.bf16.mxu0 %v3458_v3  ;;  %1710 = vmatprep.mubr.bf16.mxu1 %v3458_v3  ;;  %v2865_v13 = vcombine.high %v95_v7, %v99_v8  ;;  %v103_v15 = vld [vmem:[%s4404_s1 + $0x240] sm:$0xff]  ;;  %v108_v18 = vld [vmem:[%s4404_s1 + $0x268] sm:$0xff]  ;;  %v2864_v19 = vcombine.low %v95_v7, %v99_v8 }
  0x15   :  { %v107_v16 = vld [vmem:[%s4404_s1 + $0x260] sm:$0xff]  ;;  %v2875_v22 = vcombine.high %v104_v17, %v108_v18  ;;  %v112_v25 = vld [vmem:[%s4404_s1 + $0x288] sm:$0xff]  ;;  %v2874_v28 = vcombine.low %v104_v17, %v108_v18 }
  0x16   :  { %1605 = vmatpush1.bf16.msra.mxu0 %v2832_v45  ;;  %1687 = vmatpush1.bf16.msra.mxu1 %v2834_v48  ;;  %v2873_v21 = vcombine.high %v103_v15, %v107_v16  ;;  %v111_v23 = vld [vmem:[%s4404_s1 + $0x280] sm:$0xff]  ;;  %v116_v26 = vld [vmem:[%s4404_s1 + $0x2a8] sm:$0xff]  ;;  %v2872_v27 = vcombine.low %v103_v15, %v107_v16 }
  0x17   :  { %1606 = vmatprep.subr.bf16.mxu0 %v2841_v49  ;;  %1688 = vmatprep.subr.bf16.mxu1 %v2843_v50  ;;  %v115_v24 = vld [vmem:[%s4404_s1 + $0x2a0] sm:$0xff]  ;;  %v2883_v30 = vcombine.high %v112_v25, %v116_v26  ;;  %v120_v33 = vld [vmem:[%s4404_s1 + $0x2c8] sm:$0xff]  ;;  %v2882_v36 = vcombine.low %v112_v25, %v116_v26 }
  0x18   :  { %v2881_v29 = vcombine.high %v111_v23, %v115_v24  ;;  %v119_v31 = vld [vmem:[%s4404_s1 + $0x2c0] sm:$0xff]  ;;  %v124_v34 = vld [vmem:[%s4404_s1 + $0x2e8] sm:$0xff]  ;;  %v2880_v35 = vcombine.low %v111_v23, %v115_v24 }
  0x19   :  { %v123_v32 = vld [vmem:[%s4404_s1 + $0x2e0] sm:$0xff]  ;;  %v2891_v38 = vcombine.high %v120_v33, %v124_v34  ;;  %v128_v41 = vld [vmem:[%s4404_s1 + $0x308] sm:$0xff]  ;;  %v2890_v44 = vcombine.low %v120_v33, %v124_v34 }
  0x1a   :  { %1607 = vmatpush1.bf16.msra.mxu0 %v2840_v55  ;;  %1689 = vmatpush1.bf16.msra.mxu1 %v2842_v57  ;;  %v2889_v37 = vcombine.high %v119_v31, %v123_v32  ;;  %v127_v39 = vld [vmem:[%s4404_s1 + $0x300] sm:$0xff]  ;;  %v132_v42 = vld [vmem:[%s4404_s1 + $0x328] sm:$0xff]  ;;  %v2888_v43 = vcombine.low %v119_v31, %v123_v32 }
  0x1b   :  { %1608 = vmatprep.subr.bf16.mxu0 %v2849_v58  ;;  %1690 = vmatprep.subr.bf16.mxu1 %v2851_v60  ;;  %v131_v40 = vld [vmem:[%s4404_s1 + $0x320] sm:$0xff]  ;;  %v2899_v46 = vcombine.high %v128_v41, %v132_v42  ;;  %v136_v50 = vld [vmem:[%s4404_s1 + $0x348] sm:$0xff]  ;;  %v2898_v53 = vcombine.low %v128_v41, %v132_v42 }
  0x1c   :  { %v2897_v45 = vcombine.high %v127_v39, %v131_v40  ;;  %v135_v48 = vld [vmem:[%s4404_s1 + $0x340] sm:$0xff]  ;;  %v140_v51 = vld [vmem:[%s4404_s1 + $0x368] sm:$0xff]  ;;  %v2896_v52 = vcombine.low %v127_v39, %v131_v40 }
  0x1d   :  { %v139_v49 = vld [vmem:[%s4404_s1 + $0x360] sm:$0xff]  ;;  %v2907_v55 = vcombine.high %v136_v50, %v140_v51  ;;  %v144_v60 = vld [vmem:[%s4404_s1 + $0x388] sm:$0xff]  ;;  %v2906_v63 = vcombine.low %v136_v50, %v140_v51 }
  0x1e   :  { %1609 = vmatpush1.bf16.msra.mxu0 %v2848_v2  ;;  %1691 = vmatpush1.bf16.msra.mxu1 %v2850_v4  ;;  %v2905_v54 = vcombine.high %v135_v48, %v139_v49  ;;  %v143_v57 = vld [vmem:[%s4404_s1 + $0x380] sm:$0xff]  ;;  %v148_v61 = vld [vmem:[%s4404_s1 + $0x3a8] sm:$0xff]  ;;  %v2904_v62 = vcombine.low %v135_v48, %v139_v49 }
  0x1f   :  { %1610 = vmatprep.subr.bf16.mxu0 %v2857_v5  ;;  %1692 = vmatprep.subr.bf16.mxu1 %v2859_v6  ;;  %v147_v58 = vld [vmem:[%s4404_s1 + $0x3a0] sm:$0xff]  ;;  %v2915_v1 = vcombine.high %v144_v60, %v148_v61  ;;  %v152_v5 = vld [vmem:[%s4404_s1 + $0x3c8] sm:$0xff]  ;;  %v2914_v8 = vcombine.low %v144_v60, %v148_v61 }
  0x20   :  { %v2913_v0 = vcombine.high %v143_v57, %v147_v58  ;;  %v151_v2 = vld [vmem:[%s4404_s1 + $0x3c0] sm:$0xff]  ;;  %v156_v6 = vld [vmem:[%s4404_s1 + $0x3e8] sm:$0xff]  ;;  %v2912_v7 = vcombine.low %v143_v57, %v147_v58 }
  0x21   :  { %v155_v4 = vld [vmem:[%s4404_s1 + $0x3e0] sm:$0xff]  ;;  %v2923_v10 = vcombine.high %v152_v5, %v156_v6  ;;  %v2922_v16 = vcombine.low %v152_v5, %v156_v6  ;;  %v172_v23 = vld [vmem:[%s4404_s1 + $0x468] sm:$0xff] }
  0x22   :  { %1611 = vmatpush1.bf16.msra.mxu0 %v2856_v11  ;;  %1693 = vmatpush1.bf16.msra.mxu1 %v2858_v12  ;;  %v2921_v9 = vcombine.high %v151_v2, %v155_v4  ;;  %v159_v11 = vld [vmem:[%s4404_s1 + $0x400] sm:$0xff]  ;;  %v2920_v15 = vcombine.low %v151_v2, %v155_v4 }
  0x23   :  { %1612 = vmatprep.subr.bf16.mxu0 %v2865_v13  ;;  %1694 = vmatprep.subr.bf16.mxu1 %v2867_v14  ;;  %v163_v12 = vld [vmem:[%s4404_s1 + $0x420] sm:$0xff]  ;;  %v160_v13 = vld [vmem:[%s4404_s1 + $0x408] sm:$0xff] }
  0x24   :  { %v164_v14 = vld [vmem:[%s4404_s1 + $0x428] sm:$0xff]  ;;  %v2929_v17 = vcombine.high %v159_v11, %v163_v12  ;;  %v2928_v24 = vcombine.low %v159_v11, %v163_v12  ;;  %v183_v34 = vld [vmem:[%s4404_s1 + $0x4c0] sm:$0xff] }
  0x25   :  { %v2931_v18 = vcombine.high %v160_v13, %v164_v14  ;;  %v2930_v25 = vcombine.low %v160_v13, %v164_v14  ;;  %v191_v42 = vld [vmem:[%s4404_s1 + $0x500] sm:$0xff] }
  0x26   :  { %1613 = vmatpush1.bf16.msra.mxu0 %v2864_v19  ;;  %1695 = vmatpush1.bf16.msra.mxu1 %v2866_v20  ;;  %v167_v19 = vld [vmem:[%s4404_s1 + $0x440] sm:$0xff] }
  0x27   :  { %1614 = vmatprep.subr.bf16.mxu0 %v2873_v21  ;;  %1696 = vmatprep.subr.bf16.mxu1 %v2875_v22  ;;  %v171_v20 = vld [vmem:[%s4404_s1 + $0x460] sm:$0xff]  ;;  %v3578_v21 = vrot.slane %v3441_v59, %v3436_v56  ;;  %v168_v22 = vld [vmem:[%s4404_s1 + $0x448] sm:$0xff] }
  0x28   :  { %v2937_v26 = vcombine.high %v167_v19, %v171_v20  ;;  %v179_v56 = vld [vmem:[%s4404_s1 + $0x4a0] sm:$0xff]  ;;  %v176_v59 = vld [vmem:[%s4404_s1 + $0x488] sm:$0xff]  ;;  %v2936_v31 = vcombine.low %v167_v19, %v171_v20  ;;  %v2938_v32 = vcombine.low %v168_v22, %v172_v23 }
  0x29   :  { %v199_v51 = vld [vmem:[%s4404_s1 + $0x540] sm:$0xff] }
  0x2a   :  { %1615 = vmatpush1.bf16.msra.mxu0 %v2872_v27  ;;  %1697 = vmatpush1.bf16.msra.mxu1 %v2874_v28  ;;  %v175_v27 = vld [vmem:[%s4404_s1 + $0x480] sm:$0xff]  ;;  %v2939_v28 = vcombine.high %v168_v22, %v172_v23 }
  0x2b   :  { %1616 = vmatprep.subr.bf16.mxu0 %v2881_v29  ;;  %1698 = vmatprep.subr.bf16.mxu1 %v2883_v30  ;;  %v180_v29 = vld [vmem:[%s4404_s1 + $0x4a8] sm:$0xff]  ;;  %v3600_v30 = vcombine.high %v3458_v3, %v3458_v3  ;;  %v2945_v33 = vcombine.high %v175_v27, %v179_v56  ;;  %v2944_v39 = vcombine.low %v175_v27, %v179_v56  ;;  %v207_v61 = vld [vmem:[%s4404_s1 + $0x580] sm:$0xff] }
  0x2c   :  { %v2946_v40 = vcombine.low %v176_v59, %v180_v29  ;;  %v215_v6 = vld [vmem:[%s4404_s1 + $0x5c0] sm:$0xff]  ;;  %v236_v27 = vld [vmem:[%s4404_s1 + $0x668] sm:$0xff] }
  0x2d   :  { %v223_v14 = vld [vmem:[%s4404_s1 + $0x600] sm:$0xff] }
  0x2e   :  { %1617 = vmatpush1.bf16.msra.mxu0 %v2880_v35  ;;  %1699 = vmatpush1.bf16.msra.mxu1 %v2882_v36  ;;  %v187_v35 = vld [vmem:[%s4404_s1 + $0x4e0] sm:$0xff]  ;;  %v184_v36 = vld [vmem:[%s4404_s1 + $0x4c8] sm:$0xff] }
  0x2f   :  { %1618 = vmatprep.subr.bf16.mxu0 %v2889_v37  ;;  %1700 = vmatprep.subr.bf16.mxu1 %v2891_v38  ;;  %v2947_v37 = vcombine.high %v176_v59, %v180_v29  ;;  %v188_v38 = vld [vmem:[%s4404_s1 + $0x4e8] sm:$0xff]  ;;  %v2953_v41 = vcombine.high %v183_v34, %v187_v35  ;;  %v2952_v48 = vcombine.low %v183_v34, %v187_v35  ;;  %v231_v23 = vld [vmem:[%s4404_s1 + $0x640] sm:$0xff] }
  0x30   :  { %v2954_v49 = vcombine.low %v184_v36, %v188_v38  ;;  %v239_v29 = vld [vmem:[%s4404_s1 + $0x680] sm:$0xff]  ;;  %v244_v34 = vld [vmem:[%s4404_s1 + $0x6a8] sm:$0xff] }
  0x32   :  { %1619 = vmatpush1.bf16.msra.mxu0 %v2888_v43  ;;  %1701 = vmatpush1.bf16.msra.mxu1 %v2890_v44  ;;  %v195_v43 = vld [vmem:[%s4404_s1 + $0x520] sm:$0xff]  ;;  %v192_v44 = vld [vmem:[%s4404_s1 + $0x508] sm:$0xff] }
  0x33   :  { %1620 = vmatprep.subr.bf16.mxu0 %v2897_v45  ;;  %1702 = vmatprep.subr.bf16.mxu1 %v2899_v46  ;;  %v2955_v45 = vcombine.high %v184_v36, %v188_v38  ;;  %v196_v46 = vld [vmem:[%s4404_s1 + $0x528] sm:$0xff]  ;;  %v2961_v50 = vcombine.high %v191_v42, %v195_v43  ;;  %v2960_v57 = vcombine.low %v191_v42, %v195_v43  ;;  %v247_v38 = vld [vmem:[%s4404_s1 + $0x6c0] sm:$0xff] }
  0x34   :  { %v2962_v58 = vcombine.low %v192_v44, %v196_v46  ;;  %v252_v42 = vld [vmem:[%s4404_s1 + $0x6e8] sm:$0xff] }
  0x36   :  { %1621 = vmatpush1.bf16.msra.mxu0 %v2896_v52  ;;  %1703 = vmatpush1.bf16.msra.mxu1 %v2898_v53  ;;  %v203_v52 = vld [vmem:[%s4404_s1 + $0x560] sm:$0xff]  ;;  %v200_v53 = vld [vmem:[%s4404_s1 + $0x548] sm:$0xff] }
  0x37   :  { %1622 = vmatprep.subr.bf16.mxu0 %v2905_v54  ;;  %1704 = vmatprep.subr.bf16.mxu1 %v2907_v55  ;;  %v2963_v54 = vcombine.high %v192_v44, %v196_v46  ;;  %v204_v55 = vld [vmem:[%s4404_s1 + $0x568] sm:$0xff]  ;;  %v2969_v60 = vcombine.high %v199_v51, %v203_v52  ;;  %v2968_v2 = vcombine.low %v199_v51, %v203_v52  ;;  %v255_v46 = vld [vmem:[%s4404_s1 + $0x700] sm:$0xff] }
  0x38   :  { %v2970_v4 = vcombine.low %v200_v53, %v204_v55  ;;  %v260_v51 = vld [vmem:[%s4404_s1 + $0x728] sm:$0xff] }
  0x3a   :  { %1623 = vmatpush1.bf16.msra.mxu0 %v2904_v62  ;;  %1705 = vmatpush1.bf16.msra.mxu1 %v2906_v63  ;;  %v211_v62 = vld [vmem:[%s4404_s1 + $0x5a0] sm:$0xff]  ;;  %v208_v63 = vld [vmem:[%s4404_s1 + $0x588] sm:$0xff] }
  0x3b   :  { %1624 = vmatprep.subr.bf16.mxu0 %v2913_v0  ;;  %1706 = vmatprep.subr.bf16.mxu1 %v2915_v1  ;;  %v2971_v0 = vcombine.high %v200_v53, %v204_v55  ;;  %v212_v1 = vld [vmem:[%s4404_s1 + $0x5a8] sm:$0xff]  ;;  %v2977_v5 = vcombine.high %v207_v61, %v211_v62  ;;  %v2976_v11 = vcombine.low %v207_v61, %v211_v62  ;;  %v263_v55 = vld [vmem:[%s4404_s1 + $0x740] sm:$0xff] }
  0x3c   :  { %v2978_v12 = vcombine.low %v208_v63, %v212_v1  ;;  %v268_v61 = vld [vmem:[%s4404_s1 + $0x768] sm:$0xff] }
  0x3e   :  { %1625 = vmatpush1.bf16.msra.mxu0 %v2912_v7  ;;  %1707 = vmatpush1.bf16.msra.mxu1 %v2914_v8  ;;  %v219_v7 = vld [vmem:[%s4404_s1 + $0x5e0] sm:$0xff]  ;;  %v216_v8 = vld [vmem:[%s4404_s1 + $0x5c8] sm:$0xff] }
  0x3f   :  { %1626 = vmatprep.subr.bf16.mxu0 %v2921_v9  ;;  %1708 = vmatprep.subr.bf16.mxu1 %v2923_v10  ;;  %v2979_v9 = vcombine.high %v208_v63, %v212_v1  ;;  %v220_v10 = vld [vmem:[%s4404_s1 + $0x5e8] sm:$0xff]  ;;  %v2985_v13 = vcombine.high %v215_v6, %v219_v7  ;;  %v2984_v19 = vcombine.low %v215_v6, %v219_v7  ;;  %v271_v1 = vld [vmem:[%s4404_s1 + $0x780] sm:$0xff] }
  0x40   :  { %v2986_v20 = vcombine.low %v216_v8, %v220_v10  ;;  %v276_v6 = vld [vmem:[%s4404_s1 + $0x7a8] sm:$0xff] }
  0x42   :  { %1627 = vmatpush1.bf16.msra.mxu0 %v2920_v15  ;;  %1709 = vmatpush1.bf16.msra.mxu1 %v2922_v16  ;;  %v227_v15 = vld [vmem:[%s4404_s1 + $0x620] sm:$0xff]  ;;  %v224_v16 = vld [vmem:[%s4404_s1 + $0x608] sm:$0xff] }
  0x43   :  { %1637 = vmatprep.subr.bf16.mxu0 %v2929_v17  ;;  %1719 = vmatprep.subr.bf16.mxu1 %v2931_v18  ;;  %v2987_v17 = vcombine.high %v216_v8, %v220_v10  ;;  %v228_v18 = vld [vmem:[%s4404_s1 + $0x628] sm:$0xff]  ;;  %v2993_v22 = vcombine.high %v223_v14, %v227_v15  ;;  %v2992_v56 = vcombine.low %v223_v14, %v227_v15  ;;  %v279_v10 = vld [vmem:[%s4404_s1 + $0x7c0] sm:$0xff] }
  0x44   :  { %v2994_v59 = vcombine.low %v224_v16, %v228_v18  ;;  %v284_v14 = vld [vmem:[%s4404_s1 + $0x7e8] sm:$0xff] }
  0x45   :  { %1629 = vmatmul.mubr.bf16.vlgmr.msra.gmra.mrb[0].mxu0 %v3578_v21  ;;  %1711 = vmatmul.mubr.bf16.vlgmr.msra.gmra.mrb[0].mxu1 %v3578_v21 }
  0x46   :  { %1638 = vmatpush1.bf16.msra.mxu0 %v2928_v24  ;;  %1720 = vmatpush1.bf16.msra.mxu1 %v2930_v25  ;;  %v235_v24 = vld [vmem:[%s4404_s1 + $0x660] sm:$0xff]  ;;  %v232_v25 = vld [vmem:[%s4404_s1 + $0x648] sm:$0xff] }
  0x47   :  { %1639 = vmatprep.subr.bf16.mxu0 %v2937_v26  ;;  %1721 = vmatprep.subr.bf16.mxu1 %v2939_v28  ;;  %v2995_v26 = vcombine.high %v224_v16, %v228_v18  ;;  %v3001_v28 = vcombine.high %v231_v23, %v235_v24  ;;  %v3000_v35 = vcombine.low %v231_v23, %v235_v24  ;;  %v33_v18 = vld [vmem:[%s4404_s1 + $0x10] sm:$0xff]  ;;  %v38_v23 = vld [vmem:[%s4404_s1 + $0x38] sm:$0xff] }
  0x48   :  { %1669 = vmatprep.mubr.bf16.mxu0 %v3600_v30  ;;  %1751 = vmatprep.mubr.bf16.mxu1 %v3600_v30  ;;  %v3002_v36 = vcombine.low %v232_v25, %v236_v27 }
  0x4a   :  { %1640 = vmatpush1.bf16.msra.mxu0 %v2936_v31  ;;  %1722 = vmatpush1.bf16.msra.mxu1 %v2938_v32  ;;  %v243_v31 = vld [vmem:[%s4404_s1 + $0x6a0] sm:$0xff]  ;;  %v240_v32 = vld [vmem:[%s4404_s1 + $0x688] sm:$0xff] }
  0x4b   :  { %1641 = vmatprep.subr.bf16.mxu0 %v2945_v33  ;;  %1723 = vmatprep.subr.bf16.mxu1 %v2947_v37  ;;  %v3003_v33 = vcombine.high %v232_v25, %v236_v27  ;;  %v3009_v37 = vcombine.high %v239_v29, %v243_v31  ;;  %v3008_v43 = vcombine.low %v239_v29, %v243_v31  ;;  %v41_v27 = vld [vmem:[%s4404_s1 + $0x50] sm:$0xff]  ;;  %v46_v29 = vld [vmem:[%s4404_s1 + $0x78] sm:$0xff] }
  0x4c   :  { %v3010_v44 = vcombine.low %v240_v32, %v244_v34  ;;  %v3788_v31 = vcombine.high %v3578_v21, %v3578_v21 }
  0x4e   :  { %1642 = vmatpush1.bf16.msra.mxu0 %v2944_v39  ;;  %1724 = vmatpush1.bf16.msra.mxu1 %v2946_v40  ;;  %v251_v39 = vld [vmem:[%s4404_s1 + $0x6e0] sm:$0xff]  ;;  %v248_v40 = vld [vmem:[%s4404_s1 + $0x6c8] sm:$0xff] }
  0x4f   :  { %1643 = vmatprep.subr.bf16.mxu0 %v2953_v41  ;;  %1725 = vmatprep.subr.bf16.mxu1 %v2955_v45  ;;  %v3011_v41 = vcombine.high %v240_v32, %v244_v34  ;;  %v3017_v45 = vcombine.high %v247_v38, %v251_v39  ;;  %v3016_v52 = vcombine.low %v247_v38, %v251_v39 }
  0x50   :  { %v3018_v53 = vcombine.low %v248_v40, %v252_v42 }
  0x52   :  { %1644 = vmatpush1.bf16.msra.mxu0 %v2952_v48  ;;  %1726 = vmatpush1.bf16.msra.mxu1 %v2954_v49  ;;  %v259_v48 = vld [vmem:[%s4404_s1 + $0x720] sm:$0xff]  ;;  %v256_v49 = vld [vmem:[%s4404_s1 + $0x708] sm:$0xff] }
  0x53   :  { %1645 = vmatprep.subr.bf16.mxu0 %v2961_v50  ;;  %1727 = vmatprep.subr.bf16.mxu1 %v2963_v54  ;;  %v3019_v50 = vcombine.high %v248_v40, %v252_v42  ;;  %v3025_v54 = vcombine.high %v255_v46, %v259_v48  ;;  %v3024_v62 = vcombine.low %v255_v46, %v259_v48 }
  0x54   :  { %v3026_v63 = vcombine.low %v256_v49, %v260_v51 }
  0x56   :  { %1646 = vmatpush1.bf16.msra.mxu0 %v2960_v57  ;;  %1728 = vmatpush1.bf16.msra.mxu1 %v2962_v58  ;;  %v267_v57 = vld [vmem:[%s4404_s1 + $0x760] sm:$0xff]  ;;  %v264_v58 = vld [vmem:[%s4404_s1 + $0x748] sm:$0xff] }
  0x57   :  { %1647 = vmatprep.subr.bf16.mxu0 %v2969_v60  ;;  %1729 = vmatprep.subr.bf16.mxu1 %v2971_v0  ;;  %v3027_v60 = vcombine.high %v256_v49, %v260_v51  ;;  %v3033_v0 = vcombine.high %v263_v55, %v267_v57  ;;  %v3032_v7 = vcombine.low %v263_v55, %v267_v57 }
  0x58   :  { %v3034_v8 = vcombine.low %v264_v58, %v268_v61 }
  0x5a   :  { %1648 = vmatpush1.bf16.msra.mxu0 %v2968_v2  ;;  %1730 = vmatpush1.bf16.msra.mxu1 %v2970_v4  ;;  %v275_v2 = vld [vmem:[%s4404_s1 + $0x7a0] sm:$0xff]  ;;  %v272_v4 = vld [vmem:[%s4404_s1 + $0x788] sm:$0xff] }
  0x5b   :  { %1649 = vmatprep.subr.bf16.mxu0 %v2977_v5  ;;  %1731 = vmatprep.subr.bf16.mxu1 %v2979_v9  ;;  %v3035_v5 = vcombine.high %v264_v58, %v268_v61  ;;  %v3041_v9 = vcombine.high %v271_v1, %v275_v2  ;;  %v3040_v15 = vcombine.low %v271_v1, %v275_v2 }
  0x5c   :  { %v3042_v16 = vcombine.low %v272_v4, %v276_v6 }
  0x5e   :  { %1650 = vmatpush1.bf16.msra.mxu0 %v2976_v11  ;;  %1732 = vmatpush1.bf16.msra.mxu1 %v2978_v12  ;;  %v283_v11 = vld [vmem:[%s4404_s1 + $0x7e0] sm:$0xff]  ;;  %v280_v12 = vld [vmem:[%s4404_s1 + $0x7c8] sm:$0xff] }
  0x5f   :  { %1651 = vmatprep.subr.bf16.mxu0 %v2985_v13  ;;  %1733 = vmatprep.subr.bf16.mxu1 %v2987_v17  ;;  %v3043_v13 = vcombine.high %v272_v4, %v276_v6  ;;  %v3049_v17 = vcombine.high %v279_v10, %v283_v11  ;;  %v3048_v24 = vcombine.low %v279_v10, %v283_v11 }
  0x60   :  { %v3050_v25 = vcombine.low %v280_v12, %v284_v14 }
  0x62   :  { %1652 = vmatpush1.bf16.msra.mxu0 %v2984_v19  ;;  %1734 = vmatpush1.bf16.msra.mxu1 %v2986_v20  ;;  %v37_v19 = vld [vmem:[%s4404_s1 + $0x30] sm:$0xff]  ;;  %v34_v20 = vld [vmem:[%s4404_s1 + $0x18] sm:$0xff] }
  0x63   :  { %1653 = vmatprep.subr.bf16.mxu0 %v2993_v22  ;;  %1735 = vmatprep.subr.bf16.mxu1 %v2995_v26  ;;  %v3051_v22 = vcombine.high %v280_v12, %v284_v14  ;;  %v2805_v26 = vcombine.high %v33_v18, %v37_v19  ;;  %v2804_v32 = vcombine.low %v33_v18, %v37_v19 }
  0x66   :  { %1654 = vmatpush1.bf16.msra.mxu0 %v2992_v56  ;;  %1736 = vmatpush1.bf16.msra.mxu1 %v2994_v59  ;;  %v45_v56 = vld [vmem:[%s4404_s1 + $0x70] sm:$0xff]  ;;  %v42_v59 = vld [vmem:[%s4404_s1 + $0x58] sm:$0xff] }
  0x67   :  { %1655 = vmatprep.subr.bf16.mxu0 %v3001_v28  ;;  %1737 = vmatprep.subr.bf16.mxu1 %v3003_v33  ;;  %v2807_v28 = vcombine.high %v34_v20, %v38_v23 }
  0x6a   :  { %1656 = vmatpush1.bf16.msra.mxu0 %v3000_v35  ;;  %1738 = vmatpush1.bf16.msra.mxu1 %v3002_v36 }
  0x6b   :  { %1657 = vmatprep.subr.bf16.mxu0 %v3009_v37  ;;  %1739 = vmatprep.subr.bf16.mxu1 %v3011_v41 }
  0x6e   :  { %1658 = vmatpush1.bf16.msra.mxu0 %v3008_v43  ;;  %1740 = vmatpush1.bf16.msra.mxu1 %v3010_v44 }
  0x6f   :  { %1659 = vmatprep.subr.bf16.mxu0 %v3017_v45  ;;  %1741 = vmatprep.subr.bf16.mxu1 %v3019_v50 }
  0x72   :  { %1660 = vmatpush1.bf16.msra.mxu0 %v3016_v52  ;;  %1742 = vmatpush1.bf16.msra.mxu1 %v3018_v53 }
  0x73   :  { %1661 = vmatprep.subr.bf16.mxu0 %v3025_v54  ;;  %1743 = vmatprep.subr.bf16.mxu1 %v3027_v60 }
  0x76   :  { %1662 = vmatpush1.bf16.msra.mxu0 %v3024_v62  ;;  %1744 = vmatpush1.bf16.msra.mxu1 %v3026_v63 }
  0x77   :  { %1663 = vmatprep.subr.bf16.mxu0 %v3033_v0  ;;  %1745 = vmatprep.subr.bf16.mxu1 %v3035_v5 }
  0x7a   :  { %1664 = vmatpush1.bf16.msra.mxu0 %v3032_v7  ;;  %1746 = vmatpush1.bf16.msra.mxu1 %v3034_v8 }
  0x7b   :  { %1665 = vmatprep.subr.bf16.mxu0 %v3041_v9  ;;  %1747 = vmatprep.subr.bf16.mxu1 %v3043_v13 }
  0x7e   :  { %1666 = vmatpush1.bf16.msra.mxu0 %v3040_v15  ;;  %1748 = vmatpush1.bf16.msra.mxu1 %v3042_v16 }
  0x7f   :  { %1667 = vmatprep.subr.bf16.mxu0 %v3049_v17  ;;  %1749 = vmatprep.subr.bf16.mxu1 %v3051_v22 }
  0x82   :  { %1668 = vmatpush1.bf16.msra.mxu0 %v3048_v24 }
  0x83   :  { %10 = vsyncpa [#allocation4], 0  ;;  %1750 = vmatpush1.bf16.msra.mxu1 %v3050_v25  ;;  %1760 = vmatprep.subr.bf16.mxu0 %v2805_v26  ;;  %v2806_v33 = vcombine.low %v34_v20, %v38_v23  ;;  %v2813_v34 = vcombine.high %v41_v27, %v45_v56  ;;  %v2815_v35 = vcombine.high %v42_v59, %v46_v29  ;;  %v49_v36 = vld [vmem:[%s4404_s1 + $0x90] sm:$0xff]  ;;  %v50_v38 = vld [vmem:[%s4404_s1 + $0x98] sm:$0xff]  ;;  %s3318_s0 = smov [#allocation3]  }
  0x84   :  { %1842 = vmatprep.subr.bf16.mxu1 %v2807_v28  ;;  %v53_v37 = vld [vmem:[%s4404_s1 + $0xb0] sm:$0xff]  ;;  %v54_v39 = vld [vmem:[%s4404_s1 + $0xb8] sm:$0xff]  ;;  %v2812_v40 = vcombine.low %v41_v27, %v45_v56  ;;  %v2814_v41 = vcombine.low %v42_v59, %v46_v29 }
  0x85   :  { %1670 = vmatmul.mubr.bf16.vlgmr.msra.gmra.mrb[0].mxu0 %v3788_v31  ;;  %v2821_v42 = vcombine.high %v49_v36, %v53_v37  ;;  %v2823_v43 = vcombine.high %v50_v38, %v54_v39  ;;  %v57_v44 = vld [vmem:[%s4404_s1 + $0xd0] sm:$0xff]  ;;  %v58_v46 = vld [vmem:[%s4404_s1 + $0xd8] sm:$0xff]  ;;  %v2820_v49 = vcombine.low %v49_v36, %v53_v37  ;;  %v2822_v50 = vcombine.low %v50_v38, %v54_v39 }
  0x86   :  { %1752 = vmatmul.mubr.bf16.vlgmr.msra.gmra.mrb[0].mxu1 %v3788_v31  ;;  %1761 = vmatpush1.bf16.msra.mxu0 %v2804_v32  ;;  %v61_v45 = vld [vmem:[%s4404_s1 + $0xf0] sm:$0xff]  ;;  %v62_v48 = vld [vmem:[%s4404_s1 + $0xf8] sm:$0xff] }
  0x87   :  { %1843 = vmatpush1.bf16.msra.mxu1 %v2806_v33  ;;  %1762 = vmatprep.subr.bf16.mxu0 %v2813_v34  ;;  %v2829_v51 = vcombine.high %v57_v44, %v61_v45  ;;  %v2831_v52 = vcombine.high %v58_v46, %v62_v48  ;;  %v65_v53 = vld [vmem:[%s4404_s1 + $0x110] sm:$0xff]  ;;  %v70_v55 = vld [vmem:[%s4404_s1 + $0x138] sm:$0xff]  ;;  %v2828_v57 = vcombine.low %v57_v44, %v61_v45 }
  0x88   :  { %1844 = vmatprep.subr.bf16.mxu1 %v2815_v35  ;;  %1792 = vmatprep.mubr.bf16.mxu0 %v3458_v3  ;;  %v69_v54 = vld [vmem:[%s4404_s1 + $0x130] sm:$0xff]  ;;  %v2830_v58 = vcombine.low %v58_v46, %v62_v48  ;;  %v74_v0 = vld [vmem:[%s4404_s1 + $0x158] sm:$0xff] }
  0x89   :  { %1874 = vmatprep.mubr.bf16.mxu1 %v3458_v3  ;;  %v66_v3 = vld [vmem:[%s4404_s1 + $0x118] sm:$0xff]  ;;  %v2837_v60 = vcombine.high %v65_v53, %v69_v54  ;;  %v73_v62 = vld [vmem:[%s4404_s1 + $0x150] sm:$0xff]  ;;  %v2836_v2 = vcombine.low %v65_v53, %v69_v54 }
  0x8a   :  { %1763 = vmatpush1.bf16.msra.mxu0 %v2812_v40  ;;  %v2839_v61 = vcombine.high %v66_v3, %v70_v55  ;;  %v77_v63 = vld [vmem:[%s4404_s1 + $0x170] sm:$0xff]  ;;  %v78_v1 = vld [vmem:[%s4404_s1 + $0x178] sm:$0xff]  ;;  %v2838_v4 = vcombine.low %v66_v3, %v70_v55 }
  0x8b   :  { %1845 = vmatpush1.bf16.msra.mxu1 %v2814_v41  ;;  %1764 = vmatprep.subr.bf16.mxu0 %v2821_v42  ;;  %v2845_v5 = vcombine.high %v73_v62, %v77_v63  ;;  %v2847_v6 = vcombine.high %v74_v0, %v78_v1  ;;  %v81_v7 = vld [vmem:[%s4404_s1 + $0x190] sm:$0xff]  ;;  %v82_v9 = vld [vmem:[%s4404_s1 + $0x198] sm:$0xff]  ;;  %v2844_v11 = vcombine.low %v73_v62, %v77_v63 }
  0x8c   :  { %1846 = vmatprep.subr.bf16.mxu1 %v2823_v43  ;;  %v85_v8 = vld [vmem:[%s4404_s1 + $0x1b0] sm:$0xff]  ;;  %v86_v10 = vld [vmem:[%s4404_s1 + $0x1b8] sm:$0xff]  ;;  %v2846_v12 = vcombine.low %v74_v0, %v78_v1 }
  0x8d   :  { %v2853_v13 = vcombine.high %v81_v7, %v85_v8  ;;  %v2855_v14 = vcombine.high %v82_v9, %v86_v10  ;;  %v89_v15 = vld [vmem:[%s4404_s1 + $0x1d0] sm:$0xff]  ;;  %v90_v17 = vld [vmem:[%s4404_s1 + $0x1d8] sm:$0xff]  ;;  %v2852_v19 = vcombine.low %v81_v7, %v85_v8  ;;  %v2854_v20 = vcombine.low %v82_v9, %v86_v10 }
  0x8e   :  { %1765 = vmatpush1.bf16.msra.mxu0 %v2820_v49  ;;  %v93_v16 = vld [vmem:[%s4404_s1 + $0x1f0] sm:$0xff]  ;;  %v94_v18 = vld [vmem:[%s4404_s1 + $0x1f8] sm:$0xff] }
  0x8f   :  { %1847 = vmatpush1.bf16.msra.mxu1 %v2822_v50  ;;  %1766 = vmatprep.subr.bf16.mxu0 %v2829_v51  ;;  %v2861_v22 = vcombine.high %v89_v15, %v93_v16  ;;  %v2863_v23 = vcombine.high %v90_v17, %v94_v18  ;;  %v97_v24 = vld [vmem:[%s4404_s1 + $0x210] sm:$0xff]  ;;  %v98_v26 = vld [vmem:[%s4404_s1 + $0x218] sm:$0xff]  ;;  %v2860_v56 = vcombine.low %v89_v15, %v93_v16 }
  0x90   :  { %1848 = vmatprep.subr.bf16.mxu1 %v2831_v52  ;;  %v101_v25 = vld [vmem:[%s4404_s1 + $0x230] sm:$0xff]  ;;  %v102_v27 = vld [vmem:[%s4404_s1 + $0x238] sm:$0xff]  ;;  %v2862_v59 = vcombine.low %v90_v17, %v94_v18 }
  0x91   :  { %v2869_v28 = vcombine.high %v97_v24, %v101_v25  ;;  %v2871_v29 = vcombine.high %v98_v26, %v102_v27  ;;  %v105_v32 = vld [vmem:[%s4404_s1 + $0x250] sm:$0xff]  ;;  %v106_v34 = vld [vmem:[%s4404_s1 + $0x258] sm:$0xff]  ;;  %v2868_v36 = vcombine.low %v97_v24, %v101_v25  ;;  %v2870_v37 = vcombine.low %v98_v26, %v102_v27 }
  0x92   :  { %1767 = vmatpush1.bf16.msra.mxu0 %v2828_v57  ;;  %v109_v33 = vld [vmem:[%s4404_s1 + $0x270] sm:$0xff]  ;;  %v110_v35 = vld [vmem:[%s4404_s1 + $0x278] sm:$0xff] }
  0x93   :  { %1849 = vmatpush1.bf16.msra.mxu1 %v2830_v58  ;;  %1768 = vmatprep.subr.bf16.mxu0 %v2837_v60  ;;  %v2877_v38 = vcombine.high %v105_v32, %v109_v33  ;;  %v2879_v39 = vcombine.high %v106_v34, %v110_v35  ;;  %v113_v40 = vld [vmem:[%s4404_s1 + $0x290] sm:$0xff]  ;;  %v114_v42 = vld [vmem:[%s4404_s1 + $0x298] sm:$0xff]  ;;  %v2876_v44 = vcombine.low %v105_v32, %v109_v33 }
  0x94   :  { %1850 = vmatprep.subr.bf16.mxu1 %v2839_v61  ;;  %v117_v41 = vld [vmem:[%s4404_s1 + $0x2b0] sm:$0xff]  ;;  %v118_v43 = vld [vmem:[%s4404_s1 + $0x2b8] sm:$0xff]  ;;  %v2878_v45 = vcombine.low %v106_v34, %v110_v35 }
  0x95   :  { %v2885_v46 = vcombine.high %v113_v40, %v117_v41  ;;  %v2887_v48 = vcombine.high %v114_v42, %v118_v43  ;;  %v121_v49 = vld [vmem:[%s4404_s1 + $0x2d0] sm:$0xff]  ;;  %v122_v51 = vld [vmem:[%s4404_s1 + $0x2d8] sm:$0xff]  ;;  %v2884_v53 = vcombine.low %v113_v40, %v117_v41  ;;  %v2886_v54 = vcombine.low %v114_v42, %v118_v43 }
  0x96   :  { %1769 = vmatpush1.bf16.msra.mxu0 %v2836_v2  ;;  %v125_v50 = vld [vmem:[%s4404_s1 + $0x2f0] sm:$0xff]  ;;  %v126_v52 = vld [vmem:[%s4404_s1 + $0x2f8] sm:$0xff] }
  0x97   :  { %1851 = vmatpush1.bf16.msra.mxu1 %v2838_v4  ;;  %1770 = vmatprep.subr.bf16.mxu0 %v2845_v5  ;;  %v2893_v3 = vcombine.high %v121_v49, %v125_v50  ;;  %v2895_v55 = vcombine.high %v122_v51, %v126_v52  ;;  %v129_v57 = vld [vmem:[%s4404_s1 + $0x310] sm:$0xff]  ;;  %v130_v60 = vld [vmem:[%s4404_s1 + $0x318] sm:$0xff]  ;;  %v2892_v62 = vcombine.low %v121_v49, %v125_v50 }
  0x98   :  { %1852 = vmatprep.subr.bf16.mxu1 %v2847_v6  ;;  %v133_v58 = vld [vmem:[%s4404_s1 + $0x330] sm:$0xff]  ;;  %v134_v61 = vld [vmem:[%s4404_s1 + $0x338] sm:$0xff]  ;;  %v2894_v63 = vcombine.low %v122_v51, %v126_v52 }
  0x99   :  { %v2901_v0 = vcombine.high %v129_v57, %v133_v58  ;;  %v2903_v1 = vcombine.high %v130_v60, %v134_v61  ;;  %v137_v2 = vld [vmem:[%s4404_s1 + $0x350] sm:$0xff]  ;;  %v138_v5 = vld [vmem:[%s4404_s1 + $0x358] sm:$0xff]  ;;  %v2900_v7 = vcombine.low %v129_v57, %v133_v58  ;;  %v2902_v8 = vcombine.low %v130_v60, %v134_v61 }
  0x9a   :  { %1771 = vmatpush1.bf16.msra.mxu0 %v2844_v11  ;;  %v141_v4 = vld [vmem:[%s4404_s1 + $0x370] sm:$0xff]  ;;  %v142_v6 = vld [vmem:[%s4404_s1 + $0x378] sm:$0xff] }
  0x9b   :  { %1853 = vmatpush1.bf16.msra.mxu1 %v2846_v12  ;;  %1772 = vmatprep.subr.bf16.mxu0 %v2853_v13  ;;  %v2909_v9 = vcombine.high %v137_v2, %v141_v4  ;;  %v2911_v10 = vcombine.high %v138_v5, %v142_v6  ;;  %v145_v11 = vld [vmem:[%s4404_s1 + $0x390] sm:$0xff]  ;;  %v146_v13 = vld [vmem:[%s4404_s1 + $0x398] sm:$0xff]  ;;  %v2908_v15 = vcombine.low %v137_v2, %v141_v4 }
  0x9c   :  { %1854 = vmatprep.subr.bf16.mxu1 %v2855_v14  ;;  %v149_v12 = vld [vmem:[%s4404_s1 + $0x3b0] sm:$0xff]  ;;  %v150_v14 = vld [vmem:[%s4404_s1 + $0x3b8] sm:$0xff]  ;;  %v2910_v16 = vcombine.low %v138_v5, %v142_v6 }
  0x9d   :  { %v2917_v17 = vcombine.high %v145_v11, %v149_v12  ;;  %v2919_v18 = vcombine.high %v146_v13, %v150_v14  ;;  %v2916_v24 = vcombine.low %v145_v11, %v149_v12  ;;  %v2918_v25 = vcombine.low %v146_v13, %v150_v14  ;;  %v193_v61 = vld [vmem:[%s4404_s1 + $0x510] sm:$0xff] }
  0x9e   :  { %1773 = vmatpush1.bf16.msra.mxu0 %v2852_v19  ;;  %v153_v19 = vld [vmem:[%s4404_s1 + $0x3d0] sm:$0xff] }
  0x9f   :  { %1855 = vmatpush1.bf16.msra.mxu1 %v2854_v20  ;;  %1774 = vmatprep.subr.bf16.mxu0 %v2861_v22  ;;  %v157_v20 = vld [vmem:[%s4404_s1 + $0x3f0] sm:$0xff]  ;;  %v154_v22 = vld [vmem:[%s4404_s1 + $0x3d8] sm:$0xff] }
  0xa0   :  { %1856 = vmatprep.subr.bf16.mxu1 %v2863_v23  ;;  %v158_v23 = vld [vmem:[%s4404_s1 + $0x3f8] sm:$0xff]  ;;  %v2925_v26 = vcombine.high %v153_v19, %v157_v20  ;;  %v2924_v32 = vcombine.low %v153_v19, %v157_v20  ;;  %v201_v5 = vld [vmem:[%s4404_s1 + $0x550] sm:$0xff] }
  0xa1   :  { %v2927_v27 = vcombine.high %v154_v22, %v158_v23  ;;  %v2926_v33 = vcombine.low %v154_v22, %v158_v23  ;;  %v205_v6 = vld [vmem:[%s4404_s1 + $0x570] sm:$0xff] }
  0xa2   :  { %1775 = vmatpush1.bf16.msra.mxu0 %v2860_v56  ;;  %v161_v56 = vld [vmem:[%s4404_s1 + $0x410] sm:$0xff]  ;;  %v2973_v11 = vcombine.high %v201_v5, %v205_v6 }
  0xa3   :  { %1857 = vmatpush1.bf16.msra.mxu1 %v2862_v59  ;;  %1776 = vmatprep.subr.bf16.mxu0 %v2869_v28  ;;  %v165_v59 = vld [vmem:[%s4404_s1 + $0x430] sm:$0xff]  ;;  %v162_v28 = vld [vmem:[%s4404_s1 + $0x418] sm:$0xff] }
  0xa4   :  { %1858 = vmatprep.subr.bf16.mxu1 %v2871_v29  ;;  %v166_v29 = vld [vmem:[%s4404_s1 + $0x438] sm:$0xff]  ;;  %v2933_v34 = vcombine.high %v161_v56, %v165_v59  ;;  %v2932_v40 = vcombine.low %v161_v56, %v165_v59  ;;  %v209_v13 = vld [vmem:[%s4404_s1 + $0x590] sm:$0xff] }
  0xa5   :  { %v2935_v35 = vcombine.high %v162_v28, %v166_v29  ;;  %v2934_v41 = vcombine.low %v162_v28, %v166_v29  ;;  %v213_v14 = vld [vmem:[%s4404_s1 + $0x5b0] sm:$0xff] }
  0xa6   :  { %1777 = vmatpush1.bf16.msra.mxu0 %v2868_v36  ;;  %v169_v36 = vld [vmem:[%s4404_s1 + $0x450] sm:$0xff]  ;;  %v2981_v19 = vcombine.high %v209_v13, %v213_v14 }
  0xa7   :  { %1859 = vmatpush1.bf16.msra.mxu1 %v2870_v37  ;;  %1778 = vmatprep.subr.bf16.mxu0 %v2877_v38  ;;  %v173_v37 = vld [vmem:[%s4404_s1 + $0x470] sm:$0xff]  ;;  %v170_v38 = vld [vmem:[%s4404_s1 + $0x458] sm:$0xff] }
  0xa8   :  { %1860 = vmatprep.subr.bf16.mxu1 %v2879_v39  ;;  %v174_v39 = vld [vmem:[%s4404_s1 + $0x478] sm:$0xff]  ;;  %v2941_v42 = vcombine.high %v169_v36, %v173_v37  ;;  %v2940_v49 = vcombine.low %v169_v36, %v173_v37  ;;  %v217_v22 = vld [vmem:[%s4404_s1 + $0x5d0] sm:$0xff] }
  0xa9   :  { %v2943_v43 = vcombine.high %v170_v38, %v174_v39  ;;  %v2942_v50 = vcombine.low %v170_v38, %v174_v39  ;;  %v221_v23 = vld [vmem:[%s4404_s1 + $0x5f0] sm:$0xff] }
  0xaa   :  { %1779 = vmatpush1.bf16.msra.mxu0 %v2876_v44  ;;  %v177_v44 = vld [vmem:[%s4404_s1 + $0x490] sm:$0xff]  ;;  %v2989_v56 = vcombine.high %v217_v22, %v221_v23 }
  0xab   :  { %1861 = vmatpush1.bf16.msra.mxu1 %v2878_v45  ;;  %1780 = vmatprep.subr.bf16.mxu0 %v2885_v46  ;;  %v181_v45 = vld [vmem:[%s4404_s1 + $0x4b0] sm:$0xff]  ;;  %v178_v46 = vld [vmem:[%s4404_s1 + $0x498] sm:$0xff] }
  0xac   :  { %1862 = vmatprep.subr.bf16.mxu1 %v2887_v48  ;;  %v182_v48 = vld [vmem:[%s4404_s1 + $0x4b8] sm:$0xff]  ;;  %v2949_v51 = vcombine.high %v177_v44, %v181_v45  ;;  %v225_v28 = vld [vmem:[%s4404_s1 + $0x610] sm:$0xff] }
  0xad   :  { %v2951_v52 = vcombine.high %v178_v46, %v182_v48  ;;  %v2950_v57 = vcombine.low %v178_v46, %v182_v48  ;;  %v229_v29 = vld [vmem:[%s4404_s1 + $0x630] sm:$0xff] }
  0xae   :  { %1781 = vmatpush1.bf16.msra.mxu0 %v2884_v53  ;;  %v185_v53 = vld [vmem:[%s4404_s1 + $0x4d0] sm:$0xff]  ;;  %v2997_v36 = vcombine.high %v225_v28, %v229_v29 }
  0xaf   :  { %1863 = vmatpush1.bf16.msra.mxu1 %v2886_v54  ;;  %1782 = vmatprep.subr.bf16.mxu0 %v2893_v3  ;;  %v189_v54 = vld [vmem:[%s4404_s1 + $0x4f0] sm:$0xff]  ;;  %v190_v3 = vld [vmem:[%s4404_s1 + $0x4f8] sm:$0xff] }
  0xb0   :  { %1864 = vmatprep.subr.bf16.mxu1 %v2895_v55  ;;  %v2948_v55 = vcombine.low %v177_v44, %v181_v45  ;;  %v2957_v58 = vcombine.high %v185_v53, %v189_v54  ;;  %v233_v38 = vld [vmem:[%s4404_s1 + $0x650] sm:$0xff] }
  0xb1   :  { %v237_v39 = vld [vmem:[%s4404_s1 + $0x670] sm:$0xff] }
  0xb2   :  { %1783 = vmatpush1.bf16.msra.mxu0 %v2892_v62  ;;  %v197_v62 = vld [vmem:[%s4404_s1 + $0x530] sm:$0xff]  ;;  %v3005_v44 = vcombine.high %v233_v38, %v237_v39 }
  0xb3   :  { %1865 = vmatpush1.bf16.msra.mxu1 %v2894_v63  ;;  %1784 = vmatprep.subr.bf16.mxu0 %v2901_v0  ;;  %v198_v63 = vld [vmem:[%s4404_s1 + $0x538] sm:$0xff]  ;;  %v2956_v0 = vcombine.low %v185_v53, %v189_v54  ;;  %v2965_v2 = vcombine.high %v193_v61, %v197_v62  ;;  %v241_v46 = vld [vmem:[%s4404_s1 + $0x690] sm:$0xff] }
  0xb4   :  { %1866 = vmatprep.subr.bf16.mxu1 %v2903_v1  ;;  %v245_v48 = vld [vmem:[%s4404_s1 + $0x6b0] sm:$0xff] }
  0xb5   :  { %v3013_v53 = vcombine.high %v241_v46, %v245_v48 }
  0xb6   :  { %1785 = vmatpush1.bf16.msra.mxu0 %v2900_v7  ;;  %v202_v7 = vld [vmem:[%s4404_s1 + $0x558] sm:$0xff] }
  0xb7   :  { %1867 = vmatpush1.bf16.msra.mxu1 %v2902_v8  ;;  %1786 = vmatprep.subr.bf16.mxu0 %v2909_v9  ;;  %v206_v8 = vld [vmem:[%s4404_s1 + $0x578] sm:$0xff]  ;;  %v2964_v9 = vcombine.low %v193_v61, %v197_v62 }
  0xb8   :  { %1868 = vmatprep.subr.bf16.mxu1 %v2911_v10  ;;  %v2975_v12 = vcombine.high %v202_v7, %v206_v8 }
  0xba   :  { %1787 = vmatpush1.bf16.msra.mxu0 %v2908_v15  ;;  %v210_v15 = vld [vmem:[%s4404_s1 + $0x598] sm:$0xff] }
  0xbb   :  { %1869 = vmatpush1.bf16.msra.mxu1 %v2910_v16  ;;  %1788 = vmatprep.subr.bf16.mxu0 %v2917_v17  ;;  %v214_v16 = vld [vmem:[%s4404_s1 + $0x5b8] sm:$0xff]  ;;  %v2972_v17 = vcombine.low %v201_v5, %v205_v6 }
  0xbc   :  { %1870 = vmatprep.subr.bf16.mxu1 %v2919_v18  ;;  %v2974_v18 = vcombine.low %v202_v7, %v206_v8  ;;  %v2983_v20 = vcombine.high %v210_v15, %v214_v16  ;;  %v265_v7 = vld [vmem:[%s4404_s1 + $0x750] sm:$0xff] }
  0xbd   :  { %v269_v8 = vld [vmem:[%s4404_s1 + $0x770] sm:$0xff] }
  0xbe   :  { %1789 = vmatpush1.bf16.msra.mxu0 %v2916_v24  ;;  %v218_v24 = vld [vmem:[%s4404_s1 + $0x5d8] sm:$0xff] }
  0xbf   :  { %1871 = vmatpush1.bf16.msra.mxu1 %v2918_v25  ;;  %1790 = vmatprep.subr.bf16.mxu0 %v2925_v26  ;;  %v222_v25 = vld [vmem:[%s4404_s1 + $0x5f8] sm:$0xff]  ;;  %v2980_v26 = vcombine.low %v209_v13, %v213_v14  ;;  %v3037_v13 = vcombine.high %v265_v7, %v269_v8 }
  0xc0   :  { %1872 = vmatprep.subr.bf16.mxu1 %v2927_v27  ;;  %v2982_v27 = vcombine.low %v210_v15, %v214_v16  ;;  %v2991_v59 = vcombine.high %v218_v24, %v222_v25  ;;  %v273_v15 = vld [vmem:[%s4404_s1 + $0x790] sm:$0xff] }
  0xc1   :  { %v277_v16 = vld [vmem:[%s4404_s1 + $0x7b0] sm:$0xff] }
  0xc2   :  { %1791 = vmatpush1.bf16.msra.mxu0 %v2924_v32  ;;  %v226_v32 = vld [vmem:[%s4404_s1 + $0x618] sm:$0xff] }
  0xc3   :  { %1873 = vmatpush1.bf16.msra.mxu1 %v2926_v33  ;;  %1801 = vmatprep.subr.bf16.mxu0 %v2933_v34  ;;  %v230_v33 = vld [vmem:[%s4404_s1 + $0x638] sm:$0xff]  ;;  %v2988_v34 = vcombine.low %v217_v22, %v221_v23  ;;  %v3045_v22 = vcombine.high %v273_v15, %v277_v16 }
  0xc4   :  { %1883 = vmatprep.subr.bf16.mxu1 %v2935_v35  ;;  %v2990_v35 = vcombine.low %v218_v24, %v222_v25  ;;  %v2999_v37 = vcombine.high %v226_v32, %v230_v33  ;;  %v281_v24 = vld [vmem:[%s4404_s1 + $0x7d0] sm:$0xff] }
  0xc5   :  { %1793 = vmatmul.mubr.bf16.vlgmr.msra.gmra.mrb[4].mxu0 %v3578_v21  ;;  %v285_v25 = vld [vmem:[%s4404_s1 + $0x7f0] sm:$0xff] }
  0xc6   :  { %1802 = vmatpush1.bf16.msra.mxu0 %v2932_v40  ;;  %1875 = vmatmul.mubr.bf16.vlgmr.msra.gmra.mrb[4].mxu1 %v3578_v21  ;;  %v186_v21 = vld [vmem:[%s4404_s1 + $0x4d8] sm:$0xff] }
  0xc7   :  { %1884 = vmatpush1.bf16.msra.mxu1 %v2934_v41  ;;  %1803 = vmatprep.subr.bf16.mxu0 %v2941_v42  ;;  %v2959_v60 = vcombine.high %v186_v21, %v190_v3  ;;  %v2958_v1 = vcombine.low %v186_v21, %v190_v3  ;;  %v234_v40 = vld [vmem:[%s4404_s1 + $0x658] sm:$0xff]  ;;  %v2996_v42 = vcombine.low %v225_v28, %v229_v29  ;;  %v249_v21 = vld [vmem:[%s4404_s1 + $0x6d0] sm:$0xff] }
  0xc8   :  { %1885 = vmatprep.subr.bf16.mxu1 %v2943_v43  ;;  %1833 = vmatprep.mubr.bf16.mxu0 %v3600_v30  ;;  %v238_v41 = vld [vmem:[%s4404_s1 + $0x678] sm:$0xff]  ;;  %v2998_v43 = vcombine.low %v226_v32, %v230_v33  ;;  %v253_v3 = vld [vmem:[%s4404_s1 + $0x6f0] sm:$0xff]  ;;  %v3053_v28 = vcombine.high %v281_v24, %v285_v25  ;;  %v3052_v32 = vcombine.low %v281_v24, %v285_v25 }
  0xc9   :  { %1915 = vmatprep.mubr.bf16.mxu1 %v3600_v30  ;;  %v194_v30 = vld [vmem:[%s4404_s1 + $0x518] sm:$0xff]  ;;  %v3007_v45 = vcombine.high %v234_v40, %v238_v41  ;;  %v3021_v61 = vcombine.high %v249_v21, %v253_v3 }
  0xca   :  { %1804 = vmatpush1.bf16.msra.mxu0 %v2940_v49  ;;  %v2967_v4 = vcombine.high %v194_v30, %v198_v63  ;;  %v2966_v10 = vcombine.low %v194_v30, %v198_v63  ;;  %v242_v49 = vld [vmem:[%s4404_s1 + $0x698] sm:$0xff]  ;;  %v257_v30 = vld [vmem:[%s4404_s1 + $0x710] sm:$0xff] }
  0xcb   :  { %1886 = vmatpush1.bf16.msra.mxu1 %v2942_v50  ;;  %1805 = vmatprep.subr.bf16.mxu0 %v2949_v51  ;;  %v246_v50 = vld [vmem:[%s4404_s1 + $0x6b8] sm:$0xff]  ;;  %v3004_v51 = vcombine.low %v233_v38, %v237_v39  ;;  %v261_v63 = vld [vmem:[%s4404_s1 + $0x730] sm:$0xff]  ;;  %v3232_v38 = vld [vmem:[%s4406_s3 + $0x48] sm:$0xff]  }
  0xcc   :  { %1887 = vmatprep.subr.bf16.mxu1 %v2951_v52  ;;  %v3006_v52 = vcombine.low %v234_v40, %v238_v41  ;;  %v3015_v54 = vcombine.high %v242_v49, %v246_v50  ;;  %v3029_v5 = vcombine.high %v257_v30, %v261_v63  ;;  %v3234_v39 = vld [vmem:[%s4406_s3 + $0xc8] sm:$0xff]  }
  0xcd   :  { %v3233_v40 = vld [vmem:[%s4406_s3 + $0x8] sm:$0xff]  }
  0xce   :  { %1806 = vmatpush1.bf16.msra.mxu0 %v2948_v55  ;;  %v250_v55 = vld [vmem:[%s4404_s1 + $0x6d8] sm:$0xff]  ;;  %v3235_v41 = vld [vmem:[%s4406_s3 + $0x88] sm:$0xff]  }
  0xcf   :  { %1888 = vmatpush1.bf16.msra.mxu1 %v2950_v57  ;;  %1807 = vmatprep.subr.bf16.mxu0 %v2957_v58  ;;  %v254_v57 = vld [vmem:[%s4404_s1 + $0x6f8] sm:$0xff]  ;;  %v3012_v58 = vcombine.low %v241_v46, %v245_v48 }
  0xd0   :  { %1889 = vmatprep.subr.bf16.mxu1 %v2959_v60  ;;  %v3014_v60 = vcombine.low %v242_v49, %v246_v50  ;;  %v3023_v62 = vcombine.high %v250_v55, %v254_v57  ;;  %v3242_v46 = vld [vmem:[%s4406_s3 + $0xd8] sm:$0xff]   ;;  %v3244_v50 = vld [vmem:[%s4406_s3 + $0x60] sm:$0xff]  }
  0xd1   :  { %v3241_v48 = vld [vmem:[%s4406_s3 + $0x18] sm:$0xff]  }
  0xd2   :  { %1808 = vmatpush1.bf16.msra.mxu0 %v2956_v0  ;;  %v258_v0 = vld [vmem:[%s4404_s1 + $0x718] sm:$0xff] }
  0xd3   :  { %1890 = vmatpush1.bf16.msra.mxu1 %v2958_v1  ;;  %1809 = vmatprep.subr.bf16.mxu0 %v2965_v2  ;;  %v262_v1 = vld [vmem:[%s4404_s1 + $0x738] sm:$0xff]  ;;  %v3020_v2 = vcombine.low %v249_v21, %v253_v3  ;;  %v3250_v21 = vld [vmem:[%s4406_s3 + $0xe8] sm:$0xff]  }
  0xd4   :  { %1891 = vmatprep.subr.bf16.mxu1 %v2967_v4  ;;  %v3022_v4 = vcombine.low %v250_v55, %v254_v57  ;;  %v3031_v6 = vcombine.high %v258_v0, %v262_v1  ;;  %v3243_v49 = vld [vmem:[%s4406_s3 + $0x98] sm:$0xff]   ;;  %v3249_v3 = vld [vmem:[%s4406_s3 + $0x28] sm:$0xff]   ;;  %v3252_v57 = vld [vmem:[%s4406_s3 + $0x70] sm:$0xff]  }
  0xd5   :  { %v3251_v55 = vld [vmem:[%s4406_s3 + $0xa8] sm:$0xff]  }
  0xd6   :  { %1810 = vmatpush1.bf16.msra.mxu0 %v2964_v9  ;;  %v266_v9 = vld [vmem:[%s4404_s1 + $0x758] sm:$0xff] }
  0xd7   :  { %1892 = vmatpush1.bf16.msra.mxu1 %v2966_v10  ;;  %1811 = vmatprep.subr.bf16.mxu0 %v2973_v11  ;;  %v270_v10 = vld [vmem:[%s4404_s1 + $0x778] sm:$0xff]  ;;  %v3028_v11 = vcombine.low %v257_v30, %v261_v63 }
  0xd8   :  { %1893 = vmatprep.subr.bf16.mxu1 %v2975_v12  ;;  %v3030_v12 = vcombine.low %v258_v0, %v262_v1  ;;  %v3039_v14 = vcombine.high %v266_v9, %v270_v10  ;;  %v3258_v30 = vld [vmem:[%s4406_s3 + $0xf8] sm:$0xff]   ;;  %v3260_v1 = vld [vmem:[%s4406_s3 + $0x140] sm:$0xff]  }
  0xd9   :  { %v3257_v63 = vld [vmem:[%s4406_s3 + $0x38] sm:$0xff]  }
  0xda   :  { %1812 = vmatpush1.bf16.msra.mxu0 %v2972_v17  ;;  %v274_v17 = vld [vmem:[%s4404_s1 + $0x798] sm:$0xff] }
  0xdb   :  { %1894 = vmatpush1.bf16.msra.mxu1 %v2974_v18  ;;  %1813 = vmatprep.subr.bf16.mxu0 %v2981_v19  ;;  %v278_v18 = vld [vmem:[%s4404_s1 + $0x7b8] sm:$0xff]  ;;  %v3036_v19 = vcombine.low %v265_v7, %v269_v8  ;;  %v1985_v7 = vsub.s32 1, %v3421_v47  ;;  %v1989_v8 = vsub.s32 2, %v3421_v47 }
  0xdc   :  { %1895 = vmatprep.subr.bf16.mxu1 %v2983_v20  ;;  %v3038_v20 = vcombine.low %v266_v9, %v270_v10  ;;  %v3047_v23 = vcombine.high %v274_v17, %v278_v18  ;;  %v3259_v0 = vld [vmem:[%s4406_s3 + $0xb8] sm:$0xff]   ;;  %v1993_v9 = vsub.s32 3, %v3421_v47  ;;  %v4269_v10 = vld [vmem:[%s4405_s2] sm:$0xff] }
  0xde   :  { %1814 = vmatpush1.bf16.msra.mxu0 %v2980_v26  ;;  %v282_v26 = vld [vmem:[%s4404_s1 + $0x7d8] sm:$0xff] }
  0xdf   :  { %1896 = vmatpush1.bf16.msra.mxu1 %v2982_v27  ;;  %1815 = vmatprep.subr.bf16.mxu0 %v2989_v56  ;;  %v286_v27 = vld [vmem:[%s4404_s1 + $0x7f8] sm:$0xff]  ;;  %v3044_v56 = vcombine.low %v273_v15, %v277_v16  ;;  %v1994_v15 = vrot.slane %v4269_v10, %v1993_v9 }
  0xe0   :  { %1897 = vmatprep.subr.bf16.mxu1 %v2991_v59  ;;  %v3046_v59 = vcombine.low %v274_v17, %v278_v18  ;;  %v3055_v29 = vcombine.high %v282_v26, %v286_v27  ;;  %v3054_v33 = vcombine.low %v282_v26, %v286_v27  ;;  %v3288_v9 = vld [vmem:[%s4406_s3 + $0x178] sm:$0xff]  }
  0xe2   :  { %1816 = vmatpush1.bf16.msra.mxu0 %v2988_v34  ;;  %v3228_v34 = vld [vmem:[%s4406_s3 + $0x40] sm:$0xff]  }
  0xe3   :  { %1898 = vmatpush1.bf16.msra.mxu1 %v2990_v35  ;;  %1817 = vmatprep.subr.bf16.mxu0 %v2997_v36  ;;  %v3230_v35 = vld [vmem:[%s4406_s3 + $0xc0] sm:$0xff]  }
  0xe4   :  { %1899 = vmatprep.subr.bf16.mxu1 %v2999_v37  ;;  %v3229_v36 = vld [vmem:[%s4406_s3] sm:$0xff]  }
  0xe5   :  { %v3231_v37 = vld [vmem:[%s4406_s3 + $0x80] sm:$0xff]  }
  0xe6   :  { %1818 = vmatpush1.bf16.msra.mxu0 %v2996_v42  ;;  %v3236_v42 = vld [vmem:[%s4406_s3 + $0x50] sm:$0xff]  }
  0xe7   :  { %1900 = vmatpush1.bf16.msra.mxu1 %v2998_v43  ;;  %1819 = vmatprep.subr.bf16.mxu0 %v3005_v44  ;;  %v3237_v43 = vld [vmem:[%s4406_s3 + $0x10] sm:$0xff]  }
  0xe8   :  { %1901 = vmatprep.subr.bf16.mxu1 %v3007_v45  ;;  %v3239_v44 = vld [vmem:[%s4406_s3 + $0x90] sm:$0xff]   ;;  %v3240_v45 = vld [vmem:[%s4406_s3 + $0x58] sm:$0xff]  }
  0xea   :  { %1820 = vmatpush1.bf16.msra.mxu0 %v3004_v51  ;;  %v3246_v51 = vld [vmem:[%s4406_s3 + $0xe0] sm:$0xff]  }
  0xeb   :  { %1902 = vmatpush1.bf16.msra.mxu1 %v3006_v52  ;;  %1821 = vmatprep.subr.bf16.mxu0 %v3013_v53  ;;  %v3245_v52 = vld [vmem:[%s4406_s3 + $0x20] sm:$0xff]  }
  0xec   :  { %1903 = vmatprep.subr.bf16.mxu1 %v3015_v54  ;;  %v3247_v53 = vld [vmem:[%s4406_s3 + $0xa0] sm:$0xff]   ;;  %v3248_v54 = vld [vmem:[%s4406_s3 + $0x68] sm:$0xff]  }
  0xee   :  { %1822 = vmatpush1.bf16.msra.mxu0 %v3012_v58  ;;  %v3254_v58 = vld [vmem:[%s4406_s3 + $0xf0] sm:$0xff]  }
  0xef   :  { %1904 = vmatpush1.bf16.msra.mxu1 %v3014_v60  ;;  %1823 = vmatprep.subr.bf16.mxu0 %v3021_v61  ;;  %v3253_v60 = vld [vmem:[%s4406_s3 + $0x30] sm:$0xff]  }
  0xf0   :  { %1905 = vmatprep.subr.bf16.mxu1 %v3023_v62  ;;  %v3255_v61 = vld [vmem:[%s4406_s3 + $0xb0] sm:$0xff]   ;;  %v3256_v62 = vld [vmem:[%s4406_s3 + $0x78] sm:$0xff]  }
  0xf2   :  { %1824 = vmatpush1.bf16.msra.mxu0 %v3020_v2  ;;  %v3262_v2 = vld [vmem:[%s4406_s3 + $0x1c0] sm:$0xff]  }
  0xf3   :  { %1906 = vmatpush1.bf16.msra.mxu1 %v3022_v4  ;;  %1825 = vmatprep.subr.bf16.mxu0 %v3029_v5  ;;  %v3317_v4 = vmov 1983009808  }
  0xf4   :  { %1907 = vmatprep.subr.bf16.mxu1 %v3031_v6  ;;  %v1935_v5 = vunpack.c.l.s4 %v3317_v4  ;;  %v1981_v6 = vsub.s32 0, %v3421_v47  ;;  %v3281_v4 = vld [vmem:[%s4406_s3 + $0x128] sm:$0xff]  }
  0xf6   :  { %1826 = vmatpush1.bf16.msra.mxu0 %v3028_v11  ;;  %v1936_v11 = vunpack.c.0.s8 %v1935_v5  ;;  %v3284_v5 = vld [vmem:[%s4406_s3 + $0x170] sm:$0xff]  }
  0xf7   :  { %1908 = vmatpush1.bf16.msra.mxu1 %v3030_v12  ;;  %1827 = vmatprep.subr.bf16.mxu0 %v3037_v13  ;;  %v1982_v12 = vrot.slane %v4269_v10, %v1981_v6  ;;  %v1986_v13 = vrot.slane %v4269_v10, %v1985_v7  ;;  %v3283_v6 = vld [vmem:[%s4406_s3 + $0x1a8] sm:$0xff]   ;;  %v3286_v7 = vld [vmem:[%s4406_s3 + $0x1f0] sm:$0xff]  }
  0xf8   :  { %1909 = vmatprep.subr.bf16.mxu1 %v3039_v14  ;;  %v1990_v14 = vrot.slane %v4269_v10, %v1989_v8  ;;  %v4276_v16 = vsub.s32 %v1936_v11, %v3421_v47  ;;  %v3285_v8 = vld [vmem:[%s4406_s3 + $0x130] sm:$0xff]  }
  0xf9   :  { %v2011_v17 = vcombine.low %v1982_v12, %v1986_v13  ;;  %v3287_v11 = vld [vmem:[%s4406_s3 + $0x1b0] sm:$0xff]   ;;  %v3290_v12 = vld [vmem:[%s4406_s3 + $0x1f8] sm:$0xff]  }
  0xfa   :  { %1828 = vmatpush1.bf16.msra.mxu0 %v3036_v19  ;;  %v2012_v18 = vcombine.low %v1990_v14, %v1994_v15  ;;  %v3289_v13 = vld [vmem:[%s4406_s3 + $0x138] sm:$0xff]   ;;  %v1997_v15 = vsub.s32 4, %v3421_v47 }
  0xfb   :  { %1910 = vmatpush1.bf16.msra.mxu1 %v3038_v20  ;;  %1829 = vmatprep.subr.bf16.mxu0 %v3045_v22  ;;  %v3291_v14 = vld [vmem:[%s4406_s3 + $0x1b8] sm:$0xff]  }
  0xfc   :  { %1911 = vmatprep.subr.bf16.mxu1 %v3047_v23  ;;  %v2019_v23 = vrot.slane %v2011_v17, %v4276_v16  ;;  %v2026_v24 = vrot.slane %v2012_v18, %v4276_v16  ;;  %v2001_v17 = vsub.s32 5, %v3421_v47  ;;  %v2005_v18 = vsub.s32 6, %v3421_v47 }
  0xfe   :  { %1830 = vmatpush1.bf16.msra.mxu0 %v3044_v56 }
  0xff   :  { %1912 = vmatpush1.bf16.msra.mxu1 %v3046_v59  ;;  %1831 = vmatprep.subr.bf16.mxu0 %v3053_v28 }
 0x100   :  { %1913 = vmatprep.subr.bf16.mxu1 %v3055_v29 }
 0x102   :  { %1832 = vmatpush1.bf16.msra.mxu0 %v3052_v32 }
 0x103   :  { %1914 = vmatpush1.bf16.msra.mxu1 %v3054_v33  ;;  %3121 = vmatprep.subr.bf16.mxu0 %v3228_v34  ;;  %v2027_v34 = vcombine.low %v2019_v23, %v2026_v24  ;;  %v2006_v23 = vrot.slane %v4269_v10, %v2005_v18 }
 0x104   :  { %3143 = vmatprep.subr.bf16.mxu1 %v3230_v35 }
 0x105   :  { %1834 = vmatmul.mubr.bf16.vlgmr.msra.gmra.mrb[4].mxu0 %v3788_v31 }
 0x106   :  { %1916 = vmatmul.mubr.bf16.vlgmr.msra.gmra.mrb[4].mxu1 %v3788_v31  ;;  %3122 = vmatpush3.bf16.msra.mxu0 %v3229_v36  ;;  %v3238_v31 = vld [vmem:[%s4406_s3 + $0xd0] sm:$0xff]  }
 0x107   :  { %3144 = vmatpush3.bf16.msra.mxu1 %v3231_v37  ;;  %3123 = vmatprep.subr.bf16.mxu0 %v3232_v38 }
 0x108   :  { %3145 = vmatprep.subr.bf16.mxu1 %v3234_v39 }
 0x10a   :  { %3124 = vmatpush3.bf16.msra.mxu0 %v3233_v40 }
 0x10b   :  { %3146 = vmatpush3.bf16.msra.mxu1 %v3235_v41  ;;  %3125 = vmatprep.subr.bf16.mxu0 %v3236_v42 }
 0x10c   :  { %3147 = vmatprep.subr.bf16.mxu1 %v3238_v31 }
 0x10e   :  { %3126 = vmatpush3.bf16.msra.mxu0 %v3237_v43 }
 0x10f   :  { %3148 = vmatpush3.bf16.msra.mxu1 %v3239_v44  ;;  %3127 = vmatprep.subr.bf16.mxu0 %v3240_v45  ;;  %v3261_v44 = vld [vmem:[%s4406_s3 + $0x100] sm:$0xff]  }
 0x110   :  { %3149 = vmatprep.subr.bf16.mxu1 %v3242_v46  ;;  %v3264_v46 = vld [vmem:[%s4406_s3 + $0x148] sm:$0xff]  }
 0x112   :  { %3128 = vmatpush3.bf16.msra.mxu0 %v3241_v48 }
 0x113   :  { %3150 = vmatpush3.bf16.msra.mxu1 %v3243_v49  ;;  %3129 = vmatprep.subr.bf16.mxu0 %v3244_v50  ;;  %v3263_v49 = vld [vmem:[%s4406_s3 + $0x180] sm:$0xff]  }
 0x114   :  { %3151 = vmatprep.subr.bf16.mxu1 %v3246_v51  ;;  %v3266_v51 = vld [vmem:[%s4406_s3 + $0x1c8] sm:$0xff]  }
 0x116   :  { %3130 = vmatpush3.bf16.msra.mxu0 %v3245_v52  ;;  %v3265_v52 = vld [vmem:[%s4406_s3 + $0x108] sm:$0xff]  }
 0x117   :  { %3152 = vmatpush3.bf16.msra.mxu1 %v3247_v53  ;;  %3131 = vmatprep.subr.bf16.mxu0 %v3248_v54  ;;  %v3268_v53 = vld [vmem:[%s4406_s3 + $0x150] sm:$0xff]   ;;  %v3267_v54 = vld [vmem:[%s4406_s3 + $0x188] sm:$0xff]  }
 0x118   :  { %3153 = vmatprep.subr.bf16.mxu1 %v3250_v21  ;;  %v3270_v21 = vld [vmem:[%s4406_s3 + $0x1d0] sm:$0xff]  }
 0x11a   :  { %3132 = vmatpush3.bf16.msra.mxu0 %v3249_v3  ;;  %v3269_v3 = vld [vmem:[%s4406_s3 + $0x110] sm:$0xff]  }
 0x11b   :  { %3154 = vmatpush3.bf16.msra.mxu1 %v3251_v55  ;;  %3133 = vmatprep.subr.bf16.mxu0 %v3252_v57  ;;  %v3272_v55 = vld [vmem:[%s4406_s3 + $0x158] sm:$0xff]   ;;  %v3271_v57 = vld [vmem:[%s4406_s3 + $0x190] sm:$0xff]  }
 0x11c   :  { %3155 = vmatprep.subr.bf16.mxu1 %v3254_v58  ;;  %v3274_v58 = vld [vmem:[%s4406_s3 + $0x1d8] sm:$0xff]  }
 0x11e   :  { %3134 = vmatpush3.bf16.msra.mxu0 %v3253_v60  ;;  %v3273_v60 = vld [vmem:[%s4406_s3 + $0x118] sm:$0xff]  }
 0x11f   :  { %3156 = vmatpush3.bf16.msra.mxu1 %v3255_v61  ;;  %3135 = vmatprep.subr.bf16.mxu0 %v3256_v62  ;;  %v3276_v61 = vld [vmem:[%s4406_s3 + $0x160] sm:$0xff]   ;;  %v3275_v62 = vld [vmem:[%s4406_s3 + $0x198] sm:$0xff]  }
 0x120   :  { %3157 = vmatprep.subr.bf16.mxu1 %v3258_v30  ;;  %v3278_v30 = vld [vmem:[%s4406_s3 + $0x1e0] sm:$0xff]  }
 0x122   :  { %3136 = vmatpush3.bf16.msra.mxu0 %v3257_v63  ;;  %v3277_v63 = vld [vmem:[%s4406_s3 + $0x120] sm:$0xff]  }
 0x123   :  { %3158 = vmatpush3.bf16.msra.mxu1 %v3259_v0  ;;  %3165 = vmatprep.subr.bf16.mxu0 %v3260_v1  ;;  %v3280_v0 = vld [vmem:[%s4406_s3 + $0x168] sm:$0xff]   ;;  %v3279_v1 = vld [vmem:[%s4406_s3 + $0x1a0] sm:$0xff]  }
 0x124   :  { %3187 = vmatprep.subr.bf16.mxu1 %v3262_v2  ;;  %v3282_v2 = vld [vmem:[%s4406_s3 + $0x1e8] sm:$0xff]  }
 0x158   :  { %v1671_v19 = vpop.f32.mrb[0].mxu0 }
 0x159   :  { %v1753_v20 = vpop.f32.mrb[0].mxu1  ;;  %v1673_v22 = vpop.f32.mrb[1].mxu0 }
 0x15a   :  { %v1932_v25 = vcombine.low %v1671_v19, %v1673_v22  ;;  %v1755_v26 = vpop.f32.mrb[1].mxu1  ;;  %v1675_v27 = vpop.f32.mrb[2].mxu0  ;;  %v2009_v19 = vsub.s32 7, %v3421_v47  ;;  %v2002_v22 = vrot.slane %v4269_v10, %v2001_v17 }
 0x15b   :  { %v1933_v56 = vcombine.low %v1753_v20, %v1755_v26  ;;  %v1757_v59 = vpop.f32.mrb[2].mxu1  ;;  %v1676_v28 = vpop.f32.mrb[3].mxu0  ;;  %v1998_v20 = vrot.slane %v4269_v10, %v1997_v15 }
 0x15c   :  { %v1940_v29 = vrot.slane %v1932_v25, %v4276_v16  ;;  %v1758_v32 = vpop.f32.mrb[3].mxu1  ;;  %v2010_v24 = vrot.slane %v4269_v10, %v2009_v19 }
 0x15d   :  { %v1947_v33 = vrot.slane %v1933_v56, %v4276_v16  ;;  %v2028_v25 = vcombine.low %v1998_v20, %v2002_v22 }
 0x15e   :  { %v2029_v26 = vcombine.low %v2006_v23, %v2010_v24 }
 0x15f   :  { %v1948_v35 = vcombine.low %v1940_v29, %v1947_v33  ;;  %v2036_v28 = vrot.slane %v2028_v25, %v4276_v16 }
 0x160   :  { %v2043_v29 = vrot.slane %v2029_v26, %v4276_v16 }
 0x161   :  { %v2047_v36 = vadd.f32 %v2027_v34, %v1948_v35 }
 0x163   :  { %v2049_v37 = vmul.f32 0.2, %v2047_v36 }
 0x165   :  { %v2051_v38 = vmax.f32 %v2047_v36, %v2049_v37 }
 0x167   :  { %v2062_v39 = vrot.slane %v2051_v38, %v4276_v16  ;;  %v2055_v40 = vcombine.high %v2051_v38, %v2051_v38 }
 0x169   :  { %v2070_v41 = vcombine.high %v2062_v39, %v2062_v39  ;;  %v2069_v42 = vrot.slane %v2055_v40, %v4276_v16  ;;  %v2097_v45 = vpack.c.bf16 %v2062_v39, %v2062_v39  ;;  %v2044_v39 = vcombine.low %v2036_v28, %v2043_v29 }
 0x16b   :  { %v2098_v31 = vpack.c.bf16 %v2070_v41, %v2070_v41  ;;  %v2071_v43 = vcombine.high %v2069_v42, %v2069_v42  ;;  %v2099_v50 = vpack.c.bf16 %v2069_v42, %v2069_v42 }
 0x16d   :  { %2656 = vmatprep.mubr.bf16.mxu0 %v2098_v31  ;;  %v2100_v48 = vpack.c.bf16 %v2071_v43, %v2071_v43 }
 0x16e   :  { %2657 = vmatmul.mubr.bf16.vlgmr.msra.gmra.mrb[8].mxu0 %v2097_v45 }
 0x16f   :  { %2696 = vmatprep.mubr.bf16.mxu1 %v2100_v48  ;;  %3166 = vmatpush3.bf16.msra.mxu0 %v3261_v44 }
 0x170   :  { %2697 = vmatmul.mubr.bf16.vlgmr.msra.gmra.mrb[8].mxu1 %v2099_v50  ;;  %3167 = vmatprep.subr.bf16.mxu0 %v3264_v46 }
 0x171   :  { %3188 = vmatpush3.bf16.msra.mxu1 %v3263_v49 }
 0x172   :  { %3189 = vmatprep.subr.bf16.mxu1 %v3266_v51 }
 0x173   :  { %3168 = vmatpush3.bf16.msra.mxu0 %v3265_v52 }
 0x174   :  { %3169 = vmatprep.subr.bf16.mxu0 %v3268_v53 }
 0x175   :  { %3190 = vmatpush3.bf16.msra.mxu1 %v3267_v54  ;;  %v3056_v54 = vld [vmem:[%s4407_s4] ss:$0 sm:$0xff]  ;;  %s2791_s4 = sshll.u32 %s3318_s0, 4  ;;  %s2792_s4 = int_to_ptr.vmem [resolvable:$true] %s2791_s4 }
 0x176   :  { %3191 = vmatprep.subr.bf16.mxu1 %v3270_v21  ;;  %s3292_s8 = scalar_lea.vmem %s2792_s4, 32  ;;  %p3297_p1 = scmp.lt.s32.totalorder %s2792_s4, %s2792_s4 }
 0x177   :  { %3170 = vmatpush3.bf16.msra.mxu0 %v3269_v3  ;;  %p3293_p0 = scmp.ne.s32.totalorder %s2792_s4, %s3292_s8  ;;  %p3298_p2 = scmp.lt.s32.totalorder %s3292_s8, %s3292_s8 }
 0x178   :  { %3171 = vmatprep.subr.bf16.mxu0 %v3272_v55 }
 0x179   :  { %3192 = vmatpush3.bf16.msra.mxu1 %v3271_v57  ;;  %p3299_p3 = por %p3298_p2, %p3297_p1 }
 0x17a   :  { %3193 = vmatprep.subr.bf16.mxu1 %v3274_v58 }
 0x17b   :  { %3172 = vmatpush3.bf16.msra.mxu0 %v3273_v60  ;;  %p3300_p4 = pnand %p3299_p3, %p3293_p0 }
 0x17c   :  { %3173 = vmatprep.subr.bf16.mxu0 %v3276_v61 }
 0x17d   :  { %3194 = vmatpush3.bf16.msra.mxu1 %v3275_v62 }
 0x17e   :  { %3195 = vmatprep.subr.bf16.mxu1 %v3278_v30 }
 0x17f   :  { %3174 = vmatpush3.bf16.msra.mxu0 %v3277_v63 }
 0x180   :  { %3175 = vmatprep.subr.bf16.mxu0 %v3280_v0 }
 0x181   :  { %3196 = vmatpush3.bf16.msra.mxu1 %v3279_v1 }
 0x182   :  { %3197 = vmatprep.subr.bf16.mxu1 %v3282_v2 }
 0x183   :  { %3176 = vmatpush3.bf16.msra.mxu0 %v3281_v4 }
 0x184   :  { %3177 = vmatprep.subr.bf16.mxu0 %v3284_v5 }
 0x185   :  { %3198 = vmatpush3.bf16.msra.mxu1 %v3283_v6 }
 0x186   :  { %3199 = vmatprep.subr.bf16.mxu1 %v3286_v7 }
 0x187   :  { %3178 = vmatpush3.bf16.msra.mxu0 %v3285_v8 }
 0x188   :  { %3179 = vmatprep.subr.bf16.mxu0 %v3288_v9 }
 0x189   :  { %3200 = vmatpush3.bf16.msra.mxu1 %v3287_v11 }
 0x18a   :  { %3201 = vmatprep.subr.bf16.mxu1 %v3290_v12 }
 0x18b   :  { %3180 = vmatpush3.bf16.msra.mxu0 %v3289_v13 }
 0x18d   :  { %3202 = vmatpush3.bf16.msra.mxu1 %v3291_v14 }
 0x1d8   :  { %v1835_v27 = vpop.f32.mrb[4].mxu0 }
 0x1d9   :  { %v1917_v56 = vpop.f32.mrb[4].mxu1  ;;  %v1837_v59 = vpop.f32.mrb[5].mxu0 }
 0x1da   :  { %v1949_v32 = vcombine.low %v1835_v27, %v1837_v59  ;;  %v1919_v33 = vpop.f32.mrb[5].mxu1  ;;  %v1839_v47 = vpop.f32.mrb[6].mxu0 }
 0x1db   :  { %v1950_v34 = vcombine.low %v1917_v56, %v1919_v33  ;;  %v1921_v35 = vpop.f32.mrb[6].mxu1  ;;  %v1840_v36 = vpop.f32.mrb[7].mxu0 }
 0x1dc   :  { %v1957_v37 = vrot.slane %v1949_v32, %v4276_v16  ;;  %v1922_v38 = vpop.f32.mrb[7].mxu1 }
 0x1dd   :  { %v1964_v10 = vrot.slane %v1950_v34, %v4276_v16 }
 0x1df   :  { %v1965_v40 = vcombine.low %v1957_v37, %v1964_v10 }
 0x1e1   :  { %v2048_v41 = vadd.f32 %v2044_v39, %v1965_v40 }
 0x1e3   :  { %v2050_v42 = vmul.f32 0.2, %v2048_v41 }
 0x1e5   :  { %v2052_v31 = vmax.f32 %v2048_v41, %v2050_v42 }
 0x1e7   :  { %v2079_v43 = vrot.slane %v2052_v31, %v4276_v16  ;;  %v2072_v44 = vcombine.high %v2052_v31, %v2052_v31 }
 0x1e9   :  { %v2087_v45 = vcombine.high %v2079_v43, %v2079_v43  ;;  %v2086_v46 = vrot.slane %v2072_v44, %v4276_v16  ;;  %v2101_v50 = vpack.c.bf16 %v2079_v43, %v2079_v43 }
 0x1eb   :  { %v2102_v48 = vpack.c.bf16 %v2087_v45, %v2087_v45  ;;  %v2088_v49 = vcombine.high %v2086_v46, %v2086_v46  ;;  %v2103_v52 = vpack.c.bf16 %v2086_v46, %v2086_v46 }
 0x1ed   :  { %2736 = vmatprep.mubr.bf16.mxu0 %v2102_v48  ;;  %v2104_v51 = vpack.c.bf16 %v2088_v49, %v2088_v49 }
 0x1ee   :  { %2737 = vmatmul.mubr.bf16.vlgmr.msra.gmra.mrb[12].mxu0 %v2101_v50 }
 0x1ef   :  { %2776 = vmatprep.mubr.bf16.mxu1 %v2104_v51 }
 0x1f0   :  { %2777 = vmatmul.mubr.bf16.vlgmr.msra.gmra.mrb[12].mxu1 %v2103_v52 }
 0x241   :  { %v3137_v53 = vpop.f32.mrb[8].mxu0 }
 0x242   :  { %v3138_v21 = vpop.f32.mrb[9].mxu0 }
 0x243   :  { %v3139_v3 = vadd.f32 %v3138_v21, %v3137_v53  ;;  %v3140_v55 = vpop.f32.mrb[10].mxu0  ;;  %v3159_v57 = vpop.f32.mrb[8].mxu1 }
 0x244   :  { %v3141_v58 = vpop.f32.mrb[11].mxu0  ;;  %v3160_v16 = vpop.f32.mrb[9].mxu1 }
 0x245   :  { %v2659_v60 = vadd.f32 %v3139_v3, %v3056_v54  ;;  %v3161_v61 = vadd.f32 %v3160_v16, %v3159_v57  ;;  %v3162_v62 = vpop.f32.mrb[10].mxu1 }
 0x246   :  { %v3163_v30 = vpop.f32.mrb[11].mxu1 }
 0x247   :  { %v2699_v63 = vadd.f32 %v3161_v61, %v2659_v60 }
 0x2c1   :  { %v3181_v0 = vpop.f32.mrb[12].mxu0 }
 0x2c2   :  { %v3182_v1 = vpop.f32.mrb[13].mxu0 }
 0x2c3   :  { %v3183_v2 = vadd.f32 %v3182_v1, %v3181_v0  ;;  %v3184_v4 = vpop.f32.mrb[14].mxu0  ;;  %v3203_v5 = vpop.f32.mrb[12].mxu1 }
 0x2c4   :  { %v3185_v6 = vpop.f32.mrb[15].mxu0  ;;  %v3204_v7 = vpop.f32.mrb[13].mxu1 }
 0x2c5   :  { %v2739_v8 = vadd.f32 %v3183_v2, %v2699_v63  ;;  %v3205_v9 = vadd.f32 %v3204_v7, %v3203_v5  ;;  %v3206_v11 = vpop.f32.mrb[14].mxu1 }
 0x2c6   :  { %v3207_v12 = vpop.f32.mrb[15].mxu1 }
 0x2c7   :  { %v2779_v13 = vadd.f32 %v3205_v9, %v2739_v8 }
 0x2c9   :  { %2784 = vst [vmem:[#allocation3] sm:$0x3] %v2779_v13 }
 0x2ca   :  { %3303 = shalt.err (!%p3300_p4)
}
 0x2cb   :  { %s3304_s11 = scalar_lea.hbm %s4408_s5, 32 }
 0x2cc   :  { %p3305_p5 = scmp.ne.s32.totalorder %s4408_s5, %s3304_s11  ;;  %p3308_p6 = scmp.lt.u32.totalorder %s3304_s11, %s4408_s5 }
 0x2ce   :  { %p3310_p7 = pnand %p3308_p6, %p3305_p5 }
 0x2d0   :  { %3313 = shalt.err (!%p3310_p7)
}
 0x2d1   :  { %2794 = dma.vmem_to_hbm [thread:$0]  %s2792_s4, 32, %s4408_s5, [#allocation4]  }
 0x2d2   :  { %3314 = dma.done.wait [#allocation4], 32  }
 0x2d3   :  { %3315 = vsyncadd [#allocation4], 4294967264 }
 0x2d4   :  { %2798 = vsyncpa [#allocation4], 1 }

</bundles_post_ra>
